<compile_context>
chip_gen: v5e
topology: v5e:2x2
jax: 0.10.0
libtpu: 0.0.40
codegen_flags: <defaults>
</compile_context>

<pallas_src>
import functools

import jax
import jax.numpy as jnp
from jax.experimental import pallas as pl
from jax.experimental.pallas import tpu as pltpu


_VMEM_LIMIT = 48 * 1024 * 1024          # < v7x 64 MiB/TC, leaves Mosaic headroom
_CONV_TM = 512                          # conv output rows per grid program (512-2048 ok)
_CONV_CHANNELS = [(2, 64), (64, 64), (64, 64), (64, 64),
                  (64, 128), (128, 128), (128, 128), (128, 128)]
_POOL_AFTER = {1, 3, 5}                 # maxpool after these conv indices (0-based)
_BN_EPS = 1e-5
_NPAD = 128                             # lane-dense carried channel width


def _round_up(x, m):
    return ((x + m - 1) // m) * m


# ---------------------------------------------------------------------------
# Pallas kernel 1: fused conv3x3 + (folded BN) + bias + ReLU, M-tiled w/ halo
#   x_ref    : [tm, Cp]            bf16  this tile's rows of the flat padded grid
#   halo_ref : [1, halo_pad, Cp]   bf16  the next halo_pad rows (gathered)
#   w_ref    : [3, 3*Cp, 128]      bf16  kw-fused per-kh weights (BN folded in)
#   s_ref    : [1, 128]            f32   per-channel shift (beta - mean*scale + b*scale)
#   o_ref    : [tm, 128]           bf16  this tile's output rows
#   xbuf_ref : [tm+halo_pad, Cp]   bf16  scratch: contiguous halo'd window
#   acc_ref  : [tm, 128]           f32   scratch: MXU accumulator
# Tap (kh, kw) of output row r is xbuf row r + kh*Wp + kw; the 3 kw slices per
# kh are lane-concatenated into one K=3*Cp operand (3 matmuls total).
# ---------------------------------------------------------------------------
def _conv_kernel(x_ref, halo_ref, w_ref, s_ref, o_ref, xbuf_ref, acc_ref, *,
                 wp, tm):
    # Assemble the contiguous halo'd window for this M tile in VMEM.
    xbuf_ref[0:tm, :] = x_ref[...]
    xbuf_ref[tm:, :] = halo_ref[0]
    # 3 kw-fused taps per kh (K = 3*Cp), f32 accumulation in VMEM scratch.
    for kh in range(3):
        seg = jnp.concatenate(
            [xbuf_ref[pl.ds(kh * wp + kw, tm), :] for kw in range(3)], axis=1)
        prod = jnp.dot(seg, w_ref[kh], preferred_element_type=jnp.float32)
        if kh == 0:
            acc_ref[...] = prod
        else:
            acc_ref[...] += prod
    o_ref[...] = jnp.maximum(acc_ref[...] + s_ref[...], 0.0).astype(o_ref.dtype)


def conv3x3_bn_relu(x_nhwc, w_fused, shift):
    """x:[B,H,W,128] bf16 -> ReLU(BN(conv3x3(x))) : [B,H,W,128] bf16 (128 carried)."""
    B, H, W, C = x_nhwc.shape
    Hp, Wp = H + 2, W + 2
    Cp = w_fused.shape[1] // 3
    assert C == Cp, (C, Cp)

    xp = jnp.pad(x_nhwc.astype(jnp.bfloat16), ((0, 0), (1, 1), (1, 1), (0, 0)))
    m_out = B * Hp * Wp                       # output rows in padded-grid layout
    halo = 2 * Wp + 2                         # largest tap offset
    halo_pad = _round_up(halo, 8)
    tm = min(_CONV_TM, _round_up(m_out, 8))
    grid_m = pl.cdiv(m_out, tm)
    m_total = grid_m * tm

    x_flat = xp.reshape(m_out, Cp)
    x_ext = jnp.pad(x_flat, ((0, m_total + halo_pad - m_out), (0, 0)))
    x_main = x_ext[:m_total]
    # Small gathered side-array with each tile's halo rows (tile i needs rows
    # [(i+1)*tm, (i+1)*tm + halo_pad) in addition to its own tm rows).
    halo_idx = (jnp.arange(grid_m)[:, None] + 1) * tm + jnp.arange(halo_pad)[None, :]
    x_halo = jnp.take(x_ext, halo_idx, axis=0)          # [grid_m, halo_pad, Cp]

    kernel = functools.partial(_conv_kernel, wp=Wp, tm=tm)
    flops = 2 * m_total * (9 * Cp) * _NPAD
    bytes_acc = (x_main.size + x_halo.size + w_fused.size) * 2 \
        + shift.size * 4 + m_total * _NPAD * 2

    out = pl.pallas_call(
        kernel,
        out_shape=jax.ShapeDtypeStruct((m_total, _NPAD), jnp.bfloat16),
        grid=(grid_m,),
        in_specs=[
            pl.BlockSpec((tm, Cp), lambda i: (i, 0)),
            pl.BlockSpec((1, halo_pad, Cp), lambda i: (i, 0, 0)),
            pl.BlockSpec((3, 3 * Cp, _NPAD), lambda i: (0, 0, 0)),
            pl.BlockSpec((1, _NPAD), lambda i: (0, 0)),
        ],
        out_specs=pl.BlockSpec((tm, _NPAD), lambda i: (i, 0)),
        scratch_shapes=[pltpu.VMEM((tm + halo_pad, Cp), jnp.bfloat16),
                        pltpu.VMEM((tm, _NPAD), jnp.float32)],
        compiler_params=pltpu.CompilerParams(
            dimension_semantics=("parallel",),        # megacore shards M on v7x
            vmem_limit_bytes=_VMEM_LIMIT),
        cost_estimate=pl.CostEstimate(
            flops=flops, transcendentals=0, bytes_accessed=bytes_acc),
    )(x_main, x_halo, w_fused, shift)

    # rows at padded-grid positions (h>=H or w>=W) are garbage; slice them off.
    out = out[:m_out].reshape(B, Hp, Wp, _NPAD)[:, :H, :W, :]
    return out


# ---------------------------------------------------------------------------
# Pallas kernel 2: fused FC  out = act(X @ W + b), K-tiled with f32 accumulator
# (also used for conv1 after a wrapper-side im2col).
# ---------------------------------------------------------------------------
def _fc_kernel(x_ref, w_ref, b_ref, o_ref, acc_ref, *, relu, nk):
    @pl.when(pl.program_id(2) == 0)
    def _():
        acc_ref[...] = jnp.zeros_like(acc_ref)

    acc_ref[...] += jnp.dot(x_ref[...], w_ref[...],
                            preferred_element_type=jnp.float32)

    @pl.when(pl.program_id(2) == nk - 1)
    def _():
        y = acc_ref[...] + b_ref[...]
        if relu:
            y = jnp.maximum(y, 0.0)
        o_ref[...] = y.astype(o_ref.dtype)


def fc_matmul(x, w_pad, bias_pad, *, relu, out_dtype):
    """x:[M,K] @ w_pad:[Kp,Npad] (bf16, pre-padded) + bias_pad:[1,Npad] (f32)."""
    M, K = x.shape
    Kp, Npad = w_pad.shape
    assert Kp % 128 == 0 and Npad % 128 == 0

    Mp = max(8, _round_up(M, 8))
    if Mp >= 512:
        tm = 512
    elif Mp >= 128:
        tm = 128
    else:
        tm = Mp
    Mp = _round_up(Mp, tm)
    tn = next((t for t in (512, 256) if Npad % t == 0), 128)
    tk_cands = (512, 256, 128) if tm >= 512 else (2048, 1024, 512, 256, 128)
    tk = next((t for t in tk_cands if Kp % t == 0), 128)
    nk = Kp // tk

    x_p = jnp.pad(x.astype(jnp.bfloat16), ((0, Mp - M), (0, Kp - K)))
    kernel = functools.partial(_fc_kernel, relu=relu, nk=nk)

    out = pl.pallas_call(
        kernel,
        out_shape=jax.ShapeDtypeStruct((Mp, Npad), out_dtype),
        grid=(Mp // tm, Npad // tn, nk),
        in_specs=[
            pl.BlockSpec((tm, tk), lambda i, j, k: (i, k)),
            pl.BlockSpec((tk, tn), lambda i, j, k: (k, j)),
            pl.BlockSpec((1, tn), lambda i, j, k: (0, j)),
        ],
        out_specs=pl.BlockSpec((tm, tn), lambda i, j, k: (i, j)),
        scratch_shapes=[pltpu.VMEM((tm, tn), jnp.float32)],
        compiler_params=pltpu.CompilerParams(
            dimension_semantics=("parallel", "parallel", "arbitrary"),
            vmem_limit_bytes=_VMEM_LIMIT),
        cost_estimate=pl.CostEstimate(
            flops=2 * Mp * Kp * Npad,
            transcendentals=0,
            bytes_accessed=Mp * Kp * 2 + Kp * Npad * 2
            + Mp * Npad * jnp.dtype(out_dtype).itemsize),
    )(x_p, w_pad, bias_pad)
    # TODO(synk): consider pipeline_mode=pl.Buffered(3) on the weight spec to
    # deepen weight prefetch for the tiny-M FC1 case.
    return out[:M]


# ---------------------------------------------------------------------------
# Conv1: wrapper-side im2col (Cin=2 -> K=18, padded to 128) + single matmul.
# ---------------------------------------------------------------------------
def conv1_im2col(x_nhwc, w_mat, shift):
    B, H, W, C = x_nhwc.shape
    Kp = w_mat.shape[0]
    xp = jnp.pad(x_nhwc.astype(jnp.bfloat16), ((0, 0), (1, 1), (1, 1), (0, 0)))
    patches = jnp.concatenate(
        [xp[:, kh:kh + H, kw:kw + W, :] for kh in range(3) for kw in range(3)],
        axis=-1)                                          # [B,H,W,9*C]
    patches = patches.reshape(B * H * W, 9 * C)
    patches = jnp.pad(patches, ((0, 0), (0, Kp - 9 * C)))
    out = fc_matmul(patches, w_mat, shift, relu=True, out_dtype=jnp.bfloat16)
    return out.reshape(B, H, W, _NPAD)


# ---------------------------------------------------------------------------
# Glue: maxpool (cheap, stays in plain JAX inside the jit)
# ---------------------------------------------------------------------------
def maxpool2x2(x_nhwc):
    B, H, W, C = x_nhwc.shape
    return x_nhwc.reshape(B, H // 2, 2, W // 2, 2, C).max(axis=(2, 4))


# ---------------------------------------------------------------------------
# Parameter init (deterministic, synthetic). All weights pre-padded / pre-cast
# to their final kernel layout so the per-call path has no reshapes or casts.
# ---------------------------------------------------------------------------
def init_params(key, patch_size):
    convs = []
    keys = jax.random.split(key, len(_CONV_CHANNELS) * 2 + 4)
    ki = 0
    for idx, (cin, cout) in enumerate(_CONV_CHANNELS):
        # PyTorch conv weight layout [Cout, Cin, 3, 3]
        w = jax.random.normal(keys[ki], (cout, cin, 3, 3), jnp.float32)
        w = w * (1.0 / jnp.sqrt(9.0 * cin))
        ki += 1
        b = jax.random.normal(keys[ki], (cout,), jnp.float32) * 0.01
        ki += 1
        # BatchNorm (eval): gamma=1, beta=0, running_mean=0, running_var=1
        gamma = jnp.ones((cout,), jnp.float32)
        beta = jnp.zeros((cout,), jnp.float32)
        r_mean = jnp.zeros((cout,), jnp.float32)
        r_var = jnp.ones((cout,), jnp.float32)
        scale = gamma / jnp.sqrt(r_var + _BN_EPS)
        shift = beta - r_mean * scale + b * scale          # conv bias folded into BN
        w_folded = w * scale[:, None, None, None]          # fold BN scale into W
        shift_p = jnp.pad(shift, (0, _NPAD - cout)).reshape(1, _NPAD)
        shift_p = shift_p.astype(jnp.float32)

        if idx == 0:
            # im2col matmul weight: rows ordered (kh, kw, cin), padded to 128.
            w_mat = jnp.transpose(w_folded, (2, 3, 1, 0)).reshape(9 * cin, cout)
            w_mat = jnp.pad(w_mat, ((0, 128 - 9 * cin), (0, _NPAD - cout)))
            convs.append((w_mat.astype(jnp.bfloat16), shift_p))
        else:
            # kw-fused layout [3, 3*Cp, 128]; Cin padded to the carried width
            # (128) so no channel slice/re-pad is needed between conv layers.
            cp = _NPAD
            w_t = jnp.transpose(w_folded, (2, 3, 1, 0))                # (kh,kw,cin,cout)
            w_t = jnp.pad(w_t, ((0, 0), (0, 0), (0, cp - cin), (0, _NPAD - cout)))
            w_fused = w_t.reshape(3, 3 * cp, _NPAD).astype(jnp.bfloat16)
            convs.append((w_fused, shift_p))

    fc1_in = 128 * (patch_size // 8) * (patch_size // 8)
    k1p = _round_up(fc1_in, 128)
    w1 = jax.random.normal(keys[ki], (fc1_in, 1024), jnp.float32) / jnp.sqrt(fc1_in)
    ki += 1
    b1 = jax.random.normal(keys[ki], (1024,), jnp.float32) * 0.01
    ki += 1
    w2 = jax.random.normal(keys[ki], (1024, 8), jnp.float32) / jnp.sqrt(1024.0)
    ki += 1
    b2 = jax.random.normal(keys[ki], (8,), jnp.float32) * 0.01

    w1p = jnp.pad(w1, ((0, k1p - fc1_in), (0, 0))).astype(jnp.bfloat16)
    b1p = b1.reshape(1, 1024).astype(jnp.float32)
    n2p = 128                                              # lane-dense FC2 output
    w2p = jnp.pad(w2, ((0, 0), (0, n2p - 8))).astype(jnp.bfloat16)
    b2p = jnp.pad(b2, (0, n2p - 8)).reshape(1, n2p).astype(jnp.float32)

    return {"convs": convs, "fc": ((w1p, b1p), (w2p, b2p))}


# ---------------------------------------------------------------------------
# Forward pass: HomographyModel.forward(a, b) == Net(patch_size)(a, b)
# ---------------------------------------------------------------------------
@jax.jit
def homography_forward(params, a, b):
    # a, b: NCHW [B,1,P,P] grayscale patches
    x = jnp.concatenate([a, b], axis=1)                    # [B,2,P,P]
    x = jnp.transpose(x, (0, 2, 3, 1)).astype(jnp.bfloat16)  # NHWC [B,P,P,2]

    convs = params["convs"]
    x = conv1_im2col(x, convs[0][0], convs[0][1])          # [B,P,P,128]
    for idx in range(1, len(convs)):
        x = conv3x3_bn_relu(x, convs[idx][0], convs[idx][1])
        if idx in _POOL_AFTER:
            x = maxpool2x2(x)

    B = x.shape[0]
    # flatten in PyTorch NCHW order to match x.view(B, -1); last conv's real
    # cout == carried width (128), so no channel slice is needed.
    flat = jnp.transpose(x, (0, 3, 1, 2)).reshape(B, -1)

    (w1, b1), (w2, b2) = params["fc"]
    h = fc_matmul(flat, w1, b1, relu=True, out_dtype=jnp.bfloat16)  # Dropout = identity (eval)
    out = fc_matmul(h, w2, b2, relu=False, out_dtype=jnp.float32)
    return out[:, :8]                                      # [B, 8] corner offsets


if __name__ == "__main__":
    B, P = 2, 16                                           # patch_size = 16
    key = jax.random.PRNGKey(0)
    k_param, k_a, k_b = jax.random.split(key, 3)

    params = init_params(k_param, P)
    a = jax.random.normal(k_a, (B, 1, P, P), jnp.float32)
    b = jax.random.normal(k_b, (B, 1, P, P), jnp.float32)

    out = homography_forward(params, a, b)
    out = jax.block_until_ready(out)
    assert out.shape == (B, 8) and out.dtype == jnp.float32
    print("KERNEL_OK")
</pallas_src>

<mosaic_0001>
module attributes {stable_mosaic.version = 11 : i64} {
  func.func @_fc_kernel(%arg0: i32, %arg1: i32, %arg2: i32, %arg3: memref<512x128xbf16, #tpu.memory_space<vmem>>, %arg4: memref<128x128xbf16, #tpu.memory_space<vmem>>, %arg5: memref<1x128xf32, #tpu.memory_space<vmem>>, %arg6: memref<512x128xbf16, #tpu.memory_space<vmem>>, %arg7: memref<512x128xf32, #tpu.memory_space<vmem>>) attributes {dimension_semantics = [#tpu.dimension_semantics<parallel>, #tpu.dimension_semantics<parallel>, #tpu.dimension_semantics<arbitrary>], iteration_bounds = array<i64: 1, 1, 1>, scalar_prefetch = 0 : i64, scratch_operands = 1 : i64, tpu.core_type = #tpu.core_type<tc>, window_params = [{transform_indices = @transform_0, window_bounds = array<i64: 512, 128>}, {transform_indices = @transform_1, window_bounds = array<i64: 128, 128>}, {transform_indices = @transform_2, window_bounds = array<i64: 1, 128>}, {transform_indices = @transform_3, window_bounds = array<i64: 512, 128>}]} {
    %c0_i32 = arith.constant 0 : i32
    %0 = arith.cmpi eq, %arg2, %c0_i32 : i32
    %1 = arith.extui %0 : i1 to i32
    %c0_i32_0 = arith.constant 0 : i32
    %2 = arith.cmpi ne, %1, %c0_i32_0 : i32
    scf.if %2 {
      %cst_10 = arith.constant 0.000000e+00 : f32
      %12 = vector.broadcast %cst_10 : f32 to vector<512x128xf32>
      %c0_11 = arith.constant 0 : index
      %c0_12 = arith.constant 0 : index
      %13 = vector.load %arg7[%c0_11, %c0_12] : memref<512x128xf32, #tpu.memory_space<vmem>>, vector<512x128xf32>
      tpu.vector_store %arg7[%c0_11, %c0_12], %12 {strides = array<i32>} : memref<512x128xf32, #tpu.memory_space<vmem>>, vector<512x128xf32>,
    } else {
    }
    %c0 = arith.constant 0 : index
    %c0_1 = arith.constant 0 : index
    %3 = vector.load %arg7[%c0, %c0_1] : memref<512x128xf32, #tpu.memory_space<vmem>>, vector<512x128xf32>
    %c0_2 = arith.constant 0 : index
    %c0_3 = arith.constant 0 : index
    %4 = vector.load %arg3[%c0_2, %c0_3] : memref<512x128xbf16, #tpu.memory_space<vmem>>, vector<512x128xbf16>
    %c0_4 = arith.constant 0 : index
    %c0_5 = arith.constant 0 : index
    %5 = vector.load %arg4[%c0_4, %c0_5] : memref<128x128xbf16, #tpu.memory_space<vmem>>, vector<128x128xbf16>
    %cst = arith.constant dense<0.000000e+00> : vector<512x128xf32>
    %6 = tpu.matmul %4, %5, %cst {dimension_numbers = #tpu.dot_dimension_numbers<[1], [0], [0], [1], [0, 0, 1, 1], [], []>} : vector<512x128xbf16>, vector<128x128xbf16>, vector<512x128xf32> -> vector<512x128xf32>
    %7 = arith.addf %3, %6 : vector<512x128xf32>
    %c0_6 = arith.constant 0 : index
    %c0_7 = arith.constant 0 : index
    %8 = vector.load %arg7[%c0_6, %c0_7] : memref<512x128xf32, #tpu.memory_space<vmem>>, vector<512x128xf32>
    tpu.vector_store %arg7[%c0_6, %c0_7], %7 {strides = array<i32>} : memref<512x128xf32, #tpu.memory_space<vmem>>, vector<512x128xf32>,
    %c0_i32_8 = arith.constant 0 : i32
    %9 = arith.cmpi eq, %arg2, %c0_i32_8 : i32
    %10 = arith.extui %9 : i1 to i32
    %c0_i32_9 = arith.constant 0 : i32
    %11 = arith.cmpi ne, %10, %c0_i32_9 : i32
    scf.if %11 {
      %c0_10 = arith.constant 0 : index
      %c0_11 = arith.constant 0 : index
      %12 = vector.load %arg7[%c0_10, %c0_11] : memref<512x128xf32, #tpu.memory_space<vmem>>, vector<512x128xf32>
      %c0_12 = arith.constant 0 : index
      %c0_13 = arith.constant 0 : index
      %13 = vector.load %arg5[%c0_12, %c0_13] : memref<1x128xf32, #tpu.memory_space<vmem>>, vector<1x128xf32>
      %14 = vector.broadcast %13 : vector<1x128xf32> to vector<512x128xf32>
      %15 = arith.addf %12, %14 : vector<512x128xf32>
      %cst_14 = arith.constant 0.000000e+00 : f32
      %16 = vector.broadcast %cst_14 : f32 to vector<512x128xf32>
      %17 = arith.maximumf %15, %16 : vector<512x128xf32>
      %18 = arith.truncf %17 : vector<512x128xf32> to vector<512x128xbf16>
      %c0_15 = arith.constant 0 : index
      %c0_16 = arith.constant 0 : index
      %19 = vector.load %arg6[%c0_15, %c0_16] : memref<512x128xbf16, #tpu.memory_space<vmem>>, vector<512x128xbf16>
      tpu.vector_store %arg6[%c0_15, %c0_16], %18 {strides = array<i32>} : memref<512x128xbf16, #tpu.memory_space<vmem>>, vector<512x128xbf16>,
    } else {
    }
    return
  }
  func.func @transform_0(%arg0: i32, %arg1: i32, %arg2: i32) -> (i32, i32) {
    %c0_i32 = arith.constant 0 : i32
    return %arg0, %arg2 : i32, i32
  }
  func.func @transform_1(%arg0: i32, %arg1: i32, %arg2: i32) -> (i32, i32) {
    %c0_i32 = arith.constant 0 : i32
    return %arg2, %arg1 : i32, i32
  }
  func.func @transform_2(%arg0: i32, %arg1: i32, %arg2: i32) -> (i32, i32) {
    %c0_i32 = arith.constant 0 : i32
    %c0_i32_0 = arith.constant 0 : i32
    return %c0_i32, %arg1 : i32, i32
  }
  func.func @transform_3(%arg0: i32, %arg1: i32, %arg2: i32) -> (i32, i32) {
    %c0_i32 = arith.constant 0 : i32
    return %arg0, %arg1 : i32, i32
  }
}

module attributes {stable_mosaic.version = 11 : i64} {
  func.func @_conv_kernel(%arg0: i32, %arg1: memref<512x128xbf16, #tpu.memory_space<vmem>>, %arg2: memref<1x40x128xbf16, #tpu.memory_space<vmem>>, %arg3: memref<3x384x128xbf16, #tpu.memory_space<vmem>>, %arg4: memref<1x128xf32, #tpu.memory_space<vmem>>, %arg5: memref<512x128xbf16, #tpu.memory_space<vmem>>, %arg6: memref<552x128xbf16, #tpu.memory_space<vmem>>, %arg7: memref<512x128xf32, #tpu.memory_space<vmem>>) attributes {dimension_semantics = [#tpu.dimension_semantics<parallel>], iteration_bounds = array<i64: 2>, scalar_prefetch = 0 : i64, scratch_operands = 2 : i64, tpu.core_type = #tpu.core_type<tc>, window_params = [{transform_indices = @transform_0, window_bounds = array<i64: 512, 128>}, {transform_indices = @transform_1, window_bounds = array<i64: 1, 40, 128>}, {pipeline_mode = #tpu.pipeline_mode<synchronous>, transform_indices = @transform_2, window_bounds = array<i64: 3, 384, 128>}, {pipeline_mode = #tpu.pipeline_mode<synchronous>, transform_indices = @transform_3, window_bounds = array<i64: 1, 128>}, {transform_indices = @transform_4, window_bounds = array<i64: 512, 128>}]} {
    %c0 = arith.constant 0 : index
    %c0_0 = arith.constant 0 : index
    %0 = vector.load %arg1[%c0, %c0_0] : memref<512x128xbf16, #tpu.memory_space<vmem>>, vector<512x128xbf16>
    %c0_1 = arith.constant 0 : index
    %c0_2 = arith.constant 0 : index
    %1 = vector.load %arg6[%c0_1, %c0_2] : memref<552x128xbf16, #tpu.memory_space<vmem>>, vector<512x128xbf16>
    tpu.vector_store %arg6[%c0_1, %c0_2], %0 {strides = array<i32>} : memref<552x128xbf16, #tpu.memory_space<vmem>>, vector<512x128xbf16>,
    %c0_3 = arith.constant 0 : index
    %c0_4 = arith.constant 0 : index
    %c0_5 = arith.constant 0 : index
    %2 = vector.load %arg2[%c0_3, %c0_4, %c0_5] : memref<1x40x128xbf16, #tpu.memory_space<vmem>>, vector<1x40x128xbf16>
    %3 = vector.shape_cast %2 : vector<1x40x128xbf16> to vector<40x128xbf16>
    %c512 = arith.constant 512 : index
    %c0_6 = arith.constant 0 : index
    %4 = vector.load %arg6[%c512, %c0_6] : memref<552x128xbf16, #tpu.memory_space<vmem>>, vector<40x128xbf16>
    tpu.vector_store %arg6[%c512, %c0_6], %3 {strides = array<i32>} : memref<552x128xbf16, #tpu.memory_space<vmem>>, vector<40x128xbf16>,
    %c0_7 = arith.constant 0 : index
    %c0_8 = arith.constant 0 : index
    %5 = vector.load %arg6[%c0_7, %c0_8] : memref<552x128xbf16, #tpu.memory_space<vmem>>, vector<512x128xbf16>
    %c1 = arith.constant 1 : index
    %c0_9 = arith.constant 0 : index
    %6 = vector.load %arg6[%c1, %c0_9] : memref<552x128xbf16, #tpu.memory_space<vmem>>, vector<512x128xbf16>
    %c2 = arith.constant 2 : index
    %c0_10 = arith.constant 0 : index
    %7 = vector.load %arg6[%c2, %c0_10] : memref<552x128xbf16, #tpu.memory_space<vmem>>, vector<512x128xbf16>
    %8 = tpu.concatenate %5, %6, %7 in 1 : vector<512x128xbf16>, vector<512x128xbf16>, vector<512x128xbf16> -> vector<512x384xbf16>
    %c0_11 = arith.constant 0 : index
    %c0_12 = arith.constant 0 : index
    %c0_13 = arith.constant 0 : index
    %9 = vector.load %arg3[%c0_11, %c0_12, %c0_13] : memref<3x384x128xbf16, #tpu.memory_space<vmem>>, vector<1x384x128xbf16>
    %10 = vector.shape_cast %9 : vector<1x384x128xbf16> to vector<384x128xbf16>
    %cst = arith.constant dense<0.000000e+00> : vector<512x128xf32>
    %11 = tpu.matmul %8, %10, %cst {dimension_numbers = #tpu.dot_dimension_numbers<[1], [0], [0], [1], [0, 0, 1, 1], [], []>} : vector<512x384xbf16>, vector<384x128xbf16>, vector<512x128xf32> -> vector<512x128xf32>
    %c0_14 = arith.constant 0 : index
    %c0_15 = arith.constant 0 : index
    %12 = vector.load %arg7[%c0_14, %c0_15] : memref<512x128xf32, #tpu.memory_space<vmem>>, vector<512x128xf32>
    tpu.vector_store %arg7[%c0_14, %c0_15], %11 {strides = array<i32>} : memref<512x128xf32, #tpu.memory_space<vmem>>, vector<512x128xf32>,
    %c18 = arith.constant 18 : index
    %c0_16 = arith.constant 0 : index
    %13 = vector.load %arg6[%c18, %c0_16] : memref<552x128xbf16, #tpu.memory_space<vmem>>, vector<512x128xbf16>
    %c19 = arith.constant 19 : index
    %c0_17 = arith.constant 0 : index
    %14 = vector.load %arg6[%c19, %c0_17] : memref<552x128xbf16, #tpu.memory_space<vmem>>, vector<512x128xbf16>
    %c20 = arith.constant 20 : index
    %c0_18 = arith.constant 0 : index
    %15 = vector.load %arg6[%c20, %c0_18] : memref<552x128xbf16, #tpu.memory_space<vmem>>, vector<512x128xbf16>
    %16 = tpu.concatenate %13, %14, %15 in 1 : vector<512x128xbf16>, vector<512x128xbf16>, vector<512x128xbf16> -> vector<512x384xbf16>
    %c1_19 = arith.constant 1 : index
    %c0_20 = arith.constant 0 : index
    %c0_21 = arith.constant 0 : index
    %17 = vector.load %arg3[%c1_19, %c0_20, %c0_21] : memref<3x384x128xbf16, #tpu.memory_space<vmem>>, vector<1x384x128xbf16>
    %18 = vector.shape_cast %17 : vector<1x384x128xbf16> to vector<384x128xbf16>
    %cst_22 = arith.constant dense<0.000000e+00> : vector<512x128xf32>
    %19 = tpu.matmul %16, %18, %cst_22 {dimension_numbers = #tpu.dot_dimension_numbers<[1], [0], [0], [1], [0, 0, 1, 1], [], []>} : vector<512x384xbf16>, vector<384x128xbf16>, vector<512x128xf32> -> vector<512x128xf32>
    %c0_23 = arith.constant 0 : index
    %c0_24 = arith.constant 0 : index
    %20 = vector.load %arg7[%c0_23, %c0_24] : memref<512x128xf32, #tpu.memory_space<vmem>>, vector<512x128xf32>
    %21 = arith.addf %20, %19 : vector<512x128xf32>
    %c0_25 = arith.constant 0 : index
    %c0_26 = arith.constant 0 : index
    %22 = vector.load %arg7[%c0_25, %c0_26] : memref<512x128xf32, #tpu.memory_space<vmem>>, vector<512x128xf32>
    tpu.vector_store %arg7[%c0_25, %c0_26], %21 {strides = array<i32>} : memref<512x128xf32, #tpu.memory_space<vmem>>, vector<512x128xf32>,
    %c36 = arith.constant 36 : index
    %c0_27 = arith.constant 0 : index
    %23 = vector.load %arg6[%c36, %c0_27] : memref<552x128xbf16, #tpu.memory_space<vmem>>, vector<512x128xbf16>
    %c37 = arith.constant 37 : index
    %c0_28 = arith.constant 0 : index
    %24 = vector.load %arg6[%c37, %c0_28] : memref<552x128xbf16, #tpu.memory_space<vmem>>, vector<512x128xbf16>
    %c38 = arith.constant 38 : index
    %c0_29 = arith.constant 0 : index
    %25 = vector.load %arg6[%c38, %c0_29] : memref<552x128xbf16, #tpu.memory_space<vmem>>, vector<512x128xbf16>
    %26 = tpu.concatenate %23, %24, %25 in 1 : vector<512x128xbf16>, vector<512x128xbf16>, vector<512x128xbf16> -> vector<512x384xbf16>
    %c2_30 = arith.constant 2 : index
    %c0_31 = arith.constant 0 : index
    %c0_32 = arith.constant 0 : index
    %27 = vector.load %arg3[%c2_30, %c0_31, %c0_32] : memref<3x384x128xbf16, #tpu.memory_space<vmem>>, vector<1x384x128xbf16>
    %28 = vector.shape_cast %27 : vector<1x384x128xbf16> to vector<384x128xbf16>
    %cst_33 = arith.constant dense<0.000000e+00> : vector<512x128xf32>
    %29 = tpu.matmul %26, %28, %cst_33 {dimension_numbers = #tpu.dot_dimension_numbers<[1], [0], [0], [1], [0, 0, 1, 1], [], []>} : vector<512x384xbf16>, vector<384x128xbf16>, vector<512x128xf32> -> vector<512x128xf32>
    %c0_34 = arith.constant 0 : index
    %c0_35 = arith.constant 0 : index
    %30 = vector.load %arg7[%c0_34, %c0_35] : memref<512x128xf32, #tpu.memory_space<vmem>>, vector<512x128xf32>
    %31 = arith.addf %30, %29 : vector<512x128xf32>
    %c0_36 = arith.constant 0 : index
    %c0_37 = arith.constant 0 : index
    %32 = vector.load %arg7[%c0_36, %c0_37] : memref<512x128xf32, #tpu.memory_space<vmem>>, vector<512x128xf32>
    tpu.vector_store %arg7[%c0_36, %c0_37], %31 {strides = array<i32>} : memref<512x128xf32, #tpu.memory_space<vmem>>, vector<512x128xf32>,
    %c0_38 = arith.constant 0 : index
    %c0_39 = arith.constant 0 : index
    %33 = vector.load %arg7[%c0_38, %c0_39] : memref<512x128xf32, #tpu.memory_space<vmem>>, vector<512x128xf32>
    %c0_40 = arith.constant 0 : index
    %c0_41 = arith.constant 0 : index
    %34 = vector.load %arg4[%c0_40, %c0_41] : memref<1x128xf32, #tpu.memory_space<vmem>>, vector<1x128xf32>
    %35 = vector.broadcast %34 : vector<1x128xf32> to vector<512x128xf32>
    %36 = arith.addf %33, %35 : vector<512x128xf32>
    %cst_42 = arith.constant 0.000000e+00 : f32
    %37 = vector.broadcast %cst_42 : f32 to vector<512x128xf32>
    %38 = arith.maximumf %36, %37 : vector<512x128xf32>
    %39 = arith.truncf %38 : vector<512x128xf32> to vector<512x128xbf16>
    %c0_43 = arith.constant 0 : index
    %c0_44 = arith.constant 0 : index
    %40 = vector.load %arg5[%c0_43, %c0_44] : memref<512x128xbf16, #tpu.memory_space<vmem>>, vector<512x128xbf16>
    tpu.vector_store %arg5[%c0_43, %c0_44], %39 {strides = array<i32>} : memref<512x128xbf16, #tpu.memory_space<vmem>>, vector<512x128xbf16>,
    return
  }
  func.func @transform_0(%arg0: i32) -> (i32, i32) {
    %c0_i32 = arith.constant 0 : i32
    %c0_i32_0 = arith.constant 0 : i32
    return %arg0, %c0_i32 : i32, i32
  }
  func.func @transform_1(%arg0: i32) -> (i32, i32, i32) {
    %c0_i32 = arith.constant 0 : i32
    %c0_i32_0 = arith.constant 0 : i32
    %c0_i32_1 = arith.constant 0 : i32
    return %arg0, %c0_i32, %c0_i32_0 : i32, i32, i32
  }
  func.func @transform_2(%arg0: i32) -> (i32, i32, i32) {
    %c0_i32 = arith.constant 0 : i32
    %c0_i32_0 = arith.constant 0 : i32
    %c0_i32_1 = arith.constant 0 : i32
    %c0_i32_2 = arith.constant 0 : i32
    return %c0_i32, %c0_i32_0, %c0_i32_1 : i32, i32, i32
  }
  func.func @transform_3(%arg0: i32) -> (i32, i32) {
    %c0_i32 = arith.constant 0 : i32
    %c0_i32_0 = arith.constant 0 : i32
    %c0_i32_1 = arith.constant 0 : i32
    return %c0_i32, %c0_i32_0 : i32, i32
  }
  func.func @transform_4(%arg0: i32) -> (i32, i32) {
    %c0_i32 = arith.constant 0 : i32
    %c0_i32_0 = arith.constant 0 : i32
    return %arg0, %c0_i32 : i32, i32
  }
}

module attributes {stable_mosaic.version = 11 : i64} {
  func.func @_conv_kernel(%arg0: i32, %arg1: memref<200x128xbf16, #tpu.memory_space<vmem>>, %arg2: memref<1x24x128xbf16, #tpu.memory_space<vmem>>, %arg3: memref<3x384x128xbf16, #tpu.memory_space<vmem>>, %arg4: memref<1x128xf32, #tpu.memory_space<vmem>>, %arg5: memref<200x128xbf16, #tpu.memory_space<vmem>>, %arg6: memref<224x128xbf16, #tpu.memory_space<vmem>>, %arg7: memref<200x128xf32, #tpu.memory_space<vmem>>) attributes {dimension_semantics = [#tpu.dimension_semantics<parallel>], iteration_bounds = array<i64: 1>, scalar_prefetch = 0 : i64, scratch_operands = 2 : i64, tpu.core_type = #tpu.core_type<tc>, window_params = [{transform_indices = @transform_0, window_bounds = array<i64: 200, 128>}, {transform_indices = @transform_1, window_bounds = array<i64: 1, 24, 128>}, {pipeline_mode = #tpu.pipeline_mode<synchronous>, transform_indices = @transform_2, window_bounds = array<i64: 3, 384, 128>}, {pipeline_mode = #tpu.pipeline_mode<synchronous>, transform_indices = @transform_3, window_bounds = array<i64: 1, 128>}, {transform_indices = @transform_4, window_bounds = array<i64: 200, 128>}]} {
    %c0 = arith.constant 0 : index
    %c0_0 = arith.constant 0 : index
    %0 = vector.load %arg1[%c0, %c0_0] : memref<200x128xbf16, #tpu.memory_space<vmem>>, vector<200x128xbf16>
    %c0_1 = arith.constant 0 : index
    %c0_2 = arith.constant 0 : index
    %1 = vector.load %arg6[%c0_1, %c0_2] : memref<224x128xbf16, #tpu.memory_space<vmem>>, vector<200x128xbf16>
    tpu.vector_store %arg6[%c0_1, %c0_2], %0 {strides = array<i32>} : memref<224x128xbf16, #tpu.memory_space<vmem>>, vector<200x128xbf16>,
    %c0_3 = arith.constant 0 : index
    %c0_4 = arith.constant 0 : index
    %c0_5 = arith.constant 0 : index
    %2 = vector.load %arg2[%c0_3, %c0_4, %c0_5] : memref<1x24x128xbf16, #tpu.memory_space<vmem>>, vector<1x24x128xbf16>
    %3 = vector.shape_cast %2 : vector<1x24x128xbf16> to vector<24x128xbf16>
    %c200 = arith.constant 200 : index
    %c0_6 = arith.constant 0 : index
    %4 = vector.load %arg6[%c200, %c0_6] : memref<224x128xbf16, #tpu.memory_space<vmem>>, vector<24x128xbf16>
    tpu.vector_store %arg6[%c200, %c0_6], %3 {strides = array<i32>} : memref<224x128xbf16, #tpu.memory_space<vmem>>, vector<24x128xbf16>,
    %c0_7 = arith.constant 0 : index
    %c0_8 = arith.constant 0 : index
    %5 = vector.load %arg6[%c0_7, %c0_8] : memref<224x128xbf16, #tpu.memory_space<vmem>>, vector<200x128xbf16>
    %c1 = arith.constant 1 : index
    %c0_9 = arith.constant 0 : index
    %6 = vector.load %arg6[%c1, %c0_9] : memref<224x128xbf16, #tpu.memory_space<vmem>>, vector<200x128xbf16>
    %c2 = arith.constant 2 : index
    %c0_10 = arith.constant 0 : index
    %7 = vector.load %arg6[%c2, %c0_10] : memref<224x128xbf16, #tpu.memory_space<vmem>>, vector<200x128xbf16>
    %8 = tpu.concatenate %5, %6, %7 in 1 : vector<200x128xbf16>, vector<200x128xbf16>, vector<200x128xbf16> -> vector<200x384xbf16>
    %c0_11 = arith.constant 0 : index
    %c0_12 = arith.constant 0 : index
    %c0_13 = arith.constant 0 : index
    %9 = vector.load %arg3[%c0_11, %c0_12, %c0_13] : memref<3x384x128xbf16, #tpu.memory_space<vmem>>, vector<1x384x128xbf16>
    %10 = vector.shape_cast %9 : vector<1x384x128xbf16> to vector<384x128xbf16>
    %cst = arith.constant dense<0.000000e+00> : vector<200x128xf32>
    %11 = tpu.matmul %8, %10, %cst {dimension_numbers = #tpu.dot_dimension_numbers<[1], [0], [0], [1], [0, 0, 1, 1], [], []>} : vector<200x384xbf16>, vector<384x128xbf16>, vector<200x128xf32> -> vector<200x128xf32>
    %c0_14 = arith.constant 0 : index
    %c0_15 = arith.constant 0 : index
    %12 = vector.load %arg7[%c0_14, %c0_15] : memref<200x128xf32, #tpu.memory_space<vmem>>, vector<200x128xf32>
    tpu.vector_store %arg7[%c0_14, %c0_15], %11 {strides = array<i32>} : memref<200x128xf32, #tpu.memory_space<vmem>>, vector<200x128xf32>,
    %c10 = arith.constant 10 : index
    %c0_16 = arith.constant 0 : index
    %13 = vector.load %arg6[%c10, %c0_16] : memref<224x128xbf16, #tpu.memory_space<vmem>>, vector<200x128xbf16>
    %c11 = arith.constant 11 : index
    %c0_17 = arith.constant 0 : index
    %14 = vector.load %arg6[%c11, %c0_17] : memref<224x128xbf16, #tpu.memory_space<vmem>>, vector<200x128xbf16>
    %c12 = arith.constant 12 : index
    %c0_18 = arith.constant 0 : index
    %15 = vector.load %arg6[%c12, %c0_18] : memref<224x128xbf16, #tpu.memory_space<vmem>>, vector<200x128xbf16>
    %16 = tpu.concatenate %13, %14, %15 in 1 : vector<200x128xbf16>, vector<200x128xbf16>, vector<200x128xbf16> -> vector<200x384xbf16>
    %c1_19 = arith.constant 1 : index
    %c0_20 = arith.constant 0 : index
    %c0_21 = arith.constant 0 : index
    %17 = vector.load %arg3[%c1_19, %c0_20, %c0_21] : memref<3x384x128xbf16, #tpu.memory_space<vmem>>, vector<1x384x128xbf16>
    %18 = vector.shape_cast %17 : vector<1x384x128xbf16> to vector<384x128xbf16>
    %cst_22 = arith.constant dense<0.000000e+00> : vector<200x128xf32>
    %19 = tpu.matmul %16, %18, %cst_22 {dimension_numbers = #tpu.dot_dimension_numbers<[1], [0], [0], [1], [0, 0, 1, 1], [], []>} : vector<200x384xbf16>, vector<384x128xbf16>, vector<200x128xf32> -> vector<200x128xf32>
    %c0_23 = arith.constant 0 : index
    %c0_24 = arith.constant 0 : index
    %20 = vector.load %arg7[%c0_23, %c0_24] : memref<200x128xf32, #tpu.memory_space<vmem>>, vector<200x128xf32>
    %21 = arith.addf %20, %19 : vector<200x128xf32>
    %c0_25 = arith.constant 0 : index
    %c0_26 = arith.constant 0 : index
    %22 = vector.load %arg7[%c0_25, %c0_26] : memref<200x128xf32, #tpu.memory_space<vmem>>, vector<200x128xf32>
    tpu.vector_store %arg7[%c0_25, %c0_26], %21 {strides = array<i32>} : memref<200x128xf32, #tpu.memory_space<vmem>>, vector<200x128xf32>,
    %c20 = arith.constant 20 : index
    %c0_27 = arith.constant 0 : index
    %23 = vector.load %arg6[%c20, %c0_27] : memref<224x128xbf16, #tpu.memory_space<vmem>>, vector<200x128xbf16>
    %c21 = arith.constant 21 : index
    %c0_28 = arith.constant 0 : index
    %24 = vector.load %arg6[%c21, %c0_28] : memref<224x128xbf16, #tpu.memory_space<vmem>>, vector<200x128xbf16>
    %c22 = arith.constant 22 : index
    %c0_29 = arith.constant 0 : index
    %25 = vector.load %arg6[%c22, %c0_29] : memref<224x128xbf16, #tpu.memory_space<vmem>>, vector<200x128xbf16>
    %26 = tpu.concatenate %23, %24, %25 in 1 : vector<200x128xbf16>, vector<200x128xbf16>, vector<200x128xbf16> -> vector<200x384xbf16>
    %c2_30 = arith.constant 2 : index
    %c0_31 = arith.constant 0 : index
    %c0_32 = arith.constant 0 : index
    %27 = vector.load %arg3[%c2_30, %c0_31, %c0_32] : memref<3x384x128xbf16, #tpu.memory_space<vmem>>, vector<1x384x128xbf16>
    %28 = vector.shape_cast %27 : vector<1x384x128xbf16> to vector<384x128xbf16>
    %cst_33 = arith.constant dense<0.000000e+00> : vector<200x128xf32>
    %29 = tpu.matmul %26, %28, %cst_33 {dimension_numbers = #tpu.dot_dimension_numbers<[1], [0], [0], [1], [0, 0, 1, 1], [], []>} : vector<200x384xbf16>, vector<384x128xbf16>, vector<200x128xf32> -> vector<200x128xf32>
    %c0_34 = arith.constant 0 : index
    %c0_35 = arith.constant 0 : index
    %30 = vector.load %arg7[%c0_34, %c0_35] : memref<200x128xf32, #tpu.memory_space<vmem>>, vector<200x128xf32>
    %31 = arith.addf %30, %29 : vector<200x128xf32>
    %c0_36 = arith.constant 0 : index
    %c0_37 = arith.constant 0 : index
    %32 = vector.load %arg7[%c0_36, %c0_37] : memref<200x128xf32, #tpu.memory_space<vmem>>, vector<200x128xf32>
    tpu.vector_store %arg7[%c0_36, %c0_37], %31 {strides = array<i32>} : memref<200x128xf32, #tpu.memory_space<vmem>>, vector<200x128xf32>,
    %c0_38 = arith.constant 0 : index
    %c0_39 = arith.constant 0 : index
    %33 = vector.load %arg7[%c0_38, %c0_39] : memref<200x128xf32, #tpu.memory_space<vmem>>, vector<200x128xf32>
    %c0_40 = arith.constant 0 : index
    %c0_41 = arith.constant 0 : index
    %34 = vector.load %arg4[%c0_40, %c0_41] : memref<1x128xf32, #tpu.memory_space<vmem>>, vector<1x128xf32>
    %35 = vector.broadcast %34 : vector<1x128xf32> to vector<200x128xf32>
    %36 = arith.addf %33, %35 : vector<200x128xf32>
    %cst_42 = arith.constant 0.000000e+00 : f32
    %37 = vector.broadcast %cst_42 : f32 to vector<200x128xf32>
    %38 = arith.maximumf %36, %37 : vector<200x128xf32>
    %39 = arith.truncf %38 : vector<200x128xf32> to vector<200x128xbf16>
    %c0_43 = arith.constant 0 : index
    %c0_44 = arith.constant 0 : index
    %40 = vector.load %arg5[%c0_43, %c0_44] : memref<200x128xbf16, #tpu.memory_space<vmem>>, vector<200x128xbf16>
    tpu.vector_store %arg5[%c0_43, %c0_44], %39 {strides = array<i32>} : memref<200x128xbf16, #tpu.memory_space<vmem>>, vector<200x128xbf16>,
    return
  }
  func.func @transform_0(%arg0: i32) -> (i32, i32) {
    %c0_i32 = arith.constant 0 : i32
    %c0_i32_0 = arith.constant 0 : i32
    return %arg0, %c0_i32 : i32, i32
  }
  func.func @transform_1(%arg0: i32) -> (i32, i32, i32) {
    %c0_i32 = arith.constant 0 : i32
    %c0_i32_0 = arith.constant 0 : i32
    %c0_i32_1 = arith.constant 0 : i32
    return %arg0, %c0_i32, %c0_i32_0 : i32, i32, i32
  }
  func.func @transform_2(%arg0: i32) -> (i32, i32, i32) {
    %c0_i32 = arith.constant 0 : i32
    %c0_i32_0 = arith.constant 0 : i32
    %c0_i32_1 = arith.constant 0 : i32
    %c0_i32_2 = arith.constant 0 : i32
    return %c0_i32, %c0_i32_0, %c0_i32_1 : i32, i32, i32
  }
  func.func @transform_3(%arg0: i32) -> (i32, i32) {
    %c0_i32 = arith.constant 0 : i32
    %c0_i32_0 = arith.constant 0 : i32
    %c0_i32_1 = arith.constant 0 : i32
    return %c0_i32, %c0_i32_0 : i32, i32
  }
  func.func @transform_4(%arg0: i32) -> (i32, i32) {
    %c0_i32 = arith.constant 0 : i32
    %c0_i32_0 = arith.constant 0 : i32
    return %arg0, %c0_i32 : i32, i32
  }
}

module attributes {stable_mosaic.version = 11 : i64} {
  func.func @_conv_kernel(%arg0: i32, %arg1: memref<72x128xbf16, #tpu.memory_space<vmem>>, %arg2: memref<1x16x128xbf16, #tpu.memory_space<vmem>>, %arg3: memref<3x384x128xbf16, #tpu.memory_space<vmem>>, %arg4: memref<1x128xf32, #tpu.memory_space<vmem>>, %arg5: memref<72x128xbf16, #tpu.memory_space<vmem>>, %arg6: memref<88x128xbf16, #tpu.memory_space<vmem>>, %arg7: memref<72x128xf32, #tpu.memory_space<vmem>>) attributes {dimension_semantics = [#tpu.dimension_semantics<parallel>], iteration_bounds = array<i64: 1>, scalar_prefetch = 0 : i64, scratch_operands = 2 : i64, tpu.core_type = #tpu.core_type<tc>, window_params = [{transform_indices = @transform_0, window_bounds = array<i64: 72, 128>}, {transform_indices = @transform_1, window_bounds = array<i64: 1, 16, 128>}, {pipeline_mode = #tpu.pipeline_mode<synchronous>, transform_indices = @transform_2, window_bounds = array<i64: 3, 384, 128>}, {pipeline_mode = #tpu.pipeline_mode<synchronous>, transform_indices = @transform_3, window_bounds = array<i64: 1, 128>}, {transform_indices = @transform_4, window_bounds = array<i64: 72, 128>}]} {
    %c0 = arith.constant 0 : index
    %c0_0 = arith.constant 0 : index
    %0 = vector.load %arg1[%c0, %c0_0] : memref<72x128xbf16, #tpu.memory_space<vmem>>, vector<72x128xbf16>
    %c0_1 = arith.constant 0 : index
    %c0_2 = arith.constant 0 : index
    %1 = vector.load %arg6[%c0_1, %c0_2] : memref<88x128xbf16, #tpu.memory_space<vmem>>, vector<72x128xbf16>
    tpu.vector_store %arg6[%c0_1, %c0_2], %0 {strides = array<i32>} : memref<88x128xbf16, #tpu.memory_space<vmem>>, vector<72x128xbf16>,
    %c0_3 = arith.constant 0 : index
    %c0_4 = arith.constant 0 : index
    %c0_5 = arith.constant 0 : index
    %2 = vector.load %arg2[%c0_3, %c0_4, %c0_5] : memref<1x16x128xbf16, #tpu.memory_space<vmem>>, vector<1x16x128xbf16>
    %3 = vector.shape_cast %2 : vector<1x16x128xbf16> to vector<16x128xbf16>
    %c72 = arith.constant 72 : index
    %c0_6 = arith.constant 0 : index
    %4 = vector.load %arg6[%c72, %c0_6] : memref<88x128xbf16, #tpu.memory_space<vmem>>, vector<16x128xbf16>
    tpu.vector_store %arg6[%c72, %c0_6], %3 {strides = array<i32>} : memref<88x128xbf16, #tpu.memory_space<vmem>>, vector<16x128xbf16>,
    %c0_7 = arith.constant 0 : index
    %c0_8 = arith.constant 0 : index
    %5 = vector.load %arg6[%c0_7, %c0_8] : memref<88x128xbf16, #tpu.memory_space<vmem>>, vector<72x128xbf16>
    %c1 = arith.constant 1 : index
    %c0_9 = arith.constant 0 : index
    %6 = vector.load %arg6[%c1, %c0_9] : memref<88x128xbf16, #tpu.memory_space<vmem>>, vector<72x128xbf16>
    %c2 = arith.constant 2 : index
    %c0_10 = arith.constant 0 : index
    %7 = vector.load %arg6[%c2, %c0_10] : memref<88x128xbf16, #tpu.memory_space<vmem>>, vector<72x128xbf16>
    %8 = tpu.concatenate %5, %6, %7 in 1 : vector<72x128xbf16>, vector<72x128xbf16>, vector<72x128xbf16> -> vector<72x384xbf16>
    %c0_11 = arith.constant 0 : index
    %c0_12 = arith.constant 0 : index
    %c0_13 = arith.constant 0 : index
    %9 = vector.load %arg3[%c0_11, %c0_12, %c0_13] : memref<3x384x128xbf16, #tpu.memory_space<vmem>>, vector<1x384x128xbf16>
    %10 = vector.shape_cast %9 : vector<1x384x128xbf16> to vector<384x128xbf16>
    %cst = arith.constant dense<0.000000e+00> : vector<72x128xf32>
    %11 = tpu.matmul %8, %10, %cst {dimension_numbers = #tpu.dot_dimension_numbers<[1], [0], [0], [1], [0, 0, 1, 1], [], []>} : vector<72x384xbf16>, vector<384x128xbf16>, vector<72x128xf32> -> vector<72x128xf32>
    %c0_14 = arith.constant 0 : index
    %c0_15 = arith.constant 0 : index
    %12 = vector.load %arg7[%c0_14, %c0_15] : memref<72x128xf32, #tpu.memory_space<vmem>>, vector<72x128xf32>
    tpu.vector_store %arg7[%c0_14, %c0_15], %11 {strides = array<i32>} : memref<72x128xf32, #tpu.memory_space<vmem>>, vector<72x128xf32>,
    %c6 = arith.constant 6 : index
    %c0_16 = arith.constant 0 : index
    %13 = vector.load %arg6[%c6, %c0_16] : memref<88x128xbf16, #tpu.memory_space<vmem>>, vector<72x128xbf16>
    %c7 = arith.constant 7 : index
    %c0_17 = arith.constant 0 : index
    %14 = vector.load %arg6[%c7, %c0_17] : memref<88x128xbf16, #tpu.memory_space<vmem>>, vector<72x128xbf16>
    %c8 = arith.constant 8 : index
    %c0_18 = arith.constant 0 : index
    %15 = vector.load %arg6[%c8, %c0_18] : memref<88x128xbf16, #tpu.memory_space<vmem>>, vector<72x128xbf16>
    %16 = tpu.concatenate %13, %14, %15 in 1 : vector<72x128xbf16>, vector<72x128xbf16>, vector<72x128xbf16> -> vector<72x384xbf16>
    %c1_19 = arith.constant 1 : index
    %c0_20 = arith.constant 0 : index
    %c0_21 = arith.constant 0 : index
    %17 = vector.load %arg3[%c1_19, %c0_20, %c0_21] : memref<3x384x128xbf16, #tpu.memory_space<vmem>>, vector<1x384x128xbf16>
    %18 = vector.shape_cast %17 : vector<1x384x128xbf16> to vector<384x128xbf16>
    %cst_22 = arith.constant dense<0.000000e+00> : vector<72x128xf32>
    %19 = tpu.matmul %16, %18, %cst_22 {dimension_numbers = #tpu.dot_dimension_numbers<[1], [0], [0], [1], [0, 0, 1, 1], [], []>} : vector<72x384xbf16>, vector<384x128xbf16>, vector<72x128xf32> -> vector<72x128xf32>
    %c0_23 = arith.constant 0 : index
    %c0_24 = arith.constant 0 : index
    %20 = vector.load %arg7[%c0_23, %c0_24] : memref<72x128xf32, #tpu.memory_space<vmem>>, vector<72x128xf32>
    %21 = arith.addf %20, %19 : vector<72x128xf32>
    %c0_25 = arith.constant 0 : index
    %c0_26 = arith.constant 0 : index
    %22 = vector.load %arg7[%c0_25, %c0_26] : memref<72x128xf32, #tpu.memory_space<vmem>>, vector<72x128xf32>
    tpu.vector_store %arg7[%c0_25, %c0_26], %21 {strides = array<i32>} : memref<72x128xf32, #tpu.memory_space<vmem>>, vector<72x128xf32>,
    %c12 = arith.constant 12 : index
    %c0_27 = arith.constant 0 : index
    %23 = vector.load %arg6[%c12, %c0_27] : memref<88x128xbf16, #tpu.memory_space<vmem>>, vector<72x128xbf16>
    %c13 = arith.constant 13 : index
    %c0_28 = arith.constant 0 : index
    %24 = vector.load %arg6[%c13, %c0_28] : memref<88x128xbf16, #tpu.memory_space<vmem>>, vector<72x128xbf16>
    %c14 = arith.constant 14 : index
    %c0_29 = arith.constant 0 : index
    %25 = vector.load %arg6[%c14, %c0_29] : memref<88x128xbf16, #tpu.memory_space<vmem>>, vector<72x128xbf16>
    %26 = tpu.concatenate %23, %24, %25 in 1 : vector<72x128xbf16>, vector<72x128xbf16>, vector<72x128xbf16> -> vector<72x384xbf16>
    %c2_30 = arith.constant 2 : index
    %c0_31 = arith.constant 0 : index
    %c0_32 = arith.constant 0 : index
    %27 = vector.load %arg3[%c2_30, %c0_31, %c0_32] : memref<3x384x128xbf16, #tpu.memory_space<vmem>>, vector<1x384x128xbf16>
    %28 = vector.shape_cast %27 : vector<1x384x128xbf16> to vector<384x128xbf16>
    %cst_33 = arith.constant dense<0.000000e+00> : vector<72x128xf32>
    %29 = tpu.matmul %26, %28, %cst_33 {dimension_numbers = #tpu.dot_dimension_numbers<[1], [0], [0], [1], [0, 0, 1, 1], [], []>} : vector<72x384xbf16>, vector<384x128xbf16>, vector<72x128xf32> -> vector<72x128xf32>
    %c0_34 = arith.constant 0 : index
    %c0_35 = arith.constant 0 : index
    %30 = vector.load %arg7[%c0_34, %c0_35] : memref<72x128xf32, #tpu.memory_space<vmem>>, vector<72x128xf32>
    %31 = arith.addf %30, %29 : vector<72x128xf32>
    %c0_36 = arith.constant 0 : index
    %c0_37 = arith.constant 0 : index
    %32 = vector.load %arg7[%c0_36, %c0_37] : memref<72x128xf32, #tpu.memory_space<vmem>>, vector<72x128xf32>
    tpu.vector_store %arg7[%c0_36, %c0_37], %31 {strides = array<i32>} : memref<72x128xf32, #tpu.memory_space<vmem>>, vector<72x128xf32>,
    %c0_38 = arith.constant 0 : index
    %c0_39 = arith.constant 0 : index
    %33 = vector.load %arg7[%c0_38, %c0_39] : memref<72x128xf32, #tpu.memory_space<vmem>>, vector<72x128xf32>
    %c0_40 = arith.constant 0 : index
    %c0_41 = arith.constant 0 : index
    %34 = vector.load %arg4[%c0_40, %c0_41] : memref<1x128xf32, #tpu.memory_space<vmem>>, vector<1x128xf32>
    %35 = vector.broadcast %34 : vector<1x128xf32> to vector<72x128xf32>
    %36 = arith.addf %33, %35 : vector<72x128xf32>
    %cst_42 = arith.constant 0.000000e+00 : f32
    %37 = vector.broadcast %cst_42 : f32 to vector<72x128xf32>
    %38 = arith.maximumf %36, %37 : vector<72x128xf32>
    %39 = arith.truncf %38 : vector<72x128xf32> to vector<72x128xbf16>
    %c0_43 = arith.constant 0 : index
    %c0_44 = arith.constant 0 : index
    %40 = vector.load %arg5[%c0_43, %c0_44] : memref<72x128xbf16, #tpu.memory_space<vmem>>, vector<72x128xbf16>
    tpu.vector_store %arg5[%c0_43, %c0_44], %39 {strides = array<i32>} : memref<72x128xbf16, #tpu.memory_space<vmem>>, vector<72x128xbf16>,
    return
  }
  func.func @transform_0(%arg0: i32) -> (i32, i32) {
    %c0_i32 = arith.constant 0 : i32
    %c0_i32_0 = arith.constant 0 : i32
    return %arg0, %c0_i32 : i32, i32
  }
  func.func @transform_1(%arg0: i32) -> (i32, i32, i32) {
    %c0_i32 = arith.constant 0 : i32
    %c0_i32_0 = arith.constant 0 : i32
    %c0_i32_1 = arith.constant 0 : i32
    return %arg0, %c0_i32, %c0_i32_0 : i32, i32, i32
  }
  func.func @transform_2(%arg0: i32) -> (i32, i32, i32) {
    %c0_i32 = arith.constant 0 : i32
    %c0_i32_0 = arith.constant 0 : i32
    %c0_i32_1 = arith.constant 0 : i32
    %c0_i32_2 = arith.constant 0 : i32
    return %c0_i32, %c0_i32_0, %c0_i32_1 : i32, i32, i32
  }
  func.func @transform_3(%arg0: i32) -> (i32, i32) {
    %c0_i32 = arith.constant 0 : i32
    %c0_i32_0 = arith.constant 0 : i32
    %c0_i32_1 = arith.constant 0 : i32
    return %c0_i32, %c0_i32_0 : i32, i32
  }
  func.func @transform_4(%arg0: i32) -> (i32, i32) {
    %c0_i32 = arith.constant 0 : i32
    %c0_i32_0 = arith.constant 0 : i32
    return %arg0, %c0_i32 : i32, i32
  }
}

module attributes {stable_mosaic.version = 11 : i64} {
  func.func @_conv_kernel(%arg0: i32, %arg1: memref<32x128xbf16, #tpu.memory_space<vmem>>, %arg2: memref<1x16x128xbf16, #tpu.memory_space<vmem>>, %arg3: memref<3x384x128xbf16, #tpu.memory_space<vmem>>, %arg4: memref<1x128xf32, #tpu.memory_space<vmem>>, %arg5: memref<32x128xbf16, #tpu.memory_space<vmem>>, %arg6: memref<48x128xbf16, #tpu.memory_space<vmem>>, %arg7: memref<32x128xf32, #tpu.memory_space<vmem>>) attributes {dimension_semantics = [#tpu.dimension_semantics<parallel>], iteration_bounds = array<i64: 1>, scalar_prefetch = 0 : i64, scratch_operands = 2 : i64, tpu.core_type = #tpu.core_type<tc>, window_params = [{transform_indices = @transform_0, window_bounds = array<i64: 32, 128>}, {transform_indices = @transform_1, window_bounds = array<i64: 1, 16, 128>}, {pipeline_mode = #tpu.pipeline_mode<synchronous>, transform_indices = @transform_2, window_bounds = array<i64: 3, 384, 128>}, {pipeline_mode = #tpu.pipeline_mode<synchronous>, transform_indices = @transform_3, window_bounds = array<i64: 1, 128>}, {transform_indices = @transform_4, window_bounds = array<i64: 32, 128>}]} {
    %c0 = arith.constant 0 : index
    %c0_0 = arith.constant 0 : index
    %0 = vector.load %arg1[%c0, %c0_0] : memref<32x128xbf16, #tpu.memory_space<vmem>>, vector<32x128xbf16>
    %c0_1 = arith.constant 0 : index
    %c0_2 = arith.constant 0 : index
    %1 = vector.load %arg6[%c0_1, %c0_2] : memref<48x128xbf16, #tpu.memory_space<vmem>>, vector<32x128xbf16>
    tpu.vector_store %arg6[%c0_1, %c0_2], %0 {strides = array<i32>} : memref<48x128xbf16, #tpu.memory_space<vmem>>, vector<32x128xbf16>,
    %c0_3 = arith.constant 0 : index
    %c0_4 = arith.constant 0 : index
    %c0_5 = arith.constant 0 : index
    %2 = vector.load %arg2[%c0_3, %c0_4, %c0_5] : memref<1x16x128xbf16, #tpu.memory_space<vmem>>, vector<1x16x128xbf16>
    %3 = vector.shape_cast %2 : vector<1x16x128xbf16> to vector<16x128xbf16>
    %c32 = arith.constant 32 : index
    %c0_6 = arith.constant 0 : index
    %4 = vector.load %arg6[%c32, %c0_6] : memref<48x128xbf16, #tpu.memory_space<vmem>>, vector<16x128xbf16>
    tpu.vector_store %arg6[%c32, %c0_6], %3 {strides = array<i32>} : memref<48x128xbf16, #tpu.memory_space<vmem>>, vector<16x128xbf16>,
    %c0_7 = arith.constant 0 : index
    %c0_8 = arith.constant 0 : index
    %5 = vector.load %arg6[%c0_7, %c0_8] : memref<48x128xbf16, #tpu.memory_space<vmem>>, vector<32x128xbf16>
    %c1 = arith.constant 1 : index
    %c0_9 = arith.constant 0 : index
    %6 = vector.load %arg6[%c1, %c0_9] : memref<48x128xbf16, #tpu.memory_space<vmem>>, vector<32x128xbf16>
    %c2 = arith.constant 2 : index
    %c0_10 = arith.constant 0 : index
    %7 = vector.load %arg6[%c2, %c0_10] : memref<48x128xbf16, #tpu.memory_space<vmem>>, vector<32x128xbf16>
    %8 = tpu.concatenate %5, %6, %7 in 1 : vector<32x128xbf16>, vector<32x128xbf16>, vector<32x128xbf16> -> vector<32x384xbf16>
    %c0_11 = arith.constant 0 : index
    %c0_12 = arith.constant 0 : index
    %c0_13 = arith.constant 0 : index
    %9 = vector.load %arg3[%c0_11, %c0_12, %c0_13] : memref<3x384x128xbf16, #tpu.memory_space<vmem>>, vector<1x384x128xbf16>
    %10 = vector.shape_cast %9 : vector<1x384x128xbf16> to vector<384x128xbf16>
    %cst = arith.constant dense<0.000000e+00> : vector<32x128xf32>
    %11 = tpu.matmul %8, %10, %cst {dimension_numbers = #tpu.dot_dimension_numbers<[1], [0], [0], [1], [0, 0, 1, 1], [], []>} : vector<32x384xbf16>, vector<384x128xbf16>, vector<32x128xf32> -> vector<32x128xf32>
    %c0_14 = arith.constant 0 : index
    %c0_15 = arith.constant 0 : index
    %12 = vector.load %arg7[%c0_14, %c0_15] : memref<32x128xf32, #tpu.memory_space<vmem>>, vector<32x128xf32>
    tpu.vector_store %arg7[%c0_14, %c0_15], %11 {strides = array<i32>} : memref<32x128xf32, #tpu.memory_space<vmem>>, vector<32x128xf32>,
    %c4 = arith.constant 4 : index
    %c0_16 = arith.constant 0 : index
    %13 = vector.load %arg6[%c4, %c0_16] : memref<48x128xbf16, #tpu.memory_space<vmem>>, vector<32x128xbf16>
    %c5 = arith.constant 5 : index
    %c0_17 = arith.constant 0 : index
    %14 = vector.load %arg6[%c5, %c0_17] : memref<48x128xbf16, #tpu.memory_space<vmem>>, vector<32x128xbf16>
    %c6 = arith.constant 6 : index
    %c0_18 = arith.constant 0 : index
    %15 = vector.load %arg6[%c6, %c0_18] : memref<48x128xbf16, #tpu.memory_space<vmem>>, vector<32x128xbf16>
    %16 = tpu.concatenate %13, %14, %15 in 1 : vector<32x128xbf16>, vector<32x128xbf16>, vector<32x128xbf16> -> vector<32x384xbf16>
    %c1_19 = arith.constant 1 : index
    %c0_20 = arith.constant 0 : index
    %c0_21 = arith.constant 0 : index
    %17 = vector.load %arg3[%c1_19, %c0_20, %c0_21] : memref<3x384x128xbf16, #tpu.memory_space<vmem>>, vector<1x384x128xbf16>
    %18 = vector.shape_cast %17 : vector<1x384x128xbf16> to vector<384x128xbf16>
    %cst_22 = arith.constant dense<0.000000e+00> : vector<32x128xf32>
    %19 = tpu.matmul %16, %18, %cst_22 {dimension_numbers = #tpu.dot_dimension_numbers<[1], [0], [0], [1], [0, 0, 1, 1], [], []>} : vector<32x384xbf16>, vector<384x128xbf16>, vector<32x128xf32> -> vector<32x128xf32>
    %c0_23 = arith.constant 0 : index
    %c0_24 = arith.constant 0 : index
    %20 = vector.load %arg7[%c0_23, %c0_24] : memref<32x128xf32, #tpu.memory_space<vmem>>, vector<32x128xf32>
    %21 = arith.addf %20, %19 : vector<32x128xf32>
    %c0_25 = arith.constant 0 : index
    %c0_26 = arith.constant 0 : index
    %22 = vector.load %arg7[%c0_25, %c0_26] : memref<32x128xf32, #tpu.memory_space<vmem>>, vector<32x128xf32>
    tpu.vector_store %arg7[%c0_25, %c0_26], %21 {strides = array<i32>} : memref<32x128xf32, #tpu.memory_space<vmem>>, vector<32x128xf32>,
    %c8 = arith.constant 8 : index
    %c0_27 = arith.constant 0 : index
    %23 = vector.load %arg6[%c8, %c0_27] : memref<48x128xbf16, #tpu.memory_space<vmem>>, vector<32x128xbf16>
    %c9 = arith.constant 9 : index
    %c0_28 = arith.constant 0 : index
    %24 = vector.load %arg6[%c9, %c0_28] : memref<48x128xbf16, #tpu.memory_space<vmem>>, vector<32x128xbf16>
    %c10 = arith.constant 10 : index
    %c0_29 = arith.constant 0 : index
    %25 = vector.load %arg6[%c10, %c0_29] : memref<48x128xbf16, #tpu.memory_space<vmem>>, vector<32x128xbf16>
    %26 = tpu.concatenate %23, %24, %25 in 1 : vector<32x128xbf16>, vector<32x128xbf16>, vector<32x128xbf16> -> vector<32x384xbf16>
    %c2_30 = arith.constant 2 : index
    %c0_31 = arith.constant 0 : index
    %c0_32 = arith.constant 0 : index
    %27 = vector.load %arg3[%c2_30, %c0_31, %c0_32] : memref<3x384x128xbf16, #tpu.memory_space<vmem>>, vector<1x384x128xbf16>
    %28 = vector.shape_cast %27 : vector<1x384x128xbf16> to vector<384x128xbf16>
    %cst_33 = arith.constant dense<0.000000e+00> : vector<32x128xf32>
    %29 = tpu.matmul %26, %28, %cst_33 {dimension_numbers = #tpu.dot_dimension_numbers<[1], [0], [0], [1], [0, 0, 1, 1], [], []>} : vector<32x384xbf16>, vector<384x128xbf16>, vector<32x128xf32> -> vector<32x128xf32>
    %c0_34 = arith.constant 0 : index
    %c0_35 = arith.constant 0 : index
    %30 = vector.load %arg7[%c0_34, %c0_35] : memref<32x128xf32, #tpu.memory_space<vmem>>, vector<32x128xf32>
    %31 = arith.addf %30, %29 : vector<32x128xf32>
    %c0_36 = arith.constant 0 : index
    %c0_37 = arith.constant 0 : index
    %32 = vector.load %arg7[%c0_36, %c0_37] : memref<32x128xf32, #tpu.memory_space<vmem>>, vector<32x128xf32>
    tpu.vector_store %arg7[%c0_36, %c0_37], %31 {strides = array<i32>} : memref<32x128xf32, #tpu.memory_space<vmem>>, vector<32x128xf32>,
    %c0_38 = arith.constant 0 : index
    %c0_39 = arith.constant 0 : index
    %33 = vector.load %arg7[%c0_38, %c0_39] : memref<32x128xf32, #tpu.memory_space<vmem>>, vector<32x128xf32>
    %c0_40 = arith.constant 0 : index
    %c0_41 = arith.constant 0 : index
    %34 = vector.load %arg4[%c0_40, %c0_41] : memref<1x128xf32, #tpu.memory_space<vmem>>, vector<1x128xf32>
    %35 = vector.broadcast %34 : vector<1x128xf32> to vector<32x128xf32>
    %36 = arith.addf %33, %35 : vector<32x128xf32>
    %cst_42 = arith.constant 0.000000e+00 : f32
    %37 = vector.broadcast %cst_42 : f32 to vector<32x128xf32>
    %38 = arith.maximumf %36, %37 : vector<32x128xf32>
    %39 = arith.truncf %38 : vector<32x128xf32> to vector<32x128xbf16>
    %c0_43 = arith.constant 0 : index
    %c0_44 = arith.constant 0 : index
    %40 = vector.load %arg5[%c0_43, %c0_44] : memref<32x128xbf16, #tpu.memory_space<vmem>>, vector<32x128xbf16>
    tpu.vector_store %arg5[%c0_43, %c0_44], %39 {strides = array<i32>} : memref<32x128xbf16, #tpu.memory_space<vmem>>, vector<32x128xbf16>,
    return
  }
  func.func @transform_0(%arg0: i32) -> (i32, i32) {
    %c0_i32 = arith.constant 0 : i32
    %c0_i32_0 = arith.constant 0 : i32
    return %arg0, %c0_i32 : i32, i32
  }
  func.func @transform_1(%arg0: i32) -> (i32, i32, i32) {
    %c0_i32 = arith.constant 0 : i32
    %c0_i32_0 = arith.constant 0 : i32
    %c0_i32_1 = arith.constant 0 : i32
    return %arg0, %c0_i32, %c0_i32_0 : i32, i32, i32
  }
  func.func @transform_2(%arg0: i32) -> (i32, i32, i32) {
    %c0_i32 = arith.constant 0 : i32
    %c0_i32_0 = arith.constant 0 : i32
    %c0_i32_1 = arith.constant 0 : i32
    %c0_i32_2 = arith.constant 0 : i32
    return %c0_i32, %c0_i32_0, %c0_i32_1 : i32, i32, i32
  }
  func.func @transform_3(%arg0: i32) -> (i32, i32) {
    %c0_i32 = arith.constant 0 : i32
    %c0_i32_0 = arith.constant 0 : i32
    %c0_i32_1 = arith.constant 0 : i32
    return %c0_i32, %c0_i32_0 : i32, i32
  }
  func.func @transform_4(%arg0: i32) -> (i32, i32) {
    %c0_i32 = arith.constant 0 : i32
    %c0_i32_0 = arith.constant 0 : i32
    return %arg0, %c0_i32 : i32, i32
  }
}

module attributes {stable_mosaic.version = 11 : i64} {
  func.func @_fc_kernel(%arg0: i32, %arg1: i32, %arg2: i32, %arg3: memref<8x512xbf16, #tpu.memory_space<vmem>>, %arg4: memref<512x512xbf16, #tpu.memory_space<vmem>>, %arg5: memref<1x512xf32, #tpu.memory_space<vmem>>, %arg6: memref<8x512xbf16, #tpu.memory_space<vmem>>, %arg7: memref<8x512xf32, #tpu.memory_space<vmem>>) attributes {dimension_semantics = [#tpu.dimension_semantics<parallel>, #tpu.dimension_semantics<parallel>, #tpu.dimension_semantics<arbitrary>], iteration_bounds = array<i64: 1, 2, 1>, scalar_prefetch = 0 : i64, scratch_operands = 1 : i64, tpu.core_type = #tpu.core_type<tc>, window_params = [{transform_indices = @transform_0, window_bounds = array<i64: 8, 512>}, {transform_indices = @transform_1, window_bounds = array<i64: 512, 512>}, {transform_indices = @transform_2, window_bounds = array<i64: 1, 512>}, {transform_indices = @transform_3, window_bounds = array<i64: 8, 512>}]} {
    %c0_i32 = arith.constant 0 : i32
    %0 = arith.cmpi eq, %arg2, %c0_i32 : i32
    %1 = arith.extui %0 : i1 to i32
    %c0_i32_0 = arith.constant 0 : i32
    %2 = arith.cmpi ne, %1, %c0_i32_0 : i32
    scf.if %2 {
      %cst_10 = arith.constant 0.000000e+00 : f32
      %12 = vector.broadcast %cst_10 : f32 to vector<8x512xf32>
      %c0_11 = arith.constant 0 : index
      %c0_12 = arith.constant 0 : index
      %13 = vector.load %arg7[%c0_11, %c0_12] : memref<8x512xf32, #tpu.memory_space<vmem>>, vector<8x512xf32>
      tpu.vector_store %arg7[%c0_11, %c0_12], %12 {strides = array<i32>} : memref<8x512xf32, #tpu.memory_space<vmem>>, vector<8x512xf32>,
    } else {
    }
    %c0 = arith.constant 0 : index
    %c0_1 = arith.constant 0 : index
    %3 = vector.load %arg7[%c0, %c0_1] : memref<8x512xf32, #tpu.memory_space<vmem>>, vector<8x512xf32>
    %c0_2 = arith.constant 0 : index
    %c0_3 = arith.constant 0 : index
    %4 = vector.load %arg3[%c0_2, %c0_3] : memref<8x512xbf16, #tpu.memory_space<vmem>>, vector<8x512xbf16>
    %c0_4 = arith.constant 0 : index
    %c0_5 = arith.constant 0 : index
    %5 = vector.load %arg4[%c0_4, %c0_5] : memref<512x512xbf16, #tpu.memory_space<vmem>>, vector<512x512xbf16>
    %cst = arith.constant dense<0.000000e+00> : vector<8x512xf32>
    %6 = tpu.matmul %4, %5, %cst {dimension_numbers = #tpu.dot_dimension_numbers<[1], [0], [0], [1], [0, 0, 1, 1], [], []>} : vector<8x512xbf16>, vector<512x512xbf16>, vector<8x512xf32> -> vector<8x512xf32>
    %7 = arith.addf %3, %6 : vector<8x512xf32>
    %c0_6 = arith.constant 0 : index
    %c0_7 = arith.constant 0 : index
    %8 = vector.load %arg7[%c0_6, %c0_7] : memref<8x512xf32, #tpu.memory_space<vmem>>, vector<8x512xf32>
    tpu.vector_store %arg7[%c0_6, %c0_7], %7 {strides = array<i32>} : memref<8x512xf32, #tpu.memory_space<vmem>>, vector<8x512xf32>,
    %c0_i32_8 = arith.constant 0 : i32
    %9 = arith.cmpi eq, %arg2, %c0_i32_8 : i32
    %10 = arith.extui %9 : i1 to i32
    %c0_i32_9 = arith.constant 0 : i32
    %11 = arith.cmpi ne, %10, %c0_i32_9 : i32
    scf.if %11 {
      %c0_10 = arith.constant 0 : index
      %c0_11 = arith.constant 0 : index
      %12 = vector.load %arg7[%c0_10, %c0_11] : memref<8x512xf32, #tpu.memory_space<vmem>>, vector<8x512xf32>
      %c0_12 = arith.constant 0 : index
      %c0_13 = arith.constant 0 : index
      %13 = vector.load %arg5[%c0_12, %c0_13] : memref<1x512xf32, #tpu.memory_space<vmem>>, vector<1x512xf32>
      %14 = vector.broadcast %13 : vector<1x512xf32> to vector<8x512xf32>
      %15 = arith.addf %12, %14 : vector<8x512xf32>
      %cst_14 = arith.constant 0.000000e+00 : f32
      %16 = vector.broadcast %cst_14 : f32 to vector<8x512xf32>
      %17 = arith.maximumf %15, %16 : vector<8x512xf32>
      %18 = arith.truncf %17 : vector<8x512xf32> to vector<8x512xbf16>
      %c0_15 = arith.constant 0 : index
      %c0_16 = arith.constant 0 : index
      %19 = vector.load %arg6[%c0_15, %c0_16] : memref<8x512xbf16, #tpu.memory_space<vmem>>, vector<8x512xbf16>
      tpu.vector_store %arg6[%c0_15, %c0_16], %18 {strides = array<i32>} : memref<8x512xbf16, #tpu.memory_space<vmem>>, vector<8x512xbf16>,
    } else {
    }
    return
  }
  func.func @transform_0(%arg0: i32, %arg1: i32, %arg2: i32) -> (i32, i32) {
    %c0_i32 = arith.constant 0 : i32
    return %arg0, %arg2 : i32, i32
  }
  func.func @transform_1(%arg0: i32, %arg1: i32, %arg2: i32) -> (i32, i32) {
    %c0_i32 = arith.constant 0 : i32
    return %arg2, %arg1 : i32, i32
  }
  func.func @transform_2(%arg0: i32, %arg1: i32, %arg2: i32) -> (i32, i32) {
    %c0_i32 = arith.constant 0 : i32
    %c0_i32_0 = arith.constant 0 : i32
    return %c0_i32, %arg1 : i32, i32
  }
  func.func @transform_3(%arg0: i32, %arg1: i32, %arg2: i32) -> (i32, i32) {
    %c0_i32 = arith.constant 0 : i32
    return %arg0, %arg1 : i32, i32
  }
}

module attributes {stable_mosaic.version = 11 : i64} {
  func.func @_fc_kernel(%arg0: i32, %arg1: i32, %arg2: i32, %arg3: memref<8x1024xbf16, #tpu.memory_space<vmem>>, %arg4: memref<1024x128xbf16, #tpu.memory_space<vmem>>, %arg5: memref<1x128xf32, #tpu.memory_space<vmem>>, %arg6: memref<8x128xf32, #tpu.memory_space<vmem>>, %arg7: memref<8x128xf32, #tpu.memory_space<vmem>>) attributes {dimension_semantics = [#tpu.dimension_semantics<parallel>, #tpu.dimension_semantics<parallel>, #tpu.dimension_semantics<arbitrary>], iteration_bounds = array<i64: 1, 1, 1>, scalar_prefetch = 0 : i64, scratch_operands = 1 : i64, tpu.core_type = #tpu.core_type<tc>, window_params = [{transform_indices = @transform_0, window_bounds = array<i64: 8, 1024>}, {transform_indices = @transform_1, window_bounds = array<i64: 1024, 128>}, {transform_indices = @transform_2, window_bounds = array<i64: 1, 128>}, {transform_indices = @transform_3, window_bounds = array<i64: 8, 128>}]} {
    %c0_i32 = arith.constant 0 : i32
    %0 = arith.cmpi eq, %arg2, %c0_i32 : i32
    %1 = arith.extui %0 : i1 to i32
    %c0_i32_0 = arith.constant 0 : i32
    %2 = arith.cmpi ne, %1, %c0_i32_0 : i32
    scf.if %2 {
      %cst_10 = arith.constant 0.000000e+00 : f32
      %12 = vector.broadcast %cst_10 : f32 to vector<8x128xf32>
      %c0_11 = arith.constant 0 : index
      %c0_12 = arith.constant 0 : index
      %13 = vector.load %arg7[%c0_11, %c0_12] : memref<8x128xf32, #tpu.memory_space<vmem>>, vector<8x128xf32>
      tpu.vector_store %arg7[%c0_11, %c0_12], %12 {strides = array<i32>} : memref<8x128xf32, #tpu.memory_space<vmem>>, vector<8x128xf32>,
    } else {
    }
    %c0 = arith.constant 0 : index
    %c0_1 = arith.constant 0 : index
    %3 = vector.load %arg7[%c0, %c0_1] : memref<8x128xf32, #tpu.memory_space<vmem>>, vector<8x128xf32>
    %c0_2 = arith.constant 0 : index
    %c0_3 = arith.constant 0 : index
    %4 = vector.load %arg3[%c0_2, %c0_3] : memref<8x1024xbf16, #tpu.memory_space<vmem>>, vector<8x1024xbf16>
    %c0_4 = arith.constant 0 : index
    %c0_5 = arith.constant 0 : index
    %5 = vector.load %arg4[%c0_4, %c0_5] : memref<1024x128xbf16, #tpu.memory_space<vmem>>, vector<1024x128xbf16>
    %cst = arith.constant dense<0.000000e+00> : vector<8x128xf32>
    %6 = tpu.matmul %4, %5, %cst {dimension_numbers = #tpu.dot_dimension_numbers<[1], [0], [0], [1], [0, 0, 1, 1], [], []>} : vector<8x1024xbf16>, vector<1024x128xbf16>, vector<8x128xf32> -> vector<8x128xf32>
    %7 = arith.addf %3, %6 : vector<8x128xf32>
    %c0_6 = arith.constant 0 : index
    %c0_7 = arith.constant 0 : index
    %8 = vector.load %arg7[%c0_6, %c0_7] : memref<8x128xf32, #tpu.memory_space<vmem>>, vector<8x128xf32>
    tpu.vector_store %arg7[%c0_6, %c0_7], %7 {strides = array<i32>} : memref<8x128xf32, #tpu.memory_space<vmem>>, vector<8x128xf32>,
    %c0_i32_8 = arith.constant 0 : i32
    %9 = arith.cmpi eq, %arg2, %c0_i32_8 : i32
    %10 = arith.extui %9 : i1 to i32
    %c0_i32_9 = arith.constant 0 : i32
    %11 = arith.cmpi ne, %10, %c0_i32_9 : i32
    scf.if %11 {
      %c0_10 = arith.constant 0 : index
      %c0_11 = arith.constant 0 : index
      %12 = vector.load %arg7[%c0_10, %c0_11] : memref<8x128xf32, #tpu.memory_space<vmem>>, vector<8x128xf32>
      %c0_12 = arith.constant 0 : index
      %c0_13 = arith.constant 0 : index
      %13 = vector.load %arg5[%c0_12, %c0_13] : memref<1x128xf32, #tpu.memory_space<vmem>>, vector<1x128xf32>
      %14 = vector.broadcast %13 : vector<1x128xf32> to vector<8x128xf32>
      %15 = arith.addf %12, %14 : vector<8x128xf32>
      %c0_14 = arith.constant 0 : index
      %c0_15 = arith.constant 0 : index
      %16 = vector.load %arg6[%c0_14, %c0_15] : memref<8x128xf32, #tpu.memory_space<vmem>>, vector<8x128xf32>
      tpu.vector_store %arg6[%c0_14, %c0_15], %15 {strides = array<i32>} : memref<8x128xf32, #tpu.memory_space<vmem>>, vector<8x128xf32>,
    } else {
    }
    return
  }
  func.func @transform_0(%arg0: i32, %arg1: i32, %arg2: i32) -> (i32, i32) {
    %c0_i32 = arith.constant 0 : i32
    return %arg0, %arg2 : i32, i32
  }
  func.func @transform_1(%arg0: i32, %arg1: i32, %arg2: i32) -> (i32, i32) {
    %c0_i32 = arith.constant 0 : i32
    return %arg2, %arg1 : i32, i32
  }
  func.func @transform_2(%arg0: i32, %arg1: i32, %arg2: i32) -> (i32, i32) {
    %c0_i32 = arith.constant 0 : i32
    %c0_i32_0 = arith.constant 0 : i32
    return %c0_i32, %arg1 : i32, i32
  }
  func.func @transform_3(%arg0: i32, %arg1: i32, %arg2: i32) -> (i32, i32) {
    %c0_i32 = arith.constant 0 : i32
    return %arg0, %arg1 : i32, i32
  }
}

</mosaic_0001>

<bundles_post_ra>
// kernel: homography_forward.10
= control target key start
LH: loop header
LB: loop body
LE: loop exit
PB: predicated region body
PF: predicated region fallthrough
CT: control target
= control target key end

     0   :  { %s1815_s1 = inlined_call_operand.vmem [shape: bf16[128,128], index: 1, kind: input, shape index: {}]   ;;  %s1816_s2 = inlined_call_operand.vmem [shape: f32[1,128], index: 2, kind: input, shape index: {}]   ;;  %s1817_s0 = inlined_call_operand.vmem [shape: bf16[512,128], index: 0, kind: input, shape index: {}]   ;;  %s1818_s3 = inlined_call_operand.vmem [shape: bf16[512,128], index: 3, kind: output, shape index: {}]  }
   0x1   :  { %v1293_v0 = vld [vmem:[%s1815_s1 + $0x38] sm:$0xff]  ;;  %v1292_v1 = vld [vmem:[%s1815_s1 + $0x30] sm:$0xff]  ;;  %v1291_v2 = vld [vmem:[%s1815_s1 + $0x28] sm:$0xff] }
   0x2   :  { %466 = vmatpush.bf16.msra.mxu0 %v1293_v0  ;;  %1485 = vmatpush.bf16.msra.mxu1 %v1293_v0  ;;  %v1290_v3 = vld [vmem:[%s1815_s1 + $0x20] sm:$0xff]  ;;  %v1289_v4 = vld [vmem:[%s1815_s1 + $0x18] sm:$0xff]  ;;  %v1288_v5 = vld [vmem:[%s1815_s1 + $0x10] sm:$0xff] }
   0x3   :  { %1486 = vmatpush.bf16.msra.mxu2 %v1293_v0  ;;  %1487 = vmatpush.bf16.msra.mxu3 %v1293_v0  ;;  %v1287_v6 = vld [vmem:[%s1815_s1 + $0x8] sm:$0xff]  ;;  %v1286_v7 = vld [vmem:[%s1815_s1] sm:$0xff]  ;;  %v1256_v16 = vld [vmem:[%s1817_s0 + $0x10] sm:$0xff] }
   0x4   :  { %v1254_v8 = vld [vmem:[%s1817_s0] sm:$0xff]  ;;  %v1255_v12 = vld [vmem:[%s1817_s0 + $0x8] sm:$0xff]  ;;  %v1264_v17 = vld [vmem:[%s1817_s0 + $0x50] sm:$0xff] }
   0x5   :  { %v1262_v9 = vld [vmem:[%s1817_s0 + $0x40] sm:$0xff]  ;;  %v1263_v13 = vld [vmem:[%s1817_s0 + $0x48] sm:$0xff]  ;;  %v1272_v18 = vld [vmem:[%s1817_s0 + $0x90] sm:$0xff] }
   0x6   :  { %467 = vmatpush.bf16.msra.mxu0 %v1292_v1  ;;  %1488 = vmatpush.bf16.msra.mxu1 %v1292_v1  ;;  %v1270_v10 = vld [vmem:[%s1817_s0 + $0x80] sm:$0xff]  ;;  %v1271_v14 = vld [vmem:[%s1817_s0 + $0x88] sm:$0xff]  ;;  %v1280_v19 = vld [vmem:[%s1817_s0 + $0xd0] sm:$0xff] }
   0x7   :  { %1489 = vmatpush.bf16.msra.mxu2 %v1292_v1  ;;  %1490 = vmatpush.bf16.msra.mxu3 %v1292_v1  ;;  %v1278_v11 = vld [vmem:[%s1817_s0 + $0xc0] sm:$0xff]  ;;  %v1279_v15 = vld [vmem:[%s1817_s0 + $0xc8] sm:$0xff]  ;;  %v1257_v20 = vld [vmem:[%s1817_s0 + $0x18] sm:$0xff] }
   0x8   :  { %v1265_v21 = vld [vmem:[%s1817_s0 + $0x58] sm:$0xff]  ;;  %v1258_v24 = vld [vmem:[%s1817_s0 + $0x20] sm:$0xff]  ;;  %v1259_v28 = vld [vmem:[%s1817_s0 + $0x28] sm:$0xff] }
   0x9   :  { %v1273_v22 = vld [vmem:[%s1817_s0 + $0x98] sm:$0xff]  ;;  %v1266_v25 = vld [vmem:[%s1817_s0 + $0x60] sm:$0xff]  ;;  %v1267_v29 = vld [vmem:[%s1817_s0 + $0x68] sm:$0xff] }
   0xa   :  { %468 = vmatpush.bf16.msra.mxu0 %v1291_v2  ;;  %1491 = vmatpush.bf16.msra.mxu1 %v1291_v2  ;;  %v1281_v23 = vld [vmem:[%s1817_s0 + $0xd8] sm:$0xff]  ;;  %v1274_v26 = vld [vmem:[%s1817_s0 + $0xa0] sm:$0xff]  ;;  %v1275_v30 = vld [vmem:[%s1817_s0 + $0xa8] sm:$0xff] }
   0xb   :  { %1492 = vmatpush.bf16.msra.mxu2 %v1291_v2  ;;  %1493 = vmatpush.bf16.msra.mxu3 %v1291_v2  ;;  %v1282_v27 = vld [vmem:[%s1817_s0 + $0xe0] sm:$0xff]  ;;  %v1283_v31 = vld [vmem:[%s1817_s0 + $0xe8] sm:$0xff]  ;;  %v1260_v32 = vld [vmem:[%s1817_s0 + $0x30] sm:$0xff] }
   0xc   :  { %v1268_v33 = vld [vmem:[%s1817_s0 + $0x70] sm:$0xff]  ;;  %v1261_v36 = vld [vmem:[%s1817_s0 + $0x38] sm:$0xff]  ;;  %v1653_v42 = vld [vmem:[%s1816_s2] ss:$0 sm:$0xff] }
   0xd   :  { %v1276_v34 = vld [vmem:[%s1817_s0 + $0xb0] sm:$0xff]  ;;  %v1269_v37 = vld [vmem:[%s1817_s0 + $0x78] sm:$0xff] }
   0xe   :  { %469 = vmatpush.bf16.msra.mxu0 %v1290_v3  ;;  %1494 = vmatpush.bf16.msra.mxu1 %v1290_v3  ;;  %v1284_v35 = vld [vmem:[%s1817_s0 + $0xf0] sm:$0xff]  ;;  %v1277_v38 = vld [vmem:[%s1817_s0 + $0xb8] sm:$0xff] }
   0xf   :  { %1495 = vmatpush.bf16.msra.mxu2 %v1290_v3  ;;  %1496 = vmatpush.bf16.msra.mxu3 %v1290_v3  ;;  %v1285_v39 = vld [vmem:[%s1817_s0 + $0xf8] sm:$0xff] }
  0x12   :  { %470 = vmatpush.bf16.msra.mxu0 %v1289_v4  ;;  %1497 = vmatpush.bf16.msra.mxu1 %v1289_v4 }
  0x13   :  { %1498 = vmatpush.bf16.msra.mxu2 %v1289_v4  ;;  %1499 = vmatpush.bf16.msra.mxu3 %v1289_v4 }
  0x16   :  { %471 = vmatpush.bf16.msra.mxu0 %v1288_v5  ;;  %1500 = vmatpush.bf16.msra.mxu1 %v1288_v5 }
  0x17   :  { %1501 = vmatpush.bf16.msra.mxu2 %v1288_v5  ;;  %1502 = vmatpush.bf16.msra.mxu3 %v1288_v5 }
  0x1a   :  { %472 = vmatpush.bf16.msra.mxu0 %v1287_v6  ;;  %1503 = vmatpush.bf16.msra.mxu1 %v1287_v6 }
  0x1b   :  { %1504 = vmatpush.bf16.msra.mxu2 %v1287_v6  ;;  %1505 = vmatpush.bf16.msra.mxu3 %v1287_v6 }
  0x1e   :  { %473 = vmatpush.bf16.msra.mxu0 %v1286_v7  ;;  %1506 = vmatpush.bf16.msra.mxu1 %v1286_v7 }
  0x1f   :  { %1507 = vmatpush.bf16.msra.mxu2 %v1286_v7  ;;  %1508 = vmatpush.bf16.msra.mxu3 %v1286_v7 }
  0x21   :  { %474 = vmatmul.bf16.vlgmr.msra.gmra.mxu0 %v1254_v8  ;;  %514 = vmatmul.bf16.vlgmr.msra.gmra.mxu1 %v1262_v9 }
  0x22   :  { %554 = vmatmul.bf16.vlgmr.msra.gmra.mxu2 %v1270_v10  ;;  %594 = vmatmul.bf16.vlgmr.msra.gmra.mxu3 %v1278_v11 }
  0x31   :  { %479 = vmatmul.bf16.gmra.mxu0 %v1255_v12  ;;  %519 = vmatmul.bf16.gmra.mxu1 %v1263_v13 }
  0x32   :  { %559 = vmatmul.bf16.gmra.mxu2 %v1271_v14  ;;  %599 = vmatmul.bf16.gmra.mxu3 %v1279_v15 }
  0x41   :  { %484 = vmatmul.bf16.gmra.mxu0 %v1256_v16  ;;  %524 = vmatmul.bf16.gmra.mxu1 %v1264_v17 }
  0x42   :  { %564 = vmatmul.bf16.gmra.mxu2 %v1272_v18  ;;  %604 = vmatmul.bf16.gmra.mxu3 %v1280_v19 }
  0x51   :  { %489 = vmatmul.bf16.gmra.mxu0 %v1257_v20  ;;  %529 = vmatmul.bf16.gmra.mxu1 %v1265_v21 }
  0x52   :  { %569 = vmatmul.bf16.gmra.mxu2 %v1273_v22  ;;  %609 = vmatmul.bf16.gmra.mxu3 %v1281_v23 }
  0x61   :  { %494 = vmatmul.bf16.gmra.mxu0 %v1258_v24  ;;  %534 = vmatmul.bf16.gmra.mxu1 %v1266_v25 }
  0x62   :  { %574 = vmatmul.bf16.gmra.mxu2 %v1274_v26  ;;  %614 = vmatmul.bf16.gmra.mxu3 %v1282_v27 }
  0x71   :  { %499 = vmatmul.bf16.gmra.mxu0 %v1259_v28  ;;  %539 = vmatmul.bf16.gmra.mxu1 %v1267_v29 }
  0x72   :  { %579 = vmatmul.bf16.gmra.mxu2 %v1275_v30  ;;  %619 = vmatmul.bf16.gmra.mxu3 %v1283_v31 }
  0x81   :  { %504 = vmatmul.bf16.gmra.mxu0 %v1260_v32  ;;  %544 = vmatmul.bf16.gmra.mxu1 %v1268_v33 }
  0x82   :  { %584 = vmatmul.bf16.gmra.mxu2 %v1276_v34  ;;  %624 = vmatmul.bf16.gmra.mxu3 %v1284_v35 }
  0x91   :  { %509 = vmatmul.bf16.gmra.mxu0 %v1261_v36  ;;  %549 = vmatmul.bf16.gmra.mxu1 %v1269_v37 }
  0x92   :  { %589 = vmatmul.bf16.gmra.mxu2 %v1277_v38  ;;  %629 = vmatmul.bf16.gmra.mxu3 %v1285_v39 }
  0x9e   :  { %v475_v40 = vpop.f32.mrf.mxu0  ;;  %v515_v41 = vpop.f32.mrf.mxu1 }
  0x9f   :  { %v834_v43 = vadd.f32 %v1653_v42, %v475_v40  ;;  %v850_v44 = vadd.f32 %v1653_v42, %v515_v41 }
  0xa1   :  { %v898_v51 = vmax.f32 %v834_v43, 0.0  ;;  %v914_v52 = vmax.f32 %v850_v44, 0.0 }
  0xa5   :  { %v555_v45 = vpop.f32.mrf.mxu2  ;;  %v595_v46 = vpop.f32.mrf.mxu3 }
  0xa6   :  { %v477_v47 = vpop.f32.mrf.mxu0  ;;  %v517_v48 = vpop.f32.mrf.mxu1  ;;  %v866_v57 = vadd.f32 %v1653_v42, %v555_v45  ;;  %v882_v58 = vadd.f32 %v1653_v42, %v595_v46 }
  0xa7   :  { %v835_v49 = vadd.f32 %v1653_v42, %v477_v47  ;;  %v851_v50 = vadd.f32 %v1653_v42, %v517_v48 }
  0xa8   :  { %v930_v1 = vmax.f32 %v866_v57, 0.0  ;;  %v946_v2 = vmax.f32 %v882_v58, 0.0 }
  0xa9   :  { %v899_v53 = vmax.f32 %v835_v49, 0.0  ;;  %v915_v54 = vmax.f32 %v851_v50, 0.0 }
  0xab   :  { %v1297_v55 = vpack.c.bf16 %v899_v53, %v898_v51  ;;  %v1337_v56 = vpack.c.bf16 %v915_v54, %v914_v52 }
  0xad   :  { %1298 = vst [vmem:[%s1818_s3] sm:$0xff] %v1297_v55   ;;  %v557_v59 = vpop.f32.mrf.mxu2  ;;  %v597_v60 = vpop.f32.mrf.mxu3 }
  0xae   :  { %1461 = vst [vmem:[%s1818_s3 + $0x40] sm:$0xff] %v1337_v56   ;;  %v867_v61 = vadd.f32 %v1653_v42, %v557_v59  ;;  %v883_v62 = vadd.f32 %v1653_v42, %v597_v60  ;;  %v480_v63 = vpop.f32.mrf.mxu0  ;;  %v520_v0 = vpop.f32.mrf.mxu1 }
  0xaf   :  { %v836_v7 = vadd.f32 %v1653_v42, %v480_v63  ;;  %v852_v8 = vadd.f32 %v1653_v42, %v520_v0 }
  0xb0   :  { %v931_v3 = vmax.f32 %v867_v61, 0.0  ;;  %v947_v4 = vmax.f32 %v883_v62, 0.0 }
  0xb1   :  { %v900_v15 = vmax.f32 %v836_v7, 0.0  ;;  %v916_v16 = vmax.f32 %v852_v8, 0.0 }
  0xb2   :  { %v1377_v5 = vpack.c.bf16 %v931_v3, %v930_v1  ;;  %v1417_v6 = vpack.c.bf16 %v947_v4, %v946_v2 }
  0xb4   :  { %1469 = vst [vmem:[%s1818_s3 + $0x80] sm:$0xff] %v1377_v5  }
  0xb5   :  { %1477 = vst [vmem:[%s1818_s3 + $0xc0] sm:$0xff] %v1417_v6   ;;  %v560_v9 = vpop.f32.mrf.mxu2  ;;  %v600_v10 = vpop.f32.mrf.mxu3 }
  0xb6   :  { %v482_v11 = vpop.f32.mrf.mxu0  ;;  %v522_v12 = vpop.f32.mrf.mxu1  ;;  %v868_v21 = vadd.f32 %v1653_v42, %v560_v9  ;;  %v884_v22 = vadd.f32 %v1653_v42, %v600_v10 }
  0xb7   :  { %v837_v13 = vadd.f32 %v1653_v42, %v482_v11  ;;  %v853_v14 = vadd.f32 %v1653_v42, %v522_v12 }
  0xb8   :  { %v932_v29 = vmax.f32 %v868_v21, 0.0  ;;  %v948_v30 = vmax.f32 %v884_v22, 0.0 }
  0xb9   :  { %v901_v17 = vmax.f32 %v837_v13, 0.0  ;;  %v917_v18 = vmax.f32 %v853_v14, 0.0 }
  0xbb   :  { %v1302_v19 = vpack.c.bf16 %v901_v17, %v900_v15  ;;  %v1342_v20 = vpack.c.bf16 %v917_v18, %v916_v16 }
  0xbd   :  { %1454 = vst [vmem:[%s1818_s3 + $0x8] sm:$0xff] %v1302_v19   ;;  %v562_v23 = vpop.f32.mrf.mxu2  ;;  %v602_v24 = vpop.f32.mrf.mxu3 }
  0xbe   :  { %1462 = vst [vmem:[%s1818_s3 + $0x48] sm:$0xff] %v1342_v20   ;;  %v869_v25 = vadd.f32 %v1653_v42, %v562_v23  ;;  %v885_v26 = vadd.f32 %v1653_v42, %v602_v24  ;;  %v485_v27 = vpop.f32.mrf.mxu0  ;;  %v525_v28 = vpop.f32.mrf.mxu1 }
  0xbf   :  { %v838_v35 = vadd.f32 %v1653_v42, %v485_v27  ;;  %v854_v36 = vadd.f32 %v1653_v42, %v525_v28 }
  0xc0   :  { %v933_v31 = vmax.f32 %v869_v25, 0.0  ;;  %v949_v32 = vmax.f32 %v885_v26, 0.0 }
  0xc1   :  { %v902_v44 = vmax.f32 %v838_v35, 0.0  ;;  %v918_v45 = vmax.f32 %v854_v36, 0.0 }
  0xc2   :  { %v1382_v33 = vpack.c.bf16 %v933_v31, %v932_v29  ;;  %v1422_v34 = vpack.c.bf16 %v949_v32, %v948_v30 }
  0xc4   :  { %1470 = vst [vmem:[%s1818_s3 + $0x88] sm:$0xff] %v1382_v33  }
  0xc5   :  { %1478 = vst [vmem:[%s1818_s3 + $0xc8] sm:$0xff] %v1422_v34   ;;  %v565_v37 = vpop.f32.mrf.mxu2  ;;  %v605_v38 = vpop.f32.mrf.mxu3 }
  0xc6   :  { %v487_v39 = vpop.f32.mrf.mxu0  ;;  %v527_v40 = vpop.f32.mrf.mxu1  ;;  %v870_v50 = vadd.f32 %v1653_v42, %v565_v37  ;;  %v886_v51 = vadd.f32 %v1653_v42, %v605_v38 }
  0xc7   :  { %v839_v41 = vadd.f32 %v1653_v42, %v487_v39  ;;  %v855_v43 = vadd.f32 %v1653_v42, %v527_v40 }
  0xc8   :  { %v934_v58 = vmax.f32 %v870_v50, 0.0  ;;  %v950_v59 = vmax.f32 %v886_v51, 0.0 }
  0xc9   :  { %v903_v46 = vmax.f32 %v839_v41, 0.0  ;;  %v919_v47 = vmax.f32 %v855_v43, 0.0 }
  0xcb   :  { %v1307_v48 = vpack.c.bf16 %v903_v46, %v902_v44  ;;  %v1347_v49 = vpack.c.bf16 %v919_v47, %v918_v45 }
  0xcd   :  { %1455 = vst [vmem:[%s1818_s3 + $0x10] sm:$0xff] %v1307_v48   ;;  %v567_v52 = vpop.f32.mrf.mxu2  ;;  %v607_v53 = vpop.f32.mrf.mxu3 }
  0xce   :  { %1463 = vst [vmem:[%s1818_s3 + $0x50] sm:$0xff] %v1347_v49   ;;  %v871_v54 = vadd.f32 %v1653_v42, %v567_v52  ;;  %v887_v55 = vadd.f32 %v1653_v42, %v607_v53  ;;  %v490_v56 = vpop.f32.mrf.mxu0  ;;  %v530_v57 = vpop.f32.mrf.mxu1 }
  0xcf   :  { %v840_v0 = vadd.f32 %v1653_v42, %v490_v56  ;;  %v856_v1 = vadd.f32 %v1653_v42, %v530_v57 }
  0xd0   :  { %v935_v60 = vmax.f32 %v871_v54, 0.0  ;;  %v951_v61 = vmax.f32 %v887_v55, 0.0 }
  0xd1   :  { %v904_v8 = vmax.f32 %v840_v0, 0.0  ;;  %v920_v9 = vmax.f32 %v856_v1, 0.0 }
  0xd2   :  { %v1387_v62 = vpack.c.bf16 %v935_v60, %v934_v58  ;;  %v1427_v63 = vpack.c.bf16 %v951_v61, %v950_v59 }
  0xd4   :  { %1471 = vst [vmem:[%s1818_s3 + $0x90] sm:$0xff] %v1387_v62  }
  0xd5   :  { %1479 = vst [vmem:[%s1818_s3 + $0xd0] sm:$0xff] %v1427_v63   ;;  %v570_v2 = vpop.f32.mrf.mxu2  ;;  %v610_v3 = vpop.f32.mrf.mxu3 }
  0xd6   :  { %v492_v4 = vpop.f32.mrf.mxu0  ;;  %v532_v5 = vpop.f32.mrf.mxu1  ;;  %v872_v14 = vadd.f32 %v1653_v42, %v570_v2  ;;  %v888_v15 = vadd.f32 %v1653_v42, %v610_v3 }
  0xd7   :  { %v841_v6 = vadd.f32 %v1653_v42, %v492_v4  ;;  %v857_v7 = vadd.f32 %v1653_v42, %v532_v5 }
  0xd8   :  { %v936_v22 = vmax.f32 %v872_v14, 0.0  ;;  %v952_v23 = vmax.f32 %v888_v15, 0.0 }
  0xd9   :  { %v905_v10 = vmax.f32 %v841_v6, 0.0  ;;  %v921_v11 = vmax.f32 %v857_v7, 0.0 }
  0xdb   :  { %v1312_v12 = vpack.c.bf16 %v905_v10, %v904_v8  ;;  %v1352_v13 = vpack.c.bf16 %v921_v11, %v920_v9 }
  0xdd   :  { %1456 = vst [vmem:[%s1818_s3 + $0x18] sm:$0xff] %v1312_v12   ;;  %v572_v16 = vpop.f32.mrf.mxu2  ;;  %v612_v17 = vpop.f32.mrf.mxu3 }
  0xde   :  { %1464 = vst [vmem:[%s1818_s3 + $0x58] sm:$0xff] %v1352_v13   ;;  %v873_v18 = vadd.f32 %v1653_v42, %v572_v16  ;;  %v889_v19 = vadd.f32 %v1653_v42, %v612_v17  ;;  %v495_v20 = vpop.f32.mrf.mxu0  ;;  %v535_v21 = vpop.f32.mrf.mxu1 }
  0xdf   :  { %v842_v28 = vadd.f32 %v1653_v42, %v495_v20  ;;  %v858_v29 = vadd.f32 %v1653_v42, %v535_v21 }
  0xe0   :  { %v937_v24 = vmax.f32 %v873_v18, 0.0  ;;  %v953_v25 = vmax.f32 %v889_v19, 0.0 }
  0xe1   :  { %v906_v36 = vmax.f32 %v842_v28, 0.0  ;;  %v922_v37 = vmax.f32 %v858_v29, 0.0 }
  0xe2   :  { %v1392_v26 = vpack.c.bf16 %v937_v24, %v936_v22  ;;  %v1432_v27 = vpack.c.bf16 %v953_v25, %v952_v23 }
  0xe4   :  { %1472 = vst [vmem:[%s1818_s3 + $0x98] sm:$0xff] %v1392_v26  }
  0xe5   :  { %1480 = vst [vmem:[%s1818_s3 + $0xd8] sm:$0xff] %v1432_v27   ;;  %v575_v30 = vpop.f32.mrf.mxu2  ;;  %v615_v31 = vpop.f32.mrf.mxu3 }
  0xe6   :  { %v497_v32 = vpop.f32.mrf.mxu0  ;;  %v537_v33 = vpop.f32.mrf.mxu1  ;;  %v874_v43 = vadd.f32 %v1653_v42, %v575_v30  ;;  %v890_v44 = vadd.f32 %v1653_v42, %v615_v31 }
  0xe7   :  { %v843_v34 = vadd.f32 %v1653_v42, %v497_v32  ;;  %v859_v35 = vadd.f32 %v1653_v42, %v537_v33 }
  0xe8   :  { %v938_v51 = vmax.f32 %v874_v43, 0.0  ;;  %v954_v52 = vmax.f32 %v890_v44, 0.0 }
  0xe9   :  { %v907_v38 = vmax.f32 %v843_v34, 0.0  ;;  %v923_v39 = vmax.f32 %v859_v35, 0.0 }
  0xeb   :  { %v1317_v40 = vpack.c.bf16 %v907_v38, %v906_v36  ;;  %v1357_v41 = vpack.c.bf16 %v923_v39, %v922_v37 }
  0xed   :  { %1457 = vst [vmem:[%s1818_s3 + $0x20] sm:$0xff] %v1317_v40   ;;  %v577_v45 = vpop.f32.mrf.mxu2  ;;  %v617_v46 = vpop.f32.mrf.mxu3 }
  0xee   :  { %1465 = vst [vmem:[%s1818_s3 + $0x60] sm:$0xff] %v1357_v41   ;;  %v875_v47 = vadd.f32 %v1653_v42, %v577_v45  ;;  %v891_v48 = vadd.f32 %v1653_v42, %v617_v46  ;;  %v500_v49 = vpop.f32.mrf.mxu0  ;;  %v540_v50 = vpop.f32.mrf.mxu1 }
  0xef   :  { %v844_v57 = vadd.f32 %v1653_v42, %v500_v49  ;;  %v860_v58 = vadd.f32 %v1653_v42, %v540_v50 }
  0xf0   :  { %v939_v53 = vmax.f32 %v875_v47, 0.0  ;;  %v955_v54 = vmax.f32 %v891_v48, 0.0 }
  0xf1   :  { %v908_v1 = vmax.f32 %v844_v57, 0.0  ;;  %v924_v2 = vmax.f32 %v860_v58, 0.0 }
  0xf2   :  { %v1397_v55 = vpack.c.bf16 %v939_v53, %v938_v51  ;;  %v1437_v56 = vpack.c.bf16 %v955_v54, %v954_v52 }
  0xf4   :  { %1473 = vst [vmem:[%s1818_s3 + $0xa0] sm:$0xff] %v1397_v55  }
  0xf5   :  { %1481 = vst [vmem:[%s1818_s3 + $0xe0] sm:$0xff] %v1437_v56   ;;  %v580_v59 = vpop.f32.mrf.mxu2  ;;  %v620_v60 = vpop.f32.mrf.mxu3 }
  0xf6   :  { %v502_v61 = vpop.f32.mrf.mxu0  ;;  %v542_v62 = vpop.f32.mrf.mxu1  ;;  %v876_v7 = vadd.f32 %v1653_v42, %v580_v59  ;;  %v892_v8 = vadd.f32 %v1653_v42, %v620_v60 }
  0xf7   :  { %v845_v63 = vadd.f32 %v1653_v42, %v502_v61  ;;  %v861_v0 = vadd.f32 %v1653_v42, %v542_v62 }
  0xf8   :  { %v940_v15 = vmax.f32 %v876_v7, 0.0  ;;  %v956_v16 = vmax.f32 %v892_v8, 0.0 }
  0xf9   :  { %v909_v3 = vmax.f32 %v845_v63, 0.0  ;;  %v925_v4 = vmax.f32 %v861_v0, 0.0 }
  0xfb   :  { %v1322_v5 = vpack.c.bf16 %v909_v3, %v908_v1  ;;  %v1362_v6 = vpack.c.bf16 %v925_v4, %v924_v2 }
  0xfd   :  { %1458 = vst [vmem:[%s1818_s3 + $0x28] sm:$0xff] %v1322_v5   ;;  %v582_v9 = vpop.f32.mrf.mxu2  ;;  %v622_v10 = vpop.f32.mrf.mxu3 }
  0xfe   :  { %1466 = vst [vmem:[%s1818_s3 + $0x68] sm:$0xff] %v1362_v6   ;;  %v877_v11 = vadd.f32 %v1653_v42, %v582_v9  ;;  %v893_v12 = vadd.f32 %v1653_v42, %v622_v10  ;;  %v505_v13 = vpop.f32.mrf.mxu0  ;;  %v545_v14 = vpop.f32.mrf.mxu1 }
  0xff   :  { %v846_v21 = vadd.f32 %v1653_v42, %v505_v13  ;;  %v862_v22 = vadd.f32 %v1653_v42, %v545_v14 }
 0x100   :  { %v941_v17 = vmax.f32 %v877_v11, 0.0  ;;  %v957_v18 = vmax.f32 %v893_v12, 0.0 }
 0x101   :  { %v910_v29 = vmax.f32 %v846_v21, 0.0  ;;  %v926_v30 = vmax.f32 %v862_v22, 0.0 }
 0x102   :  { %v1402_v19 = vpack.c.bf16 %v941_v17, %v940_v15  ;;  %v1442_v20 = vpack.c.bf16 %v957_v18, %v956_v16 }
 0x104   :  { %1474 = vst [vmem:[%s1818_s3 + $0xa8] sm:$0xff] %v1402_v19  }
 0x105   :  { %1482 = vst [vmem:[%s1818_s3 + $0xe8] sm:$0xff] %v1442_v20   ;;  %v585_v23 = vpop.f32.mrf.mxu2  ;;  %v625_v24 = vpop.f32.mrf.mxu3 }
 0x106   :  { %v507_v25 = vpop.f32.mrf.mxu0  ;;  %v547_v26 = vpop.f32.mrf.mxu1  ;;  %v878_v35 = vadd.f32 %v1653_v42, %v585_v23  ;;  %v894_v36 = vadd.f32 %v1653_v42, %v625_v24 }
 0x107   :  { %v847_v27 = vadd.f32 %v1653_v42, %v507_v25  ;;  %v863_v28 = vadd.f32 %v1653_v42, %v547_v26 }
 0x108   :  { %v942_v44 = vmax.f32 %v878_v35, 0.0  ;;  %v958_v45 = vmax.f32 %v894_v36, 0.0 }
 0x109   :  { %v911_v31 = vmax.f32 %v847_v27, 0.0  ;;  %v927_v32 = vmax.f32 %v863_v28, 0.0 }
 0x10b   :  { %v1327_v33 = vpack.c.bf16 %v911_v31, %v910_v29  ;;  %v1367_v34 = vpack.c.bf16 %v927_v32, %v926_v30 }
 0x10d   :  { %1459 = vst [vmem:[%s1818_s3 + $0x30] sm:$0xff] %v1327_v33   ;;  %v587_v37 = vpop.f32.mrf.mxu2  ;;  %v627_v38 = vpop.f32.mrf.mxu3 }
 0x10e   :  { %1467 = vst [vmem:[%s1818_s3 + $0x70] sm:$0xff] %v1367_v34   ;;  %v879_v39 = vadd.f32 %v1653_v42, %v587_v37  ;;  %v895_v40 = vadd.f32 %v1653_v42, %v627_v38  ;;  %v510_v41 = vpop.f32.mrf.mxu0  ;;  %v550_v43 = vpop.f32.mrf.mxu1 }
 0x10f   :  { %v848_v50 = vadd.f32 %v1653_v42, %v510_v41  ;;  %v864_v51 = vadd.f32 %v1653_v42, %v550_v43 }
 0x110   :  { %v943_v46 = vmax.f32 %v879_v39, 0.0  ;;  %v959_v47 = vmax.f32 %v895_v40, 0.0 }
 0x111   :  { %v912_v58 = vmax.f32 %v848_v50, 0.0  ;;  %v928_v59 = vmax.f32 %v864_v51, 0.0 }
 0x112   :  { %v1407_v48 = vpack.c.bf16 %v943_v46, %v942_v44  ;;  %v1447_v49 = vpack.c.bf16 %v959_v47, %v958_v45 }
 0x114   :  { %1475 = vst [vmem:[%s1818_s3 + $0xb0] sm:$0xff] %v1407_v48  }
 0x115   :  { %1483 = vst [vmem:[%s1818_s3 + $0xf0] sm:$0xff] %v1447_v49   ;;  %v590_v52 = vpop.f32.mrf.mxu2  ;;  %v630_v53 = vpop.f32.mrf.mxu3 }
 0x116   :  { %v512_v54 = vpop.f32.mrf.mxu0  ;;  %v552_v55 = vpop.f32.mrf.mxu1  ;;  %v880_v0 = vadd.f32 %v1653_v42, %v590_v52  ;;  %v896_v1 = vadd.f32 %v1653_v42, %v630_v53 }
 0x117   :  { %v849_v56 = vadd.f32 %v1653_v42, %v512_v54  ;;  %v865_v57 = vadd.f32 %v1653_v42, %v552_v55 }
 0x118   :  { %v944_v6 = vmax.f32 %v880_v0, 0.0  ;;  %v960_v7 = vmax.f32 %v896_v1, 0.0 }
 0x119   :  { %v913_v60 = vmax.f32 %v849_v56, 0.0  ;;  %v929_v61 = vmax.f32 %v865_v57, 0.0 }
 0x11b   :  { %v1332_v62 = vpack.c.bf16 %v913_v60, %v912_v58  ;;  %v1372_v63 = vpack.c.bf16 %v929_v61, %v928_v59 }
 0x11d   :  { %1460 = vst [vmem:[%s1818_s3 + $0x38] sm:$0xff] %v1332_v62   ;;  %v592_v2 = vpop.f32.mrf.mxu2  ;;  %v632_v3 = vpop.f32.mrf.mxu3 }
 0x11e   :  { %1468 = vst [vmem:[%s1818_s3 + $0x78] sm:$0xff] %v1372_v63   ;;  %v881_v4 = vadd.f32 %v1653_v42, %v592_v2  ;;  %v897_v5 = vadd.f32 %v1653_v42, %v632_v3 }
 0x120   :  { %v945_v8 = vmax.f32 %v881_v4, 0.0  ;;  %v961_v9 = vmax.f32 %v897_v5, 0.0 }
 0x122   :  { %v1412_v10 = vpack.c.bf16 %v945_v8, %v944_v6  ;;  %v1452_v11 = vpack.c.bf16 %v961_v9, %v960_v7 }
 0x124   :  { %1476 = vst [vmem:[%s1818_s3 + $0xb8] sm:$0xff] %v1412_v10  }
 0x125   :  { %1484 = vst [vmem:[%s1818_s3 + $0xf8] sm:$0xff] %v1452_v11  }

// kernel: homography_forward.12
= control target key start
LH: loop header
LB: loop body
LE: loop exit
PB: predicated region body
PF: predicated region fallthrough
CT: control target
= control target key end

     0   :  { %vm299_vm0 = vcmask 1046528   ;;  %vm179_vm1 = vsmask.f32 7424  ;;  %vm1857_vm2 = vcmask 1045504   ;;  %s4321_s2 = inlined_call_operand.vmem [shape: bf16[3,384,128], index: 2, kind: input, shape index: {}]   ;;  %s4322_s0 = inlined_call_operand.vmem [shape: bf16[200,128], index: 0, kind: input, shape index: {}]   ;;  %s4323_s1 = inlined_call_operand.vmem [shape: bf16[1,24,128], index: 1, kind: input, shape index: {}]   ;;  %s4324_s3 = inlined_call_operand.vmem [shape: f32[1,128], index: 3, kind: input, shape index: {}]   ;;  %s4325_s4 = inlined_call_operand.vmem [shape: bf16[200,128], index: 4, kind: output, shape index: {}]  }
   0x1   :  { %v3077_v0 = vld [vmem:[%s4321_s2 + $0x38] sm:$0xff]  ;;  %v3076_v1 = vld [vmem:[%s4321_s2 + $0x30] sm:$0xff]  ;;  %v17_v2 = vld [vmem:[%s4322_s0] sm:$0xff]  }
   0x2   :  { %530 = vmatpush.bf16.msra.mxu0 %v3077_v0  ;;  %3242 = vmatpush.bf16.msra.mxu1 %v3077_v0  ;;  %42 = vst [vmem:[#allocation2] sm:$0xff] %v17_v2   ;;  %v25_v3 = vld [vmem:[%s4322_s0 + $0x20] sm:$0xff]   ;;  %v37_v4 = vld [vmem:[%s4322_s0 + $0x50] sm:$0xff]   ;;  %v19_v5 = vld [vmem:[%s4322_s0 + $0x8] sm:$0xff]  }
   0x3   :  { %3244 = vmatpush.bf16.msra.mxu3 %v3077_v0  ;;  %3243 = vmatpush.bf16.msra.mxu2 %v3077_v0  ;;  %50 = vst [vmem:[#allocation2 + $0x20] sm:$0xff] %v25_v3   ;;  %v3075_v6 = vld [vmem:[%s4321_s2 + $0x28] sm:$0xff]  ;;  %v33_v8 = vld [vmem:[%s4322_s0 + $0x40] sm:$0xff]   ;;  %v39_v9 = vld [vmem:[%s4322_s0 + $0x58] sm:$0xff]  }
   0x4   :  { %62 = vst [vmem:[#allocation2 + $0x50] sm:$0xff] %v37_v4   ;;  %v27_v7 = vld [vmem:[%s4322_s0 + $0x28] sm:$0xff]   ;;  %v3074_v10 = vld [vmem:[%s4321_s2 + $0x20] sm:$0xff]  ;;  %v3073_v11 = vld [vmem:[%s4321_s2 + $0x18] sm:$0xff] }
   0x5   :  { %44 = vst [vmem:[#allocation2 + $0x8] sm:$0xff] %v19_v5   ;;  %v3072_v12 = vld [vmem:[%s4321_s2 + $0x10] sm:$0xff]  ;;  %v3071_v14 = vld [vmem:[%s4321_s2 + $0x8] sm:$0xff]  ;;  %v41_v15 = vld [vmem:[%s4322_s0 + $0x60] sm:$0xf] }
   0x6   :  { %531 = vmatpush.bf16.msra.mxu0 %v3076_v1  ;;  %3245 = vmatpush.bf16.msra.mxu1 %v3076_v1  ;;  %52 = vst [vmem:[#allocation2 + $0x28] sm:$0xff] %v27_v7   ;;  %v21_v13 = vld [vmem:[%s4322_s0 + $0x10] sm:$0xff]   ;;  %v35_v17 = vld [vmem:[%s4322_s0 + $0x48] sm:$0xff]   ;;  %v3070_v18 = vld [vmem:[%s4321_s2] sm:$0xff] }
   0x7   :  { %3247 = vmatpush.bf16.msra.mxu3 %v3076_v1  ;;  %3246 = vmatpush.bf16.msra.mxu2 %v3076_v1  ;;  %58 = vst [vmem:[#allocation2 + $0x40] sm:$0xff] %v33_v8   ;;  %v29_v16 = vld [vmem:[%s4322_s0 + $0x30] sm:$0xff]   ;;  %v3085_v19 = vld [vmem:[%s4321_s2 + $0x78] sm:$0xff]  ;;  %v67_v30 = vld [vmem:[%s4323_s1] sm:$0xff]  }
   0x8   :  { %64 = vst [vmem:[#allocation2 + $0x58] sm:$0xff] %v39_v9   ;;  %v3120_v20 = vld [vmem:[%s4321_s2 + $0x138] sm:$0xff]  ;;  %v3084_v25 = vld [vmem:[%s4321_s2 + $0x70] sm:$0xff]  ;;  %v69_v31 = vld [vmem:[%s4323_s1 + $0x8] sm:$0xf] }
   0x9   :  { %46 = vst [vmem:[#allocation2 + $0x10] sm:$0xff] %v21_v13   ;;  %v3112_v21 = vld [vmem:[%s4321_s2 + $0xf8] sm:$0xff]  ;;  %v3360_v23 = vld [vmem:[#allocation2] sm:$0xff]   ;;  %v3119_v27 = vld [vmem:[%s4321_s2 + $0x130] sm:$0xff] }
   0xa   :  { %532 = vmatpush.bf16.msra.mxu0 %v3075_v6  ;;  %3248 = vmatpush.bf16.msra.mxu1 %v3075_v6  ;;  %66 = vst [vmem:[#allocation2 + $0x60] sm:$0xf] %v41_v15  ;;  %v3358_v22 = vld [vmem:[#allocation2 + $0x20] sm:$0xff]  ;;  %v3093_v26 = vld [vmem:[%s4321_s2 + $0xb8] sm:$0xff]  ;;  %v3111_v28 = vld [vmem:[%s4321_s2 + $0xf0] sm:$0xff] }
   0xb   :  { %3250 = vmatpush.bf16.msra.mxu3 %v3075_v6  ;;  %3249 = vmatpush.bf16.msra.mxu2 %v3075_v6  ;;  %54 = vst [vmem:[#allocation2 + $0x30] sm:$0xff] %v29_v16   ;;  %v3362_v24 = vld [vmem:[#allocation2 + $0x50] sm:$0xff]  ;;  %v3083_v32 = vld [vmem:[%s4321_s2 + $0x68] sm:$0xff]  ;;  %v23_v36 = vld [vmem:[%s4322_s0 + $0x18] sm:$0xff]  }
   0xc   :  { %60 = vst [vmem:[#allocation2 + $0x48] sm:$0xff] %v35_v17   ;;  %v3092_v33 = vld [vmem:[%s4321_s2 + $0xb0] sm:$0xff]  ;;  %v3118_v34 = vld [vmem:[%s4321_s2 + $0x128] sm:$0xff]  ;;  %v3082_v37 = vld [vmem:[%s4321_s2 + $0x60] sm:$0xff] }
   0xd   :  { %70 = vst [vmem:[#allocation2 + $0x64] sm:$0xff] %v67_v30   ;;  %v3110_v35 = vld [vmem:[%s4321_s2 + $0xe8] sm:$0xff]  ;;  %v31_v39 = vld [vmem:[%s4322_s0 + $0x38] sm:$0xff]   ;;  %v3117_v40 = vld [vmem:[%s4321_s2 + $0x120] sm:$0xff] }
   0xe   :  { %533 = vmatpush.bf16.msra.mxu0 %v3074_v10  ;;  %3251 = vmatpush.bf16.msra.mxu1 %v3074_v10  ;;  %v3378_v29 = vld [vmem:[#allocation2 + $0x40] sm:$0xff]  ;;  %72 = vst [vmem:[#allocation2 + $0x6c] sm:$0xf] %v69_v31  ;;  %v3091_v38 = vld [vmem:[%s4321_s2 + $0xa8] sm:$0xff]  ;;  %v3081_v43 = vld [vmem:[%s4321_s2 + $0x58] sm:$0xff] }
   0xf   :  { %3253 = vmatpush.bf16.msra.mxu3 %v3074_v10  ;;  %3252 = vmatpush.bf16.msra.mxu2 %v3074_v10  ;;  %48 = vst [vmem:[#allocation2 + $0x18] sm:$0xff] %v23_v36   ;;  %v3109_v41 = vld [vmem:[%s4321_s2 + $0xe0] sm:$0xff]  ;;  %v3108_v44 = vld [vmem:[%s4321_s2 + $0xd8] sm:$0xff]  ;;  %v3430_v46 = vld [vmem:[#allocation2 + $0x8] sm:$0xff] }
  0x10   :  { %56 = vst [vmem:[#allocation2 + $0x38] sm:$0xff] %v31_v39   ;;  %v3090_v42 = vld [vmem:[%s4321_s2 + $0xa0] sm:$0xff]  ;;  %v3116_v45 = vld [vmem:[%s4321_s2 + $0x118] sm:$0xff]  ;;  %v3432_v47 = vld [vmem:[#allocation2 + $0x28] sm:$0xff]  ;;  %v301_v10 = vrot.slane %v3430_v46, 1 }
  0x11   :  { %v3434_v48 = vld [vmem:[#allocation2 + $0x58] sm:$0xff]  ;;  %v3080_v50 = vld [vmem:[%s4321_s2 + $0x50] sm:$0xff]  ;;  %v3079_v55 = vld [vmem:[%s4321_s2 + $0x48] sm:$0xff] }
  0x12   :  { %534 = vmatpush.bf16.msra.mxu0 %v3073_v11  ;;  %3254 = vmatpush.bf16.msra.mxu1 %v3073_v11  ;;  %v3089_v49 = vld [vmem:[%s4321_s2 + $0x98] sm:$0xff]  ;;  %v3107_v51 = vld [vmem:[%s4321_s2 + $0xd0] sm:$0xff]  ;;  %v3106_v56 = vld [vmem:[%s4321_s2 + $0xc8] sm:$0xff] }
  0x13   :  { %3256 = vmatpush.bf16.msra.mxu3 %v3073_v11  ;;  %3255 = vmatpush.bf16.msra.mxu2 %v3073_v11  ;;  %v3115_v52 = vld [vmem:[%s4321_s2 + $0x110] sm:$0xff]  ;;  %v3450_v53 = vld [vmem:[#allocation2 + $0x48] sm:$0xff]  ;;  %v97_v58 = vld [vmem:[#allocation2 + $0x60] sm:$0xf] }
  0x14   :  { %v3088_v54 = vld [vmem:[%s4321_s2 + $0x90] sm:$0xff]  ;;  %v3114_v57 = vld [vmem:[%s4321_s2 + $0x108] sm:$0xff]  ;;  %v3228_v60 = vld [vmem:[#allocation2] sm:$0xf0]  ;;  %v3481_v2 = vunpack.c.l.b16 %v97_v58 }
  0x15   :  { %v3087_v59 = vld [vmem:[%s4321_s2 + $0x88] sm:$0xff]  ;;  %v3229_v61 = vld [vmem:[#allocation2] sm:$0xe]  ;;  %v3155_v1 = vld [vmem:[%s4321_s2 + $0x1f8] sm:$0xff] }
  0x16   :  { %535 = vmatpush.bf16.msra.mxu0 %v3072_v12  ;;  %3257 = vmatpush.bf16.msra.mxu1 %v3072_v12  ;;  %v3078_v62 = vld [vmem:[%s4321_s2 + $0x40] sm:$0xff]  ;;  %v3230_v3 = vor.u32 %v3229_v61, %v3228_v60  ;;  %v3147_v5 = vld [vmem:[%s4321_s2 + $0x1b8] sm:$0xff]  ;;  %v3489_v6 = vld [vmem:[#allocation2 + $0x10] sm:$0xff]  ;;  %v162_v8 = vpack.c.b16 %v3481_v2, %v3481_v2 }
  0x17   :  { %3259 = vmatpush.bf16.msra.mxu3 %v3072_v12  ;;  %3258 = vmatpush.bf16.msra.mxu2 %v3072_v12  ;;  %v3105_v63 = vld [vmem:[%s4321_s2 + $0xc0] sm:$0xff]  ;;  %v3491_v7 = vld [vmem:[#allocation2 + $0x30] sm:$0xff]  ;;  %v3496_v12 = vld [vmem:[#allocation2 + $0x8] sm:$0xf] }
  0x18   :  { %v3113_v0 = vld [vmem:[%s4321_s2 + $0x100] sm:$0xff]  ;;  %v300_v9 = vrot.slane %v3230_v3, 1  ;;  %v3128_v13 = vld [vmem:[%s4321_s2 + $0x178] sm:$0xff]  ;;  %v4326_v16 = vunpack.c.l.b16 %v3496_v12 }
  0x19   :  { %v3086_v4 = vld [vmem:[%s4321_s2 + $0x80] sm:$0xff]  ;;  %v3163_v17 = vld [vmem:[%s4321_s2 + $0x238] sm:$0xff] }
  0x1a   :  { %536 = vmatpush.bf16.msra.mxu0 %v3071_v14  ;;  %3260 = vmatpush.bf16.msra.mxu1 %v3071_v14  ;;  %v774_v11 = vld [vmem:[#allocation2 + $0x4] sm:$0xe]  ;;  %v3516_v30 = vld [vmem:[#allocation2 + $0x38] sm:$0xff] }
  0x1b   :  { %3262 = vmatpush.bf16.msra.mxu3 %v3071_v14  ;;  %3261 = vmatpush.bf16.msra.mxu2 %v3071_v14  ;;  %v302_v14 = vsel %vm299_vm0, %v300_v9, %v301_v10  ;;  %v828_v15 = vunpack.c.l.b16 %v774_v11  ;;  %v3096_v61 = vld [vmem:[#allocation2 + $0x1c] sm:$0xff]  ;;  %v192_v11 = vshrl.u32 %v3430_v46, 16 }
  0x1c   :  { %v894_v3 = vshll.u32 %v3096_v61, 16 }
  0x1e   :  { %537 = vmatpush.bf16.msra.mxu0 %v3070_v18  ;;  %3263 = vmatpush.bf16.msra.mxu1 %v3070_v18 }
  0x1f   :  { %3265 = vmatpush.bf16.msra.mxu3 %v3070_v18  ;;  %3264 = vmatpush.bf16.msra.mxu2 %v3070_v18  ;;  %v3094_v18 = vld [vmem:[#allocation2 + $0xc] sm:$0xff] }
  0x20   :  { %v882_v36 = vshrl.u32 %v3094_v18, 16 }
  0x21   :  { %538 = vmatmul.bf16.vlgmr.msra.gmra.mxu0 %v3360_v23  ;;  %558 = vmatmul.bf16.vlgmr.msra.gmra.mxu1 %v3358_v22 }
  0x22   :  { %603 = vmatpush.bf16.msrb.mxu1 %v3085_v19  ;;  %1360 = vmatpush.bf16.msrb.mxu0 %v3120_v20  ;;  %v854_v19 = vpack.c.b16 %v4326_v16, %v828_v15  ;;  %v3510_v20 = vrot.slane %v3094_v18, 1 }
  0x23   :  { %1287 = vmatpush.bf16.msrb.mxu3 %v3112_v21  ;;  %676 = vmatpush.bf16.msrb.mxu2 %v3093_v26 }
  0x24   :  { %588 = vmatmul.bf16.vlgmr.msra.gmra.mxu3 %v3362_v24  ;;  %578 = vmatmul.bf16.vlgmr.msra.gmra.mxu2 %v3378_v29  ;;  %v1050_v21 = vrot.slane %v854_v19, 1  ;;  %v873_v26 = vshll.u32 %v854_v19, 16 }
  0x26   :  { %604 = vmatpush.bf16.msrb.mxu1 %v3084_v25  ;;  %1361 = vmatpush.bf16.msrb.mxu0 %v3119_v27  ;;  %v3512_v25 = vld [vmem:[#allocation2 + $0x14] sm:$0xff]  ;;  %v878_v27 = vshll.u32 %v3094_v18, 16  ;;  %v1051_v31 = vsel %vm299_vm0, %v1050_v21, %v3510_v20  ;;  %v3097_v21 = vld [vmem:[#allocation2 + $0x24] sm:$0xff] }
  0x27   :  { %1288 = vmatpush.bf16.msrb.mxu3 %v3111_v28  ;;  %677 = vmatpush.bf16.msrb.mxu2 %v3092_v33  ;;  %v3514_v28 = vld [vmem:[#allocation2 + $0x18] sm:$0xff]  ;;  %v303_v33 = vrot.slane %v3489_v6, 1  ;;  %v979_v60 = vrot.slane %v3512_v25, 1 }
  0x29   :  { %v304_v39 = vsel %vm299_vm0, %v301_v10, %v303_v33  ;;  %v896_v10 = vrot.slane %v894_v3, 1 }
  0x2a   :  { %605 = vmatpush.bf16.msrb.mxu1 %v3083_v32  ;;  %1362 = vmatpush.bf16.msrb.mxu0 %v3118_v34  ;;  %v871_v32 = vshrl.u32 %v854_v19, 16  ;;  %v875_v34 = vrot.slane %v873_v26, 1  ;;  %v981_v19 = vrot.slane %v3096_v61, 1 }
  0x2b   :  { %1289 = vmatpush.bf16.msrb.mxu3 %v3110_v35  ;;  %678 = vmatpush.bf16.msrb.mxu2 %v3091_v38  ;;  %v880_v35 = vrot.slane %v878_v27, 1  ;;  %v183_v38 = vshll.u32 %v3360_v23, 16  ;;  %v307_v27 = vrot.slane %v3358_v22, 1 }
  0x2e   :  { %606 = vmatpush.bf16.msrb.mxu1 %v3082_v37  ;;  %1363 = vmatpush.bf16.msrb.mxu0 %v3117_v40  ;;  %v886_v37 = vshll.u32 %v3512_v25, 16  ;;  %v3146_v40 = vld [vmem:[%s4321_s2 + $0x1b0] sm:$0xff] }
  0x2f   :  { %1290 = vmatpush.bf16.msrb.mxu3 %v3109_v41  ;;  %679 = vmatpush.bf16.msrb.mxu2 %v3090_v42  ;;  %v3154_v41 = vld [vmem:[%s4321_s2 + $0x1f0] sm:$0xff] }
  0x30   :  { %v3127_v42 = vld [vmem:[%s4321_s2 + $0x170] sm:$0xff] }
  0x31   :  { %543 = vmatmul.bf16.gmra.mxu0 %v3430_v46  ;;  %563 = vmatmul.bf16.gmra.mxu1 %v3432_v47 }
  0x32   :  { %607 = vmatpush.bf16.msrb.mxu1 %v3081_v43  ;;  %1364 = vmatpush.bf16.msrb.mxu0 %v3116_v45  ;;  %v876_v43 = vor.u32 %v875_v34, %v871_v32  ;;  %v888_v45 = vrot.slane %v886_v37, 1  ;;  %v898_v32 = vshrl.u32 %v3096_v61, 16  ;;  %v3126_v34 = vld [vmem:[%s4321_s2 + $0x168] sm:$0xff]  ;;  %v3152_v61 = vld [vmem:[%s4321_s2 + $0x1e0] sm:$0xff] }
  0x33   :  { %1291 = vmatpush.bf16.msrb.mxu3 %v3108_v44  ;;  %680 = vmatpush.bf16.msrb.mxu2 %v3089_v49  ;;  %v884_v44 = vor.u32 %v882_v36, %v880_v35  ;;  %v3162_v49 = vld [vmem:[%s4321_s2 + $0x230] sm:$0xff] }
  0x34   :  { %593 = vmatmul.bf16.gmra.mxu3 %v3434_v48  ;;  %583 = vmatmul.bf16.gmra.mxu2 %v3450_v53  ;;  %v900_v36 = vor.u32 %v898_v32, %v896_v10 }
  0x36   :  { %608 = vmatpush.bf16.msrb.mxu1 %v3080_v50  ;;  %1365 = vmatpush.bf16.msrb.mxu0 %v3115_v52  ;;  %v181_v50 = vshrl.u32 %v3360_v23, 16  ;;  %v188_v52 = vshll.u32 %v3430_v46, 16  ;;  %v305_v23 = vrot.slane %v3514_v28, 1  ;;  %v902_v46 = vshll.u32 %v3097_v21, 16 }
  0x37   :  { %1292 = vmatpush.bf16.msrb.mxu3 %v3107_v51  ;;  %681 = vmatpush.bf16.msrb.mxu2 %v3088_v54  ;;  %v185_v51 = vrot.slane %v183_v38, 1  ;;  %v881_v54 = vsel %vm179_vm1, %v876_v43, %v880_v35  ;;  %v3161_v35 = vld [vmem:[%s4321_s2 + $0x228] sm:$0xff]  ;;  %v200_v38 = vshrl.u32 %v3489_v6, 16 }
  0x38   :  { %v1052_v58 = vrot.slane %v881_v54, 1  ;;  %v904_v37 = vrot.slane %v902_v46, 1  ;;  %v906_v54 = vshrl.u32 %v3097_v21, 16 }
  0x3a   :  { %609 = vmatpush.bf16.msrb.mxu1 %v3079_v55  ;;  %1366 = vmatpush.bf16.msrb.mxu0 %v3114_v57  ;;  %v889_v55 = vsel %vm179_vm1, %v884_v44, %v888_v45  ;;  %v190_v57 = vrot.slane %v188_v52, 1  ;;  %v983_v44 = vrot.slane %v3097_v21, 1  ;;  %v220_v21 = vshll.u32 %v3432_v47, 16 }
  0x3b   :  { %1293 = vmatpush.bf16.msrb.mxu3 %v3106_v56  ;;  %682 = vmatpush.bf16.msrb.mxu2 %v3087_v59  ;;  %v186_v56 = vor.u32 %v185_v51, %v181_v50  ;;  %v1053_v59 = vrot.slane %v889_v55, 1  ;;  %v309_v51 = vrot.slane %v3432_v47, 1 }
  0x3c   :  { %v194_v15 = vor.u32 %v192_v11, %v190_v57  ;;  %v3583_v52 = vsel %vm299_vm0, %v981_v19, %v983_v44 }
  0x3d   :  { %v310_v55 = vsel %vm299_vm0, %v307_v27, %v309_v51 }
  0x3e   :  { %610 = vmatpush.bf16.msrb.mxu1 %v3078_v62  ;;  %1367 = vmatpush.bf16.msrb.mxu0 %v3113_v0  ;;  %v191_v62 = vsel %vm179_vm1, %v186_v56, %v190_v57  ;;  %v3548_v0 = vsel %vm299_vm0, %v3510_v20, %v979_v60  ;;  %v908_v56 = vor.u32 %v906_v54, %v904_v37  ;;  %v224_v54 = vshrl.u32 %v3432_v47, 16 }
  0x3f   :  { %1294 = vmatpush.bf16.msrb.mxu3 %v3105_v63  ;;  %683 = vmatpush.bf16.msrb.mxu2 %v3086_v4  ;;  %v1054_v63 = vsel %vm299_vm0, %v1052_v58, %v1053_v59  ;;  %v306_v4 = vsel %vm299_vm0, %v303_v33, %v305_v23  ;;  %v308_v33 = vsel %vm299_vm0, %v305_v23, %v307_v27  ;;  %v208_v58 = vshrl.u32 %v3514_v28, 16 }
  0x40   :  { %v222_v27 = vrot.slane %v220_v21, 1  ;;  %v232_v21 = vshrl.u32 %v3491_v7, 16 }
  0x41   :  { %548 = vmatmul.bf16.gmra.mxu0 %v3489_v6  ;;  %568 = vmatmul.bf16.gmra.mxu1 %v3491_v7 }
  0x42   :  { %1433 = vmatpush.bf16.msra.mxu1 %v3128_v13  ;;  %2262 = vmatpush.bf16.msra.mxu0 %v3163_v17  ;;  %v196_v13 = vshll.u32 %v3489_v6, 16 }
  0x43   :  { %2189 = vmatpush.bf16.msra.mxu3 %v3155_v1  ;;  %2116 = vmatpush.bf16.msra.mxu2 %v3147_v5  ;;  %v890_v1 = vshrl.u32 %v3512_v25, 16  ;;  %v3145_v5 = vld [vmem:[%s4321_s2 + $0x1a8] sm:$0xff] }
  0x44   :  { %598 = vmatmul.bf16.gmra.mxu3 %v162_v8  ;;  %684 = vmatmul.bf16.vlgmr.msrb.gmra.mxu2 %v302_v14  ;;  %v3153_v8 = vld [vmem:[%s4321_s2 + $0x1e8] sm:$0xff]  ;;  %v198_v17 = vrot.slane %v196_v13, 1 }
  0x45   :  { %v892_v9 = vor.u32 %v890_v1, %v888_v45  ;;  %v3098_v45 = vld [vmem:[#allocation2 + $0x2c] sm:$0xff] }
  0x46   :  { %1434 = vmatpush.bf16.msra.mxu1 %v3127_v42  ;;  %2263 = vmatpush.bf16.msra.mxu0 %v3162_v49  ;;  %v199_v25 = vsel %vm179_vm1, %v194_v15, %v198_v17  ;;  %v910_v6 = vshll.u32 %v3098_v45, 16  ;;  %v985_v3 = vrot.slane %v3098_v45, 1  ;;  %v914_v11 = vshrl.u32 %v3098_v45, 16 }
  0x47   :  { %2117 = vmatpush.bf16.msra.mxu2 %v3146_v40  ;;  %2190 = vmatpush.bf16.msra.mxu3 %v3154_v41  ;;  %v897_v14 = vsel %vm179_vm1, %v892_v9, %v896_v10  ;;  %v905_v40 = vsel %vm179_vm1, %v900_v36, %v904_v37  ;;  %v202_v41 = vor.u32 %v200_v38, %v198_v17  ;;  %v3125_v9 = vld [vmem:[%s4321_s2 + $0x160] sm:$0xff] }
  0x48   :  { %v1058_v18 = vrot.slane %v897_v14, 1  ;;  %v1062_v43 = vrot.slane %v905_v40, 1  ;;  %v912_v57 = vrot.slane %v910_v6, 1  ;;  %v3605_v10 = vsel %vm299_vm0, %v983_v44, %v985_v3  ;;  %v3160_v14 = vld [vmem:[%s4321_s2 + $0x220] sm:$0xff] }
  0x49   :  { %v228_v6 = vshll.u32 %v3491_v7, 16 }
  0x4a   :  { %v1059_v26 = vsel %vm299_vm0, %v1053_v59, %v1058_v18  ;;  %1435 = vmatpush.bf16.msra.mxu1 %v3126_v34  ;;  %2264 = vmatpush.bf16.msra.mxu0 %v3161_v35  ;;  %v1063_v50 = vsel %vm299_vm0, %v1058_v18, %v1062_v43  ;;  %v212_v59 = vshll.u32 %v3358_v22, 16  ;;  %v916_v17 = vor.u32 %v914_v11, %v912_v57 }
  0x4b   :  { %2118 = vmatpush.bf16.msra.mxu2 %v3145_v5  ;;  %2191 = vmatpush.bf16.msra.mxu3 %v3153_v8  ;;  %v311_v8 = vrot.slane %v3491_v7, 1 }
  0x4c   :  { %v214_v23 = vrot.slane %v212_v59, 1  ;;  %v226_v59 = vor.u32 %v224_v54, %v222_v27 }
  0x4d   :  { %v312_v15 = vsel %vm299_vm0, %v309_v51, %v311_v8 }
  0x4e   :  { %1436 = vmatpush.bf16.msra.mxu1 %v3125_v9  ;;  %2265 = vmatpush.bf16.msra.mxu0 %v3160_v14 }
  0x4f   :  { %2192 = vmatpush.bf16.msra.mxu3 %v3152_v61 }
  0x51   :  { %553 = vmatmul.bf16.gmra.mxu0 %v3514_v28  ;;  %573 = vmatmul.bf16.gmra.mxu1 %v3516_v30 }
  0x54   :  { %1295 = vmatmul.bf16.vlgmr.msrb.gmra.mxu3 %v1051_v31  ;;  %689 = vmatmul.bf16.gmra.mxu2 %v304_v39  ;;  %v3566_v31 = vsel %vm299_vm0, %v979_v60, %v981_v19  ;;  %v204_v39 = vshll.u32 %v3514_v28, 16  ;;  %v3144_v60 = vld [vmem:[%s4321_s2 + $0x1a0] sm:$0xff]  ;;  %v216_v19 = vshrl.u32 %v3358_v22, 16  ;;  %v313_v22 = vrot.slane %v3516_v30, 1 }
  0x55   :  { %2119 = vmatpush.bf16.msra.mxu2 %v3144_v60  ;;  %v230_v60 = vrot.slane %v228_v6, 1 }
  0x56   :  { %v206_v42 = vrot.slane %v204_v39, 1 }
  0x58   :  { %v207_v49 = vsel %vm179_vm1, %v202_v41, %v206_v42  ;;  %v314_v41 = vsel %vm299_vm0, %v311_v8, %v313_v22 }
  0x61   :  { %611 = vmatmul.bf16.vlgmr.msrb.gmra.mxu1 %v191_v62  ;;  %1368 = vmatmul.bf16.vlgmr.msrb.gmra.mxu0 %v1054_v63  ;;  %v913_v62 = vsel %vm179_vm1, %v908_v56, %v912_v57  ;;  %v210_v63 = vor.u32 %v208_v58, %v206_v42  ;;  %v3143_v42 = vld [vmem:[%s4321_s2 + $0x198] sm:$0xff] }
  0x62   :  { %v1066_v1 = vrot.slane %v913_v62, 1  ;;  %2120 = vmatpush.bf16.msra.mxu2 %v3143_v42  ;;  %v3159_v56 = vld [vmem:[%s4321_s2 + $0x218] sm:$0xff]  ;;  %v3657_v62 = vld [vmem:[#allocation2 + $0x44] sm:$0xff] }
  0x63   :  { %v215_v28 = vsel %vm179_vm1, %v210_v63, %v214_v23  ;;  %2266 = vmatpush.bf16.msra.mxu0 %v3159_v56  ;;  %v934_v9 = vshll.u32 %v3657_v62, 16  ;;  %v991_v7 = vrot.slane %v3657_v62, 1  ;;  %v938_v54 = vshrl.u32 %v3657_v62, 16 }
  0x64   :  { %1300 = vmatmul.bf16.gmra.mxu3 %v3548_v0  ;;  %694 = vmatmul.bf16.gmra.mxu2 %v306_v4  ;;  %v3596_v4 = vld [vmem:[#allocation2 + $0x34] sm:$0xff]  ;;  %v1067_v5 = vsel %vm299_vm0, %v1062_v43, %v1066_v1 }
  0x65   :  { %v918_v13 = vshll.u32 %v3596_v4, 16  ;;  %v987_v46 = vrot.slane %v3596_v4, 1  ;;  %v922_v39 = vshrl.u32 %v3596_v4, 16  ;;  %v3151_v43 = vld [vmem:[%s4321_s2 + $0x1d8] sm:$0xff] }
  0x66   :  { %2193 = vmatpush.bf16.msra.mxu3 %v3151_v43 }
  0x67   :  { %v920_v18 = vrot.slane %v918_v13, 1  ;;  %v3627_v38 = vsel %vm299_vm0, %v985_v3, %v987_v46  ;;  %v231_v3 = vsel %vm179_vm1, %v226_v59, %v230_v60  ;;  %v3158_v59 = vld [vmem:[%s4321_s2 + $0x210] sm:$0xff] }
  0x68   :  { %2267 = vmatpush.bf16.msra.mxu0 %v3158_v59 }
  0x69   :  { %v924_v44 = vor.u32 %v922_v39, %v920_v18 }
  0x71   :  { %616 = vmatmul.bf16.gmra.mxu1 %v199_v25  ;;  %1373 = vmatmul.bf16.gmra.mxu0 %v1059_v26  ;;  %v921_v25 = vsel %vm179_vm1, %v916_v17, %v920_v18  ;;  %v218_v26 = vor.u32 %v216_v19, %v214_v23 }
  0x72   :  { %v1070_v32 = vrot.slane %v921_v25, 1  ;;  %v236_v25 = vshll.u32 %v3516_v30, 16 }
  0x73   :  { %v223_v36 = vsel %vm179_vm1, %v218_v26, %v222_v27  ;;  %v3142_v26 = vld [vmem:[%s4321_s2 + $0x190] sm:$0xff] }
  0x74   :  { %1305 = vmatmul.bf16.gmra.mxu3 %v3566_v31  ;;  %699 = vmatmul.bf16.gmra.mxu2 %v308_v33  ;;  %v3617_v33 = vld [vmem:[#allocation2 + $0x3c] sm:$0xff]  ;;  %v1071_v37 = vsel %vm299_vm0, %v1066_v1, %v1070_v32  ;;  %v3150_v27 = vld [vmem:[%s4321_s2 + $0x1d0] sm:$0xff] }
  0x75   :  { %v926_v40 = vshll.u32 %v3617_v33, 16  ;;  %v989_v47 = vrot.slane %v3617_v33, 1  ;;  %v930_v8 = vshrl.u32 %v3617_v33, 16  ;;  %2121 = vmatpush.bf16.msra.mxu2 %v3142_v26  ;;  %2194 = vmatpush.bf16.msra.mxu3 %v3150_v27  ;;  %v234_v33 = vor.u32 %v232_v21, %v230_v60 }
  0x77   :  { %v928_v45 = vrot.slane %v926_v40, 1 }
  0x79   :  { %v929_v57 = vsel %vm179_vm1, %v924_v44, %v928_v45  ;;  %v932_v14 = vor.u32 %v930_v8, %v928_v45  ;;  %v317_v44 = vrot.slane %v3450_v53, 1  ;;  %v3707_v45 = vsel %vm299_vm0, %v989_v47, %v991_v7 }
  0x7a   :  { %v1074_v61 = vrot.slane %v929_v57, 1  ;;  %v3123_v57 = vld [vmem:[%s4321_s2 + $0x150] sm:$0xff] }
  0x7c   :  { %v1075_v4 = vsel %vm299_vm0, %v1070_v32, %v1074_v61 }
  0x81   :  { %621 = vmatmul.bf16.gmra.mxu1 %v207_v49  ;;  %1378 = vmatmul.bf16.gmra.mxu0 %v1063_v50 }
  0x84   :  { %1310 = vmatmul.bf16.gmra.mxu3 %v3583_v52  ;;  %704 = vmatmul.bf16.gmra.mxu2 %v310_v55  ;;  %v3124_v55 = vld [vmem:[%s4321_s2 + $0x158] sm:$0xff] }
  0x85   :  { %1437 = vmatpush.bf16.msra.mxu1 %v3124_v55 }
  0x89   :  { %1438 = vmatpush.bf16.msra.mxu1 %v3123_v57 }
  0x91   :  { %626 = vmatmul.bf16.gmra.mxu1 %v215_v28  ;;  %1383 = vmatmul.bf16.gmra.mxu0 %v1067_v5  ;;  %v315_v28 = vrot.slane %v3378_v29, 1  ;;  %v3669_v5 = vsel %vm299_vm0, %v987_v46, %v989_v47 }
  0x93   :  { %v316_v13 = vsel %vm299_vm0, %v313_v22, %v315_v28  ;;  %v3695_v22 = vld [vmem:[#allocation2 + $0x4c] sm:$0xff]  ;;  %v318_v56 = vsel %vm299_vm0, %v315_v28, %v317_v44  ;;  %v244_v28 = vshll.u32 %v3378_v29, 16 }
  0x94   :  { %1315 = vmatmul.bf16.gmra.mxu3 %v3605_v10  ;;  %709 = vmatmul.bf16.gmra.mxu2 %v312_v15  ;;  %v936_v15 = vrot.slane %v934_v9, 1  ;;  %v942_v6 = vshll.u32 %v3695_v22, 16  ;;  %v993_v21 = vrot.slane %v3695_v22, 1 }
  0x96   :  { %v937_v32 = vsel %vm179_vm1, %v932_v14, %v936_v15  ;;  %v940_v60 = vor.u32 %v938_v54, %v936_v15  ;;  %v246_v14 = vrot.slane %v244_v28, 1 }
  0x9e   :  { %v3619_v34 = vpop.f32.mrf.mxu0  ;;  %v3621_v35 = vpop.f32.mrf.mxu1 }
  0xa1   :  { %631 = vmatmul.bf16.gmra.mxu1 %v223_v36  ;;  %1388 = vmatmul.bf16.gmra.mxu0 %v1071_v37  ;;  %v238_v36 = vrot.slane %v236_v25, 1  ;;  %v1078_v37 = vrot.slane %v937_v32, 1  ;;  %v3731_v25 = vld [vmem:[#allocation2 + $0x54] sm:$0xff] }
  0xa2   :  { %v950_v54 = vshll.u32 %v3731_v25, 16 }
  0xa3   :  { %v239_v42 = vsel %vm179_vm1, %v234_v33, %v238_v36  ;;  %v1079_v43 = vsel %vm299_vm0, %v1074_v61, %v1078_v37  ;;  %v944_v61 = vrot.slane %v942_v6, 1 }
  0xa4   :  { %1320 = vmatmul.bf16.gmra.mxu3 %v3627_v38  ;;  %714 = vmatmul.bf16.gmra.mxu2 %v314_v41  ;;  %v952_v59 = vrot.slane %v950_v54, 1 }
  0xa5   :  { %v945_v8 = vsel %vm179_vm1, %v940_v60, %v944_v61  ;;  %v248_v60 = vshrl.u32 %v3378_v29, 16  ;;  %v3149_v29 = vld [vmem:[%s4321_s2 + $0x1c8] sm:$0xff] }
  0xa6   :  { %v3641_v50 = vpop.f32.mrf.mxu0  ;;  %v3643_v51 = vpop.f32.mrf.mxu1  ;;  %v1082_v15 = vrot.slane %v945_v8, 1  ;;  %2195 = vmatpush.bf16.msra.mxu3 %v3149_v29 }
  0xa7   :  { %v3639_v49 = vpop.f32.mrf.mxu3  ;;  %v3654_v58 = vpop.f32.mrf.mxu2 }
  0xae   :  { %v3661_v23 = vpop.f32.mrf.mxu0  ;;  %v3663_v1 = vpop.f32.mrf.mxu1 }
  0xaf   :  { %v3659_v63 = vpop.f32.mrf.mxu3  ;;  %v3673_v11 = vpop.f32.mrf.mxu2 }
  0xb1   :  { %636 = vmatmul.bf16.gmra.mxu1 %v231_v3  ;;  %1393 = vmatmul.bf16.gmra.mxu0 %v1075_v4  ;;  %v240_v4 = vshrl.u32 %v3516_v30, 16  ;;  %v1083_v30 = vsel %vm299_vm0, %v1078_v37, %v1082_v15 }
  0xb4   :  { %1325 = vmatmul.bf16.gmra.mxu3 %v3669_v5  ;;  %719 = vmatmul.bf16.gmra.mxu2 %v316_v13  ;;  %v242_v13 = vor.u32 %v240_v4, %v238_v36  ;;  %v946_v36 = vshrl.u32 %v3695_v22, 16 }
  0xb6   :  { %v3679_v18 = vpop.f32.mrf.mxu0  ;;  %v3681_v19 = vpop.f32.mrf.mxu1  ;;  %v247_v33 = vsel %vm179_vm1, %v242_v13, %v246_v14  ;;  %v948_v57 = vor.u32 %v946_v36, %v944_v61  ;;  %v250_v13 = vor.u32 %v248_v60, %v246_v14  ;;  %v3122_v61 = vld [vmem:[%s4321_s2 + $0x148] sm:$0xff]  ;;  %v995_v36 = vrot.slane %v3731_v25, 1 }
  0xb7   :  { %v3677_v17 = vpop.f32.mrf.mxu3  ;;  %v3692_v46 = vpop.f32.mrf.mxu2  ;;  %1439 = vmatpush.bf16.msra.mxu1 %v3122_v61 }
  0xb8   :  { %4332 = vst [vmem:[#allocation4_spill] sm:$0xff] %v3677_v17  ;;  %v3756_v28 = vsel %vm179_vm1, %v948_v57, %v952_v59 }
  0xbe   :  { %v3699_v40 = vpop.f32.mrf.mxu0  ;;  %v3701_v41 = vpop.f32.mrf.mxu1 }
  0xbf   :  { %v3697_v39 = vpop.f32.mrf.mxu3  ;;  %v3711_v55 = vpop.f32.mrf.mxu2 }
  0xc0   :  { %4333 = vst [vmem:[#allocation5_spill] sm:$0xff] %v3697_v39 }
  0xc1   :  { %641 = vmatmul.bf16.gmra.mxu1 %v239_v42  ;;  %1398 = vmatmul.bf16.gmra.mxu0 %v1079_v43  ;;  %v319_v42 = vrot.slane %v3362_v24, 1  ;;  %v3741_v43 = vsel %vm299_vm0, %v991_v7, %v993_v21  ;;  %v252_v7 = vshll.u32 %v3450_v53, 16 }
  0xc4   :  { %1330 = vmatmul.bf16.gmra.mxu3 %v3707_v45  ;;  %724 = vmatmul.bf16.gmra.mxu2 %v318_v56  ;;  %v320_v56 = vsel %vm299_vm0, %v317_v44, %v319_v42  ;;  %v3141_v44 = vld [vmem:[%s4321_s2 + $0x188] sm:$0xff] }
  0xc5   :  { %2122 = vmatpush.bf16.msra.mxu2 %v3141_v44  ;;  %v3782_v44 = vsel %vm299_vm0, %v993_v21, %v995_v36  ;;  %v798_v21 = vld [vmem:[#allocation2 + $0x64] sm:$0xf] }
  0xc6   :  { %v3723_v62 = vpop.f32.mrf.mxu0  ;;  %v3725_v3 = vpop.f32.mrf.mxu1  ;;  %4336 = vst [vmem:[#allocation8_spill] sm:$0xff] %v3782_v44 }
  0xc7   :  { %v3721_v47 = vpop.f32.mrf.mxu3  ;;  %v685_v9 = vpop.f32.mrf.mxu2 }
  0xc8   :  { %4334 = vst [vmem:[#allocation6_spill] sm:$0xff] %v3721_v47 }
  0xce   :  { %v3733_v27 = vpop.f32.mrf.mxu0  ;;  %v3735_v32 = vpop.f32.mrf.mxu1 }
  0xcf   :  { %v601_v26 = vpop.f32.mrf.mxu3  ;;  %v3745_v6 = vpop.f32.mrf.mxu2 }
  0xd0   :  { %v254_v26 = vrot.slane %v252_v7, 1  ;;  %v954_v7 = vshrl.u32 %v3731_v25, 16  ;;  %v98_v25 = vld [vmem:[#allocation2 + $0x64] sm:$0x1] }
  0xd1   :  { %646 = vmatmul.bf16.gmra.mxu1 %v247_v33  ;;  %1403 = vmatmul.bf16.gmra.mxu0 %v1083_v30  ;;  %v1086_v33 = vrot.slane %v3756_v28, 1  ;;  %v3770_v30 = vld [vmem:[#allocation2 + $0x5c] sm:$0xff]  ;;  %v321_v28 = vrot.slane %v3434_v48, 1 }
  0xd2   :  { %v255_v54 = vsel %vm179_vm1, %v250_v13, %v254_v26  ;;  %v958_v16 = vshll.u32 %v3770_v30, 16  ;;  %v956_v61 = vor.u32 %v954_v7, %v952_v59 }
  0xd3   :  { %v1087_v60 = vsel %vm299_vm0, %v1082_v15, %v1086_v33  ;;  %v3157_v15 = vld [vmem:[%s4321_s2 + $0x208] sm:$0xff] }
  0xd4   :  { %1335 = vmatmul.bf16.gmra.mxu3 %v3741_v43  ;;  %729 = vmatmul.bf16.gmra.mxu2 %v320_v56 }
  0xd5   :  { %2268 = vmatpush.bf16.msra.mxu0 %v3157_v15 }
  0xd6   :  { %v3751_v4 = vpop.f32.mrf.mxu0  ;;  %v3753_v22 = vpop.f32.mrf.mxu1 }
  0xd7   :  { %v1296_v37 = vpop.f32.mrf.mxu3  ;;  %v3758_v8 = vpop.f32.mrf.mxu2 }
  0xde   :  { %v612_v56 = vpop.f32.mrf.mxu1  ;;  %v1369_v57 = vpop.f32.mrf.mxu0 }
  0xdf   :  { %v1298_v14 = vpop.f32.mrf.mxu3  ;;  %v613_v47 = vadd.f32 %v612_v56, %v3619_v34  ;;  %v3779_v39 = vadd.f32 %v1369_v57, %v1296_v37  ;;  %v3784_v29 = vpop.f32.mrf.mxu2  ;;  %v960_v34 = vrot.slane %v958_v16, 1  ;;  %v322_v37 = vsel %vm299_vm0, %v319_v42, %v321_v28  ;;  %v800_v56 = vld [vmem:[#allocation2 + $0x68] sm:$0x3] }
  0xe0   :  { %v177_v57 = vunpack.c.l.b16 %v98_v25  ;;  %v852_v42 = vunpack.c.l.b16 %v798_v21  ;;  %v868_v7 = vunpack.c.l.b16 %v800_v56 }
  0xe1   :  { %4335 = vst [vmem:[#allocation7_spill] sm:$0xff] %v3779_v39  ;;  %v3786_v13 = vadd.f32 %v685_v9, %v613_v47  ;;  %651 = vmatmul.bf16.gmra.mxu1 %v255_v54  ;;  %1408 = vmatmul.bf16.gmra.mxu0 %v1087_v60  ;;  %v256_v54 = vshrl.u32 %v3450_v53, 16  ;;  %v260_v60 = vshll.u32 %v3362_v24, 16 }
  0xe2   :  { %v3804_v25 = vpack.c.b16 %v177_v57, %v3481_v2 }
  0xe3   :  { %4337 = vst [vmem:[#allocation9_spill] sm:$0xff] %v3786_v13  ;;  %v3796_v13 = vsel %vm179_vm1, %v956_v61, %v960_v34  ;;  %v258_v53 = vor.u32 %v256_v54, %v254_v26  ;;  %v262_v17 = vrot.slane %v260_v60, 1  ;;  %v3811_v61 = vrot.slane %v3770_v30, 1 }
  0xe4   :  { %1340 = vmatmul.bf16.gmra.mxu3 %v3782_v44  ;;  %734 = vmatmul.bf16.gmra.mxu2 %v322_v37  ;;  %v1090_v44 = vrot.slane %v3796_v13, 1  ;;  %v323_v26 = vrot.slane %v3804_v25, 1 }
  0xe6   :  { %v614_v47 = vpop.f32.mrf.mxu1  ;;  %v1371_v9 = vpop.f32.mrf.mxu0  ;;  %v1091_v2 = vsel %vm299_vm0, %v1086_v33, %v1090_v44  ;;  %v3140_v33 = vld [vmem:[%s4321_s2 + $0x180] sm:$0xff] }
  0xe7   :  { %v1301_v39 = vpop.f32.mrf.mxu3  ;;  %v615_v59 = vadd.f32 %v614_v47, %v3641_v50  ;;  %v3799_v16 = vadd.f32 %v1371_v9, %v1298_v14  ;;  %v3801_v15 = vpop.f32.mrf.mxu2  ;;  %v3813_v50 = vpack.c.b16 %v868_v7, %v852_v42  ;;  %v263_v47 = vsel %vm179_vm1, %v258_v53, %v262_v17  ;;  %2123 = vmatpush.bf16.msra.mxu2 %v3140_v33 }
  0xe8   :  { %v962_v9 = vshrl.u32 %v3770_v30, 16 }
  0xe9   :  { %v3807_v37 = vadd.f32 %v3745_v6, %v615_v59  ;;  %v3819_v6 = vsel %vm299_vm0, %v995_v36, %v3811_v61  ;;  %v966_v54 = vshll.u32 %v3813_v50, 16  ;;  %v799_v59 = vld [vmem:[#allocation2 + $0x68] sm:$0x1] }
  0xea   :  { %v964_v30 = vor.u32 %v962_v9, %v960_v34  ;;  %v853_v53 = vunpack.c.l.b16 %v799_v59 }
  0xeb   :  { %v968_v36 = vrot.slane %v966_v54, 1  ;;  %v3121_v54 = vld [vmem:[%s4321_s2 + $0x140] sm:$0xff] }
  0xec   :  { %1440 = vmatpush.bf16.msra.mxu1 %v3121_v54 }
  0xee   :  { %v617_v21 = vpop.f32.mrf.mxu1  ;;  %v1374_v56 = vpop.f32.mrf.mxu0 }
  0xef   :  { %v1303_v14 = vpop.f32.mrf.mxu3  ;;  %v618_v13 = vadd.f32 %v617_v21, %v3661_v23  ;;  %v3823_v57 = vadd.f32 %v1374_v56, %v1301_v39  ;;  %v3827_v60 = vpop.f32.mrf.mxu2  ;;  %v3148_v23 = vld [vmem:[%s4321_s2 + $0x1c0] sm:$0xff]  ;;  %v324_v39 = vsel %vm299_vm0, %v321_v28, %v323_v26  ;;  %v3846_v28 = vpack.c.b16 %v853_v53, %v852_v42  ;;  %v1581_v53 = vld [vmem:[#allocation2 + $0x8] sm:$0xc] }
  0xf0   :  { %2196 = vmatpush.bf16.msra.mxu3 %v3148_v23 }
  0xf1   :  { %4338 = vst [vmem:[#allocation10_spill] sm:$0xff] %v3823_v57  ;;  %v3830_v7 = vadd.f32 %v3758_v8, %v618_v13  ;;  %656 = vmatmul.bf16.gmra.mxu1 %v263_v47  ;;  %1413 = vmatmul.bf16.gmra.mxu0 %v1091_v2  ;;  %v264_v47 = vshrl.u32 %v3362_v24, 16  ;;  %v268_v2 = vshll.u32 %v3434_v48, 16  ;;  %v969_v57 = vsel %vm179_vm1, %v964_v30, %v968_v36  ;;  %v3156_v24 = vld [vmem:[%s4321_s2 + $0x200] sm:$0xff] }
  0xf2   :  { %v1094_v59 = vrot.slane %v969_v57, 1  ;;  %v4328_v33 = vrot.slane %v3846_v28, 1  ;;  %2269 = vmatpush.bf16.msra.mxu0 %v3156_v24  ;;  %v801_v57 = vld [vmem:[#allocation2 + $0x4] sm:$0xc]  ;;  %v272_v24 = vshrl.u32 %v3434_v48, 16 }
  0xf3   :  { %4339 = vst [vmem:[#allocation11_spill] sm:$0xff] %v3830_v7 }
  0xf4   :  { %1345 = vmatmul.bf16.gmra.mxu3 %v3819_v6  ;;  %739 = vmatmul.bf16.gmra.mxu2 %v324_v39  ;;  %v1095_v30 = vsel %vm299_vm0, %v1090_v44, %v1094_v59  ;;  %v1635_v44 = vunpack.c.l.b16 %v1581_v53  ;;  %v4342_v53 = vunpack.c.l.b16 %v3496_v12 }
  0xf6   :  { %v619_v21 = vpop.f32.mrf.mxu1  ;;  %v1376_v56 = vpop.f32.mrf.mxu0 }
  0xf7   :  { %v1306_v8 = vpop.f32.mrf.mxu3  ;;  %v620_v13 = vadd.f32 %v619_v21, %v3679_v18  ;;  %v3843_v7 = vadd.f32 %v1376_v56, %v1303_v14  ;;  %v3848_v34 = vpop.f32.mrf.mxu2  ;;  %v266_v18 = vor.u32 %v264_v47, %v262_v17  ;;  %v270_v14 = vrot.slane %v268_v2, 1  ;;  %v3862_v21 = vld [vmem:[#allocation2 + $0xc] sm:$0xf] }
  0xf8   :  { %v1099_v17 = vsel %vm299_vm0, %v3811_v61, %v4328_v33  ;;  %v970_v2 = vshrl.u32 %v3813_v50, 16  ;;  %v3882_v33 = vld [vmem:[#allocation2 + $0x10] sm:$0xff] }
  0xf9   :  { %v3851_v9 = vadd.f32 %v3784_v29, %v620_v13  ;;  %v271_v29 = vsel %vm179_vm1, %v266_v18, %v270_v14  ;;  %v276_v18 = vshll.u32 %v3804_v25, 16  ;;  %v274_v48 = vor.u32 %v272_v24, %v270_v14 }
  0xfe   :  { %v622_v23 = vpop.f32.mrf.mxu1  ;;  %v1379_v39 = vpop.f32.mrf.mxu0 }
  0xff   :  { %v1308_v42 = vpop.f32.mrf.mxu3  ;;  %v623_v56 = vadd.f32 %v622_v23, %v3699_v40  ;;  %v3865_v13 = vadd.f32 %v1379_v39, %v1306_v8  ;;  %v3871_v47 = vpop.f32.mrf.mxu2  ;;  %v4329_v40 = vunpack.c.l.b16 %v3862_v21  ;;  %v974_v8 = vunpack.c.l.b16 %v801_v57 }
 0x100   :  { %v3880_v23 = vor.u32 %v970_v2, %v968_v36 }
 0x101   :  { %4340 = vst [vmem:[#allocation12_spill] sm:$0xff] %v3865_v13  ;;  %v3875_v54 = vadd.f32 %v3801_v15, %v623_v56  ;;  %661 = vmatmul.bf16.gmra.mxu1 %v271_v29  ;;  %1418 = vmatmul.bf16.gmra.mxu0 %v1095_v30  ;;  %v1661_v15 = vpack.c.b16 %v4329_v40, %v1635_v44  ;;  %v1685_v44 = vshll.u32 %v3882_v33, 16  ;;  %v3898_v40 = vld [vmem:[#allocation2 + $0x18] sm:$0xff] }
 0x102   :  { %v975_v56 = vpack.c.b16 %v4342_v53, %v974_v8  ;;  %v4330_v36 = vrot.slane %v3880_v23, 1  ;;  %v1056_v8 = vrot.slane %v3548_v0, 1  ;;  %v1689_v0 = vshrl.u32 %v3882_v33, 16 }
 0x103   :  { %4341 = vst [vmem:[#allocation13_spill] sm:$0xff] %v3875_v54  ;;  %v278_v54 = vrot.slane %v276_v18, 1  ;;  %v1680_v13 = vshll.u32 %v1661_v15, 16  ;;  %v1678_v24 = vshrl.u32 %v1661_v15, 16 }
 0x104   :  { %1350 = vmatmul.bf16.gmra.mxu3 %v1099_v17  ;;  %744 = vmatmul.bf16.gmra.mxu2 %v323_v26  ;;  %v976_v12 = vrot.slane %v975_v56, 1  ;;  %v1101_v14 = vsel %vm299_vm0, %v1094_v59, %v4330_v36  ;;  %v1859_v56 = vrot.slane %v3882_v33, 2  ;;  %v1693_v59 = vshll.u32 %v3898_v40, 16 }
 0x105   :  { %v1682_v18 = vrot.slane %v1680_v13, 1 }
 0x106   :  { %v624_v29 = vpop.f32.mrf.mxu1  ;;  %v1381_v30 = vpop.f32.mrf.mxu0 }
 0x107   :  { %v1311_v39 = vpop.f32.mrf.mxu3  ;;  %v625_v17 = vadd.f32 %v624_v29, %v3723_v62  ;;  %v3889_v57 = vadd.f32 %v1381_v30, %v1308_v42  ;;  %v3892_v2 = vpop.f32.mrf.mxu2  ;;  %v279_v62 = vsel %vm179_vm1, %v274_v48, %v278_v54  ;;  %v1687_v29 = vrot.slane %v1685_v44, 1 }
 0x109   :  { %4343 = vst [vmem:[#allocation14_spill] sm:$0xff] %v3889_v57  ;;  %v3895_v26 = vadd.f32 %v3827_v60, %v625_v17  ;;  %v978_v60 = vsel %vm299_vm0, %v976_v12, %v3510_v20  ;;  %v1858_v17 = vrot.slane %v1661_v15, 2  ;;  %v4346_v15 = vrot.slane %v3846_v28, 1 }
 0x10b   :  { %4344 = vst [vmem:[#allocation15_spill] sm:$0xff] %v3895_v26  ;;  %v1055_v26 = vrot.slane %v978_v60, 1  ;;  %v1860_v12 = vsel %vm1857_vm2, %v1858_v17, %v1859_v56  ;;  %v1695_v60 = vrot.slane %v1693_v59, 1  ;;  %v3931_v59 = vld [vmem:[#allocation2 + $0x20] sm:$0xff] }
 0x10d   :  { %v3914_v44 = vsel %vm299_vm0, %v1055_v26, %v1056_v8 }
 0x10e   :  { %v627_v30 = vpop.f32.mrf.mxu1  ;;  %v1384_v53 = vpop.f32.mrf.mxu0 }
 0x10f   :  { %v1313_v42 = vpop.f32.mrf.mxu3  ;;  %v628_v48 = vadd.f32 %v627_v30, %v3733_v27  ;;  %v3910_v57 = vadd.f32 %v1384_v53, %v1311_v39  ;;  %v707_v13 = vpop.f32.mrf.mxu2  ;;  %v1683_v27 = vor.u32 %v1682_v18, %v1678_v24  ;;  %v1691_v39 = vor.u32 %v1689_v0, %v1687_v29 }
 0x110   :  { %v280_v24 = vshrl.u32 %v3804_v25, 16 }
 0x111   :  { %4345 = vst [vmem:[#allocation16_spill] sm:$0xff] %v3910_v57  ;;  %v3917_v20 = vadd.f32 %v3848_v34, %v628_v48  ;;  %666 = vmatmul.bf16.gmra.mxu1 %v279_v62  ;;  %1423 = vmatmul.bf16.gmra.mxu0 %v1101_v14  ;;  %v1688_v34 = vsel %vm179_vm1, %v1683_v27, %v1687_v29  ;;  %v1608_v14 = vld [vmem:[#allocation2 + $0x8] sm:$0x8]  ;;  %v4347_v27 = vunpack.c.l.b16 %v3862_v21  ;;  %v4348_v21 = vrot.slane %v3880_v23, 1 }
 0x112   :  { %v1696_v62 = vsel %vm179_vm1, %v1691_v39, %v1695_v60  ;;  %v1861_v18 = vrot.slane %v1688_v34, 2  ;;  %v1781_v0 = vunpack.c.l.b16 %v1608_v14  ;;  %v1701_v34 = vshll.u32 %v3931_v59, 16 }
 0x113   :  { %v1862_v17 = vrot.slane %v1696_v62, 2 }
 0x114   :  { %1355 = vmatmul.bf16.gmra.mxu3 %v4346_v15  ;;  %2124 = vmatmul.bf16.vlgmr.msra.gmra.mxu2 %v1860_v12  ;;  %v1782_v39 = vpack.c.b16 %v4347_v27, %v1781_v0  ;;  %v1703_v0 = vrot.slane %v1701_v34, 1 }
 0x115   :  { %v1863_v12 = vsel %vm1857_vm2, %v1861_v18, %v1862_v17 }
 0x116   :  { %v629_v53 = vpop.f32.mrf.mxu1  ;;  %v1386_v36 = vpop.f32.mrf.mxu0  ;;  %v1783_v14 = vrot.slane %v1782_v39, 1 }
 0x117   :  { %v1316_v30 = vpop.f32.mrf.mxu3  ;;  %v630_v26 = vadd.f32 %v629_v53, %v3751_v4  ;;  %v3923_v57 = vadd.f32 %v1386_v36, %v1313_v42  ;;  %v710_v28 = vpop.f32.mrf.mxu2  ;;  %v1060_v4 = vrot.slane %v3566_v31, 1  ;;  %v282_v42 = vor.u32 %v280_v24, %v278_v54 }
 0x118   :  { %v1786_v24 = vrot.slane %v3898_v40, 1 }
 0x119   :  { %v3928_v48 = vadd.f32 %v3871_v47, %v630_v26  ;;  %v1867_v47 = vrot.slane %v3898_v40, 2  ;;  %v1697_v26 = vshrl.u32 %v3898_v40, 16  ;;  %v3944_v54 = vsel %vm299_vm0, %v1056_v8, %v1060_v4 }
 0x11b   :  { %v1699_v18 = vor.u32 %v1697_v26, %v1695_v60  ;;  %v1064_v26 = vrot.slane %v3583_v52, 1 }
 0x11d   :  { %v3974_v52 = vsel %vm299_vm0, %v1060_v4, %v1064_v26 }
 0x11e   :  { %v632_v15 = vpop.f32.mrf.mxu1  ;;  %v1389_v29 = vpop.f32.mrf.mxu0 }
 0x11f   :  { %v1318_v36 = vpop.f32.mrf.mxu3  ;;  %v633_v25 = vadd.f32 %v632_v15, %v3621_v35  ;;  %v3939_v53 = vadd.f32 %v1389_v29, %v1316_v30  ;;  %v712_v31 = vpop.f32.mrf.mxu2  ;;  %v1784_v35 = vrot.slane %v3882_v33, 1  ;;  %v1868_v30 = vsel %vm1857_vm2, %v1859_v56, %v1867_v47 }
 0x120   :  { %v1704_v33 = vsel %vm179_vm1, %v1699_v18, %v1703_v0  ;;  %v1705_v18 = vshrl.u32 %v3931_v59, 16 }
 0x121   :  { %v3947_v62 = vadd.f32 %v3892_v2, %v633_v25  ;;  %671 = vmatmul.bf16.gmra.mxu1 %v282_v42  ;;  %1428 = vmatmul.bf16.gmra.mxu0 %v4348_v21  ;;  %v1785_v2 = vsel %vm299_vm0, %v1783_v14, %v1784_v35  ;;  %v1869_v39 = vrot.slane %v1704_v33, 2  ;;  %v3962_v25 = vld [vmem:[#allocation2 + $0x28] sm:$0xff] }
 0x122   :  { %v1864_v40 = vrot.slane %v1785_v2, 2 }
 0x124   :  { %2197 = vmatmul.bf16.vlgmr.msra.gmra.mxu3 %v1863_v12  ;;  %2129 = vmatmul.bf16.gmra.mxu2 %v1868_v30  ;;  %v1787_v12 = vsel %vm299_vm0, %v1784_v35, %v1786_v24  ;;  %v1873_v35 = vrot.slane %v3931_v59, 2 }
 0x125   :  { %v1865_v60 = vrot.slane %v1787_v12, 2 }
 0x126   :  { %v634_v8 = vpop.f32.mrf.mxu1  ;;  %v1391_v29 = vpop.f32.mrf.mxu0 }
 0x127   :  { %v1321_v15 = vpop.f32.mrf.mxu3  ;;  %v635_v42 = vadd.f32 %v634_v8, %v3643_v51  ;;  %v3956_v23 = vadd.f32 %v1391_v29, %v1318_v36  ;;  %v715_v27 = vpop.f32.mrf.mxu2  ;;  %v1866_v51 = vsel %vm1857_vm2, %v1864_v40, %v1865_v60  ;;  %v1870_v36 = vsel %vm1857_vm2, %v1862_v17, %v1869_v39 }
 0x128   :  { %v1709_v8 = vshll.u32 %v3962_v25, 16  ;;  %v1874_v17 = vsel %vm1857_vm2, %v1867_v47, %v1873_v35 }
 0x129   :  { %v3960_v56 = vadd.f32 %v707_v13, %v635_v42 }
 0x12a   :  { %v1711_v42 = vrot.slane %v1709_v8, 1 }
 0x12e   :  { %v637_v21 = vpop.f32.mrf.mxu1  ;;  %v1394_v14 = vpop.f32.mrf.mxu0 }
 0x12f   :  { %v1323_v34 = vpop.f32.mrf.mxu3  ;;  %v638_v30 = vadd.f32 %v637_v21, %v3663_v1  ;;  %v3969_v13 = vadd.f32 %v1394_v14, %v1321_v15  ;;  %v717_v29 = vpop.f32.mrf.mxu2  ;;  %v1788_v1 = vrot.slane %v3931_v59, 1  ;;  %v1707_v15 = vor.u32 %v1705_v18, %v1703_v0  ;;  %v3988_v59 = vld [vmem:[#allocation2 + $0x30] sm:$0xff] }
 0x130   :  { %v1068_v0 = vrot.slane %v3605_v10, 1 }
 0x131   :  { %v3976_v2 = vadd.f32 %v710_v28, %v638_v30  ;;  %1441 = vmatmul.bf16.vlgmr.msra.gmra.mxu1 %v3914_v44  ;;  %2270 = vmatmul.bf16.vlgmr.msra.gmra.mxu0 %v1866_v51  ;;  %v1789_v28 = vsel %vm299_vm0, %v1786_v24, %v1788_v1  ;;  %v1712_v44 = vsel %vm179_vm1, %v1707_v15, %v1711_v42  ;;  %v1879_v24 = vrot.slane %v3962_v25, 2 }
 0x132   :  { %v1871_v47 = vrot.slane %v1789_v28, 2  ;;  %v4000_v10 = vsel %vm299_vm0, %v1064_v26, %v1068_v0 }
 0x134   :  { %2202 = vmatmul.bf16.gmra.mxu3 %v1870_v36  ;;  %2134 = vmatmul.bf16.gmra.mxu2 %v1874_v17  ;;  %v1875_v36 = vrot.slane %v1712_v44, 2 }
 0x136   :  { %v639_v33 = vpop.f32.mrf.mxu1  ;;  %v1396_v40 = vpop.f32.mrf.mxu0 }
 0x137   :  { %v1326_v12 = vpop.f32.mrf.mxu3  ;;  %v640_v21 = vadd.f32 %v639_v33, %v3681_v19  ;;  %v3982_v4 = vadd.f32 %v1396_v40, %v1323_v34  ;;  %v720_v14 = vpop.f32.mrf.mxu2  ;;  %v1872_v19 = vsel %vm1857_vm2, %v1865_v60, %v1871_v47  ;;  %v1876_v34 = vsel %vm1857_vm2, %v1869_v39, %v1875_v36 }
 0x138   :  { %v1717_v33 = vshll.u32 %v3988_v59, 16  ;;  %v1880_v60 = vsel %vm1857_vm2, %v1873_v35, %v1879_v24 }
 0x139   :  { %v3986_v51 = vadd.f32 %v712_v31, %v640_v21  ;;  %v1713_v31 = vshrl.u32 %v3962_v25, 16 }
 0x13b   :  { %v1715_v39 = vor.u32 %v1713_v31, %v1711_v42  ;;  %v1072_v42 = vrot.slane %v3627_v38, 1 }
 0x13d   :  { %v4026_v38 = vsel %vm299_vm0, %v1068_v0, %v1072_v42 }
 0x13e   :  { %v642_v18 = vpop.f32.mrf.mxu1  ;;  %v1399_v8 = vpop.f32.mrf.mxu0 }
 0x13f   :  { %v1328_v30 = vpop.f32.mrf.mxu3  ;;  %v643_v17 = vadd.f32 %v642_v18, %v3701_v41  ;;  %v3995_v15 = vadd.f32 %v1399_v8, %v1326_v12  ;;  %v722_v40 = vpop.f32.mrf.mxu2  ;;  %v1790_v41 = vrot.slane %v3962_v25, 1  ;;  %v1719_v12 = vrot.slane %v1717_v33, 1  ;;  %v4014_v25 = vld [vmem:[#allocation2 + $0x38] sm:$0xff] }
 0x141   :  { %v4002_v21 = vadd.f32 %v715_v27, %v643_v17  ;;  %1446 = vmatmul.bf16.gmra.mxu1 %v3944_v54  ;;  %2275 = vmatmul.bf16.gmra.mxu0 %v1872_v19  ;;  %v1791_v27 = vsel %vm299_vm0, %v1788_v1, %v1790_v41  ;;  %v1720_v54 = vsel %vm179_vm1, %v1715_v39, %v1719_v12  ;;  %v1885_v1 = vrot.slane %v3988_v59, 2 }
 0x142   :  { %v1877_v35 = vrot.slane %v1791_v27, 2  ;;  %v1881_v17 = vrot.slane %v1720_v54, 2 }
 0x144   :  { %2207 = vmatmul.bf16.gmra.mxu3 %v1876_v34  ;;  %2139 = vmatmul.bf16.gmra.mxu2 %v1880_v60 }
 0x146   :  { %v644_v44 = vpop.f32.mrf.mxu1  ;;  %v1401_v18 = vpop.f32.mrf.mxu0 }
 0x147   :  { %v1331_v28 = vpop.f32.mrf.mxu3  ;;  %v645_v8 = vadd.f32 %v644_v44, %v3725_v3  ;;  %v4008_v26 = vadd.f32 %v1401_v18, %v1328_v30  ;;  %v725_v19 = vpop.f32.mrf.mxu2  ;;  %v1878_v3 = vsel %vm1857_vm2, %v1871_v47, %v1877_v35  ;;  %v1882_v30 = vsel %vm1857_vm2, %v1875_v36, %v1881_v17 }
 0x148   :  { %v1725_v18 = vshll.u32 %v4014_v25, 16  ;;  %v1886_v47 = vsel %vm1857_vm2, %v1879_v24, %v1885_v1 }
 0x149   :  { %v4012_v34 = vadd.f32 %v717_v29, %v645_v8  ;;  %v1721_v29 = vshrl.u32 %v3988_v59, 16 }
 0x14b   :  { %v1723_v36 = vor.u32 %v1721_v29, %v1719_v12  ;;  %v1076_v12 = vrot.slane %v3669_v5, 1 }
 0x14d   :  { %v4052_v5 = vsel %vm299_vm0, %v1072_v42, %v1076_v12 }
 0x14e   :  { %v647_v33 = vpop.f32.mrf.mxu1  ;;  %v1404_v60 = vpop.f32.mrf.mxu0 }
 0x14f   :  { %v1333_v31 = vpop.f32.mrf.mxu3  ;;  %v648_v39 = vadd.f32 %v647_v33, %v3735_v32  ;;  %v4021_v44 = vadd.f32 %v1404_v60, %v1331_v28  ;;  %v727_v8 = vpop.f32.mrf.mxu2  ;;  %v1792_v32 = vrot.slane %v3988_v59, 1  ;;  %v1727_v28 = vrot.slane %v1725_v18, 1  ;;  %v4040_v59 = vld [vmem:[#allocation2 + $0x40] sm:$0xff] }
 0x151   :  { %4349 = vst [vmem:[#allocation17_spill] sm:$0xff] %v4021_v44  ;;  %v4028_v27 = vadd.f32 %v720_v14, %v648_v39  ;;  %1451 = vmatmul.bf16.gmra.mxu1 %v3974_v52  ;;  %2280 = vmatmul.bf16.gmra.mxu0 %v1878_v3  ;;  %v1793_v14 = vsel %vm299_vm0, %v1790_v41, %v1792_v32  ;;  %v1891_v41 = vrot.slane %v4014_v25, 2 }
 0x152   :  { %v1728_v52 = vsel %vm179_vm1, %v1723_v36, %v1727_v28  ;;  %v1883_v24 = vrot.slane %v1793_v14, 2 }
 0x153   :  { %v1887_v39 = vrot.slane %v1728_v52, 2 }
 0x154   :  { %2212 = vmatmul.bf16.gmra.mxu3 %v1882_v30  ;;  %2144 = vmatmul.bf16.gmra.mxu2 %v1886_v47 }
 0x156   :  { %v649_v33 = vpop.f32.mrf.mxu1  ;;  %v1406_v60 = vpop.f32.mrf.mxu0 }
 0x157   :  { %v1336_v54 = vpop.f32.mrf.mxu3  ;;  %v650_v44 = vadd.f32 %v649_v33, %v3753_v22  ;;  %v4034_v0 = vadd.f32 %v1406_v60, %v1333_v31  ;;  %v730_v3 = vpop.f32.mrf.mxu2  ;;  %v1884_v22 = vsel %vm1857_vm2, %v1877_v35, %v1883_v24  ;;  %v1888_v31 = vsel %vm1857_vm2, %v1881_v17, %v1887_v39 }
 0x158   :  { %v1892_v35 = vsel %vm1857_vm2, %v1885_v1, %v1891_v41 }
 0x159   :  { %v4038_v30 = vadd.f32 %v722_v40, %v650_v44  ;;  %v1729_v40 = vshrl.u32 %v4014_v25, 16  ;;  %v1733_v44 = vshll.u32 %v4040_v59, 16 }
 0x15b   :  { %v1731_v17 = vor.u32 %v1729_v40, %v1727_v28  ;;  %v1080_v28 = vrot.slane %v3707_v45, 1 }
 0x15d   :  { %v4078_v45 = vsel %vm299_vm0, %v1076_v12, %v1080_v28 }
 0x15e   :  { %v652_v18 = vpop.f32.mrf.mxu1  ;;  %v1409_v47 = vpop.f32.mrf.mxu0 }
 0x15f   :  { %v1338_v29 = vpop.f32.mrf.mxu3  ;;  %v653_v36 = vadd.f32 %v652_v18, %v3654_v58  ;;  %v4047_v33 = vadd.f32 %v1409_v47, %v1336_v54  ;;  %v732_v60 = vpop.f32.mrf.mxu2  ;;  %v1794_v58 = vrot.slane %v4014_v25, 1  ;;  %v1735_v54 = vrot.slane %v1733_v44, 1  ;;  %v4066_v25 = vld [vmem:[#allocation2 + $0x48] sm:$0xff] }
 0x161   :  { %4350 = vst [vmem:[#allocation18_spill] sm:$0xff] %v4047_v33  ;;  %v4054_v14 = vadd.f32 %v725_v19, %v653_v36  ;;  %1456 = vmatmul.bf16.gmra.mxu1 %v4000_v10  ;;  %2285 = vmatmul.bf16.gmra.mxu0 %v1884_v22  ;;  %v1795_v19 = vsel %vm299_vm0, %v1792_v32, %v1794_v58  ;;  %v1897_v32 = vrot.slane %v4040_v59, 2 }
 0x162   :  { %v1736_v10 = vsel %vm179_vm1, %v1731_v17, %v1735_v54  ;;  %v1889_v1 = vrot.slane %v1795_v19, 2 }
 0x163   :  { %v1893_v36 = vrot.slane %v1736_v10, 2 }
 0x164   :  { %2217 = vmatmul.bf16.gmra.mxu3 %v1888_v31  ;;  %2149 = vmatmul.bf16.gmra.mxu2 %v1892_v35 }
 0x166   :  { %v654_v18 = vpop.f32.mrf.mxu1  ;;  %v1411_v47 = vpop.f32.mrf.mxu0 }
 0x167   :  { %v1341_v52 = vpop.f32.mrf.mxu3  ;;  %v655_v33 = vadd.f32 %v654_v18, %v3673_v11  ;;  %v4060_v42 = vadd.f32 %v1411_v47, %v1338_v29  ;;  %v735_v22 = vpop.f32.mrf.mxu2  ;;  %v1890_v11 = vsel %vm1857_vm2, %v1883_v24, %v1889_v1  ;;  %v1894_v29 = vsel %vm1857_vm2, %v1887_v39, %v1893_v36 }
 0x168   :  { %v1898_v24 = vsel %vm1857_vm2, %v1891_v41, %v1897_v32 }
 0x169   :  { %v4064_v31 = vadd.f32 %v727_v8, %v655_v33  ;;  %v1737_v8 = vshrl.u32 %v4040_v59, 16  ;;  %v1741_v33 = vshll.u32 %v4066_v25, 16 }
 0x16b   :  { %v1739_v39 = vor.u32 %v1737_v8, %v1735_v54  ;;  %v1084_v54 = vrot.slane %v3741_v43, 1 }
 0x16d   :  { %v4104_v43 = vsel %vm299_vm0, %v1080_v28, %v1084_v54 }
 0x16e   :  { %v657_v44 = vpop.f32.mrf.mxu1  ;;  %v1414_v35 = vpop.f32.mrf.mxu0 }
 0x16f   :  { %v1343_v40 = vpop.f32.mrf.mxu3  ;;  %v658_v17 = vadd.f32 %v657_v44, %v3692_v46  ;;  %v4073_v18 = vadd.f32 %v1414_v35, %v1341_v52  ;;  %v737_v47 = vpop.f32.mrf.mxu2  ;;  %v1796_v46 = vrot.slane %v4040_v59, 1  ;;  %v1743_v52 = vrot.slane %v1741_v33, 1  ;;  %v4092_v59 = vld [vmem:[#allocation2 + $0x50] sm:$0xff] }
 0x171   :  { %4351 = vst [vmem:[#allocation19_spill] sm:$0xff] %v4073_v18  ;;  %v4080_v19 = vadd.f32 %v730_v3, %v658_v17  ;;  %1461 = vmatmul.bf16.gmra.mxu1 %v4026_v38  ;;  %2290 = vmatmul.bf16.gmra.mxu0 %v1890_v11  ;;  %v1797_v3 = vsel %vm299_vm0, %v1794_v58, %v1796_v46  ;;  %v1903_v58 = vrot.slane %v4066_v25, 2 }
 0x172   :  { %v1744_v38 = vsel %vm179_vm1, %v1739_v39, %v1743_v52  ;;  %v1895_v41 = vrot.slane %v1797_v3, 2 }
 0x173   :  { %v1899_v17 = vrot.slane %v1744_v38, 2 }
 0x174   :  { %2222 = vmatmul.bf16.gmra.mxu3 %v1894_v29  ;;  %2154 = vmatmul.bf16.gmra.mxu2 %v1898_v24 }
 0x176   :  { %v659_v44 = vpop.f32.mrf.mxu1  ;;  %v1416_v35 = vpop.f32.mrf.mxu0 }
 0x177   :  { %v1346_v10 = vpop.f32.mrf.mxu3  ;;  %v660_v18 = vadd.f32 %v659_v44, %v3711_v55  ;;  %v4086_v12 = vadd.f32 %v1416_v35, %v1343_v40  ;;  %v740_v11 = vpop.f32.mrf.mxu2  ;;  %v1896_v55 = vsel %vm1857_vm2, %v1889_v1, %v1895_v41  ;;  %v1900_v40 = vsel %vm1857_vm2, %v1893_v36, %v1899_v17 }
 0x178   :  { %v1904_v1 = vsel %vm1857_vm2, %v1897_v32, %v1903_v58 }
 0x179   :  { %v4090_v29 = vadd.f32 %v732_v60, %v660_v18  ;;  %v1745_v60 = vshrl.u32 %v4066_v25, 16  ;;  %v1749_v18 = vshll.u32 %v4092_v59, 16 }
 0x17b   :  { %4352 = vst [vmem:[#allocation20_spill] sm:$0xff] %v4090_v29  ;;  %v1747_v36 = vor.u32 %v1745_v60, %v1743_v52  ;;  %v4357_v52 = vld [vmem:[#allocation8_spill] sm:$0xff] }
 0x17c   :  { %v1088_v60 = vrot.slane %v4357_v52, 1 }
 0x17e   :  { %v662_v33 = vpop.f32.mrf.mxu1  ;;  %v1419_v24 = vpop.f32.mrf.mxu0 }
 0x17f   :  { %v1348_v8 = vpop.f32.mrf.mxu3  ;;  %v663_v39 = vadd.f32 %v662_v33, %v3639_v49  ;;  %v4099_v44 = vadd.f32 %v1419_v24, %v1346_v10  ;;  %v742_v35 = vpop.f32.mrf.mxu2  ;;  %v1798_v49 = vrot.slane %v4066_v25, 1  ;;  %v1751_v10 = vrot.slane %v1749_v18, 1  ;;  %v4118_v25 = vld [vmem:[#allocation2 + $0x58] sm:$0xff] }
 0x181   :  { %4353 = vst [vmem:[#allocation21_spill] sm:$0xff] %v4099_v44  ;;  %v4106_v3 = vadd.f32 %v735_v22, %v663_v39  ;;  %1466 = vmatmul.bf16.gmra.mxu1 %v4052_v5  ;;  %2295 = vmatmul.bf16.gmra.mxu0 %v1896_v55  ;;  %v1799_v22 = vsel %vm299_vm0, %v1796_v46, %v1798_v49  ;;  %v1909_v46 = vrot.slane %v4092_v59, 2 }
 0x182   :  { %v1752_v5 = vsel %vm179_vm1, %v1747_v36, %v1751_v10  ;;  %v1901_v32 = vrot.slane %v1799_v22, 2 }
 0x183   :  { %4354 = vst [vmem:[#allocation22_spill] sm:$0xff] %v4106_v3  ;;  %v1905_v39 = vrot.slane %v1752_v5, 2  ;;  %v4130_v5 = vsel %vm299_vm0, %v1084_v54, %v1088_v60 }
 0x184   :  { %2227 = vmatmul.bf16.gmra.mxu3 %v1900_v40  ;;  %2159 = vmatmul.bf16.gmra.mxu2 %v1904_v1 }
 0x186   :  { %v664_v33 = vpop.f32.mrf.mxu1  ;;  %v1421_v24 = vpop.f32.mrf.mxu0 }
 0x187   :  { %v1351_v38 = vpop.f32.mrf.mxu3  ;;  %v665_v44 = vadd.f32 %v664_v33, %v3659_v63  ;;  %v4112_v28 = vadd.f32 %v1421_v24, %v1348_v8  ;;  %v745_v55 = vpop.f32.mrf.mxu2  ;;  %v1902_v63 = vsel %vm1857_vm2, %v1895_v41, %v1901_v32  ;;  %v1906_v8 = vsel %vm1857_vm2, %v1899_v17, %v1905_v39  ;;  %v4358_v33 = vld [vmem:[#allocation4_spill] sm:$0xff] }
 0x188   :  { %v1910_v41 = vsel %vm1857_vm2, %v1903_v58, %v1909_v46  ;;  %v1800_v17 = vrot.slane %v4092_v59, 1 }
 0x189   :  { %4355 = vst [vmem:[#allocation23_spill] sm:$0xff] %v4112_v28  ;;  %v4116_v40 = vadd.f32 %v737_v47, %v665_v44  ;;  %v1753_v47 = vshrl.u32 %v4092_v59, 16  ;;  %v1757_v44 = vshll.u32 %v4118_v25, 16  ;;  %v4144_v59 = vld [vmem:[#allocation2 + $0x60] sm:$0xff] }
 0x18b   :  { %4356 = vst [vmem:[#allocation24_spill] sm:$0xff] %v4116_v40 }
 0x18e   :  { %v667_v1 = vpop.f32.mrf.mxu1  ;;  %v1424_v3 = vpop.f32.mrf.mxu0 }
 0x18f   :  { %v1353_v18 = vpop.f32.mrf.mxu3  ;;  %v668_v36 = vadd.f32 %v667_v1, %v4358_v33  ;;  %v4125_v24 = vadd.f32 %v1424_v3, %v1351_v38  ;;  %v747_v22 = vpop.f32.mrf.mxu2  ;;  %v1755_v3 = vor.u32 %v1753_v47, %v1751_v10  ;;  %v1759_v38 = vrot.slane %v1757_v44, 1 }
 0x190   :  { %v4361_v22 = vld [vmem:[#allocation5_spill] sm:$0xff]  ;;  %v4331_v10 = vrot.slane %v3819_v6, 1 }
 0x191   :  { %4359 = vst [vmem:[#allocation8_spill] sm:$0xff] %v4125_v24  ;;  %v4132_v52 = vadd.f32 %v740_v11, %v668_v36  ;;  %1471 = vmatmul.bf16.gmra.mxu1 %v4078_v45  ;;  %2300 = vmatmul.bf16.gmra.mxu0 %v1902_v63  ;;  %v1801_v11 = vsel %vm299_vm0, %v1798_v49, %v1800_v17  ;;  %v1915_v49 = vrot.slane %v4118_v25, 2 }
 0x192   :  { %v1760_v45 = vsel %vm179_vm1, %v1755_v3, %v1759_v38  ;;  %v1907_v58 = vrot.slane %v1801_v11, 2 }
 0x193   :  { %4360 = vst [vmem:[#allocation4_spill] sm:$0xff] %v4132_v52  ;;  %v1911_v36 = vrot.slane %v1760_v45, 2  ;;  %v4158_v45 = vsel %vm299_vm0, %v1088_v60, %v4331_v10 }
 0x194   :  { %2232 = vmatmul.bf16.gmra.mxu3 %v1906_v8  ;;  %2164 = vmatmul.bf16.gmra.mxu2 %v1910_v41 }
 0x196   :  { %v669_v33 = vpop.f32.mrf.mxu1  ;;  %v1426_v24 = vpop.f32.mrf.mxu0 }
 0x197   :  { %v1356_v1 = vpop.f32.mrf.mxu3  ;;  %v670_v40 = vadd.f32 %v669_v33, %v4361_v22  ;;  %v4138_v54 = vadd.f32 %v1426_v24, %v1353_v18  ;;  %v2125_v63 = vpop.f32.mrf.mxu2  ;;  %v1908_v33 = vsel %vm1857_vm2, %v1901_v32, %v1907_v58  ;;  %v1912_v18 = vsel %vm1857_vm2, %v1905_v39, %v1911_v36  ;;  %v4364_v24 = vld [vmem:[#allocation6_spill] sm:$0xff] }
 0x198   :  { %v1916_v32 = vsel %vm1857_vm2, %v1909_v46, %v1915_v49  ;;  %v1802_v39 = vrot.slane %v4118_v25, 1 }
 0x199   :  { %4362 = vst [vmem:[#allocation5_spill] sm:$0xff] %v4138_v54  ;;  %v4142_v8 = vadd.f32 %v742_v35, %v670_v40  ;;  %v1761_v35 = vshrl.u32 %v4118_v25, 16  ;;  %v1765_v40 = vshll.u32 %v4144_v59, 16 }
 0x19a   :  { %v1803_v60 = vsel %vm299_vm0, %v1800_v17, %v1802_v39  ;;  %v4367_v17 = vld [vmem:[#allocation7_spill] sm:$0xff] }
 0x19b   :  { %4363 = vst [vmem:[#allocation25_spill] sm:$0xff] %v4142_v8 }
 0x19e   :  { %v672_v44 = vpop.f32.mrf.mxu1  ;;  %v1429_v41 = vpop.f32.mrf.mxu0 }
 0x19f   :  { %v1358_v47 = vpop.f32.mrf.mxu3  ;;  %v673_v3 = vadd.f32 %v672_v44, %v4364_v24  ;;  %v4151_v22 = vadd.f32 %v1429_v41, %v1356_v1  ;;  %v2127_v11 = vpop.f32.mrf.mxu2  ;;  %v1763_v1 = vor.u32 %v1761_v35, %v1759_v38  ;;  %v1767_v44 = vrot.slane %v1765_v40, 1  ;;  %v1605_v41 = vld [vmem:[#allocation2 + $0x68] sm:$0xf]  ;;  %v1607_v24 = vld [vmem:[#allocation2 + $0x6c] sm:$0x7] }
 0x1a1   :  { %4365 = vst [vmem:[#allocation6_spill] sm:$0xff] %v4151_v22  ;;  %v4160_v47 = vadd.f32 %v745_v55, %v673_v3  ;;  %1476 = vmatmul.bf16.gmra.mxu1 %v4104_v43  ;;  %2305 = vmatmul.bf16.gmra.mxu0 %v1908_v33  ;;  %v1768_v55 = vsel %vm179_vm1, %v1763_v1, %v1767_v44  ;;  %v1659_v3 = vunpack.c.l.b16 %v1605_v41  ;;  %v1675_v43 = vunpack.c.l.b16 %v1607_v24 }
 0x1a2   :  { %v1917_v10 = vrot.slane %v1768_v55, 2  ;;  %v1769_v1 = vshrl.u32 %v4144_v59, 16 }
 0x1a3   :  { %4366 = vst [vmem:[#allocation26_spill] sm:$0xff] %v4160_v47  ;;  %v4167_v46 = vpack.c.b16 %v1675_v43, %v1659_v3 }
 0x1a4   :  { %2237 = vmatmul.bf16.gmra.mxu3 %v1912_v18  ;;  %2169 = vmatmul.bf16.gmra.mxu2 %v1916_v32  ;;  %v1913_v18 = vrot.slane %v1803_v60, 2  ;;  %v1918_v32 = vsel %vm1857_vm2, %v1911_v36, %v1917_v10  ;;  %v4368_v60 = vld [vmem:[#allocation9_spill] sm:$0xff]  ;;  %v1771_v52 = vor.u32 %v1769_v1, %v1767_v44 }
 0x1a5   :  { %v1773_v41 = vshll.u32 %v4167_v46, 16 }
 0x1a6   :  { %v674_v8 = vpop.f32.mrf.mxu1  ;;  %v1431_v54 = vpop.f32.mrf.mxu0  ;;  %v1914_v40 = vsel %vm1857_vm2, %v1907_v58, %v1913_v18  ;;  %v1804_v58 = vrot.slane %v4144_v59, 1 }
 0x1a7   :  { %v2198_v22 = vpop.f32.mrf.mxu3  ;;  %v2130_v33 = vpop.f32.mrf.mxu2  ;;  %v1921_v54 = vrot.slane %v4144_v59, 2  ;;  %v4185_v59 = vld [vmem:[%s4324_s3] ss:$0 sm:$0xff] }
 0x1a8   :  { %v2199_v8 = vadd.f32 %v2198_v22, %v2125_v63  ;;  %v1775_v63 = vrot.slane %v1773_v41, 1  ;;  %v1606_v22 = vld [vmem:[#allocation2 + $0x6c] sm:$0x3]  ;;  %v4180_v29 = vsel %vm299_vm0, %v1802_v39, %v1804_v58 }
 0x1a9   :  { %v1922_v36 = vsel %vm1857_vm2, %v1915_v49, %v1921_v54 }
 0x1aa   :  { %v1776_v44 = vsel %vm179_vm1, %v1771_v52, %v1775_v63 }
 0x1ab   :  { %v1923_v39 = vrot.slane %v1776_v44, 2  ;;  %v999_v44 = vrot.slane %v3813_v50, 1 }
 0x1ad   :  { %v1924_v52 = vsel %vm1857_vm2, %v1917_v10, %v1923_v39  ;;  %v1777_v10 = vshrl.u32 %v4167_v46, 16 }
 0x1ae   :  { %v1442_v38 = vpop.f32.mrf.mxu1  ;;  %v2271_v35 = vpop.f32.mrf.mxu0 }
 0x1af   :  { %v2200_v25 = vpop.f32.mrf.mxu3  ;;  %v1443_v47 = vadd.f32 %v1442_v38, %v4367_v17  ;;  %v2132_v24 = vpop.f32.mrf.mxu2  ;;  %v2272_v43 = vadd.f32 %v2271_v35, %v2199_v8  ;;  %v1919_v8 = vrot.slane %v4180_v29, 2 }
 0x1b1   :  { %v1531_v55 = vadd.f32 %v1443_v47, %v4368_v60  ;;  %1481 = vmatmul.bf16.gmra.mxu1 %v4130_v5  ;;  %2310 = vmatmul.bf16.gmra.mxu0 %v1914_v40  ;;  %v1660_v47 = vunpack.c.l.b16 %v1606_v22  ;;  %v2201_v60 = vadd.f32 %v2200_v25, %v2127_v11 }
 0x1b3   :  { %v2360_v5 = vadd.f32 %v2272_v43, %v1531_v55  ;;  %v4191_v1 = vpack.c.b16 %v1660_v47, %v1659_v3 }
 0x1b4   :  { %2242 = vmatmul.bf16.gmra.mxu3 %v1918_v32  ;;  %2174 = vmatmul.bf16.gmra.mxu2 %v1922_v36 }
 0x1b5   :  { %v2439_v11 = vadd.f32 %v4185_v59, %v2360_v5  ;;  %v4370_v5 = vld [vmem:[#allocation11_spill] sm:$0xff] }
 0x1b6   :  { %v1444_v17 = vpop.f32.mrf.mxu1  ;;  %v2273_v28 = vpop.f32.mrf.mxu0 }
 0x1b7   :  { %v2203_v38 = vpop.f32.mrf.mxu3  ;;  %v1445_v49 = vadd.f32 %v1444_v17, %v3799_v16  ;;  %v2135_v35 = vpop.f32.mrf.mxu2  ;;  %v2274_v32 = vadd.f32 %v2273_v28, %v2201_v60  ;;  %v1920_v16 = vsel %vm1857_vm2, %v1913_v18, %v1919_v8  ;;  %v2464_v28 = vmax.f32 %v2439_v11, 0.0  ;;  %v4369_v17 = vld [vmem:[#allocation10_spill] sm:$0xff] }
 0x1b8   :  { %v2204_v22 = vadd.f32 %v2203_v38, %v2130_v33  ;;  %v1806_v38 = vrot.slane %v4167_v46, 1  ;;  %v1779_v11 = vor.u32 %v1777_v10, %v1775_v63 }
 0x1b9   :  { %v1532_v40 = vadd.f32 %v1445_v49, %v3807_v37  ;;  %v1927_v37 = vrot.slane %v4191_v1, 2 }
 0x1bb   :  { %v2361_v25 = vadd.f32 %v2274_v32, %v1532_v40  ;;  %v1928_v18 = vsel %vm1857_vm2, %v1921_v54, %v1927_v37 }
 0x1bd   :  { %v2440_v41 = vadd.f32 %v4185_v59, %v2361_v25 }
 0x1be   :  { %v1447_v36 = vpop.f32.mrf.mxu1  ;;  %v2276_v43 = vpop.f32.mrf.mxu0 }
 0x1bf   :  { %v2205_v55 = vpop.f32.mrf.mxu3  ;;  %v2465_v29 = vmax.f32 %v2440_v41, 0.0  ;;  %v1448_v3 = vadd.f32 %v1447_v36, %v4369_v17  ;;  %v2137_v47 = vpop.f32.mrf.mxu2  ;;  %v2277_v33 = vadd.f32 %v2276_v43, %v2204_v22  ;;  %v1807_v41 = vsel %vm299_vm0, %v1804_v58, %v1806_v38 }
 0x1c0   :  { %v2206_v50 = vadd.f32 %v2205_v55, %v2132_v24  ;;  %v1925_v46 = vrot.slane %v1807_v41, 2  ;;  %v4371_v55 = vrot.slane %v3819_v6, 1 }
 0x1c1   :  { %v3171_v60 = vpack.c.bf16 %v2465_v29, %v2464_v28  ;;  %v1533_v49 = vadd.f32 %v1448_v3, %v4370_v5  ;;  %1486 = vmatmul.bf16.gmra.mxu1 %v4158_v45  ;;  %2315 = vmatmul.bf16.gmra.mxu0 %v1920_v16  ;;  %v1000_v45 = vsel %vm299_vm0, %v3811_v61, %v999_v44  ;;  %v1929_v28 = vrot.slane %v1779_v11, 2  ;;  %v4374_v11 = vld [vmem:[#allocation14_spill] sm:$0xff] }
 0x1c2   :  { %v1926_v58 = vsel %vm1857_vm2, %v1919_v8, %v1925_v46 }
 0x1c3   :  { %3172 = vst [vmem:[%s4325_s4] sm:$0xff] %v3171_v60   ;;  %v2362_v25 = vadd.f32 %v2277_v33, %v1533_v49  ;;  %v4372_v49 = vld [vmem:[#allocation12_spill] sm:$0xff] }
 0x1c4   :  { %2247 = vmatmul.bf16.gmra.mxu3 %v1924_v52  ;;  %2179 = vmatmul.bf16.gmra.mxu2 %v1928_v18  ;;  %v1096_v52 = vrot.slane %v1000_v45, 1 }
 0x1c5   :  { %v2441_v22 = vadd.f32 %v4185_v59, %v2362_v25 }
 0x1c6   :  { %v1449_v32 = vpop.f32.mrf.mxu1  ;;  %v2278_v1 = vpop.f32.mrf.mxu0 }
 0x1c7   :  { %v2208_v40 = vpop.f32.mrf.mxu3  ;;  %v1450_v54 = vadd.f32 %v1449_v32, %v3843_v7  ;;  %v2140_v36 = vpop.f32.mrf.mxu2  ;;  %v2279_v43 = vadd.f32 %v2278_v1, %v2206_v50  ;;  %v1097_v7 = vsel %vm299_vm0, %v4371_v55, %v1096_v52  ;;  %v2466_v3 = vmax.f32 %v2441_v22, 0.0  ;;  %v4373_v32 = vld [vmem:[#allocation13_spill] sm:$0xff] }
 0x1c8   :  { %v2209_v60 = vadd.f32 %v2208_v40, %v2135_v35  ;;  %v1931_v22 = vrot.slane %v1806_v38, 2 }
 0x1c9   :  { %v1534_v16 = vadd.f32 %v1450_v54, %v3851_v9  ;;  %v1930_v9 = vsel %vm1857_vm2, %v1923_v39, %v1929_v28  ;;  %v4375_v54 = vld [vmem:[#allocation15_spill] sm:$0xff] }
 0x1cb   :  { %v2363_v29 = vadd.f32 %v2279_v43, %v1534_v16  ;;  %v1102_v43 = vrot.slane %v999_v44, 1 }
 0x1cd   :  { %v2442_v17 = vadd.f32 %v4185_v59, %v2363_v29 }
 0x1ce   :  { %v1452_v63 = vpop.f32.mrf.mxu1  ;;  %v2281_v24 = vpop.f32.mrf.mxu0 }
 0x1cf   :  { %v2210_v61 = vpop.f32.mrf.mxu3  ;;  %v2467_v5 = vmax.f32 %v2442_v17, 0.0  ;;  %v1453_v18 = vadd.f32 %v1452_v63, %v4372_v49  ;;  %v2142_v10 = vpop.f32.mrf.mxu2  ;;  %v2282_v6 = vadd.f32 %v2281_v24, %v2209_v60 }
 0x1d0   :  { %v2211_v35 = vadd.f32 %v2210_v61, %v2137_v47  ;;  %v1932_v47 = vsel %vm1857_vm2, %v1925_v46, %v1931_v22 }
 0x1d1   :  { %v3176_v33 = vpack.c.bf16 %v2467_v5, %v2466_v3  ;;  %v1535_v1 = vadd.f32 %v1453_v18, %v4373_v32  ;;  %1491 = vmatmul.bf16.gmra.mxu1 %v1097_v7  ;;  %2320 = vmatmul.bf16.gmra.mxu0 %v1926_v58  ;;  %v1103_v7 = vsel %vm299_vm0, %v1096_v52, %v1102_v43  ;;  %v4376_v3 = vld [vmem:[#allocation16_spill] sm:$0xff] }
 0x1d3   :  { %3231 = vst [vmem:[%s4325_s4 + $0x8] sm:$0xff] %v3176_v33   ;;  %v2364_v40 = vadd.f32 %v2282_v6, %v1535_v1 }
 0x1d4   :  { %2252 = vmatmul.bf16.gmra.mxu3 %v1930_v9  ;;  %2184 = vmatmul.bf16.gmra.mxu2 %v1927_v37 }
 0x1d5   :  { %v2443_v29 = vadd.f32 %v4185_v59, %v2364_v40 }
 0x1d6   :  { %v1454_v39 = vpop.f32.mrf.mxu1  ;;  %v2283_v45 = vpop.f32.mrf.mxu0 }
 0x1d7   :  { %v2213_v8 = vpop.f32.mrf.mxu3  ;;  %v1455_v50 = vadd.f32 %v1454_v39, %v4374_v11  ;;  %v2145_v25 = vpop.f32.mrf.mxu2  ;;  %v2284_v16 = vadd.f32 %v2283_v45, %v2211_v35  ;;  %v2468_v61 = vmax.f32 %v2443_v29, 0.0 }
 0x1d8   :  { %v2214_v58 = vadd.f32 %v2213_v8, %v2140_v36 }
 0x1d9   :  { %v1536_v41 = vadd.f32 %v1455_v50, %v4375_v54 }
 0x1db   :  { %v2365_v17 = vadd.f32 %v2284_v16, %v1536_v41 }
 0x1dd   :  { %v2444_v63 = vadd.f32 %v4185_v59, %v2365_v17 }
 0x1de   :  { %v1457_v55 = vpop.f32.mrf.mxu1  ;;  %v2286_v37 = vpop.f32.mrf.mxu0 }
 0x1df   :  { %v2215_v24 = vpop.f32.mrf.mxu3  ;;  %v2469_v9 = vmax.f32 %v2444_v63, 0.0  ;;  %v1458_v60 = vadd.f32 %v1457_v55, %v4376_v3  ;;  %v2147_v5 = vpop.f32.mrf.mxu2  ;;  %v2287_v49 = vadd.f32 %v2286_v37, %v2214_v58 }
 0x1e0   :  { %v2216_v33 = vadd.f32 %v2215_v24, %v2142_v10 }
 0x1e1   :  { %v3181_v44 = vpack.c.bf16 %v2469_v9, %v2468_v61  ;;  %v1537_v38 = vadd.f32 %v1458_v60, %v3917_v20  ;;  %1496 = vmatmul.bf16.gmra.mxu1 %v1103_v7  ;;  %2325 = vmatmul.bf16.gmra.mxu0 %v1932_v47 }
 0x1e3   :  { %3232 = vst [vmem:[%s4325_s4 + $0x10] sm:$0xff] %v3181_v44   ;;  %v2366_v36 = vadd.f32 %v2287_v49, %v1537_v38 }
 0x1e4   :  { %2257 = vmatmul.bf16.gmra.mxu3 %v1929_v28 }
 0x1e5   :  { %v2445_v20 = vadd.f32 %v4185_v59, %v2366_v36 }
 0x1e6   :  { %v1459_v18 = vpop.f32.mrf.mxu1  ;;  %v2288_v46 = vpop.f32.mrf.mxu0 }
 0x1e7   :  { %v2218_v52 = vpop.f32.mrf.mxu3  ;;  %v1460_v32 = vadd.f32 %v1459_v18, %v3923_v57  ;;  %v2150_v1 = vpop.f32.mrf.mxu2  ;;  %v2289_v8 = vadd.f32 %v2288_v46, %v2216_v33  ;;  %v2470_v11 = vmax.f32 %v2445_v20, 0.0 }
 0x1e8   :  { %v2219_v50 = vadd.f32 %v2218_v52, %v2145_v25 }
 0x1e9   :  { %v1538_v6 = vadd.f32 %v1460_v32, %v3928_v48 }
 0x1eb   :  { %v2367_v39 = vadd.f32 %v2289_v8, %v1538_v6 }
 0x1ed   :  { %v2446_v28 = vadd.f32 %v4185_v59, %v2367_v39 }
 0x1ee   :  { %v1462_v35 = vpop.f32.mrf.mxu1  ;;  %v2291_v40 = vpop.f32.mrf.mxu0 }
 0x1ef   :  { %v2220_v45 = vpop.f32.mrf.mxu3  ;;  %v2471_v54 = vmax.f32 %v2446_v28, 0.0  ;;  %v1463_v10 = vadd.f32 %v1462_v35, %v3939_v53  ;;  %v2152_v41 = vpop.f32.mrf.mxu2  ;;  %v2292_v48 = vadd.f32 %v2291_v40, %v2219_v50 }
 0x1f0   :  { %v2221_v24 = vadd.f32 %v2220_v45, %v2147_v5 }
 0x1f1   :  { %v3186_v16 = vpack.c.bf16 %v2471_v54, %v2470_v11  ;;  %v1539_v57 = vadd.f32 %v1463_v10, %v3947_v62  ;;  %1501 = vmatmul.bf16.gmra.mxu1 %v1102_v43  ;;  %2330 = vmatmul.bf16.gmra.mxu0 %v1931_v22 }
 0x1f3   :  { %3233 = vst [vmem:[%s4325_s4 + $0x18] sm:$0xff] %v3186_v16   ;;  %v2368_v55 = vadd.f32 %v2292_v48, %v1539_v57 }
 0x1f5   :  { %v2447_v62 = vadd.f32 %v4185_v59, %v2368_v55 }
 0x1f6   :  { %v1464_v17 = vpop.f32.mrf.mxu1  ;;  %v2293_v63 = vpop.f32.mrf.mxu0 }
 0x1f7   :  { %v2223_v29 = vpop.f32.mrf.mxu3  ;;  %v1465_v25 = vadd.f32 %v1464_v17, %v3956_v23  ;;  %v2155_v37 = vpop.f32.mrf.mxu2  ;;  %v2294_v7 = vadd.f32 %v2293_v63, %v2221_v24  ;;  %v2472_v9 = vmax.f32 %v2447_v62, 0.0 }
 0x1f8   :  { %v2224_v3 = vadd.f32 %v2223_v29, %v2150_v1 }
 0x1f9   :  { %v1540_v53 = vadd.f32 %v1465_v25, %v3960_v56 }
 0x1fb   :  { %v2369_v43 = vadd.f32 %v2294_v7, %v1540_v53 }
 0x1fd   :  { %v2448_v22 = vadd.f32 %v4185_v59, %v2369_v43 }
 0x1fe   :  { %v1467_v61 = vpop.f32.mrf.mxu1  ;;  %v2296_v58 = vpop.f32.mrf.mxu0 }
 0x1ff   :  { %v2225_v47 = vpop.f32.mrf.mxu3  ;;  %v2473_v60 = vmax.f32 %v2448_v22, 0.0  ;;  %v1468_v5 = vadd.f32 %v1467_v61, %v3969_v13  ;;  %v2157_v44 = vpop.f32.mrf.mxu2  ;;  %v2297_v56 = vadd.f32 %v2296_v58, %v2224_v3  ;;  %v4377_v22 = vld [vmem:[#allocation17_spill] sm:$0xff] }
 0x200   :  { %v2226_v46 = vadd.f32 %v2225_v47, %v2152_v41 }
 0x201   :  { %v3191_v38 = vpack.c.bf16 %v2473_v60, %v2472_v9  ;;  %v1541_v23 = vadd.f32 %v1468_v5, %v3976_v2 }
 0x203   :  { %3234 = vst [vmem:[%s4325_s4 + $0x20] sm:$0xff] %v3191_v38   ;;  %v2370_v33 = vadd.f32 %v2297_v56, %v1541_v23 }
 0x205   :  { %v2449_v6 = vadd.f32 %v4185_v59, %v2370_v33 }
 0x206   :  { %v1469_v52 = vpop.f32.mrf.mxu1  ;;  %v2298_v18 = vpop.f32.mrf.mxu0 }
 0x207   :  { %v2228_v49 = vpop.f32.mrf.mxu3  ;;  %v1470_v36 = vadd.f32 %v1469_v52, %v3982_v4  ;;  %v2160_v32 = vpop.f32.mrf.mxu2  ;;  %v2299_v13 = vadd.f32 %v2298_v18, %v2226_v46  ;;  %v2474_v45 = vmax.f32 %v2449_v6, 0.0  ;;  %v4378_v6 = vld [vmem:[#allocation18_spill] sm:$0xff] }
 0x208   :  { %v2229_v35 = vadd.f32 %v2228_v49, %v2155_v37 }
 0x209   :  { %v1542_v1 = vadd.f32 %v1470_v36, %v3986_v51 }
 0x20b   :  { %v2371_v8 = vadd.f32 %v2299_v13, %v1542_v1 }
 0x20d   :  { %v2450_v2 = vadd.f32 %v4185_v59, %v2371_v8 }
 0x20e   :  { %v1472_v39 = vpop.f32.mrf.mxu1  ;;  %v2301_v28 = vpop.f32.mrf.mxu0 }
 0x20f   :  { %v2230_v20 = vpop.f32.mrf.mxu3  ;;  %v2475_v40 = vmax.f32 %v2450_v2, 0.0  ;;  %v1473_v11 = vadd.f32 %v1472_v39, %v3995_v15  ;;  %v2162_v50 = vpop.f32.mrf.mxu2  ;;  %v2302_v51 = vadd.f32 %v2301_v28, %v2229_v35 }
 0x210   :  { %v2231_v57 = vadd.f32 %v2230_v20, %v2157_v44 }
 0x211   :  { %v3196_v54 = vpack.c.bf16 %v2475_v40, %v2474_v45  ;;  %v1543_v4 = vadd.f32 %v1473_v11, %v4002_v21 }
 0x213   :  { %3235 = vst [vmem:[%s4325_s4 + $0x28] sm:$0xff] %v3196_v54   ;;  %v2372_v48 = vadd.f32 %v2302_v51, %v1543_v4 }
 0x215   :  { %v2451_v24 = vadd.f32 %v4185_v59, %v2372_v48 }
 0x216   :  { %v1474_v41 = vpop.f32.mrf.mxu1  ;;  %v2303_v16 = vpop.f32.mrf.mxu0 }
 0x217   :  { %v2233_v10 = vpop.f32.mrf.mxu3  ;;  %v1475_v29 = vadd.f32 %v1474_v41, %v4008_v26  ;;  %v2165_v17 = vpop.f32.mrf.mxu2  ;;  %v2304_v15 = vadd.f32 %v2303_v16, %v2231_v57  ;;  %v2476_v7 = vmax.f32 %v2451_v24, 0.0 }
 0x218   :  { %v2234_v62 = vadd.f32 %v2233_v10, %v2160_v32 }
 0x219   :  { %v1544_v63 = vadd.f32 %v1475_v29, %v4012_v34 }
 0x21b   :  { %v2373_v55 = vadd.f32 %v2304_v15, %v1544_v63  ;;  %v4379_v63 = vld [vmem:[#allocation19_spill] sm:$0xff] }
 0x21d   :  { %v2452_v21 = vadd.f32 %v4185_v59, %v2373_v55 }
 0x21e   :  { %v1477_v37 = vpop.f32.mrf.mxu1  ;;  %v2306_v53 = vpop.f32.mrf.mxu0 }
 0x21f   :  { %v2235_v25 = vpop.f32.mrf.mxu3  ;;  %v2477_v43 = vmax.f32 %v2452_v21, 0.0  ;;  %v1478_v47 = vadd.f32 %v1477_v37, %v4377_v22  ;;  %v2167_v61 = vpop.f32.mrf.mxu2  ;;  %v2307_v34 = vadd.f32 %v2306_v53, %v2234_v62  ;;  %v4380_v22 = vld [vmem:[#allocation20_spill] sm:$0xff] }
 0x220   :  { %v2236_v5 = vadd.f32 %v2235_v25, %v2162_v50 }
 0x221   :  { %v3201_v58 = vpack.c.bf16 %v2477_v43, %v2476_v7  ;;  %v1545_v26 = vadd.f32 %v1478_v47, %v4028_v27 }
 0x223   :  { %3236 = vst [vmem:[%s4325_s4 + $0x30] sm:$0xff] %v3201_v58   ;;  %v2374_v44 = vadd.f32 %v2307_v34, %v1545_v26 }
 0x225   :  { %v2453_v52 = vadd.f32 %v4185_v59, %v2374_v44 }
 0x226   :  { %v1479_v3 = vpop.f32.mrf.mxu1  ;;  %v2308_v60 = vpop.f32.mrf.mxu0 }
 0x227   :  { %v2238_v9 = vpop.f32.mrf.mxu3  ;;  %v1480_v38 = vadd.f32 %v1479_v3, %v4034_v0  ;;  %v2170_v23 = vpop.f32.mrf.mxu2  ;;  %v2309_v49 = vadd.f32 %v2308_v60, %v2236_v5  ;;  %v2478_v32 = vmax.f32 %v2453_v52, 0.0 }
 0x228   :  { %v2239_v1 = vadd.f32 %v2238_v9, %v2165_v17 }
 0x229   :  { %v1546_v56 = vadd.f32 %v1480_v38, %v4038_v30  ;;  %v4381_v38 = vld [vmem:[#allocation21_spill] sm:$0xff] }
 0x22b   :  { %v2375_v18 = vadd.f32 %v2309_v49, %v1546_v56 }
 0x22d   :  { %v2454_v27 = vadd.f32 %v4185_v59, %v2375_v18 }
 0x22e   :  { %v1482_v33 = vpop.f32.mrf.mxu1  ;;  %v2311_v36 = vpop.f32.mrf.mxu0 }
 0x22f   :  { %v2240_v46 = vpop.f32.mrf.mxu3  ;;  %v2479_v13 = vmax.f32 %v2454_v27, 0.0  ;;  %v1483_v8 = vadd.f32 %v1482_v33, %v4378_v6  ;;  %v2172_v2 = vpop.f32.mrf.mxu2  ;;  %v2312_v30 = vadd.f32 %v2311_v36, %v2239_v1  ;;  %v4383_v1 = vld [vmem:[#allocation23_spill] sm:$0xff] }
 0x230   :  { %v2241_v35 = vadd.f32 %v2240_v46, %v2167_v61 }
 0x231   :  { %v3206_v20 = vpack.c.bf16 %v2479_v13, %v2478_v32  ;;  %v1547_v0 = vadd.f32 %v1483_v8, %v4054_v14  ;;  %v4384_v8 = vld [vmem:[#allocation24_spill] sm:$0xff] }
 0x233   :  { %3237 = vst [vmem:[%s4325_s4 + $0x38] sm:$0xff] %v3206_v20   ;;  %v2376_v40 = vadd.f32 %v2312_v30, %v1547_v0 }
 0x235   :  { %v2455_v51 = vadd.f32 %v4185_v59, %v2376_v40 }
 0x236   :  { %v1484_v28 = vpop.f32.mrf.mxu1  ;;  %v2313_v45 = vpop.f32.mrf.mxu0 }
 0x237   :  { %v2243_v39 = vpop.f32.mrf.mxu3  ;;  %v1485_v11 = vadd.f32 %v1484_v28, %v4060_v42  ;;  %v2175_v50 = vpop.f32.mrf.mxu2  ;;  %v2314_v4 = vadd.f32 %v2313_v45, %v2241_v35  ;;  %v2480_v48 = vmax.f32 %v2455_v51, 0.0 }
 0x238   :  { %v2244_v29 = vadd.f32 %v2243_v39, %v2170_v23 }
 0x239   :  { %v1548_v54 = vadd.f32 %v1485_v11, %v4064_v31 }
 0x23b   :  { %v2377_v10 = vadd.f32 %v2314_v4, %v1548_v54  ;;  %v4385_v54 = vld [vmem:[#allocation8_spill] sm:$0xff] }
 0x23d   :  { %v2456_v14 = vadd.f32 %v4185_v59, %v2377_v10 }
 0x23e   :  { %v1487_v16 = vpop.f32.mrf.mxu1  ;;  %v2316_v57 = vpop.f32.mrf.mxu0 }
 0x23f   :  { %v2245_v41 = vpop.f32.mrf.mxu3  ;;  %v2481_v17 = vmax.f32 %v2456_v14, 0.0  ;;  %v1488_v15 = vadd.f32 %v1487_v16, %v4379_v63  ;;  %v2177_v24 = vpop.f32.mrf.mxu2  ;;  %v2317_v31 = vadd.f32 %v2316_v57, %v2244_v29  ;;  %v4386_v14 = vld [vmem:[#allocation4_spill] sm:$0xff] }
 0x240   :  { %v2246_v53 = vadd.f32 %v2245_v41, %v2172_v2 }
 0x241   :  { %v3211_v55 = vpack.c.bf16 %v2481_v17, %v2480_v48  ;;  %v1549_v42 = vadd.f32 %v1488_v15, %v4080_v19  ;;  %v4387_v15 = vld [vmem:[#allocation5_spill] sm:$0xff] }
 0x243   :  { %3238 = vst [vmem:[%s4325_s4 + $0x40] sm:$0xff] %v3211_v55   ;;  %v2378_v7 = vadd.f32 %v2317_v31, %v1549_v42  ;;  %v4388_v55 = vld [vmem:[#allocation25_spill] sm:$0xff] }
 0x245   :  { %v2457_v58 = vadd.f32 %v4185_v59, %v2378_v7 }
 0x246   :  { %v1489_v25 = vpop.f32.mrf.mxu1  ;;  %v2318_v37 = vpop.f32.mrf.mxu0 }
 0x247   :  { %v2248_v21 = vpop.f32.mrf.mxu3  ;;  %v1490_v62 = vadd.f32 %v1489_v25, %v4086_v12  ;;  %v2180_v43 = vpop.f32.mrf.mxu2  ;;  %v2319_v61 = vadd.f32 %v2318_v37, %v2246_v53  ;;  %v2482_v60 = vmax.f32 %v2457_v58, 0.0  ;;  %v4382_v12 = vld [vmem:[#allocation22_spill] sm:$0xff] }
 0x248   :  { %v2249_v5 = vadd.f32 %v2248_v21, %v2175_v50 }
 0x249   :  { %v1550_v47 = vadd.f32 %v1490_v62, %v4380_v22 }
 0x24b   :  { %v2379_v26 = vadd.f32 %v2319_v61, %v1550_v47  ;;  %v4389_v61 = vld [vmem:[#allocation6_spill] sm:$0xff] }
 0x24d   :  { %v2458_v19 = vadd.f32 %v4185_v59, %v2379_v26 }
 0x24e   :  { %v1492_v9 = vpop.f32.mrf.mxu1  ;;  %v2321_v3 = vpop.f32.mrf.mxu0 }
 0x24f   :  { %v2250_v34 = vpop.f32.mrf.mxu3  ;;  %v2483_v44 = vmax.f32 %v2458_v19, 0.0  ;;  %v1493_v23 = vadd.f32 %v1492_v9, %v4381_v38  ;;  %v2182_v56 = vpop.f32.mrf.mxu2  ;;  %v2322_v18 = vadd.f32 %v2321_v3, %v2249_v5 }
 0x250   :  { %v2251_v36 = vadd.f32 %v2250_v34, %v2177_v24  ;;  %v4390_v34 = vld [vmem:[#allocation26_spill] sm:$0xff] }
 0x251   :  { %v3216_v49 = vpack.c.bf16 %v2483_v44, %v2482_v60  ;;  %v1551_v52 = vadd.f32 %v1493_v23, %v4382_v12 }
 0x253   :  { %3239 = vst [vmem:[%s4325_s4 + $0x48] sm:$0xff] %v3216_v49   ;;  %v2380_v32 = vadd.f32 %v2322_v18, %v1551_v52 }
 0x255   :  { %v2459_v0 = vadd.f32 %v4185_v59, %v2380_v32 }
 0x256   :  { %v1494_v46 = vpop.f32.mrf.mxu1  ;;  %v2323_v33 = vpop.f32.mrf.mxu0 }
 0x257   :  { %v2253_v27 = vpop.f32.mrf.mxu3  ;;  %v1495_v13 = vadd.f32 %v1494_v46, %v4383_v1  ;;  %v2185_v6 = vpop.f32.mrf.mxu2  ;;  %v2324_v20 = vadd.f32 %v2323_v33, %v2251_v36  ;;  %v2484_v40 = vmax.f32 %v2459_v0, 0.0 }
 0x258   :  { %v2254_v11 = vadd.f32 %v2253_v27, %v2180_v43 }
 0x259   :  { %v1552_v2 = vadd.f32 %v1495_v13, %v4384_v8 }
 0x25b   :  { %v2381_v30 = vadd.f32 %v2324_v20, %v1552_v2 }
 0x25d   :  { %v2460_v39 = vadd.f32 %v4185_v59, %v2381_v30 }
 0x25e   :  { %v1497_v45 = vpop.f32.mrf.mxu1  ;;  %v2326_v35 = vpop.f32.mrf.mxu0 }
 0x25f   :  { %v2255_v28 = vpop.f32.mrf.mxu3  ;;  %v2485_v50 = vmax.f32 %v2460_v39, 0.0  ;;  %v1498_v4 = vadd.f32 %v1497_v45, %v4385_v54  ;;  %v2187_v51 = vpop.f32.mrf.mxu2  ;;  %v2327_v16 = vadd.f32 %v2326_v35, %v2254_v11 }
 0x260   :  { %v2256_v17 = vadd.f32 %v2255_v28, %v2182_v56 }
 0x261   :  { %v3221_v10 = vpack.c.bf16 %v2485_v50, %v2484_v40  ;;  %v1553_v41 = vadd.f32 %v1498_v4, %v4386_v14 }
 0x263   :  { %3240 = vst [vmem:[%s4325_s4 + $0x50] sm:$0xff] %v3221_v10   ;;  %v2382_v63 = vadd.f32 %v2327_v16, %v1553_v41 }
 0x265   :  { %v2461_v21 = vadd.f32 %v4185_v59, %v2382_v63 }
 0x266   :  { %v1499_v48 = vpop.f32.mrf.mxu1  ;;  %v2328_v29 = vpop.f32.mrf.mxu0 }
 0x267   :  { %v2258_v57 = vpop.f32.mrf.mxu3  ;;  %v1500_v24 = vadd.f32 %v1499_v48, %v4387_v15  ;;  %v2329_v31 = vadd.f32 %v2328_v29, %v2256_v17  ;;  %v2486_v22 = vmax.f32 %v2461_v21, 0.0 }
 0x268   :  { %v2259_v25 = vadd.f32 %v2258_v57, %v2185_v6 }
 0x269   :  { %v1554_v42 = vadd.f32 %v1500_v24, %v4388_v55 }
 0x26b   :  { %v2383_v37 = vadd.f32 %v2329_v31, %v1554_v42 }
 0x26d   :  { %v2462_v53 = vadd.f32 %v4185_v59, %v2383_v37 }
 0x26e   :  { %v1502_v62 = vpop.f32.mrf.mxu1  ;;  %v2331_v43 = vpop.f32.mrf.mxu0 }
 0x26f   :  { %v2260_v7 = vpop.f32.mrf.mxu3  ;;  %v2487_v47 = vmax.f32 %v2462_v53, 0.0  ;;  %v1503_v58 = vadd.f32 %v1502_v62, %v4389_v61  ;;  %v2332_v26 = vadd.f32 %v2331_v43, %v2259_v25 }
 0x271   :  { %v3226_v19 = vpack.c.bf16 %v2487_v47, %v2486_v22  ;;  %v1555_v9 = vadd.f32 %v1503_v58, %v4390_v34 }
 0x273   :  { %3241 = vst [vmem:[%s4325_s4 + $0x58] sm:$0xff] %v3226_v19   ;;  %v2384_v3 = vadd.f32 %v2332_v26, %v1555_v9 }
 0x275   :  { %v2463_v60 = vadd.f32 %v4185_v59, %v2384_v3 }
 0x276   :  { %v1504_v5 = vpop.f32.mrf.mxu1  ;;  %v2333_v44 = vpop.f32.mrf.mxu0 }
 0x277   :  { %v2488_v38 = vmax.f32 %v2463_v60, 0.0 }
 0x279   :  { %v2513_v23 = vpack.c.bf16 %v2488_v38, %v2488_v38 }
 0x27b   :  { %2538 = vst [vmem:[%s4325_s4 + $0x60] sm:$0xf] %v2513_v23 }

// kernel: homography_forward.16
= control target key start
LH: loop header
LB: loop body
LE: loop exit
PB: predicated region body
PF: predicated region fallthrough
CT: control target
= control target key end

     0   :  { %vm50_vm0 = vsmask.f32 7424  ;;  %vm76_vm1 = vcmask 1046528   ;;  %vm440_vm2 = vcmask 1045504   ;;  %s1873_s2 = inlined_call_operand.vmem [shape: bf16[3,384,128], index: 2, kind: input, shape index: {}]   ;;  %s1874_s0 = inlined_call_operand.vmem [shape: bf16[32,128], index: 0, kind: input, shape index: {}]   ;;  %s1875_s1 = inlined_call_operand.vmem [shape: bf16[1,16,128], index: 1, kind: input, shape index: {}]   ;;  %s1876_s3 = inlined_call_operand.vmem [shape: f32[1,128], index: 3, kind: input, shape index: {}]   ;;  %s1877_s4 = inlined_call_operand.vmem [shape: bf16[32,128], index: 4, kind: output, shape index: {}]  }
   0x1   :  { %v1444_v0 = vld [vmem:[%s1873_s2 + $0x38] sm:$0xff]  ;;  %v1443_v4 = vld [vmem:[%s1873_s2 + $0x30] sm:$0xff]  ;;  %v1442_v8 = vld [vmem:[%s1873_s2 + $0x28] sm:$0xff] }
   0x2   :  { %v1452_v1 = vld [vmem:[%s1873_s2 + $0x78] sm:$0xff]  ;;  %276 = vmatpush.bf16.msra.mxu0 %v1444_v0  ;;  %v1451_v5 = vld [vmem:[%s1873_s2 + $0x70] sm:$0xff]  ;;  %v1450_v9 = vld [vmem:[%s1873_s2 + $0x68] sm:$0xff] }
   0x3   :  { %v1460_v2 = vld [vmem:[%s1873_s2 + $0xb8] sm:$0xff]  ;;  %295 = vmatpush.bf16.msra.mxu1 %v1452_v1  ;;  %v1459_v6 = vld [vmem:[%s1873_s2 + $0xb0] sm:$0xff]  ;;  %v1458_v10 = vld [vmem:[%s1873_s2 + $0xa8] sm:$0xff] }
   0x4   :  { %v1469_v3 = vld [vmem:[%s1873_s2 + $0xf8] sm:$0xff]  ;;  %314 = vmatpush.bf16.msra.mxu2 %v1460_v2  ;;  %v1468_v7 = vld [vmem:[%s1873_s2 + $0xf0] sm:$0xff]  ;;  %v1467_v11 = vld [vmem:[%s1873_s2 + $0xe8] sm:$0xff] }
   0x5   :  { %606 = vmatpush.bf16.msra.mxu3 %v1469_v3  ;;  %v1441_v12 = vld [vmem:[%s1873_s2 + $0x20] sm:$0xff]  ;;  %v19_v17 = vld [vmem:[%s1874_s0 + $0x8] sm:$0xff]   ;;  %v1440_v18 = vld [vmem:[%s1873_s2 + $0x18] sm:$0xff] }
   0x6   :  { %277 = vmatpush.bf16.msra.mxu0 %v1443_v4  ;;  %v1449_v13 = vld [vmem:[%s1873_s2 + $0x60] sm:$0xff]  ;;  %23 = vst [vmem:[#allocation2 + $0x8] sm:$0xff] %v19_v17   ;;  %v1448_v19 = vld [vmem:[%s1873_s2 + $0x58] sm:$0xff]  ;;  %v1439_v23 = vld [vmem:[%s1873_s2 + $0x10] sm:$0xff] }
   0x7   :  { %296 = vmatpush.bf16.msra.mxu1 %v1451_v5  ;;  %v17_v14 = vld [vmem:[%s1874_s0] sm:$0xff]   ;;  %v1456_v20 = vld [vmem:[%s1873_s2 + $0x98] sm:$0xff]  ;;  %v1447_v24 = vld [vmem:[%s1873_s2 + $0x50] sm:$0xff] }
   0x8   :  { %315 = vmatpush.bf16.msra.mxu2 %v1459_v6  ;;  %v1457_v15 = vld [vmem:[%s1873_s2 + $0xa0] sm:$0xff]  ;;  %21 = vst [vmem:[#allocation2] sm:$0xff] %v17_v14   ;;  %v1465_v21 = vld [vmem:[%s1873_s2 + $0xd8] sm:$0xff]  ;;  %v1455_v25 = vld [vmem:[%s1873_s2 + $0x90] sm:$0xff] }
   0x9   :  { %607 = vmatpush.bf16.msra.mxu3 %v1468_v7  ;;  %v1466_v16 = vld [vmem:[%s1873_s2 + $0xe0] sm:$0xff]  ;;  %v1464_v27 = vld [vmem:[%s1873_s2 + $0xd0] sm:$0xff]  ;;  %v1438_v35 = vld [vmem:[%s1873_s2 + $0x8] sm:$0xff] }
   0xa   :  { %278 = vmatpush.bf16.msra.mxu0 %v1442_v8  ;;  %v25_v22 = vld [vmem:[%s1875_s1] sm:$0xff]   ;;  %v1446_v36 = vld [vmem:[%s1873_s2 + $0x48] sm:$0xff]  ;;  %v1477_v57 = vld [vmem:[%s1873_s2 + $0x138] sm:$0xff] }
   0xb   :  { %297 = vmatpush.bf16.msra.mxu1 %v1450_v9  ;;  %27 = vst [vmem:[#allocation2 + $0x10] sm:$0xff] %v25_v22   ;;  %v1454_v41 = vld [vmem:[%s1873_s2 + $0x88] sm:$0xff]  ;;  %v1437_v46 = vld [vmem:[%s1873_s2] sm:$0xff]  ;;  %v1485_v58 = vld [vmem:[%s1873_s2 + $0x178] sm:$0xff] }
   0xc   :  { %316 = vmatpush.bf16.msra.mxu2 %v1458_v10  ;;  %v1463_v42 = vld [vmem:[%s1873_s2 + $0xc8] sm:$0xff]  ;;  %v1445_v47 = vld [vmem:[%s1873_s2 + $0x40] sm:$0xff]  ;;  %v1496_v63 = vld [vmem:[%s1873_s2 + $0x1b8] sm:$0xff] }
   0xd   :  { %608 = vmatpush.bf16.msra.mxu3 %v1467_v11  ;;  %v1649_v29 = vld [vmem:[#allocation2 + $0x8] sm:$0xff]  ;;  %v1453_v48 = vld [vmem:[%s1873_s2 + $0x80] sm:$0xff]  ;;  %v1504_v0 = vld [vmem:[%s1873_s2 + $0x1f8] sm:$0xff] }
   0xe   :  { %279 = vmatpush.bf16.msra.mxu0 %v1441_v12  ;;  %v59_v39 = vshll.u32 %v1649_v29, 16  ;;  %v1667_v44 = vld [vmem:[#allocation2 + $0x8] sm:$0xff]  ;;  %v1462_v49 = vld [vmem:[%s1873_s2 + $0xc0] sm:$0xff]  ;;  %v78_v53 = vrot.slane %v1649_v29, 1  ;;  %v1476_v1 = vld [vmem:[%s1873_s2 + $0x130] sm:$0xff]  ;;  %v63_v11 = vshrl.u32 %v1649_v29, 16 }
   0xf   :  { %298 = vmatpush.bf16.msra.mxu1 %v1449_v13  ;;  %v1514_v26 = vld [vmem:[#allocation2] sm:$0xff]   ;;  %v442_v55 = vrot.slane %v1667_v44, 2  ;;  %v1484_v2 = vld [vmem:[%s1873_s2 + $0x170] sm:$0xff]  ;;  %v1475_v8 = vld [vmem:[%s1873_s2 + $0x128] sm:$0xff]  ;;  %v368_v22 = vshll.u32 %v1667_v44, 16 }
  0x10   :  { %317 = vmatpush.bf16.msra.mxu2 %v1457_v15  ;;  %v54_v28 = vshll.u32 %v1514_v26, 16  ;;  %v337_v30 = vld [vmem:[#allocation2] sm:$0xc]  ;;  %v1527_v31 = vld [vmem:[#allocation2] sm:$0xf0]  ;;  %v52_v37 = vshrl.u32 %v1514_v26, 16 }
  0x11   :  { %609 = vmatpush.bf16.msra.mxu3 %v1466_v16  ;;  %v1528_v32 = vld [vmem:[#allocation2] sm:$0xe]  ;;  %v1651_v33 = vld [vmem:[#allocation2 + $0x4] sm:$0xf]  ;;  %v349_v34 = vunpack.c.l.b16 %v337_v30  ;;  %v61_v51 = vrot.slane %v59_v39, 1  ;;  %v1495_v5 = vld [vmem:[%s1873_s2 + $0x1b0] sm:$0xff] }
  0x12   :  { %280 = vmatpush.bf16.msra.mxu0 %v1440_v18  ;;  %v56_v38 = vrot.slane %v54_v28, 1  ;;  %v350_v40 = vunpack.c.l.b16 %v1651_v33  ;;  %v1529_v43 = vor.u32 %v1528_v32, %v1527_v31  ;;  %v33_v56 = vld [vmem:[#allocation2 + $0x10] sm:$0x1]  ;;  %v1483_v9 = vld [vmem:[%s1873_s2 + $0x168] sm:$0xff]  ;;  %v1501_v28 = vld [vmem:[%s1873_s2 + $0x1e0] sm:$0xff] }
  0x13   :  { %299 = vmatpush.bf16.msra.mxu1 %v1448_v19  ;;  %v48_v60 = vunpack.c.l.b16 %v33_v56  ;;  %v341_v3 = vld [vmem:[#allocation2 + $0x10] sm:$0x3]  ;;  %v1726_v13 = vld [vmem:[#allocation2 + $0x4] sm:$0xff]   ;;  %v343_v19 = vld [vmem:[#allocation2] sm:$0x8] }
  0x14   :  { %318 = vmatpush.bf16.msra.mxu2 %v1456_v20  ;;  %v1671_v45 = vpack.c.b16 %v350_v40, %v349_v34  ;;  %v57_v50 = vor.u32 %v56_v38, %v52_v37  ;;  %v77_v52 = vrot.slane %v1529_v43, 1  ;;  %v1503_v6 = vld [vmem:[%s1873_s2 + $0x1f0] sm:$0xff]  ;;  %v353_v7 = vunpack.c.l.b16 %v341_v3  ;;  %v1728_v14 = vld [vmem:[#allocation2 + $0x4] sm:$0xf0]  ;;  %v1474_v20 = vld [vmem:[%s1873_s2 + $0x120] sm:$0xff] }
  0x15   :  { %610 = vmatpush.bf16.msra.mxu3 %v1465_v21  ;;  %v49_v4 = vpack.c.b16 %v48_v60, %v48_v60  ;;  %v342_v10 = vld [vmem:[#allocation2 + $0x10] sm:$0x7]  ;;  %v1494_v15 = vld [vmem:[%s1873_s2 + $0x1a8] sm:$0xff]  ;;  %v1482_v21 = vld [vmem:[%s1873_s2 + $0x160] sm:$0xff]  ;;  %v370_v37 = vrot.slane %v368_v22, 1 }
  0x16   :  { %281 = vmatpush.bf16.msra.mxu0 %v1439_v23  ;;  %v441_v54 = vrot.slane %v1671_v45, 2  ;;  %v62_v59 = vsel %vm50_vm0, %v57_v50, %v61_v51  ;;  %v79_v61 = vsel %vm76_vm1, %v77_v52, %v78_v53  ;;  %v1502_v16 = vld [vmem:[%s1873_s2 + $0x1e8] sm:$0xff]  ;;  %v356_v17 = vpack.c.b16 %v353_v7, %v353_v7  ;;  %v1473_v34 = vld [vmem:[%s1873_s2 + $0x118] sm:$0xff] }
  0x17   :  { %300 = vmatpush.bf16.msra.mxu1 %v1447_v24  ;;  %v67_v12 = vshll.u32 %v49_v4, 16  ;;  %v358_v18 = vunpack.c.l.b16 %v342_v10  ;;  %v65_v23 = vor.u32 %v63_v11, %v61_v51  ;;  %v80_v30 = vrot.slane %v49_v4, 1  ;;  %v1791_v56 = vld [vmem:[#allocation2 + $0xc] sm:$0xff]  ;;  %v1470_v4 = vld [vmem:[%s1873_s2 + $0x100] sm:$0xff] }
  0x18   :  { %319 = vmatpush.bf16.msra.mxu2 %v1455_v25  ;;  %v443_v62 = vsel %vm440_vm2, %v441_v54, %v442_v55  ;;  %v363_v25 = vshll.u32 %v1671_v45, 16  ;;  %v450_v31 = vrot.slane %v356_v17, 2  ;;  %v387_v51 = vrot.slane %v1667_v44, 1  ;;  %v1499_v54 = vld [vmem:[%s1873_s2 + $0x1d0] sm:$0xff]  ;;  %v1489_v11 = vld [vmem:[%s1873_s2 + $0x180] sm:$0xff] }
  0x19   :  { %611 = vmatpush.bf16.msra.mxu3 %v1464_v27  ;;  %v69_v24 = vrot.slane %v67_v12, 1  ;;  %v1493_v27 = vld [vmem:[%s1873_s2 + $0x1a0] sm:$0xff]  ;;  %v1750_v32 = vpack.c.b16 %v358_v18, %v358_v18  ;;  %v81_v43 = vsel %vm76_vm1, %v78_v53, %v80_v30  ;;  %v1491_v53 = vld [vmem:[%s1873_s2 + $0x190] sm:$0xff]  ;;  %v718_v3 = vshll.u32 %v1791_v56, 16 }
  0x1a   :  { %282 = vmatpush.bf16.msra.mxu0 %v1438_v35  ;;  %v1481_v35 = vld [vmem:[%s1873_s2 + $0x158] sm:$0xff]  ;;  %v365_v39 = vrot.slane %v363_v25, 1  ;;  %v1497_v12 = vld [vmem:[%s1873_s2 + $0x1c0] sm:$0xff] }
  0x1b   :  { %301 = vmatpush.bf16.msra.mxu1 %v1446_v36  ;;  %v361_v36 = vshrl.u32 %v1671_v45, 16  ;;  %v70_v38 = vsel %vm50_vm0, %v65_v23, %v69_v24  ;;  %v1492_v45 = vld [vmem:[%s1873_s2 + $0x198] sm:$0xff]  ;;  %v376_v33 = vshll.u32 %v1750_v32, 16  ;;  %v389_v52 = vrot.slane %v1750_v32, 1  ;;  %v1510_v24 = vld [vmem:[%s1873_s2 + $0x228] sm:$0xff] }
  0x1c   :  { %320 = vmatpush.bf16.msra.mxu2 %v1454_v41  ;;  %v372_v41 = vshrl.u32 %v1667_v44, 16  ;;  %v1471_v44 = vld [vmem:[%s1873_s2 + $0x108] sm:$0xff]  ;;  %v380_v23 = vshrl.u32 %v1750_v32, 16  ;;  %v1507_v32 = vld [vmem:[%s1873_s2 + $0x210] sm:$0xff] }
  0x1d   :  { %612 = vmatpush.bf16.msra.mxu3 %v1463_v42 }
  0x1e   :  { %283 = vmatpush.bf16.msra.mxu0 %v1437_v46  ;;  %v451_v46 = vsel %vm440_vm2, %v442_v55, %v450_v31  ;;  %v378_v55 = vrot.slane %v376_v33, 1 }
  0x1f   :  { %302 = vmatpush.bf16.msra.mxu1 %v1445_v47  ;;  %v1500_v47 = vld [vmem:[%s1873_s2 + $0x1d8] sm:$0xff] }
  0x20   :  { %321 = vmatpush.bf16.msra.mxu2 %v1453_v48  ;;  %v1480_v48 = vld [vmem:[%s1873_s2 + $0x150] sm:$0xff] }
  0x21   :  { %613 = vmatpush.bf16.msra.mxu3 %v1462_v49  ;;  %284 = vmatmul.bf16.vlgmr.msra.gmra.mxu0 %v1514_v26  ;;  %v384_v26 = vunpack.c.l.b16 %v343_v19  ;;  %v366_v49 = vor.u32 %v365_v39, %v361_v36  ;;  %v1486_v19 = vld [vmem:[#allocation2 + $0x4] sm:$0xff] }
  0x22   :  { %625 = vmatpush.bf16.msrb.mxu0 %v1477_v57  ;;  %303 = vmatmul.bf16.vlgmr.msra.gmra.mxu1 %v62_v59  ;;  %v713_v57 = vshll.u32 %v1726_v13, 16 }
  0x23   :  { %644 = vmatpush.bf16.msrb.mxu1 %v1485_v58  ;;  %322 = vmatmul.bf16.vlgmr.msra.gmra.mxu2 %v79_v61  ;;  %v385_v42 = vpack.c.b16 %v350_v40, %v384_v26  ;;  %v1472_v40 = vld [vmem:[%s1873_s2 + $0x110] sm:$0xff]  ;;  %v1479_v58 = vld [vmem:[%s1873_s2 + $0x148] sm:$0xff]  ;;  %v371_v59 = vsel %vm50_vm0, %v366_v49, %v370_v37  ;;  %v390_v61 = vsel %vm76_vm1, %v387_v51, %v389_v52 }
  0x24   :  { %614 = vmatmul.bf16.vlgmr.msra.gmra.mxu3 %v443_v62  ;;  %935 = vmatpush.bf16.msrb.mxu2 %v1496_v63  ;;  %v1490_v62 = vld [vmem:[%s1873_s2 + $0x188] sm:$0xff]  ;;  %v444_v7 = vrot.slane %v371_v59, 2  ;;  %v448_v10 = vrot.slane %v390_v61, 2  ;;  %v382_v26 = vor.u32 %v380_v23, %v378_v55 }
  0x25   :  { %954 = vmatpush.bf16.msrb.mxu3 %v1504_v0  ;;  %v386_v50 = vrot.slane %v385_v42, 1  ;;  %v1498_v63 = vld [vmem:[%s1873_s2 + $0x1c8] sm:$0xff] }
  0x26   :  { %626 = vmatpush.bf16.msrb.mxu0 %v1476_v1  ;;  %v711_v1 = vshrl.u32 %v1726_v13, 16  ;;  %v452_v31 = vrot.slane %v382_v26, 2 }
  0x27   :  { %645 = vmatpush.bf16.msrb.mxu1 %v1484_v2  ;;  %v388_v60 = vsel %vm76_vm1, %v386_v50, %v387_v51  ;;  %v715_v2 = vrot.slane %v713_v57, 1 }
  0x28   :  { %936 = vmatpush.bf16.msrb.mxu2 %v1495_v5  ;;  %v1478_v5 = vld [vmem:[%s1873_s2 + $0x140] sm:$0xff] }
  0x29   :  { %955 = vmatpush.bf16.msrb.mxu3 %v1503_v6  ;;  %v1512_v6 = vld [vmem:[%s1873_s2 + $0x238] sm:$0xff]  ;;  %v716_v13 = vor.u32 %v715_v2, %v711_v1 }
  0x2a   :  { %627 = vmatpush.bf16.msrb.mxu0 %v1475_v8 }
  0x2b   :  { %646 = vmatpush.bf16.msrb.mxu1 %v1483_v9  ;;  %v447_v9 = vrot.slane %v388_v60, 2 }
  0x2c   :  { %937 = vmatpush.bf16.msrb.mxu2 %v1494_v15  ;;  %v720_v15 = vrot.slane %v718_v3, 1 }
  0x2d   :  { %956 = vmatpush.bf16.msrb.mxu3 %v1502_v16  ;;  %v683_v16 = vld [vmem:[#allocation2 + $0x14] sm:$0x1]  ;;  %v449_v18 = vsel %vm440_vm2, %v447_v9, %v448_v10 }
  0x2e   :  { %628 = vmatpush.bf16.msrb.mxu0 %v1474_v20  ;;  %v721_v20 = vsel %vm50_vm0, %v716_v13, %v720_v15  ;;  %v706_v22 = vunpack.c.l.b16 %v683_v16 }
  0x2f   :  { %647 = vmatpush.bf16.msrb.mxu1 %v1482_v21  ;;  %v1511_v21 = vld [vmem:[%s1873_s2 + $0x230] sm:$0xff] }
  0x30   :  { %938 = vmatpush.bf16.msrb.mxu2 %v1493_v27  ;;  %v709_v25 = vpack.c.b16 %v706_v22, %v706_v22  ;;  %v1509_v27 = vld [vmem:[%s1873_s2 + $0x220] sm:$0xff] }
  0x31   :  { %957 = vmatpush.bf16.msrb.mxu3 %v1501_v28  ;;  %289 = vmatmul.bf16.gmra.mxu0 %v1649_v29  ;;  %v374_v29 = vor.u32 %v372_v41, %v370_v37  ;;  %v722_v28 = vshrl.u32 %v1791_v56, 16  ;;  %v1508_v37 = vld [vmem:[%s1873_s2 + $0x218] sm:$0xff]  ;;  %v1487_v41 = vld [vmem:[#allocation2 + $0xc] sm:$0xff] }
  0x32   :  { %629 = vmatpush.bf16.msrb.mxu0 %v1473_v34  ;;  %308 = vmatmul.bf16.gmra.mxu1 %v70_v38  ;;  %v726_v30 = vshll.u32 %v709_v25, 16  ;;  %v454_v34 = vrot.slane %v389_v52, 2 }
  0x33   :  { %648 = vmatpush.bf16.msrb.mxu1 %v1481_v35  ;;  %327 = vmatmul.bf16.gmra.mxu2 %v81_v43  ;;  %v379_v0 = vsel %vm50_vm0, %v374_v29, %v378_v55  ;;  %v724_v35 = vor.u32 %v722_v28, %v720_v15  ;;  %v1541_v43 = vld [vmem:[#allocation2 + $0x4] sm:$0xe] }
  0x34   :  { %619 = vmatmul.bf16.gmra.mxu3 %v451_v46  ;;  %939 = vmatpush.bf16.msrb.mxu2 %v1492_v45  ;;  %v445_v8 = vrot.slane %v379_v0, 2  ;;  %v728_v36 = vrot.slane %v726_v30, 1  ;;  %v455_v39 = vsel %vm440_vm2, %v448_v10, %v454_v34  ;;  %v1506_v46 = vld [vmem:[%s1873_s2 + $0x208] sm:$0xff]  ;;  %v1542_v45 = vor.u32 %v1541_v43, %v1728_v14 }
  0x35   :  { %958 = vmatpush.bf16.msrb.mxu3 %v1500_v47  ;;  %v1505_v47 = vld [vmem:[%s1873_s2 + $0x200] sm:$0xff] }
  0x36   :  { %630 = vmatpush.bf16.msrb.mxu0 %v1472_v40  ;;  %v446_v17 = vsel %vm440_vm2, %v444_v7, %v445_v8  ;;  %v453_v38 = vsel %vm440_vm2, %v445_v8, %v452_v31  ;;  %v729_v42 = vsel %vm50_vm0, %v724_v35, %v728_v36  ;;  %v735_v33 = vrot.slane %v1542_v45, 1 }
  0x37   :  { %649 = vmatpush.bf16.msrb.mxu1 %v1480_v48  ;;  %v736_v40 = vrot.slane %v1791_v56, 1  ;;  %v738_v48 = vrot.slane %v709_v25, 1 }
  0x38   :  { %940 = vmatpush.bf16.msrb.mxu2 %v1491_v53 }
  0x39   :  { %959 = vmatpush.bf16.msrb.mxu3 %v1499_v54  ;;  %v737_v49 = vsel %vm76_vm1, %v735_v33, %v736_v40  ;;  %v739_v50 = vsel %vm76_vm1, %v736_v40, %v738_v48  ;;  %v1539_v33 = vld [vmem:[%s1876_s3] ss:$0 sm:$0xff] }
  0x3a   :  { %631 = vmatpush.bf16.msrb.mxu0 %v1471_v44 }
  0x3b   :  { %650 = vmatpush.bf16.msrb.mxu1 %v1479_v58 }
  0x3c   :  { %941 = vmatpush.bf16.msrb.mxu2 %v1490_v62 }
  0x3d   :  { %960 = vmatpush.bf16.msrb.mxu3 %v1498_v63 }
  0x3e   :  { %632 = vmatpush.bf16.msrb.mxu0 %v1470_v4 }
  0x3f   :  { %651 = vmatpush.bf16.msrb.mxu1 %v1478_v5 }
  0x40   :  { %942 = vmatpush.bf16.msrb.mxu2 %v1489_v11 }
  0x41   :  { %961 = vmatpush.bf16.msrb.mxu3 %v1497_v12  ;;  %633 = vmatmul.bf16.vlgmr.msrb.gmra.mxu0 %v446_v17 }
  0x42   :  { %973 = vmatpush.bf16.msra.mxu0 %v1512_v6  ;;  %652 = vmatmul.bf16.vlgmr.msrb.gmra.mxu1 %v449_v18 }
  0x43   :  { %1531 = vmatpush.bf16.msra.mxu1 %v1512_v6  ;;  %943 = vmatmul.bf16.vlgmr.msrb.gmra.mxu2 %v1486_v19 }
  0x44   :  { %962 = vmatmul.bf16.vlgmr.msrb.gmra.mxu3 %v721_v20 }
  0x46   :  { %974 = vmatpush.bf16.msra.mxu0 %v1511_v21 }
  0x47   :  { %1532 = vmatpush.bf16.msra.mxu1 %v1511_v21 }
  0x4a   :  { %975 = vmatpush.bf16.msra.mxu0 %v1510_v24 }
  0x4b   :  { %1533 = vmatpush.bf16.msra.mxu1 %v1510_v24 }
  0x4e   :  { %976 = vmatpush.bf16.msra.mxu0 %v1509_v27 }
  0x4f   :  { %1534 = vmatpush.bf16.msra.mxu1 %v1509_v27 }
  0x51   :  { %638 = vmatmul.bf16.gmra.mxu0 %v453_v38 }
  0x52   :  { %977 = vmatpush.bf16.msra.mxu0 %v1508_v37  ;;  %657 = vmatmul.bf16.gmra.mxu1 %v455_v39 }
  0x53   :  { %1535 = vmatpush.bf16.msra.mxu1 %v1508_v37  ;;  %948 = vmatmul.bf16.gmra.mxu2 %v1487_v41 }
  0x54   :  { %967 = vmatmul.bf16.gmra.mxu3 %v729_v42 }
  0x56   :  { %978 = vmatpush.bf16.msra.mxu0 %v1507_v32 }
  0x57   :  { %1536 = vmatpush.bf16.msra.mxu1 %v1507_v32 }
  0x5a   :  { %979 = vmatpush.bf16.msra.mxu0 %v1506_v46 }
  0x5b   :  { %1537 = vmatpush.bf16.msra.mxu1 %v1506_v46 }
  0x5e   :  { %980 = vmatpush.bf16.msra.mxu0 %v1505_v47 }
  0x5f   :  { %1538 = vmatpush.bf16.msra.mxu1 %v1505_v47 }
  0x61   :  { %981 = vmatmul.bf16.vlgmr.msra.gmra.mxu0 %v737_v49 }
  0x62   :  { %986 = vmatmul.bf16.vlgmr.msra.gmra.mxu1 %v739_v50 }
  0x9e   :  { %v285_v51 = vpop.f32.mrf.mxu0 }
  0x9f   :  { %v304_v14 = vpop.f32.mrf.mxu1 }
  0xa0   :  { %v305_v52 = vadd.f32 %v304_v14, %v285_v51 }
  0xa6   :  { %v323_v53 = vpop.f32.mrf.mxu2  ;;  %v287_v29 = vpop.f32.mrf.mxu0 }
  0xa7   :  { %v615_v54 = vpop.f32.mrf.mxu3  ;;  %v306_v55 = vpop.f32.mrf.mxu1  ;;  %v324_v27 = vadd.f32 %v323_v53, %v305_v52 }
  0xa8   :  { %v307_v34 = vadd.f32 %v306_v55, %v287_v29 }
  0xae   :  { %v325_v57 = vpop.f32.mrf.mxu2  ;;  %v290_v58 = vpop.f32.mrf.mxu0 }
  0xaf   :  { %v617_v44 = vpop.f32.mrf.mxu3  ;;  %v309_v56 = vpop.f32.mrf.mxu1  ;;  %v326_v32 = vadd.f32 %v325_v57, %v307_v34 }
  0xb0   :  { %v310_v19 = vadd.f32 %v309_v56, %v290_v58 }
  0xb6   :  { %v328_v59 = vpop.f32.mrf.mxu2  ;;  %v292_v61 = vpop.f32.mrf.mxu0 }
  0xb7   :  { %v620_v60 = vpop.f32.mrf.mxu3  ;;  %v311_v62 = vpop.f32.mrf.mxu1  ;;  %v329_v28 = vadd.f32 %v328_v59, %v310_v19 }
  0xb8   :  { %v312_v35 = vadd.f32 %v311_v62, %v292_v61 }
  0xbe   :  { %v330_v63 = vpop.f32.mrf.mxu2  ;;  %v634_v1 = vpop.f32.mrf.mxu0 }
  0xbf   :  { %v622_v0 = vpop.f32.mrf.mxu3  ;;  %v653_v2 = vpop.f32.mrf.mxu1  ;;  %v635_v16 = vadd.f32 %v634_v1, %v615_v54  ;;  %v331_v43 = vadd.f32 %v330_v63, %v312_v35 }
  0xc1   :  { %v654_v20 = vadd.f32 %v653_v2, %v635_v16 }
  0xc3   :  { %v667_v38 = vadd.f32 %v654_v20, %v324_v27 }
  0xc6   :  { %v944_v3 = vpop.f32.mrf.mxu2  ;;  %v636_v5 = vpop.f32.mrf.mxu0 }
  0xc7   :  { %v963_v4 = vpop.f32.mrf.mxu3  ;;  %v655_v6 = vpop.f32.mrf.mxu1  ;;  %v637_v24 = vadd.f32 %v636_v5, %v617_v44 }
  0xc8   :  { %v964_v23 = vadd.f32 %v963_v4, %v944_v3 }
  0xc9   :  { %v656_v39 = vadd.f32 %v655_v6, %v637_v24 }
  0xcb   :  { %v668_v50 = vadd.f32 %v656_v39, %v326_v32 }
  0xce   :  { %v946_v7 = vpop.f32.mrf.mxu2  ;;  %v639_v9 = vpop.f32.mrf.mxu0 }
  0xcf   :  { %v965_v8 = vpop.f32.mrf.mxu3  ;;  %v658_v10 = vpop.f32.mrf.mxu1  ;;  %v640_v17 = vadd.f32 %v639_v9, %v620_v60 }
  0xd0   :  { %v966_v46 = vadd.f32 %v965_v8, %v946_v7 }
  0xd1   :  { %v659_v25 = vadd.f32 %v658_v10, %v640_v17 }
  0xd3   :  { %v669_v41 = vadd.f32 %v659_v25, %v329_v28 }
  0xd6   :  { %v641_v11 = vpop.f32.mrf.mxu0  ;;  %v949_v13 = vpop.f32.mrf.mxu2 }
  0xd7   :  { %v660_v12 = vpop.f32.mrf.mxu1  ;;  %v968_v15 = vpop.f32.mrf.mxu3  ;;  %v642_v26 = vadd.f32 %v641_v11, %v622_v0 }
  0xd8   :  { %v969_v18 = vadd.f32 %v968_v15, %v949_v13 }
  0xd9   :  { %v661_v42 = vadd.f32 %v660_v12, %v642_v26 }
  0xdb   :  { %v670_v51 = vadd.f32 %v661_v42, %v331_v43 }
  0xde   :  { %v982_v21 = vpop.f32.mrf.mxu0  ;;  %v951_v36 = vpop.f32.mrf.mxu2 }
  0xdf   :  { %v987_v22 = vpop.f32.mrf.mxu1  ;;  %v983_v30 = vadd.f32 %v982_v21, %v964_v23  ;;  %v970_v37 = vpop.f32.mrf.mxu3 }
  0xe0   :  { %v988_v31 = vadd.f32 %v987_v22, %v969_v18  ;;  %v971_v45 = vadd.f32 %v970_v37, %v951_v36 }
  0xe1   :  { %v996_v47 = vadd.f32 %v983_v30, %v667_v38 }
  0xe2   :  { %v998_v40 = vadd.f32 %v988_v31, %v669_v41 }
  0xe3   :  { %v1012_v53 = vadd.f32 %v1539_v33, %v996_v47 }
  0xe4   :  { %v1014_v54 = vadd.f32 %v1539_v33, %v998_v40 }
  0xe5   :  { %v1016_v58 = vmax.f32 %v1012_v53, 0.0 }
  0xe6   :  { %v984_v48 = vpop.f32.mrf.mxu0  ;;  %v1018_v56 = vmax.f32 %v1014_v54, 0.0 }
  0xe7   :  { %v989_v49 = vpop.f32.mrf.mxu1  ;;  %v985_v14 = vadd.f32 %v984_v48, %v966_v46 }
  0xe8   :  { %v990_v52 = vadd.f32 %v989_v49, %v971_v45 }
  0xe9   :  { %v997_v29 = vadd.f32 %v985_v14, %v668_v50 }
  0xea   :  { %v999_v55 = vadd.f32 %v990_v52, %v670_v51 }
  0xeb   :  { %v1013_v57 = vadd.f32 %v1539_v33, %v997_v29 }
  0xec   :  { %v1015_v44 = vadd.f32 %v1539_v33, %v999_v55 }
  0xed   :  { %v1017_v59 = vmax.f32 %v1013_v57, 0.0 }
  0xee   :  { %v1019_v60 = vmax.f32 %v1015_v44, 0.0 }
  0xef   :  { %v1520_v61 = vpack.c.bf16 %v1017_v59, %v1016_v58 }
  0xf0   :  { %v1525_v62 = vpack.c.bf16 %v1019_v60, %v1018_v56 }
  0xf1   :  { %1521 = vst [vmem:[%s1877_s4] sm:$0xff] %v1520_v61  }
  0xf2   :  { %1530 = vst [vmem:[%s1877_s4 + $0x8] sm:$0xff] %v1525_v62  }

// kernel: homography_forward.14
= control target key start
LH: loop header
LB: loop body
LE: loop exit
PB: predicated region body
PF: predicated region fallthrough
CT: control target
= control target key end

     0   :  { %vm586_vm0 = vcmask 1044480   ;;  %vm81_vm1 = vsmask.f32 7424  ;;  %vm129_vm2 = vcmask 1046528   ;;  %vm1039_vm3 = vcmask 1045504   ;;  %s2501_s2 = inlined_call_operand.vmem [shape: bf16[3,384,128], index: 2, kind: input, shape index: {}]   ;;  %s2502_s0 = inlined_call_operand.vmem [shape: bf16[72,128], index: 0, kind: input, shape index: {}]   ;;  %s2503_s1 = inlined_call_operand.vmem [shape: bf16[1,16,128], index: 1, kind: input, shape index: {}]   ;;  %s2504_s3 = inlined_call_operand.vmem [shape: f32[1,128], index: 3, kind: input, shape index: {}]   ;;  %s2505_s4 = inlined_call_operand.vmem [shape: bf16[72,128], index: 4, kind: output, shape index: {}]  }
   0x1   :  { %v1823_v0 = vld [vmem:[%s2501_s2 + $0x38] sm:$0xff]  ;;  %v1822_v1 = vld [vmem:[%s2501_s2 + $0x30] sm:$0xff]  ;;  %v17_v4 = vld [vmem:[%s2502_s0] sm:$0xff]   ;;  %vm527_vm4 = vcmask 1042432  }
   0x2   :  { %336 = vmatpush.bf16.msra.mxu0 %v1823_v0  ;;  %1955 = vmatpush.bf16.msra.mxu1 %v1823_v0  ;;  %v1847_v2 = vld [vmem:[%s2501_s2 + $0xf8] sm:$0xff]  ;;  %v1846_v3 = vld [vmem:[%s2501_s2 + $0xf0] sm:$0xff]  ;;  %26 = vst [vmem:[#allocation2] sm:$0xff] %v17_v4   ;;  %v1821_v6 = vld [vmem:[%s2501_s2 + $0x28] sm:$0xff] }
   0x3   :  { %1956 = vmatpush.bf16.msra.mxu2 %v1823_v0  ;;  %773 = vmatpush.bf16.msra.mxu3 %v1847_v2  ;;  %v21_v5 = vld [vmem:[%s2502_s0 + $0x10] sm:$0xff]   ;;  %v25_v7 = vld [vmem:[%s2502_s0 + $0x20] sm:$0xf]  ;;  %v1845_v9 = vld [vmem:[%s2501_s2 + $0xe8] sm:$0xff] }
   0x4   :  { %30 = vst [vmem:[#allocation2 + $0x10] sm:$0xff] %v21_v5   ;;  %v35_v8 = vld [vmem:[%s2503_s1] sm:$0xff]   ;;  %v19_v10 = vld [vmem:[%s2502_s0 + $0x8] sm:$0xff]   ;;  %v23_v11 = vld [vmem:[%s2502_s0 + $0x18] sm:$0xff]  }
   0x5   :  { %34 = vst [vmem:[#allocation2 + $0x20] sm:$0xf] %v25_v7  ;;  %v1820_v12 = vld [vmem:[%s2501_s2 + $0x20] sm:$0xff]  ;;  %v1819_v14 = vld [vmem:[%s2501_s2 + $0x18] sm:$0xff]  ;;  %v1818_v16 = vld [vmem:[%s2501_s2 + $0x10] sm:$0xff] }
   0x6   :  { %337 = vmatpush.bf16.msra.mxu0 %v1822_v1  ;;  %1957 = vmatpush.bf16.msra.mxu1 %v1822_v1  ;;  %37 = vst [vmem:[#allocation2 + $0x24] sm:$0xff] %v35_v8   ;;  %v1844_v13 = vld [vmem:[%s2501_s2 + $0xe0] sm:$0xff]  ;;  %v1843_v15 = vld [vmem:[%s2501_s2 + $0xd8] sm:$0xff]  ;;  %v1842_v19 = vld [vmem:[%s2501_s2 + $0xd0] sm:$0xff] }
   0x7   :  { %1958 = vmatpush.bf16.msra.mxu2 %v1822_v1  ;;  %774 = vmatpush.bf16.msra.mxu3 %v1846_v3  ;;  %28 = vst [vmem:[#allocation2 + $0x8] sm:$0xff] %v19_v10   ;;  %v1817_v20 = vld [vmem:[%s2501_s2 + $0x8] sm:$0xff]  ;;  %v1816_v25 = vld [vmem:[%s2501_s2] sm:$0xff]  ;;  %v1831_v28 = vld [vmem:[%s2501_s2 + $0x78] sm:$0xff] }
   0x8   :  { %32 = vst [vmem:[#allocation2 + $0x18] sm:$0xff] %v23_v11   ;;  %v1841_v24 = vld [vmem:[%s2501_s2 + $0xc8] sm:$0xff]  ;;  %v1839_v30 = vld [vmem:[%s2501_s2 + $0xb8] sm:$0xff]  ;;  %v1840_v35 = vld [vmem:[%s2501_s2 + $0xc0] sm:$0xff] }
   0x9   :  { %v444_v17 = vld [vmem:[#allocation2] sm:$0x8]  ;;  %v1855_v31 = vld [vmem:[%s2501_s2 + $0x138] sm:$0xff]  ;;  %v1830_v38 = vld [vmem:[%s2501_s2 + $0x70] sm:$0xff] }
   0xa   :  { %338 = vmatpush.bf16.msra.mxu0 %v1821_v6  ;;  %1959 = vmatpush.bf16.msra.mxu1 %v1821_v6  ;;  %v465_v21 = vunpack.c.l.b16 %v444_v17  ;;  %v2082_v33 = vld [vmem:[#allocation2] sm:$0xff]   ;;  %v1882_v39 = vld [vmem:[%s2501_s2 + $0x1f8] sm:$0xff]  ;;  %v1838_v40 = vld [vmem:[%s2501_s2 + $0xb0] sm:$0xff] }
   0xb   :  { %1960 = vmatpush.bf16.msra.mxu2 %v1821_v6  ;;  %775 = vmatpush.bf16.msra.mxu3 %v1845_v9  ;;  %v2080_v32 = vld [vmem:[#allocation2 + $0x10] sm:$0xff]  ;;  %v1829_v43 = vld [vmem:[%s2501_s2 + $0x68] sm:$0xff]  ;;  %v1828_v47 = vld [vmem:[%s2501_s2 + $0x60] sm:$0xff]  ;;  %v85_v6 = vshll.u32 %v2082_v33, 16 }
   0xc   :  { %v47_v23 = vld [vmem:[#allocation2 + $0x20] sm:$0xf]  ;;  %v1854_v41 = vld [vmem:[%s2501_s2 + $0x130] sm:$0xff]  ;;  %v1837_v45 = vld [vmem:[%s2501_s2 + $0xa8] sm:$0xff] }
   0xd   :  { %v2063_v26 = vunpack.c.l.b16 %v47_v23  ;;  %v1881_v44 = vld [vmem:[%s2501_s2 + $0x1f0] sm:$0xff]  ;;  %v1853_v46 = vld [vmem:[%s2501_s2 + $0x128] sm:$0xff]  ;;  %v1836_v48 = vld [vmem:[%s2501_s2 + $0xa0] sm:$0xff]  ;;  %v87_v17 = vrot.slane %v85_v6, 1 }
   0xe   :  { %339 = vmatpush.bf16.msra.mxu0 %v1820_v12  ;;  %1961 = vmatpush.bf16.msra.mxu1 %v1820_v12  ;;  %v2048_v18 = vld [vmem:[#allocation2 + $0x4] sm:$0xff]   ;;  %v1827_v50 = vld [vmem:[%s2501_s2 + $0x58] sm:$0xff]  ;;  %v2138_v55 = vld [vmem:[#allocation2 + $0x10] sm:$0xff]  }
   0xf   :  { %1962 = vmatpush.bf16.msra.mxu2 %v1820_v12  ;;  %776 = vmatpush.bf16.msra.mxu3 %v1844_v13  ;;  %v466_v22 = vunpack.c.l.b16 %v2048_v18  ;;  %v2072_v29 = vld [vmem:[#allocation2 + $0x8] sm:$0xff]   ;;  %v72_v34 = vpack.c.b16 %v2063_v26, %v2063_v26  ;;  %v1852_v49 = vld [vmem:[%s2501_s2 + $0x120] sm:$0xff]  ;;  %v1835_v53 = vld [vmem:[%s2501_s2 + $0x98] sm:$0xff]  ;;  %v596_v59 = vrot.slane %v2138_v55, 3  ;;  %v499_v0 = vshll.u32 %v2138_v55, 16 }
  0x10   :  { %v588_v37 = vrot.slane %v2072_v29, 3  ;;  %v491_v52 = vshll.u32 %v2072_v29, 16  ;;  %v1851_v54 = vld [vmem:[%s2501_s2 + $0x118] sm:$0xff]  ;;  %v2140_v56 = vld [vmem:[#allocation2 + $0x8] sm:$0xff]  ;;  %v1826_v60 = vld [vmem:[%s2501_s2 + $0x50] sm:$0xff]  ;;  %v495_v63 = vshrl.u32 %v2072_v29, 16 }
  0x11   :  { %v2067_v27 = vpack.c.b16 %v466_v22, %v465_v21  ;;  %v2142_v57 = vld [vmem:[#allocation2 + $0x18] sm:$0xff]  ;;  %v1834_v1 = vld [vmem:[%s2501_s2 + $0x90] sm:$0xff]  ;;  %v1931_v3 = vld [vmem:[#allocation2] sm:$0xf0]  ;;  %v501_v11 = vrot.slane %v499_v0, 1 }
  0x12   :  { %340 = vmatpush.bf16.msra.mxu0 %v1819_v14  ;;  %1963 = vmatpush.bf16.msra.mxu1 %v1819_v14  ;;  %v493_v62 = vrot.slane %v491_v52, 1  ;;  %v1850_v2 = vld [vmem:[%s2501_s2 + $0x110] sm:$0xff]  ;;  %v1932_v4 = vld [vmem:[#allocation2] sm:$0xe]  ;;  %v1880_v5 = vld [vmem:[%s2501_s2 + $0x1e8] sm:$0xff]  ;;  %v597_v7 = vsel %vm586_vm0, %v588_v37, %v596_v59 }
  0x13   :  { %1964 = vmatpush.bf16.msra.mxu2 %v1819_v14  ;;  %777 = vmatpush.bf16.msra.mxu3 %v1843_v15  ;;  %v587_v36 = vrot.slane %v2067_v27, 3  ;;  %v486_v51 = vshll.u32 %v2067_v27, 16  ;;  %v484_v58 = vshrl.u32 %v2067_v27, 16  ;;  %v1825_v8 = vld [vmem:[%s2501_s2 + $0x48] sm:$0xff]  ;;  %v1879_v12 = vld [vmem:[%s2501_s2 + $0x1e0] sm:$0xff]  ;;  %v1933_v15 = vor.u32 %v1932_v4, %v1931_v3 }
  0x14   :  { %v497_v10 = vor.u32 %v495_v63, %v493_v62  ;;  %v1833_v13 = vld [vmem:[%s2501_s2 + $0x88] sm:$0xff]  ;;  %v131_v27 = vrot.slane %v2140_v56, 1  ;;  %v1871_v0 = vld [vmem:[%s2501_s2 + $0x1a0] sm:$0xff] }
  0x15   :  { %v589_v42 = vsel %vm586_vm0, %v587_v36, %v588_v37  ;;  %v488_v61 = vrot.slane %v486_v51, 1  ;;  %v1849_v14 = vld [vmem:[%s2501_s2 + $0x108] sm:$0xff]  ;;  %v1890_v37 = vld [vmem:[%s2501_s2 + $0x238] sm:$0xff]  ;;  %v1887_v4 = vld [vmem:[%s2501_s2 + $0x220] sm:$0xff] }
  0x16   :  { %341 = vmatpush.bf16.msra.mxu0 %v1818_v16  ;;  %1965 = vmatpush.bf16.msra.mxu1 %v1818_v16  ;;  %v2185_v23 = vsel %vm81_vm1, %v497_v10, %v501_v11  ;;  %v1872_v51 = vld [vmem:[%s2501_s2 + $0x1a8] sm:$0xff]  ;;  %v1870_v10 = vld [vmem:[%s2501_s2 + $0x198] sm:$0xff] }
  0x17   :  { %1966 = vmatpush.bf16.msra.mxu2 %v1818_v16  ;;  %778 = vmatpush.bf16.msra.mxu3 %v1842_v19  ;;  %v489_v9 = vor.u32 %v488_v61, %v484_v58  ;;  %v83_v16 = vshrl.u32 %v2082_v33, 16  ;;  %v90_v19 = vshll.u32 %v2140_v56, 16  ;;  %v591_v36 = vrot.slane %v2185_v23, 3  ;;  %v1888_v61 = vld [vmem:[%s2501_s2 + $0x228] sm:$0xff] }
  0x19   :  { %v494_v21 = vsel %vm81_vm1, %v489_v9, %v493_v62  ;;  %v453_v62 = vld [vmem:[#allocation2 + $0x24] sm:$0x7] }
  0x1a   :  { %342 = vmatpush.bf16.msra.mxu0 %v1817_v20  ;;  %1967 = vmatpush.bf16.msra.mxu1 %v1817_v20 }
  0x1b   :  { %1968 = vmatpush.bf16.msra.mxu2 %v1817_v20  ;;  %779 = vmatpush.bf16.msra.mxu3 %v1841_v24  ;;  %v1824_v20 = vld [vmem:[%s2501_s2 + $0x40] sm:$0xff] }
  0x1c   :  { %v1832_v24 = vld [vmem:[%s2501_s2 + $0x80] sm:$0xff] }
  0x1e   :  { %343 = vmatpush.bf16.msra.mxu0 %v1816_v25  ;;  %1969 = vmatpush.bf16.msra.mxu1 %v1816_v25 }
  0x1f   :  { %1970 = vmatpush.bf16.msra.mxu2 %v1816_v25  ;;  %780 = vmatpush.bf16.msra.mxu3 %v1840_v35  ;;  %v130_v25 = vrot.slane %v1933_v15, 1  ;;  %v590_v35 = vrot.slane %v494_v21, 3  ;;  %v1858_v21 = vld [vmem:[%s2501_s2 + $0x150] sm:$0xff] }
  0x21   :  { %344 = vmatmul.bf16.vlgmr.msra.gmra.mxu0 %v2082_v33  ;;  %354 = vmatmul.bf16.vlgmr.msra.gmra.mxu1 %v2080_v32  ;;  %v88_v33 = vor.u32 %v87_v17, %v83_v16 }
  0x22   :  { %369 = vmatpush.bf16.msrb.mxu1 %v1831_v28  ;;  %806 = vmatpush.bf16.msrb.mxu0 %v1855_v31  ;;  %v1848_v28 = vld [vmem:[%s2501_s2 + $0x100] sm:$0xff]  ;;  %v1863_v31 = vld [vmem:[%s2501_s2 + $0x178] sm:$0xff] }
  0x23   :  { %402 = vmatpush.bf16.msrb.mxu2 %v1839_v30  ;;  %1259 = vmatpush.bf16.msrb.mxu3 %v1882_v39  ;;  %v1874_v30 = vld [vmem:[%s2501_s2 + $0x1b8] sm:$0xff] }
  0x24   :  { %364 = vmatmul.bf16.vlgmr.msra.gmra.mxu2 %v72_v34  ;;  %781 = vmatmul.bf16.vlgmr.msra.gmra.mxu3 %v589_v42  ;;  %v92_v34 = vrot.slane %v90_v19, 1  ;;  %v2207_v39 = vld [vmem:[#allocation2 + $0x18] sm:$0xff]   ;;  %v1873_v42 = vld [vmem:[%s2501_s2 + $0x1b0] sm:$0xff] }
  0x25   :  { %v511_v16 = vshrl.u32 %v2207_v39, 16  ;;  %v1886_v19 = vld [vmem:[%s2501_s2 + $0x218] sm:$0xff] }
  0x26   :  { %370 = vmatpush.bf16.msrb.mxu1 %v1830_v38  ;;  %807 = vmatpush.bf16.msrb.mxu0 %v1854_v41  ;;  %v132_v38 = vsel %vm129_vm2, %v130_v25, %v131_v27  ;;  %v592_v41 = vsel %vm586_vm0, %v590_v35, %v591_v36  ;;  %v1868_v25 = vld [vmem:[%s2501_s2 + $0x188] sm:$0xff]  ;;  %v135_v35 = vrot.slane %v2142_v57, 1 }
  0x27   :  { %403 = vmatpush.bf16.msrb.mxu2 %v1838_v40  ;;  %1260 = vmatpush.bf16.msrb.mxu3 %v1881_v44  ;;  %v93_v40 = vsel %vm81_vm1, %v88_v33, %v92_v34  ;;  %v602_v44 = vrot.slane %v2207_v39, 3  ;;  %v106_v33 = vshll.u32 %v2142_v57, 16 }
  0x29   :  { %v603_v52 = vsel %vm586_vm0, %v596_v59, %v602_v44  ;;  %v98_v59 = vshll.u32 %v2080_v32, 16 }
  0x2a   :  { %371 = vmatpush.bf16.msrb.mxu1 %v1829_v43  ;;  %808 = vmatpush.bf16.msrb.mxu0 %v1853_v46  ;;  %v1862_v43 = vld [vmem:[%s2501_s2 + $0x170] sm:$0xff]  ;;  %v503_v46 = vshrl.u32 %v2138_v55, 16  ;;  %v94_v55 = vshrl.u32 %v2140_v56, 16 }
  0x2b   :  { %404 = vmatpush.bf16.msrb.mxu2 %v1837_v45  ;;  %1261 = vmatpush.bf16.msrb.mxu3 %v1880_v5  ;;  %v1889_v45 = vld [vmem:[%s2501_s2 + $0x230] sm:$0xff]  ;;  %v133_v5 = vrot.slane %v2080_v32, 1 }
  0x2c   :  { %v505_v58 = vor.u32 %v503_v46, %v501_v11  ;;  %v96_v6 = vor.u32 %v94_v55, %v92_v34  ;;  %v1859_v11 = vld [vmem:[%s2501_s2 + $0x158] sm:$0xff]  ;;  %v1856_v55 = vld [vmem:[%s2501_s2 + $0x140] sm:$0xff] }
  0x2e   :  { %372 = vmatpush.bf16.msrb.mxu1 %v1828_v47  ;;  %809 = vmatpush.bf16.msrb.mxu0 %v1852_v49  ;;  %v507_v47 = vshll.u32 %v2207_v39, 16  ;;  %v1906_v49 = vunpack.c.h.b16 %v2207_v39 }
  0x2f   :  { %405 = vmatpush.bf16.msrb.mxu2 %v1836_v48  ;;  %1262 = vmatpush.bf16.msrb.mxu3 %v1879_v12  ;;  %v2223_v48 = vld [vmem:[#allocation2 + $0x20] sm:$0xff]   ;;  %v134_v12 = vsel %vm129_vm2, %v131_v27, %v133_v5 }
  0x30   :  { %v515_v17 = vshll.u32 %v2223_v48, 16 }
  0x31   :  { %349 = vmatmul.bf16.gmra.mxu0 %v2140_v56  ;;  %359 = vmatmul.bf16.gmra.mxu1 %v2142_v57  ;;  %v1869_v56 = vld [vmem:[%s2501_s2 + $0x190] sm:$0xff] }
  0x32   :  { %373 = vmatpush.bf16.msrb.mxu1 %v1827_v50  ;;  %810 = vmatpush.bf16.msrb.mxu0 %v1851_v54  ;;  %v1909_v50 = vunpack.c.l.b16 %v2223_v48  ;;  %v1878_v54 = vld [vmem:[%s2501_s2 + $0x1d8] sm:$0xff] }
  0x33   :  { %406 = vmatpush.bf16.msrb.mxu2 %v1835_v53  ;;  %v1861_v53 = vld [vmem:[%s2501_s2 + $0x168] sm:$0xff]  ;;  %1263 = vmatpush.bf16.msrb.mxu3 %v1878_v54  ;;  %v1875_v54 = vld [vmem:[%s2501_s2 + $0x1c0] sm:$0xff] }
  0x34   :  { %786 = vmatmul.bf16.gmra.mxu3 %v597_v7  ;;  %v2242_v63 = vpack.c.b16 %v1909_v50, %v1906_v49  ;;  %v100_v7 = vrot.slane %v98_v59, 1  ;;  %v1857_v49 = vld [vmem:[%s2501_s2 + $0x148] sm:$0xff] }
  0x36   :  { %374 = vmatpush.bf16.msrb.mxu1 %v1826_v60  ;;  %811 = vmatpush.bf16.msrb.mxu0 %v1850_v2  ;;  %v509_v60 = vrot.slane %v507_v47, 1  ;;  %v474_v2 = vunpack.c.l.b16 %v453_v62 }
  0x37   :  { %407 = vmatpush.bf16.msrb.mxu2 %v1834_v1  ;;  %v1860_v1 = vld [vmem:[%s2501_s2 + $0x160] sm:$0xff] }
  0x38   :  { %v510_v3 = vsel %vm81_vm1, %v505_v58, %v509_v60  ;;  %v2257_v9 = vpack.c.b16 %v474_v2, %v1909_v50  ;;  %v513_v27 = vor.u32 %v511_v16, %v509_v60  ;;  %v2314_v50 = vld [vmem:[#allocation2 + $0x14] sm:$0xff]  ;;  %v1867_v58 = vld [vmem:[%s2501_s2 + $0x180] sm:$0xff] }
  0x39   :  { %v955_v2 = vshll.u32 %v2314_v50, 16 }
  0x3a   :  { %375 = vmatpush.bf16.msrb.mxu1 %v1825_v8  ;;  %812 = vmatpush.bf16.msrb.mxu0 %v1849_v14  ;;  %v598_v8 = vrot.slane %v510_v3, 3  ;;  %v608_v15 = vrot.slane %v2257_v9, 3  ;;  %v110_v3 = vshrl.u32 %v2142_v57, 16 }
  0x3b   :  { %408 = vmatpush.bf16.msrb.mxu2 %v1833_v13  ;;  %v101_v13 = vsel %vm81_vm1, %v96_v6, %v100_v7 }
  0x3c   :  { %v599_v14 = vsel %vm586_vm0, %v591_v36, %v598_v8  ;;  %v609_v23 = vsel %vm586_vm0, %v602_v44, %v608_v15  ;;  %v899_v36 = vld [vmem:[#allocation2 + $0x4] sm:$0xc]  ;;  %v136_v44 = vsel %vm129_vm2, %v133_v5, %v135_v35 }
  0x3e   :  { %376 = vmatpush.bf16.msrb.mxu1 %v1824_v20  ;;  %813 = vmatpush.bf16.msrb.mxu0 %v1848_v28  ;;  %v1877_v20 = vld [vmem:[%s2501_s2 + $0x1d0] sm:$0xff]  ;;  %v517_v28 = vrot.slane %v515_v17, 1 }
  0x3f   :  { %409 = vmatpush.bf16.msrb.mxu2 %v1832_v24  ;;  %v1885_v24 = vld [vmem:[%s2501_s2 + $0x210] sm:$0xff]  ;;  %1264 = vmatpush.bf16.msrb.mxu3 %v1877_v20 }
  0x40   :  { %v518_v34 = vsel %vm81_vm1, %v513_v27, %v517_v28 }
  0x41   :  { %377 = vmatmul.bf16.vlgmr.msrb.gmra.mxu1 %v93_v40  ;;  %814 = vmatmul.bf16.vlgmr.msrb.gmra.mxu0 %v592_v41  ;;  %v108_v40 = vrot.slane %v106_v33, 1  ;;  %v604_v41 = vrot.slane %v518_v34, 3  ;;  %v2352_v33 = vld [vmem:[#allocation2 + $0x24] sm:$0xf]  ;;  %v909_v34 = vld [vmem:[#allocation2 + $0x28] sm:$0x7] }
  0x42   :  { %839 = vmatpush.bf16.msra.mxu1 %v1863_v31  ;;  %1292 = vmatpush.bf16.msra.mxu0 %v1890_v37  ;;  %v102_v31 = vshrl.u32 %v2080_v32, 16  ;;  %v921_v37 = vunpack.c.l.b16 %v899_v36  ;;  %v929_v36 = vunpack.c.l.b16 %v2352_v33 }
  0x43   :  { %1226 = vmatpush.bf16.msra.mxu2 %v1874_v30  ;;  %v1876_v30 = vld [vmem:[%s2501_s2 + $0x1c8] sm:$0xff]  ;;  %v605_v47 = vsel %vm586_vm0, %v598_v8, %v604_v41  ;;  %v957_v8 = vrot.slane %v955_v2, 1 }
  0x44   :  { %410 = vmatmul.bf16.vlgmr.msrb.gmra.mxu2 %v132_v38  ;;  %791 = vmatmul.bf16.gmra.mxu3 %v603_v52  ;;  %v922_v38 = vunpack.c.h.b16 %v2048_v18  ;;  %v104_v39 = vor.u32 %v102_v31, %v100_v7 }
  0x45   :  { %1265 = vmatpush.bf16.msrb.mxu3 %v1876_v30  ;;  %v1897_v30 = vunpack.c.l.b16 %v2072_v29 }
  0x46   :  { %840 = vmatpush.bf16.msra.mxu1 %v1862_v43  ;;  %1293 = vmatpush.bf16.msra.mxu0 %v1889_v45  ;;  %v2302_v43 = vld [vmem:[#allocation2 + $0xc] sm:$0xff]  ;;  %v2306_v32 = vpack.c.b16 %v922_v38, %v921_v37  ;;  %v109_v46 = vsel %vm81_vm1, %v104_v39, %v108_v40  ;;  %v937_v37 = vunpack.c.l.b16 %v909_v34 }
  0x47   :  { %1227 = vmatpush.bf16.msra.mxu2 %v1873_v42  ;;  %v48_v42 = vld [vmem:[#allocation2 + $0x24] sm:$0x1]  ;;  %v947_v52 = vshll.u32 %v2302_v43, 16 }
  0x48   :  { %v79_v45 = vunpack.c.l.b16 %v48_v42  ;;  %v940_v62 = vshrl.u32 %v2306_v32, 16  ;;  %v2362_v29 = vpack.c.b16 %v937_v37, %v929_v36 }
  0x49   :  { %1266 = vmatpush.bf16.msrb.mxu3 %v1875_v54 }
  0x4a   :  { %841 = vmatpush.bf16.msra.mxu1 %v1861_v53  ;;  %1294 = vmatpush.bf16.msra.mxu0 %v1888_v61  ;;  %v1884_v53 = vld [vmem:[%s2501_s2 + $0x208] sm:$0xff]  ;;  %v80_v60 = vpack.c.b16 %v79_v45, %v2063_v26  ;;  %v519_v61 = vshrl.u32 %v2223_v48, 16  ;;  %v1883_v26 = vld [vmem:[%s2501_s2 + $0x200] sm:$0xff] }
  0x4b   :  { %1228 = vmatpush.bf16.msra.mxu2 %v1872_v51  ;;  %v942_v51 = vshll.u32 %v2306_v32, 16 }
  0x4c   :  { %v521_v5 = vor.u32 %v519_v61, %v517_v28  ;;  %v118_v28 = vshrl.u32 %v80_v60, 16  ;;  %v1040_v61 = vrot.slane %v2306_v32, 2 }
  0x4d   :  { %v944_v59 = vrot.slane %v942_v51, 1 }
  0x4e   :  { %842 = vmatpush.bf16.msra.mxu1 %v1860_v1  ;;  %1295 = vmatpush.bf16.msra.mxu0 %v1887_v4  ;;  %v951_v1 = vshrl.u32 %v2302_v43, 16  ;;  %v114_v4 = vshll.u32 %v80_v60, 16 }
  0x4f   :  { %1229 = vmatpush.bf16.msra.mxu2 %v1871_v0  ;;  %v949_v0 = vrot.slane %v947_v52, 1  ;;  %v945_v6 = vor.u32 %v944_v59, %v940_v62  ;;  %v1041_v62 = vrot.slane %v2302_v43, 2 }
  0x51   :  { %382 = vmatmul.bf16.gmra.mxu1 %v101_v13  ;;  %819 = vmatmul.bf16.gmra.mxu0 %v599_v14  ;;  %v953_v7 = vor.u32 %v951_v1, %v949_v0  ;;  %v610_v13 = vrot.slane %v521_v5, 3  ;;  %v950_v14 = vsel %vm81_vm1, %v945_v6, %v949_v0  ;;  %v1954_v6 = vld [vmem:[#allocation2 + $0x14] sm:$0xff]  }
  0x52   :  { %843 = vmatpush.bf16.msra.mxu1 %v1859_v11  ;;  %1296 = vmatpush.bf16.msra.mxu0 %v1886_v19  ;;  %v112_v11 = vor.u32 %v110_v3, %v108_v40  ;;  %v1043_v17 = vrot.slane %v950_v14, 2  ;;  %v522_v40 = vpack.c.b16 %v1897_v30, %v466_v22  ;;  %v984_v22 = vrot.slane %v2314_v50, 1 }
  0x53   :  { %1230 = vmatpush.bf16.msra.mxu2 %v1870_v10  ;;  %v137_v10 = vrot.slane %v80_v60, 1  ;;  %v958_v16 = vsel %vm81_vm1, %v953_v7, %v957_v8  ;;  %v611_v57 = vsel %vm586_vm0, %v604_v41, %v610_v13  ;;  %v1953_v41 = vld [vmem:[#allocation2 + $0xc] sm:$0xff]  }
  0x54   :  { %415 = vmatmul.bf16.gmra.mxu2 %v134_v12  ;;  %796 = vmatmul.bf16.gmra.mxu3 %v609_v23  ;;  %v116_v12 = vrot.slane %v114_v4, 1  ;;  %v1044_v19 = vrot.slane %v958_v16, 2  ;;  %v528_v45 = vrot.slane %v522_v40, 5 }
  0x55   :  { %v138_v9 = vsel %vm129_vm2, %v135_v35, %v137_v10 }
  0x56   :  { %844 = vmatpush.bf16.msra.mxu1 %v1858_v21  ;;  %1297 = vmatpush.bf16.msra.mxu0 %v1885_v24  ;;  %v1045_v20 = vsel %vm1039_vm3, %v1043_v17, %v1044_v19  ;;  %v959_v21 = vshrl.u32 %v2314_v50, 16  ;;  %v910_v24 = vld [vmem:[#allocation2 + $0x4] sm:$0x8]  ;;  %v120_v39 = vor.u32 %v118_v28, %v116_v12 }
  0x57   :  { %1231 = vmatpush.bf16.msra.mxu2 %v1869_v56  ;;  %v2346_v56 = vld [vmem:[#allocation2 + $0x1c] sm:$0xff]  ;;  %v979_v31 = vunpack.c.l.b16 %v910_v24 }
  0x58   :  { %v963_v23 = vshll.u32 %v2346_v56, 16  ;;  %v967_v18 = vshrl.u32 %v2346_v56, 16  ;;  %v986_v7 = vrot.slane %v2346_v56, 1 }
  0x59   :  { %v980_v42 = vpack.c.b16 %v922_v38, %v979_v31  ;;  %v971_v38 = vshll.u32 %v2362_v29, 16  ;;  %v1055_v31 = vrot.slane %v2346_v56, 2 }
  0x5a   :  { %845 = vmatpush.bf16.msra.mxu1 %v1857_v49  ;;  %1298 = vmatpush.bf16.msra.mxu0 %v1884_v53  ;;  %v965_v27 = vrot.slane %v963_v23, 1  ;;  %v982_v49 = vrot.slane %v2302_v43, 1  ;;  %v531_v43 = vrot.slane %v1954_v6, 5  ;;  %v988_v23 = vrot.slane %v2362_v29, 1 }
  0x5b   :  { %1232 = vmatpush.bf16.msra.mxu2 %v1868_v25  ;;  %v961_v25 = vor.u32 %v959_v21, %v957_v8  ;;  %v973_v60 = vrot.slane %v971_v38, 1  ;;  %v975_v8 = vshrl.u32 %v2362_v29, 16 }
  0x5c   :  { %v985_v54 = vsel %vm129_vm2, %v982_v49, %v984_v22  ;;  %v989_v30 = vsel %vm129_vm2, %v986_v7, %v988_v23 }
  0x5d   :  { %v966_v35 = vsel %vm81_vm1, %v961_v25, %v965_v27  ;;  %v1047_v1 = vrot.slane %v985_v54, 2  ;;  %v977_v16 = vor.u32 %v975_v8, %v973_v60  ;;  %v1059_v37 = vrot.slane %v989_v30, 2 }
  0x5e   :  { %846 = vmatpush.bf16.msra.mxu1 %v1856_v55  ;;  %1299 = vmatpush.bf16.msra.mxu0 %v1883_v26  ;;  %v593_v55 = vrot.slane %v528_v45, 3  ;;  %v1042_v26 = vsel %vm1039_vm3, %v1040_v61, %v1041_v62  ;;  %v1065_v54 = vrot.slane %v988_v23, 2 }
  0x5f   :  { %1233 = vmatpush.bf16.msra.mxu2 %v1867_v58  ;;  %v969_v58 = vor.u32 %v967_v18, %v965_v27 }
  0x61   :  { %387 = vmatmul.bf16.gmra.mxu1 %v109_v46  ;;  %824 = vmatmul.bf16.gmra.mxu0 %v605_v47  ;;  %v529_v46 = vrot.slane %v1953_v41, 5  ;;  %v981_v47 = vrot.slane %v980_v42, 1  ;;  %v974_v2 = vsel %vm81_vm1, %v969_v58, %v973_v60  ;;  %v908_v41 = vld [vmem:[#allocation2 + $0x28] sm:$0x3] }
  0x62   :  { %v1057_v5 = vrot.slane %v974_v2, 2 }
  0x63   :  { %v530_v52 = vsel %vm527_vm4, %v528_v45, %v529_v46  ;;  %v983_v53 = vsel %vm129_vm2, %v981_v47, %v982_v49  ;;  %v930_v47 = vunpack.c.l.b16 %v908_v41 }
  0x64   :  { %420 = vmatmul.bf16.gmra.mxu2 %v136_v44  ;;  %801 = vmatmul.bf16.gmra.mxu3 %v608_v15  ;;  %v117_v15 = vsel %vm81_vm1, %v112_v11, %v116_v12  ;;  %v1051_v44 = vrot.slane %v966_v35, 2  ;;  %v594_v59 = vrot.slane %v530_v52, 3  ;;  %v1046_v0 = vrot.slane %v983_v53, 2 }
  0x65   :  { %v987_v11 = vsel %vm129_vm2, %v984_v22, %v986_v7  ;;  %v1049_v12 = vrot.slane %v2314_v50, 2  ;;  %v533_v50 = vrot.slane %v2242_v63, 5 }
  0x66   :  { %v1052_v51 = vsel %vm1039_vm3, %v1044_v19, %v1051_v44  ;;  %v595_v3 = vsel %vm586_vm0, %v593_v55, %v594_v59  ;;  %v1048_v4 = vsel %vm1039_vm3, %v1046_v0, %v1047_v1  ;;  %v1058_v32 = vsel %vm1039_vm3, %v1051_v44, %v1057_v5 }
  0x67   :  { %v1053_v14 = vrot.slane %v987_v11, 2  ;;  %v534_v28 = vsel %vm527_vm4, %v531_v43, %v533_v50  ;;  %v1056_v63 = vsel %vm1039_vm3, %v1049_v12, %v1055_v31  ;;  %v1066_v55 = vsel %vm1039_vm3, %v1059_v37, %v1065_v54 }
  0x68   :  { %v606_v35 = vrot.slane %v534_v28, 3 }
  0x69   :  { %v1054_v19 = vsel %vm1039_vm3, %v1047_v1, %v1053_v14  ;;  %v1060_v45 = vsel %vm1039_vm3, %v1053_v14, %v1059_v37 }
  0x71   :  { %392 = vmatmul.bf16.gmra.mxu1 %v117_v15  ;;  %829 = vmatmul.bf16.gmra.mxu0 %v611_v57 }
  0x74   :  { %425 = vmatmul.bf16.gmra.mxu2 %v138_v9  ;;  %1267 = vmatmul.bf16.vlgmr.msrb.gmra.mxu3 %v1045_v20  ;;  %v1050_v9 = vsel %vm1039_vm3, %v1041_v62, %v1049_v12  ;;  %v1063_v20 = vrot.slane %v977_v16, 2 }
  0x76   :  { %v1064_v21 = vsel %vm1039_vm3, %v1057_v5, %v1063_v20 }
  0x81   :  { %397 = vmatmul.bf16.gmra.mxu1 %v120_v39  ;;  %834 = vmatmul.bf16.gmra.mxu0 %v610_v13  ;;  %v1910_v39 = vunpack.c.h.b16 %v2223_v48  ;;  %v935_v48 = vpack.c.b16 %v930_v47, %v929_v36 }
  0x83   :  { %v1061_v38 = vrot.slane %v935_v48, 2 }
  0x84   :  { %430 = vmatmul.bf16.gmra.mxu2 %v137_v10  ;;  %1272 = vmatmul.bf16.gmra.mxu3 %v1052_v51  ;;  %v532_v10 = vsel %vm527_vm4, %v529_v46, %v531_v43  ;;  %v526_v46 = vpack.c.b16 %v1910_v39, %v1910_v39 }
  0x85   :  { %v600_v13 = vrot.slane %v532_v10, 3  ;;  %v1062_v58 = vsel %vm1039_vm3, %v1055_v31, %v1061_v38 }
  0x86   :  { %v535_v49 = vrot.slane %v526_v46, 5 }
  0x87   :  { %v601_v17 = vsel %vm586_vm0, %v594_v59, %v600_v13  ;;  %v607_v29 = vsel %vm586_vm0, %v600_v13, %v606_v35 }
  0x88   :  { %v536_v18 = vsel %vm527_vm4, %v533_v50, %v535_v49 }
  0x89   :  { %v612_v53 = vrot.slane %v536_v18, 3 }
  0x8b   :  { %v613_v62 = vsel %vm586_vm0, %v606_v35, %v612_v53 }
  0x91   :  { %847 = vmatmul.bf16.vlgmr.msra.gmra.mxu1 %v595_v3  ;;  %1300 = vmatmul.bf16.vlgmr.msra.gmra.mxu0 %v1048_v4 }
  0x94   :  { %1234 = vmatmul.bf16.vlgmr.msra.gmra.mxu2 %v1042_v26  ;;  %1277 = vmatmul.bf16.gmra.mxu3 %v1058_v32 }
  0x9e   :  { %v345_v15 = vpop.f32.mrf.mxu0  ;;  %v2385_v57 = vpop.f32.mrf.mxu1 }
  0xa1   :  { %852 = vmatmul.bf16.gmra.mxu1 %v601_v17  ;;  %1305 = vmatmul.bf16.gmra.mxu0 %v1054_v19 }
  0xa4   :  { %1239 = vmatmul.bf16.gmra.mxu2 %v1050_v9  ;;  %1282 = vmatmul.bf16.gmra.mxu3 %v1064_v21 }
  0xa6   :  { %v347_v25 = vpop.f32.mrf.mxu0  ;;  %v2394_v27 = vpop.f32.mrf.mxu1 }
  0xa7   :  { %v2392_v24 = vpop.f32.mrf.mxu2  ;;  %v782_v34 = vpop.f32.mrf.mxu3 }
  0xae   :  { %v350_v42 = vpop.f32.mrf.mxu0  ;;  %v2401_v44 = vpop.f32.mrf.mxu1 }
  0xaf   :  { %v367_v40 = vpop.f32.mrf.mxu2  ;;  %v784_v56 = vpop.f32.mrf.mxu3 }
  0xb1   :  { %857 = vmatmul.bf16.gmra.mxu1 %v607_v29  ;;  %1310 = vmatmul.bf16.gmra.mxu0 %v1060_v45 }
  0xb4   :  { %1244 = vmatmul.bf16.gmra.mxu2 %v1056_v63  ;;  %1287 = vmatmul.bf16.gmra.mxu3 %v1063_v20 }
  0xb6   :  { %v352_v51 = vpop.f32.mrf.mxu0  ;;  %v2407_v22 = vpop.f32.mrf.mxu1 }
  0xb7   :  { %v787_v52 = vpop.f32.mrf.mxu3 }
  0xbe   :  { %v378_v60 = vpop.f32.mrf.mxu1  ;;  %v815_v61 = vpop.f32.mrf.mxu0 }
  0xbf   :  { %v379_v33 = vadd.f32 %v378_v60, %v345_v15  ;;  %v2413_v36 = vadd.f32 %v815_v61, %v782_v34  ;;  %v789_v59 = vpop.f32.mrf.mxu3 }
  0xc1   :  { %862 = vmatmul.bf16.gmra.mxu1 %v613_v62  ;;  %1315 = vmatmul.bf16.gmra.mxu0 %v1066_v55 }
  0xc4   :  { %1249 = vmatmul.bf16.gmra.mxu2 %v1062_v58 }
  0xc6   :  { %v380_v2 = vpop.f32.mrf.mxu1  ;;  %v817_v26 = vpop.f32.mrf.mxu0 }
  0xc7   :  { %v411_v0 = vpop.f32.mrf.mxu2  ;;  %v381_v3 = vadd.f32 %v380_v2, %v347_v25  ;;  %v2417_v4 = vadd.f32 %v817_v26, %v784_v56  ;;  %v792_v5 = vpop.f32.mrf.mxu3 }
  0xc8   :  { %v2415_v1 = vadd.f32 %v411_v0, %v379_v33 }
  0xce   :  { %v383_v43 = vpop.f32.mrf.mxu1  ;;  %v820_v7 = vpop.f32.mrf.mxu0 }
  0xcf   :  { %v413_v6 = vpop.f32.mrf.mxu2  ;;  %v384_v8 = vadd.f32 %v383_v43, %v350_v42  ;;  %v2421_v10 = vadd.f32 %v820_v7, %v787_v52  ;;  %v794_v11 = vpop.f32.mrf.mxu3 }
  0xd0   :  { %v2419_v32 = vadd.f32 %v413_v6, %v381_v3 }
  0xd1   :  { %867 = vmatmul.bf16.gmra.mxu1 %v612_v53  ;;  %1320 = vmatmul.bf16.gmra.mxu0 %v1065_v54 }
  0xd4   :  { %1254 = vmatmul.bf16.gmra.mxu2 %v1061_v38 }
  0xd6   :  { %v385_v14 = vpop.f32.mrf.mxu1  ;;  %v822_v16 = vpop.f32.mrf.mxu0 }
  0xd7   :  { %v416_v12 = vpop.f32.mrf.mxu2  ;;  %v386_v9 = vadd.f32 %v385_v14, %v352_v51  ;;  %v2425_v15 = vadd.f32 %v822_v16, %v789_v59  ;;  %v797_v17 = vpop.f32.mrf.mxu3 }
  0xd8   :  { %v2423_v13 = vadd.f32 %v416_v12, %v384_v8 }
  0xde   :  { %v388_v21 = vpop.f32.mrf.mxu1  ;;  %v825_v50 = vpop.f32.mrf.mxu0 }
  0xdf   :  { %v418_v19 = vpop.f32.mrf.mxu2  ;;  %v389_v23 = vadd.f32 %v388_v21, %v2385_v57  ;;  %v2430_v25 = vadd.f32 %v825_v50, %v792_v5  ;;  %v799_v28 = vpop.f32.mrf.mxu3 }
  0xe0   :  { %v2427_v20 = vadd.f32 %v418_v19, %v386_v9 }
  0xe6   :  { %v390_v34 = vpop.f32.mrf.mxu1  ;;  %v827_v35 = vpop.f32.mrf.mxu0 }
  0xe7   :  { %v421_v30 = vpop.f32.mrf.mxu2  ;;  %v391_v37 = vadd.f32 %v390_v34, %v2394_v27  ;;  %v2435_v39 = vadd.f32 %v827_v35, %v794_v11  ;;  %v802_v63 = vpop.f32.mrf.mxu3 }
  0xe8   :  { %v2432_v31 = vadd.f32 %v421_v30, %v389_v23 }
  0xee   :  { %v393_v42 = vpop.f32.mrf.mxu1  ;;  %v830_v29 = vpop.f32.mrf.mxu0 }
  0xef   :  { %v423_v40 = vpop.f32.mrf.mxu2  ;;  %v394_v57 = vadd.f32 %v393_v42, %v2401_v44  ;;  %v2440_v45 = vadd.f32 %v830_v29, %v797_v17  ;;  %v804_v46 = vpop.f32.mrf.mxu3  ;;  %v2461_v17 = vld [vmem:[%s2504_s3] ss:$0 sm:$0xff] }
  0xf0   :  { %v2437_v41 = vadd.f32 %v423_v40, %v391_v37 }
  0xf6   :  { %v395_v49 = vpop.f32.mrf.mxu1  ;;  %v832_v48 = vpop.f32.mrf.mxu0 }
  0xf7   :  { %v426_v47 = vpop.f32.mrf.mxu2  ;;  %v396_v27 = vadd.f32 %v395_v49, %v2407_v22  ;;  %v2445_v51 = vadd.f32 %v832_v48, %v799_v28  ;;  %v1268_v18 = vpop.f32.mrf.mxu3 }
  0xf8   :  { %v2442_v56 = vadd.f32 %v426_v47, %v394_v57 }
  0xfe   :  { %v398_v53 = vpop.f32.mrf.mxu1  ;;  %v835_v54 = vpop.f32.mrf.mxu0 }
  0xff   :  { %v428_v38 = vpop.f32.mrf.mxu2  ;;  %v399_v44 = vadd.f32 %v398_v53, %v2392_v24  ;;  %v2450_v58 = vadd.f32 %v835_v54, %v802_v63  ;;  %v1270_v60 = vpop.f32.mrf.mxu3 }
 0x100   :  { %v2447_v52 = vadd.f32 %v428_v38, %v396_v27 }
 0x106   :  { %v400_v55 = vpop.f32.mrf.mxu1  ;;  %v837_v33 = vpop.f32.mrf.mxu0 }
 0x107   :  { %v431_v61 = vpop.f32.mrf.mxu2  ;;  %v1273_v59 = vpop.f32.mrf.mxu3 }
 0x108   :  { %v2452_v62 = vadd.f32 %v431_v61, %v399_v44 }
 0x10e   :  { %v848_v0 = vpop.f32.mrf.mxu1  ;;  %v1301_v2 = vpop.f32.mrf.mxu0 }
 0x10f   :  { %v433_v22 = vpop.f32.mrf.mxu2  ;;  %v849_v26 = vadd.f32 %v848_v0, %v2413_v36  ;;  %v1275_v3 = vpop.f32.mrf.mxu3 }
 0x111   :  { %v881_v5 = vadd.f32 %v849_v26, %v2415_v1 }
 0x116   :  { %v850_v24 = vpop.f32.mrf.mxu1  ;;  %v1303_v7 = vpop.f32.mrf.mxu0 }
 0x117   :  { %v1235_v6 = vpop.f32.mrf.mxu2  ;;  %v851_v11 = vadd.f32 %v850_v24, %v2417_v4  ;;  %v1278_v12 = vpop.f32.mrf.mxu3 }
 0x118   :  { %v1269_v43 = vadd.f32 %v1268_v18, %v1235_v6 }
 0x119   :  { %v882_v14 = vadd.f32 %v851_v11, %v2419_v32 }
 0x11a   :  { %v1302_v8 = vadd.f32 %v1301_v2, %v1269_v43 }
 0x11c   :  { %v1334_v9 = vadd.f32 %v1302_v8, %v881_v5 }
 0x11e   :  { %v853_v1 = vpop.f32.mrf.mxu1  ;;  %v1306_v21 = vpop.f32.mrf.mxu0  ;;  %v1365_v50 = vadd.f32 %v2461_v17, %v1334_v9 }
 0x11f   :  { %v1237_v16 = vpop.f32.mrf.mxu2  ;;  %v854_v28 = vadd.f32 %v853_v1, %v2421_v10  ;;  %v1280_v4 = vpop.f32.mrf.mxu3 }
 0x120   :  { %v1271_v36 = vadd.f32 %v1270_v60, %v1237_v16  ;;  %v1374_v35 = vmax.f32 %v1365_v50, 0.0 }
 0x121   :  { %v883_v32 = vadd.f32 %v854_v28, %v2423_v13 }
 0x122   :  { %v1304_v19 = vadd.f32 %v1303_v7, %v1271_v36 }
 0x124   :  { %v1335_v23 = vadd.f32 %v1304_v19, %v882_v14 }
 0x126   :  { %v1366_v30 = vadd.f32 %v2461_v17, %v1335_v23  ;;  %v855_v42 = vpop.f32.mrf.mxu1  ;;  %v1308_v29 = vpop.f32.mrf.mxu0 }
 0x127   :  { %v1240_v34 = vpop.f32.mrf.mxu2  ;;  %v856_v46 = vadd.f32 %v855_v42, %v2425_v15  ;;  %v1283_v10 = vpop.f32.mrf.mxu3 }
 0x128   :  { %v1375_v37 = vmax.f32 %v1366_v30, 0.0  ;;  %v1274_v63 = vadd.f32 %v1273_v59, %v1240_v34 }
 0x129   :  { %v884_v47 = vadd.f32 %v856_v46, %v2427_v20 }
 0x12a   :  { %v1914_v40 = vpack.c.bf16 %v1375_v37, %v1374_v35  ;;  %v1307_v57 = vadd.f32 %v1306_v21, %v1274_v63 }
 0x12c   :  { %1915 = vst [vmem:[%s2505_s4] sm:$0xff] %v1914_v40   ;;  %v1336_v48 = vadd.f32 %v1307_v57, %v883_v32 }
 0x12e   :  { %v858_v18 = vpop.f32.mrf.mxu1  ;;  %v1311_v38 = vpop.f32.mrf.mxu0  ;;  %v1367_v53 = vadd.f32 %v2461_v17, %v1336_v48 }
 0x12f   :  { %v1242_v49 = vpop.f32.mrf.mxu2  ;;  %v859_v44 = vadd.f32 %v858_v18, %v2430_v25  ;;  %v1285_v60 = vpop.f32.mrf.mxu3 }
 0x130   :  { %v1276_v13 = vadd.f32 %v1275_v3, %v1242_v49  ;;  %v1376_v33 = vmax.f32 %v1367_v53, 0.0 }
 0x131   :  { %v885_v55 = vadd.f32 %v859_v44, %v2432_v31 }
 0x132   :  { %v1309_v27 = vadd.f32 %v1308_v29, %v1276_v13 }
 0x134   :  { %v1337_v54 = vadd.f32 %v1309_v27, %v884_v47 }
 0x136   :  { %v1368_v61 = vadd.f32 %v2461_v17, %v1337_v54  ;;  %v860_v0 = vpop.f32.mrf.mxu1  ;;  %v1313_v2 = vpop.f32.mrf.mxu0 }
 0x137   :  { %v1245_v15 = vpop.f32.mrf.mxu2  ;;  %v861_v3 = vadd.f32 %v860_v0, %v2435_v39  ;;  %v1288_v25 = vpop.f32.mrf.mxu3 }
 0x138   :  { %v1377_v59 = vmax.f32 %v1368_v61, 0.0  ;;  %v1279_v20 = vadd.f32 %v1278_v12, %v1245_v15 }
 0x139   :  { %v886_v5 = vadd.f32 %v861_v3, %v2437_v41 }
 0x13a   :  { %v1919_v22 = vpack.c.bf16 %v1377_v59, %v1376_v33  ;;  %v1312_v26 = vadd.f32 %v1311_v38, %v1279_v20 }
 0x13c   :  { %1948 = vst [vmem:[%s2505_s4 + $0x8] sm:$0xff] %v1919_v22   ;;  %v1338_v43 = vadd.f32 %v1312_v26, %v885_v55 }
 0x13e   :  { %v863_v7 = vpop.f32.mrf.mxu1  ;;  %v1316_v8 = vpop.f32.mrf.mxu0  ;;  %v1369_v11 = vadd.f32 %v2461_v17, %v1338_v43 }
 0x13f   :  { %v1247_v6 = vpop.f32.mrf.mxu2  ;;  %v864_v14 = vadd.f32 %v863_v7, %v2440_v45  ;;  %v1290_v16 = vpop.f32.mrf.mxu3 }
 0x140   :  { %v1281_v31 = vadd.f32 %v1280_v4, %v1247_v6  ;;  %v1378_v19 = vmax.f32 %v1369_v11, 0.0 }
 0x141   :  { %v887_v36 = vadd.f32 %v864_v14, %v2442_v56 }
 0x142   :  { %v1314_v24 = vadd.f32 %v1313_v2, %v1281_v31 }
 0x144   :  { %v1339_v12 = vadd.f32 %v1314_v24, %v886_v5 }
 0x146   :  { %v1370_v9 = vadd.f32 %v2461_v17, %v1339_v12  ;;  %v865_v50 = vpop.f32.mrf.mxu1  ;;  %v1318_v23 = vpop.f32.mrf.mxu0 }
 0x147   :  { %v1250_v39 = vpop.f32.mrf.mxu2  ;;  %v866_v4 = vadd.f32 %v865_v50, %v2445_v51 }
 0x148   :  { %v1379_v1 = vmax.f32 %v1370_v9, 0.0  ;;  %v1284_v41 = vadd.f32 %v1283_v10, %v1250_v39 }
 0x149   :  { %v888_v45 = vadd.f32 %v866_v4, %v2447_v52 }
 0x14a   :  { %v1924_v21 = vpack.c.bf16 %v1379_v1, %v1378_v19  ;;  %v1317_v28 = vadd.f32 %v1316_v8, %v1284_v41 }
 0x14c   :  { %1949 = vst [vmem:[%s2505_s4 + $0x10] sm:$0xff] %v1924_v21   ;;  %v1340_v32 = vadd.f32 %v1317_v28, %v887_v36 }
 0x14e   :  { %v868_v35 = vpop.f32.mrf.mxu1  ;;  %v1321_v37 = vpop.f32.mrf.mxu0  ;;  %v1371_v63 = vadd.f32 %v2461_v17, %v1340_v32 }
 0x14f   :  { %v1252_v30 = vpop.f32.mrf.mxu2  ;;  %v869_v42 = vadd.f32 %v868_v35, %v2450_v58 }
 0x150   :  { %v1286_v34 = vadd.f32 %v1285_v60, %v1252_v30  ;;  %v1380_v10 = vmax.f32 %v1371_v63, 0.0 }
 0x151   :  { %v889_v57 = vadd.f32 %v869_v42, %v2452_v62 }
 0x152   :  { %v1319_v56 = vadd.f32 %v1318_v23, %v1286_v34 }
 0x154   :  { %v1341_v40 = vadd.f32 %v1319_v56, %v888_v45 }
 0x156   :  { %v1372_v29 = vadd.f32 %v2461_v17, %v1341_v40  ;;  %v870_v48 = vpop.f32.mrf.mxu1  ;;  %v1323_v13 = vpop.f32.mrf.mxu0 }
 0x157   :  { %v1255_v46 = vpop.f32.mrf.mxu2 }
 0x158   :  { %v1381_v51 = vmax.f32 %v1372_v29, 0.0  ;;  %v1289_v47 = vadd.f32 %v1288_v25, %v1255_v46 }
 0x15a   :  { %v1929_v52 = vpack.c.bf16 %v1381_v51, %v1380_v10  ;;  %v1322_v49 = vadd.f32 %v1321_v37, %v1289_v47 }
 0x15c   :  { %1950 = vst [vmem:[%s2505_s4 + $0x18] sm:$0xff] %v1929_v52   ;;  %v1342_v27 = vadd.f32 %v1322_v49, %v889_v57 }
 0x15e   :  { %v1373_v18 = vadd.f32 %v2461_v17, %v1342_v27 }
 0x15f   :  { %v1257_v58 = vpop.f32.mrf.mxu2 }
 0x160   :  { %v1382_v38 = vmax.f32 %v1373_v18, 0.0 }
 0x162   :  { %v1391_v53 = vpack.c.bf16 %v1382_v38, %v1382_v38 }
 0x164   :  { %1400 = vst [vmem:[%s2505_s4 + $0x20] sm:$0xf] %v1391_v53 }

// kernel: homography_forward.11
= control target key start
LH: loop header
LB: loop body
LE: loop exit
PB: predicated region body
PF: predicated region fallthrough
CT: control target
= control target key end

     0   :  { %s6821_s15 = smov 0   ;;  %s9009_s0 = inlined_call_operand.vmem [shape: bf16[1024,128], index: 0, kind: input, shape index: {}]   ;;  %s9010_s1 = inlined_call_operand.vmem [shape: bf16[2,40,128], index: 1, kind: input, shape index: {}]   ;;  %s9011_s2 = inlined_call_operand.vmem [shape: bf16[3,384,128], index: 2, kind: input, shape index: {}]   ;;  %s9012_s3 = inlined_call_operand.vmem [shape: f32[1,128], index: 3, kind: input, shape index: {}]   ;;  %s9013_s4 = inlined_call_operand.vmem [shape: bf16[1024,128], index: 4, kind: output, shape index: {}]  }
   0x1 LB: > { %s6827_s16 = sadd.s32 4294967295, %s6794_s15   ;;  %p5607_p0 = scmp.ge.s32.totalorder %s6794_s15, 1  ;;  %s6794_s15 = sphi %s6821_s15, %s14_s15  }
   0x2   : > { %p173_p1 = scmp.lt.s32.totalorder %s6794_s15, 3 }
   0x4   : > { %p174_p2 = pnand %p5607_p0, %p173_p1 }
   0x6   : > { %177 = sbr.rel (%p174_p2) target bundleno = 1333 (0x535), region = 36 }
   0xb   : > { %v6409_v0 = vld [vmem:[%s9011_s2 + $0x38] sm:$0xff]  ;;  %s5608_s19 = sshll.u32 %s6827_s16, 6  ;;  %v6408_v1 = vld [vmem:[%s9011_s2 + $0x30] sm:$0xff]  ;;  %v6407_v2 = vld [vmem:[%s9011_s2 + $0x28] sm:$0xff]  ;;  %vm620_vm0 = vsmask.f32 7424 }
   0xc   : > { %p205_p3 = scmp.lt.s32.totalorder %s5608_s19, 127  ;;  %1206 = vmatpush.bf16.msra.mxu0 %v6409_v0  ;;  %6734 = vmatpush.bf16.msra.mxu1 %v6409_v0  ;;  %v6406_v8 = vld [vmem:[%s9011_s2 + $0x20] sm:$0xff]  ;;  %v6405_v12 = vld [vmem:[%s9011_s2 + $0x18] sm:$0xff]  ;;  %v6404_v13 = vld [vmem:[%s9011_s2 + $0x10] sm:$0xff]  ;;  %vm916_vm1 = vcmask 1046528   ;;  %p210_p4 = scmp.lt.s32.totalorder %s6827_s16, 1 }
   0xd   : > { %6735 = vmatpush.bf16.msra.mxu2 %v6409_v0  ;;  %6736 = vmatpush.bf16.msra.mxu3 %v6409_v0  ;;  %v6403_v15 = vld [vmem:[%s9011_s2 + $0x8] sm:$0xff]  ;;  %v6402_v19 = vld [vmem:[%s9011_s2] sm:$0xff]  ;;  %v6425_v20 = vld [vmem:[%s9011_s2 + $0xb8] sm:$0xff]  ;;  %vm4076_vm2 = vcmask 1045504  }
   0xe   : > { %s9366_s19 = smov (!%p205_p3, %s5608_s19), 127  ;;  %v6464_v21 = vld [vmem:[%s9011_s2 + $0xf8] sm:$0xff]  ;;  %v6424_v28 = vld [vmem:[%s9011_s2 + $0xb0] sm:$0xff]  ;;  %v6423_v33 = vld [vmem:[%s9011_s2 + $0xa8] sm:$0xff]  ;;  %s9368_s16 = smov (!%p210_p4, %s6827_s16), 1 }
   0xf   : > { %s5609_s22 = sshll.u32 %s9366_s19, 2  ;;  %v6417_v26 = vld [vmem:[%s9011_s2 + $0x78] sm:$0xff]  ;;  %v6463_v29 = vld [vmem:[%s9011_s2 + $0xf0] sm:$0xff]  ;;  %v6462_v34 = vld [vmem:[%s9011_s2 + $0xe8] sm:$0xff]  ;;  %s6758_s29 = smul.u32 20, %s9368_s16 }
  0x10   : > { %1207 = vmatpush.bf16.msra.mxu0 %v6408_v1  ;;  %6737 = vmatpush.bf16.msra.mxu1 %v6408_v1  ;;  %s6849_s27 = scalar_lea.vmem %s9009_s0, %s5609_s22  ;;  %v6472_v27 = vld [vmem:[%s9011_s2 + $0x138] sm:$0xff]  ;;  %v6416_v30 = vld [vmem:[%s9011_s2 + $0x70] sm:$0xff]  ;;  %v6415_v35 = vld [vmem:[%s9011_s2 + $0x68] sm:$0xff]  ;;  %s8318_s20 = scalar_lea.vmem %s9013_s4, %s5609_s22 }
  0x11   : > { %6738 = vmatpush.bf16.msra.mxu2 %v6408_v1  ;;  %6739 = vmatpush.bf16.msra.mxu3 %v6408_v1  ;;  %v221_v3 = vld [vmem:[%s6849_s27] sm:$0xff]   ;;  %v223_v7 = vld [vmem:[%s6849_s27 + $0x8] sm:$0xff]   ;;  %v225_v14 = vld [vmem:[%s6849_s27 + $0x10] sm:$0xff]   ;;  %s7848_s6 = scalar_lea.vmem %s9010_s1, %s6758_s29 }
  0x12   : > { %v237_v4 = vld [vmem:[%s6849_s27 + $0x40] sm:$0xff]   ;;  %285 = vst [vmem:[#allocation2] sm:$0xff] %v221_v3   ;;  %v239_v9 = vld [vmem:[%s6849_s27 + $0x48] sm:$0xff]   ;;  %v241_v16 = vld [vmem:[%s6849_s27 + $0x50] sm:$0xff]  }
  0x13   : > { %v253_v5 = vld [vmem:[%s6849_s27 + $0x80] sm:$0xff]   ;;  %301 = vst [vmem:[#allocation2 + $0x40] sm:$0xff] %v237_v4   ;;  %v255_v10 = vld [vmem:[%s6849_s27 + $0x88] sm:$0xff]   ;;  %v257_v17 = vld [vmem:[%s6849_s27 + $0x90] sm:$0xff]  }
  0x14   : > { %v269_v6 = vld [vmem:[%s6849_s27 + $0xc0] sm:$0xff]   ;;  %1208 = vmatpush.bf16.msra.mxu0 %v6407_v2  ;;  %6740 = vmatpush.bf16.msra.mxu1 %v6407_v2  ;;  %317 = vst [vmem:[#allocation2 + $0x80] sm:$0xff] %v253_v5   ;;  %v271_v11 = vld [vmem:[%s6849_s27 + $0xc8] sm:$0xff]   ;;  %v273_v18 = vld [vmem:[%s6849_s27 + $0xd0] sm:$0xff]  }
  0x15   : > { %6741 = vmatpush.bf16.msra.mxu2 %v6407_v2  ;;  %6742 = vmatpush.bf16.msra.mxu3 %v6407_v2  ;;  %333 = vst [vmem:[#allocation2 + $0xc0] sm:$0xff] %v269_v6   ;;  %v6471_v31 = vld [vmem:[%s9011_s2 + $0x130] sm:$0xff]  ;;  %v227_v32 = vld [vmem:[%s6849_s27 + $0x18] sm:$0xff]   ;;  %v6470_v36 = vld [vmem:[%s9011_s2 + $0x128] sm:$0xff] }
  0x16   : > { %287 = vst [vmem:[#allocation2 + $0x8] sm:$0xff] %v223_v7   ;;  %v243_v37 = vld [vmem:[%s6849_s27 + $0x58] sm:$0xff]   ;;  %v6422_v44 = vld [vmem:[%s9011_s2 + $0xa0] sm:$0xff]  ;;  %v231_v60 = vld [vmem:[%s6849_s27 + $0x28] sm:$0xff]  }
  0x17   : > { %303 = vst [vmem:[#allocation2 + $0x48] sm:$0xff] %v239_v9   ;;  %v259_v38 = vld [vmem:[%s6849_s27 + $0x98] sm:$0xff]   ;;  %v6461_v45 = vld [vmem:[%s9011_s2 + $0xe0] sm:$0xff]  ;;  %v247_v61 = vld [vmem:[%s6849_s27 + $0x68] sm:$0xff]  }
  0x18   : > { %1209 = vmatpush.bf16.msra.mxu0 %v6406_v8  ;;  %6743 = vmatpush.bf16.msra.mxu1 %v6406_v8  ;;  %319 = vst [vmem:[#allocation2 + $0x88] sm:$0xff] %v255_v10   ;;  %v275_v39 = vld [vmem:[%s6849_s27 + $0xd8] sm:$0xff]   ;;  %v6414_v46 = vld [vmem:[%s9011_s2 + $0x60] sm:$0xff]  ;;  %v263_v62 = vld [vmem:[%s6849_s27 + $0xa8] sm:$0xff]  }
  0x19   : > { %6744 = vmatpush.bf16.msra.mxu2 %v6406_v8  ;;  %6745 = vmatpush.bf16.msra.mxu3 %v6406_v8  ;;  %335 = vst [vmem:[#allocation2 + $0xc8] sm:$0xff] %v271_v11   ;;  %v6886_v23 = vld [vmem:[#allocation2] sm:$0xff]   ;;  %v6421_v56 = vld [vmem:[%s9011_s2 + $0x98] sm:$0xff]  ;;  %v279_v63 = vld [vmem:[%s6849_s27 + $0xe8] sm:$0xff]  }
  0x1a   : > { %289 = vst [vmem:[#allocation2 + $0x10] sm:$0xff] %v225_v14   ;;  %v6884_v22 = vld [vmem:[#allocation2 + $0x40] sm:$0xff]  ;;  %v6460_v57 = vld [vmem:[%s9011_s2 + $0xd8] sm:$0xff]  ;;  %v6420_v4 = vld [vmem:[%s9011_s2 + $0x90] sm:$0xff] }
  0x1b   : > { %305 = vst [vmem:[#allocation2 + $0x50] sm:$0xff] %v241_v16   ;;  %v6386_v24 = vld [vmem:[#allocation2 + $0x80] sm:$0xff]  ;;  %v6413_v58 = vld [vmem:[%s9011_s2 + $0x58] sm:$0xff]  ;;  %v6459_v5 = vld [vmem:[%s9011_s2 + $0xd0] sm:$0xff] }
  0x1c   : > { %1210 = vmatpush.bf16.msra.mxu0 %v6405_v12  ;;  %6746 = vmatpush.bf16.msra.mxu1 %v6405_v12  ;;  %321 = vst [vmem:[#allocation2 + $0x90] sm:$0xff] %v257_v17   ;;  %v6394_v25 = vld [vmem:[#allocation2 + $0xc0] sm:$0xff]  ;;  %v6468_v59 = vld [vmem:[%s9011_s2 + $0x118] sm:$0xff]  ;;  %v6412_v6 = vld [vmem:[%s9011_s2 + $0x50] sm:$0xff] }
  0x1d   : > { %6747 = vmatpush.bf16.msra.mxu2 %v6405_v12  ;;  %6748 = vmatpush.bf16.msra.mxu3 %v6405_v12  ;;  %337 = vst [vmem:[#allocation2 + $0xd0] sm:$0xff] %v273_v18   ;;  %v6924_v40 = vld [vmem:[#allocation2 + $0x8] sm:$0xff]  ;;  %v6469_v47 = vld [vmem:[%s9011_s2 + $0x120] sm:$0xff]  ;;  %v6467_v7 = vld [vmem:[%s9011_s2 + $0x110] sm:$0xff] }
  0x1e   : > { %291 = vst [vmem:[#allocation2 + $0x18] sm:$0xff] %v227_v32   ;;  %v6926_v41 = vld [vmem:[#allocation2 + $0x48] sm:$0xff]  ;;  %v229_v48 = vld [vmem:[%s6849_s27 + $0x20] sm:$0xff]   ;;  %v233_v8 = vld [vmem:[%s6849_s27 + $0x30] sm:$0xff]  }
  0x1f   : > { %307 = vst [vmem:[#allocation2 + $0x58] sm:$0xff] %v243_v37   ;;  %v6387_v42 = vld [vmem:[#allocation2 + $0x88] sm:$0xff]  ;;  %v245_v49 = vld [vmem:[%s6849_s27 + $0x60] sm:$0xff]   ;;  %v249_v9 = vld [vmem:[%s6849_s27 + $0x70] sm:$0xff]  }
  0x20   : > { %1211 = vmatpush.bf16.msra.mxu0 %v6404_v13  ;;  %6749 = vmatpush.bf16.msra.mxu1 %v6404_v13  ;;  %323 = vst [vmem:[#allocation2 + $0x98] sm:$0xff] %v259_v38   ;;  %v6395_v43 = vld [vmem:[#allocation2 + $0xc8] sm:$0xff]  ;;  %v261_v50 = vld [vmem:[%s6849_s27 + $0xa0] sm:$0xff]   ;;  %v265_v10 = vld [vmem:[%s6849_s27 + $0xb0] sm:$0xff]  }
  0x21   : > { %6750 = vmatpush.bf16.msra.mxu2 %v6404_v13  ;;  %6751 = vmatpush.bf16.msra.mxu3 %v6404_v13  ;;  %339 = vst [vmem:[#allocation2 + $0xd8] sm:$0xff] %v275_v39   ;;  %v277_v51 = vld [vmem:[%s6849_s27 + $0xe0] sm:$0xff]   ;;  %v6946_v52 = vld [vmem:[#allocation2 + $0x10] sm:$0xff]  ;;  %v6419_v16 = vld [vmem:[%s9011_s2 + $0x88] sm:$0xff] }
  0x22   : > { %293 = vst [vmem:[#allocation2 + $0x20] sm:$0xff] %v229_v48   ;;  %v6948_v53 = vld [vmem:[#allocation2 + $0x50] sm:$0xff]  ;;  %v6458_v17 = vld [vmem:[%s9011_s2 + $0xc8] sm:$0xff]  ;;  %v6410_v32 = vld [vmem:[%s9011_s2 + $0x40] sm:$0xff] }
  0x23   : > { %309 = vst [vmem:[#allocation2 + $0x60] sm:$0xff] %v245_v49   ;;  %v6388_v54 = vld [vmem:[#allocation2 + $0x90] sm:$0xff]  ;;  %v6411_v18 = vld [vmem:[%s9011_s2 + $0x48] sm:$0xff] }
  0x24   : > { %1212 = vmatpush.bf16.msra.mxu0 %v6403_v15  ;;  %6752 = vmatpush.bf16.msra.mxu1 %v6403_v15  ;;  %325 = vst [vmem:[#allocation2 + $0xa0] sm:$0xff] %v261_v50   ;;  %v6396_v55 = vld [vmem:[#allocation2 + $0xd0] sm:$0xff]  ;;  %v1777_v38 = vld [vmem:[#allocation2 + $0x8] sm:$0xe]  ;;  %v7034_v39 = vld [vmem:[#allocation2 + $0xc] sm:$0xf] }
  0x25   : > { %6753 = vmatpush.bf16.msra.mxu2 %v6403_v15  ;;  %6754 = vmatpush.bf16.msra.mxu3 %v6403_v15  ;;  %341 = vst [vmem:[#allocation2 + $0xe0] sm:$0xff] %v277_v51   ;;  %v6968_v0 = vld [vmem:[#allocation2 + $0x18] sm:$0xff]  ;;  %v281_v11 = vld [vmem:[%s6849_s27 + $0xf0] sm:$0xff]  }
  0x26   : > { %295 = vst [vmem:[#allocation2 + $0x28] sm:$0xff] %v231_v60   ;;  %v6970_v1 = vld [vmem:[#allocation2 + $0x58] sm:$0xff]  ;;  %v6426_v48 = vld [vmem:[#allocation2 + $0x10] sm:$0xff] }
  0x27   : > { %311 = vst [vmem:[#allocation2 + $0x68] sm:$0xff] %v247_v61   ;;  %v6389_v2 = vld [vmem:[#allocation2 + $0x98] sm:$0xff] }
  0x28   : > { %1213 = vmatpush.bf16.msra.mxu0 %v6402_v19  ;;  %6755 = vmatpush.bf16.msra.mxu1 %v6402_v19  ;;  %327 = vst [vmem:[#allocation2 + $0xa8] sm:$0xff] %v263_v62   ;;  %v6397_v3 = vld [vmem:[#allocation2 + $0xd8] sm:$0xff]  ;;  %v2022_v62 = vshrl.u32 %v6426_v48, 16 }
  0x29   : > { %6756 = vmatpush.bf16.msra.mxu2 %v6402_v19  ;;  %6757 = vmatpush.bf16.msra.mxu3 %v6402_v19  ;;  %343 = vst [vmem:[#allocation2 + $0xe8] sm:$0xff] %v279_v63   ;;  %v6990_v12 = vld [vmem:[#allocation2 + $0x20] sm:$0xff]  ;;  %v6466_v19 = vld [vmem:[%s9011_s2 + $0x108] sm:$0xff]  ;;  %v7053_v50 = vld [vmem:[#allocation2 + $0x18] sm:$0xff] }
  0x2a   : > { %297 = vst [vmem:[#allocation2 + $0x30] sm:$0xff] %v233_v8   ;;  %v6992_v13 = vld [vmem:[#allocation2 + $0x60] sm:$0xff]  ;;  %v2026_v63 = vshll.u32 %v7053_v50, 16  ;;  %v622_v8 = vshrl.u32 %v6886_v23, 16 }
  0x2b   : > { %1214 = vmatmul.bf16.vlgmr.msra.gmra.mxu0 %v6886_v23  ;;  %1254 = vmatmul.bf16.vlgmr.msra.gmra.mxu1 %v6884_v22  ;;  %313 = vst [vmem:[#allocation2 + $0x70] sm:$0xff] %v249_v9   ;;  %v6390_v14 = vld [vmem:[#allocation2 + $0xa0] sm:$0xff] }
  0x2c   : > { %1294 = vmatmul.bf16.vlgmr.msra.gmra.mxu2 %v6386_v24  ;;  %1334 = vmatmul.bf16.vlgmr.msra.gmra.mxu3 %v6394_v25  ;;  %329 = vst [vmem:[#allocation2 + $0xb0] sm:$0xff] %v265_v10   ;;  %v6398_v15 = vld [vmem:[#allocation2 + $0xe0] sm:$0xff]  ;;  %v267_v24 = vld [vmem:[%s6849_s27 + $0xb8] sm:$0xff]   ;;  %v629_v10 = vshll.u32 %v6924_v40, 16 }
  0x2d   : > { %1544 = vmatpush.bf16.msrb.mxu2 %v6425_v20  ;;  %2764 = vmatpush.bf16.msrb.mxu3 %v6464_v21  ;;  %345 = vst [vmem:[#allocation2 + $0xf0] sm:$0xff] %v281_v11   ;;  %v235_v20 = vld [vmem:[%s6849_s27 + $0x38] sm:$0xff]  }
  0x2e   : > { %1375 = vmatpush.bf16.msrb.mxu1 %v6417_v26  ;;  %2933 = vmatpush.bf16.msrb.mxu0 %v6472_v27  ;;  %299 = vst [vmem:[#allocation2 + $0x38] sm:$0xff] %v235_v20   ;;  %v251_v21 = vld [vmem:[%s6849_s27 + $0x78] sm:$0xff]   ;;  %v7012_v26 = vld [vmem:[#allocation2 + $0x28] sm:$0xff] }
  0x2f   : > { %v283_v25 = vld [vmem:[%s6849_s27 + $0xf8] sm:$0xff]   ;;  %315 = vst [vmem:[#allocation2 + $0x78] sm:$0xff] %v251_v21   ;;  %v7014_v27 = vld [vmem:[#allocation2 + $0x68] sm:$0xff]  ;;  %v918_v21 = vrot.slane %v6924_v40, 1 }
  0x30   : > { %331 = vst [vmem:[#allocation2 + $0xb8] sm:$0xff] %v267_v24   ;;  %v7068_v24 = vrot.slane %v6426_v48, 1 }
  0x31   : > { %1545 = vmatpush.bf16.msrb.mxu2 %v6424_v28  ;;  %2765 = vmatpush.bf16.msrb.mxu3 %v6463_v29  ;;  %347 = vst [vmem:[#allocation2 + $0xf8] sm:$0xff] %v283_v25   ;;  %v6391_v28 = vld [vmem:[#allocation2 + $0xa8] sm:$0xff] }
  0x32   : > { %1376 = vmatpush.bf16.msrb.mxu1 %v6416_v30  ;;  %2934 = vmatpush.bf16.msrb.mxu0 %v6471_v31  ;;  %v6399_v29 = vld [vmem:[#allocation2 + $0xe8] sm:$0xff]  ;;  %v6418_v30 = vld [vmem:[%s9011_s2 + $0x80] sm:$0xff]  ;;  %9042 = vst [vmem:[#allocation4_spill] sm:$0xff] %v7034_v39 }
  0x33   : > { %v6457_v31 = vld [vmem:[%s9011_s2 + $0xc0] sm:$0xff]  ;;  %9043 = vst [vmem:[#allocation5_spill] sm:$0xff] %v7068_v24 }
  0x34   : > { %v6400_v37 = vld [vmem:[#allocation2 + $0xf0] sm:$0xff] }
  0x35   : > { %1546 = vmatpush.bf16.msrb.mxu2 %v6423_v33  ;;  %2766 = vmatpush.bf16.msrb.mxu3 %v6462_v34  ;;  %v6465_v33 = vld [vmem:[%s9011_s2 + $0x100] sm:$0xff]  ;;  %v7030_v34 = vld [vmem:[#allocation2 + $0x30] sm:$0xff] }
  0x36   : > { %1377 = vmatpush.bf16.msrb.mxu1 %v6415_v35  ;;  %2935 = vmatpush.bf16.msrb.mxu0 %v6470_v36  ;;  %v7032_v35 = vld [vmem:[#allocation2 + $0x70] sm:$0xff] }
  0x37   : > { %v6392_v36 = vld [vmem:[#allocation2 + $0xb0] sm:$0xff] }
  0x39   : > { %1547 = vmatpush.bf16.msrb.mxu2 %v6422_v44  ;;  %2767 = vmatpush.bf16.msrb.mxu3 %v6461_v45  ;;  %v1909_v44 = vunpack.c.l.b16 %v1777_v38  ;;  %v9014_v45 = vunpack.c.l.b16 %v7034_v39 }
  0x3a   : > { %1378 = vmatpush.bf16.msrb.mxu1 %v6414_v46  ;;  %2936 = vmatpush.bf16.msrb.mxu0 %v6469_v47  ;;  %v6480_v46 = vld [vmem:[%s9011_s2 + $0x178] sm:$0xff] }
  0x3b   : > { %1219 = vmatmul.bf16.gmra.mxu0 %v6924_v40  ;;  %1259 = vmatmul.bf16.gmra.mxu1 %v6926_v41  ;;  %v6535_v47 = vld [vmem:[%s9011_s2 + $0x238] sm:$0xff]  ;;  %v1974_v49 = vpack.c.b16 %v9014_v45, %v1909_v44 }
  0x3c   : > { %1299 = vmatmul.bf16.gmra.mxu2 %v6387_v42  ;;  %1339 = vmatmul.bf16.gmra.mxu3 %v6395_v43  ;;  %v6519_v42 = vld [vmem:[%s9011_s2 + $0x1b8] sm:$0xff] }
  0x3d   : > { %1548 = vmatpush.bf16.msrb.mxu2 %v6421_v56  ;;  %2768 = vmatpush.bf16.msrb.mxu3 %v6460_v57  ;;  %v6527_v43 = vld [vmem:[%s9011_s2 + $0x1f8] sm:$0xff]  ;;  %v2013_v51 = vshll.u32 %v1974_v49, 16  ;;  %v2390_v25 = vrot.slane %v1974_v49, 1 }
  0x3e   : > { %1379 = vmatpush.bf16.msrb.mxu1 %v6413_v58  ;;  %2937 = vmatpush.bf16.msrb.mxu0 %v6468_v59  ;;  %v7057_v56 = vld [vmem:[#allocation2 + $0x78] sm:$0xff]  ;;  %v2011_v59 = vshrl.u32 %v1974_v49, 16  ;;  %v637_v49 = vshll.u32 %v6946_v52, 16 }
  0x3f   : > { %v6393_v57 = vld [vmem:[#allocation2 + $0xb8] sm:$0xff]  ;;  %v2015_v60 = vrot.slane %v2013_v51, 1 }
  0x40   : > { %v6401_v58 = vld [vmem:[#allocation2 + $0xf8] sm:$0xff] }
  0x41   : > { %1549 = vmatpush.bf16.msrb.mxu2 %v6420_v4  ;;  %2769 = vmatpush.bf16.msrb.mxu3 %v6459_v5  ;;  %v6701_v4 = vld [vmem:[#allocation2] sm:$0xe]  ;;  %v2016_v5 = vor.u32 %v2015_v60, %v2011_v59  ;;  %v920_v59 = vrot.slane %v6946_v52, 1  ;;  %v2279_v60 = vrot.slane %v7053_v50, 1 }
  0x42   : > { %1380 = vmatpush.bf16.msrb.mxu1 %v6412_v6  ;;  %2938 = vmatpush.bf16.msrb.mxu0 %v6467_v7  ;;  %v2028_v7 = vrot.slane %v2026_v63, 1 }
  0x45   : > { %1550 = vmatpush.bf16.msrb.mxu2 %v6419_v16  ;;  %2770 = vmatpush.bf16.msrb.mxu3 %v6458_v17  ;;  %v631_v17 = vrot.slane %v629_v10, 1 }
  0x46   : > { %1381 = vmatpush.bf16.msrb.mxu1 %v6411_v18  ;;  %2939 = vmatpush.bf16.msrb.mxu0 %v6466_v19 }
  0x49   : > { %1551 = vmatpush.bf16.msrb.mxu2 %v6418_v30  ;;  %2771 = vmatpush.bf16.msrb.mxu3 %v6457_v31 }
  0x4a   : > { %1382 = vmatpush.bf16.msrb.mxu1 %v6410_v32  ;;  %2940 = vmatpush.bf16.msrb.mxu0 %v6465_v33  ;;  %v2391_v33 = vsel %vm916_vm1, %v2390_v25, %v7068_v24  ;;  %v922_v25 = vrot.slane %v6968_v0, 1 }
  0x4b   : > { %1224 = vmatmul.bf16.gmra.mxu0 %v6946_v52  ;;  %1264 = vmatmul.bf16.gmra.mxu1 %v6948_v53 }
  0x4c   : > { %1304 = vmatmul.bf16.gmra.mxu2 %v6388_v54  ;;  %1344 = vmatmul.bf16.gmra.mxu3 %v6396_v55  ;;  %v2018_v54 = vshll.u32 %v6426_v48, 16  ;;  %v7055_v55 = vld [vmem:[#allocation2 + $0x38] sm:$0xff]  ;;  %v633_v48 = vshrl.u32 %v6924_v40, 16 }
  0x4d   : > { %4512 = vmatpush.bf16.msra.mxu2 %v6519_v42  ;;  %4681 = vmatpush.bf16.msra.mxu3 %v6527_v43 }
  0x4e   : > { %3102 = vmatpush.bf16.msra.mxu1 %v6480_v46  ;;  %4850 = vmatpush.bf16.msra.mxu0 %v6535_v47  ;;  %v2020_v61 = vrot.slane %v2018_v54, 1  ;;  %v635_v54 = vor.u32 %v633_v48, %v631_v17 }
  0x50   : > { %v2024_v6 = vor.u32 %v2022_v62, %v2020_v61 }
  0x5b   : > { %1229 = vmatmul.bf16.gmra.mxu0 %v6968_v0  ;;  %1269 = vmatmul.bf16.gmra.mxu1 %v6970_v1 }
  0x5c   : > { %1309 = vmatmul.bf16.gmra.mxu2 %v6389_v2  ;;  %1349 = vmatmul.bf16.gmra.mxu3 %v6397_v3  ;;  %v624_v2 = vshll.u32 %v6886_v23, 16  ;;  %v6700_v3 = vld [vmem:[#allocation2] sm:$0xf0] }
  0x5d   : > { %v6702_v11 = vor.u32 %v6701_v4, %v6700_v3  ;;  %v7070_v23 = vld [vmem:[#allocation2 + $0x20] sm:$0xff] }
  0x5e   : > { %v626_v9 = vrot.slane %v624_v2, 1 }
  0x5f   : > { %v917_v18 = vrot.slane %v6702_v11, 1 }
  0x60   : > { %v627_v16 = vor.u32 %v626_v9, %v622_v8 }
  0x61   : > { %v919_v32 = vsel %vm916_vm1, %v917_v18, %v918_v21 }
  0x62   : > { %v632_v30 = vsel %vm620_vm0, %v627_v16, %v631_v17  ;;  %v641_v16 = vshrl.u32 %v6946_v52, 16  ;;  %v645_v17 = vshll.u32 %v6968_v0, 16 }
  0x6b   : > { %1234 = vmatmul.bf16.gmra.mxu0 %v6990_v12  ;;  %1274 = vmatmul.bf16.gmra.mxu1 %v6992_v13 }
  0x6c   : > { %1314 = vmatmul.bf16.gmra.mxu2 %v6390_v14  ;;  %1354 = vmatmul.bf16.gmra.mxu3 %v6398_v15  ;;  %v2021_v14 = vsel %vm620_vm0, %v2016_v5, %v2020_v61  ;;  %v2029_v15 = vsel %vm620_vm0, %v2024_v6, %v2028_v7  ;;  %v7096_v61 = vld [vmem:[#allocation2 + $0x28] sm:$0xff]  ;;  %v921_v5 = vsel %vm916_vm1, %v918_v21, %v920_v59 }
  0x6d   : > { %v2392_v19 = vrot.slane %v2021_v14, 1  ;;  %v2393_v20 = vrot.slane %v2029_v15, 1  ;;  %v7111_v6 = vsel %vm916_vm1, %v7068_v24, %v2279_v60 }
  0x6e   : > { %9048 = vst [vmem:[#allocation10_spill] sm:$0xff] %v7111_v6 }
  0x6f   : > { %v2394_v31 = vsel %vm916_vm1, %v2392_v19, %v2393_v20 }
  0x7b   : > { %1239 = vmatmul.bf16.gmra.mxu0 %v7012_v26  ;;  %1279 = vmatmul.bf16.gmra.mxu1 %v7014_v27 }
  0x7c   : > { %1319 = vmatmul.bf16.gmra.mxu2 %v6391_v28  ;;  %1359 = vmatmul.bf16.gmra.mxu3 %v6399_v29 }
  0x8b   : > { %1244 = vmatmul.bf16.gmra.mxu0 %v7030_v34  ;;  %1284 = vmatmul.bf16.gmra.mxu1 %v7032_v35 }
  0x8c   : > { %1324 = vmatmul.bf16.gmra.mxu2 %v6392_v36  ;;  %1364 = vmatmul.bf16.gmra.mxu3 %v6400_v37  ;;  %v2030_v36 = vshrl.u32 %v7053_v50, 16  ;;  %v2034_v37 = vshll.u32 %v7070_v23, 16  ;;  %v2038_v50 = vshrl.u32 %v7070_v23, 16 }
  0x8e   : > { %v2032_v38 = vor.u32 %v2030_v36, %v2028_v7  ;;  %v2036_v42 = vrot.slane %v2034_v37, 1  ;;  %v2042_v7 = vshll.u32 %v7096_v61, 16 }
  0x90   : > { %v2037_v51 = vsel %vm620_vm0, %v2032_v38, %v2036_v42  ;;  %v2040_v8 = vor.u32 %v2038_v50, %v2036_v42  ;;  %v2044_v9 = vrot.slane %v2042_v7, 1  ;;  %v923_v42 = vsel %vm916_vm1, %v920_v59, %v922_v25  ;;  %v6479_v7 = vld [vmem:[%s9011_s2 + $0x170] sm:$0xff] }
  0x91   : > { %v653_v50 = vshll.u32 %v6990_v12, 16  ;;  %3103 = vmatpush.bf16.msra.mxu1 %v6479_v7 }
  0x92   : > { %v2045_v18 = vsel %vm620_vm0, %v2040_v8, %v2044_v9  ;;  %v6534_v8 = vld [vmem:[%s9011_s2 + $0x230] sm:$0xff] }
  0x93   : > { %v2402_v21 = vrot.slane %v2045_v18, 1  ;;  %4851 = vmatpush.bf16.msra.mxu0 %v6534_v8 }
  0x9b   : > { %1249 = vmatmul.bf16.gmra.mxu0 %v7055_v55  ;;  %1289 = vmatmul.bf16.gmra.mxu1 %v7057_v56 }
  0x9c   : > { %1329 = vmatmul.bf16.gmra.mxu2 %v6393_v57  ;;  %1369 = vmatmul.bf16.gmra.mxu3 %v6401_v58  ;;  %v639_v57 = vrot.slane %v637_v49, 1  ;;  %v2398_v58 = vrot.slane %v2037_v51, 1  ;;  %v6518_v51 = vld [vmem:[%s9011_s2 + $0x1b0] sm:$0xff] }
  0x9d   : > { %4513 = vmatpush.bf16.msra.mxu2 %v6518_v51 }
  0x9e   : > { %v640_v3 = vsel %vm620_vm0, %v635_v54, %v639_v57  ;;  %v2399_v4 = vsel %vm916_vm1, %v2393_v20, %v2398_v58  ;;  %v643_v19 = vor.u32 %v641_v16, %v639_v57  ;;  %v647_v20 = vrot.slane %v645_v17, 1  ;;  %v6526_v54 = vld [vmem:[%s9011_s2 + $0x1f0] sm:$0xff] }
  0x9f   : > { %v2403_v38 = vsel %vm916_vm1, %v2398_v58, %v2402_v21  ;;  %4682 = vmatpush.bf16.msra.mxu3 %v6526_v54  ;;  %v655_v17 = vrot.slane %v653_v50, 1 }
  0xa0   : > { %v648_v37 = vsel %vm620_vm0, %v643_v19, %v647_v20  ;;  %v924_v19 = vrot.slane %v6990_v12, 1 }
  0xa2   : > { %v925_v54 = vsel %vm916_vm1, %v922_v25, %v924_v19 }
  0xa8   : > { %v7072_v28 = vpop.f32.mrf.mxu0  ;;  %v7074_v29 = vpop.f32.mrf.mxu1 }
  0xab   : > { %1383 = vmatmul.bf16.vlgmr.msrb.gmra.mxu1 %v632_v30  ;;  %2941 = vmatmul.bf16.vlgmr.msrb.gmra.mxu0 %v2394_v31  ;;  %v2281_v30 = vrot.slane %v7070_v23, 1  ;;  %v7129_v31 = vld [vmem:[#allocation2 + $0x30] sm:$0xff]  ;;  %v2046_v23 = vshrl.u32 %v7096_v61, 16 }
  0xac   : > { %1552 = vmatmul.bf16.vlgmr.msrb.gmra.mxu2 %v919_v32  ;;  %2772 = vmatmul.bf16.vlgmr.msrb.gmra.mxu3 %v2391_v33  ;;  %v2050_v49 = vshll.u32 %v7129_v31, 16 }
  0xad   : > { %v7143_v48 = vsel %vm916_vm1, %v2279_v60, %v2281_v30  ;;  %v2048_v57 = vor.u32 %v2046_v23, %v2044_v9 }
  0xae   : > { %9053 = vst [vmem:[#allocation15_spill] sm:$0xff] %v7143_v48  ;;  %v2052_v58 = vrot.slane %v2050_v49, 1 }
  0xaf   : > { %v7083_v43 = vpop.f32.mrf.mxu2  ;;  %v7085_v44 = vpop.f32.mrf.mxu3 }
  0xb0   : > { %9044 = vst [vmem:[#allocation6_spill] sm:$0xff] %v7083_v43  ;;  %v7087_v46 = vpop.f32.mrf.mxu0  ;;  %v7089_v47 = vpop.f32.mrf.mxu1  ;;  %v2053_v9 = vsel %vm620_vm0, %v2048_v57, %v2052_v58  ;;  %v697_v43 = vshrl.u32 %v6926_v41, 16 }
  0xb1   : > { %9045 = vst [vmem:[#allocation7_spill] sm:$0xff] %v7085_v44  ;;  %v2406_v18 = vrot.slane %v2053_v9, 1 }
  0xb7   : > { %v7098_v62 = vpop.f32.mrf.mxu2  ;;  %v7100_v63 = vpop.f32.mrf.mxu3 }
  0xb8   : > { %9046 = vst [vmem:[#allocation8_spill] sm:$0xff] %v7098_v62  ;;  %v7102_v2 = vpop.f32.mrf.mxu0  ;;  %v7104_v40 = vpop.f32.mrf.mxu1 }
  0xb9   : > { %9047 = vst [vmem:[#allocation9_spill] sm:$0xff] %v7100_v63  ;;  %v669_v63 = vshll.u32 %v7030_v34, 16 }
  0xbb   : > { %1388 = vmatmul.bf16.gmra.mxu1 %v640_v3  ;;  %2946 = vmatmul.bf16.gmra.mxu0 %v2399_v4 }
  0xbc   : > { %1557 = vmatmul.bf16.gmra.mxu2 %v921_v5  ;;  %2777 = vmatmul.bf16.gmra.mxu3 %v7111_v6  ;;  %v649_v5 = vshrl.u32 %v6968_v0, 16  ;;  %v2283_v0 = vrot.slane %v7096_v61, 1  ;;  %v2054_v61 = vshrl.u32 %v7129_v31, 16  ;;  %v677_v6 = vshll.u32 %v7055_v55, 16 }
  0xbe   : > { %v651_v16 = vor.u32 %v649_v5, %v647_v20  ;;  %v2407_v20 = vsel %vm916_vm1, %v2402_v21, %v2406_v18  ;;  %v7187_v57 = vsel %vm916_vm1, %v2281_v30, %v2283_v0  ;;  %v2056_v50 = vor.u32 %v2054_v61, %v2052_v58 }
  0xbf   : > { %v7116_v10 = vpop.f32.mrf.mxu2  ;;  %v7118_v11 = vpop.f32.mrf.mxu3  ;;  %9058 = vst [vmem:[#allocation20_spill] sm:$0xff] %v7187_v57  ;;  %v657_v30 = vshrl.u32 %v6990_v12, 16  ;;  %v926_v58 = vrot.slane %v7012_v26, 1  ;;  %v2285_v61 = vrot.slane %v7129_v31, 1 }
  0xc0   : > { %9049 = vst [vmem:[#allocation11_spill] sm:$0xff] %v7116_v10  ;;  %v7120_v14 = vpop.f32.mrf.mxu0  ;;  %v7122_v15 = vpop.f32.mrf.mxu1  ;;  %v656_v51 = vsel %vm620_vm0, %v651_v16, %v655_v17  ;;  %v661_v16 = vshll.u32 %v7012_v26, 16 }
  0xc1   : > { %9050 = vst [vmem:[#allocation12_spill] sm:$0xff] %v7118_v11 }
  0xc7   : > { %v7131_v32 = vpop.f32.mrf.mxu2  ;;  %v7133_v33 = vpop.f32.mrf.mxu3 }
  0xc8   : > { %9051 = vst [vmem:[#allocation13_spill] sm:$0xff] %v7131_v32  ;;  %v7135_v36 = vpop.f32.mrf.mxu0  ;;  %v7137_v52 = vpop.f32.mrf.mxu1 }
  0xc9   : > { %9052 = vst [vmem:[#allocation14_spill] sm:$0xff] %v7133_v33 }
  0xcb   : > { %1393 = vmatmul.bf16.gmra.mxu1 %v648_v37  ;;  %2951 = vmatmul.bf16.gmra.mxu0 %v2403_v38  ;;  %v7173_v37 = vld [vmem:[#allocation2 + $0x38] sm:$0xff] }
  0xcc   : > { %1562 = vmatmul.bf16.gmra.mxu2 %v923_v42  ;;  %2782 = vmatmul.bf16.gmra.mxu3 %v7143_v48  ;;  %v2058_v5 = vshll.u32 %v7173_v37, 16  ;;  %v2062_v31 = vshrl.u32 %v7173_v37, 16 }
  0xce   : > { %v2060_v7 = vrot.slane %v2058_v5, 1  ;;  %v7205_v5 = vld [vmem:[#allocation2 + $0x40] sm:$0xff] }
  0xcf   : > { %v7154_v59 = vpop.f32.mrf.mxu2  ;;  %v7156_v60 = vpop.f32.mrf.mxu3 }
  0xd0   : > { %9054 = vst [vmem:[#allocation16_spill] sm:$0xff] %v7154_v59  ;;  %v7158_v3 = vpop.f32.mrf.mxu0  ;;  %v7160_v4 = vpop.f32.mrf.mxu1 }
  0xd1   : > { %9055 = vst [vmem:[#allocation17_spill] sm:$0xff] %v7156_v60 }
  0xd7   : > { %v7175_v38 = vpop.f32.mrf.mxu2  ;;  %v7177_v42 = vpop.f32.mrf.mxu3 }
  0xd8   : > { %9056 = vst [vmem:[#allocation18_spill] sm:$0xff] %v7175_v38  ;;  %v7179_v23 = vpop.f32.mrf.mxu0  ;;  %v7181_v49 = vpop.f32.mrf.mxu1  ;;  %v693_v38 = vshll.u32 %v6926_v41, 16 }
  0xd9   : > { %9057 = vst [vmem:[#allocation19_spill] sm:$0xff] %v7177_v42 }
  0xdb   : > { %1398 = vmatmul.bf16.gmra.mxu1 %v656_v51  ;;  %2956 = vmatmul.bf16.gmra.mxu0 %v2407_v20  ;;  %v2061_v51 = vsel %vm620_vm0, %v2056_v50, %v2060_v7  ;;  %v659_v20 = vor.u32 %v657_v30, %v655_v17  ;;  %v927_v50 = vsel %vm916_vm1, %v924_v19, %v926_v58 }
  0xdc   : > { %1567 = vmatmul.bf16.gmra.mxu2 %v925_v54  ;;  %2787 = vmatmul.bf16.gmra.mxu3 %v7187_v57  ;;  %v663_v54 = vrot.slane %v661_v16, 1  ;;  %v2410_v45 = vrot.slane %v2061_v51, 1  ;;  %v7219_v30 = vsel %vm916_vm1, %v2283_v0, %v2285_v61  ;;  %v2066_v16 = vshll.u32 %v7205_v5, 16 }
  0xdd   : > { %9063 = vst [vmem:[#allocation25_spill] sm:$0xff] %v7219_v30  ;;  %v2064_v51 = vor.u32 %v2062_v31, %v2060_v7  ;;  %v665_v0 = vshrl.u32 %v7012_v26, 16  ;;  %v928_v7 = vrot.slane %v7030_v34, 1  ;;  %v2287_v31 = vrot.slane %v7173_v37, 1 }
  0xde   : > { %v664_v33 = vsel %vm620_vm0, %v659_v20, %v663_v54  ;;  %v2411_v17 = vsel %vm916_vm1, %v2406_v18, %v2410_v45  ;;  %v2070_v37 = vshrl.u32 %v7205_v5, 16 }
  0xdf   : > { %v7192_v8 = vpop.f32.mrf.mxu2  ;;  %v7194_v9 = vpop.f32.mrf.mxu3 }
  0xe0   : > { %9059 = vst [vmem:[#allocation21_spill] sm:$0xff] %v7192_v8  ;;  %v7196_v21 = vpop.f32.mrf.mxu0  ;;  %v7198_v25 = vpop.f32.mrf.mxu1 }
  0xe1   : > { %9060 = vst [vmem:[#allocation22_spill] sm:$0xff] %v7194_v9 }
  0xe7   : > { %v7207_v9 = vpop.f32.mrf.mxu2  ;;  %v7209_v42 = vpop.f32.mrf.mxu3 }
  0xe8   : > { %9061 = vst [vmem:[#allocation23_spill] sm:$0xff] %v7207_v9  ;;  %v7211_v60 = vpop.f32.mrf.mxu0  ;;  %v7213_v12 = vpop.f32.mrf.mxu1 }
  0xe9   : > { %9062 = vst [vmem:[#allocation24_spill] sm:$0xff] %v7209_v42  ;;  %v2068_v42 = vrot.slane %v2066_v16, 1  ;;  %v7237_v16 = vld [vmem:[#allocation2 + $0x48] sm:$0xff] }
  0xeb   : > { %1403 = vmatmul.bf16.gmra.mxu1 %v664_v33  ;;  %2961 = vmatmul.bf16.gmra.mxu0 %v2411_v17  ;;  %v2069_v33 = vsel %vm620_vm0, %v2064_v51, %v2068_v42  ;;  %v667_v17 = vor.u32 %v665_v0, %v663_v54  ;;  %v7251_v51 = vsel %vm916_vm1, %v2285_v61, %v2287_v31  ;;  %v2074_v0 = vshll.u32 %v7237_v16, 16 }
  0xec   : > { %1572 = vmatmul.bf16.gmra.mxu2 %v927_v50  ;;  %2792 = vmatmul.bf16.gmra.mxu3 %v7219_v30  ;;  %v671_v50 = vrot.slane %v669_v63, 1  ;;  %v2414_v44 = vrot.slane %v2069_v33, 1  ;;  %v929_v63 = vsel %vm916_vm1, %v926_v58, %v928_v7  ;;  %9068 = vst [vmem:[#allocation30_spill] sm:$0xff] %v7251_v51  ;;  %v2072_v33 = vor.u32 %v2070_v37, %v2068_v42 }
  0xed   : > { %v673_v61 = vshrl.u32 %v7030_v34, 16  ;;  %v930_v42 = vrot.slane %v7055_v55, 1  ;;  %v2289_v37 = vrot.slane %v7205_v5, 1  ;;  %v2078_v5 = vshrl.u32 %v7237_v16, 16 }
  0xee   : > { %v672_v48 = vsel %vm620_vm0, %v667_v17, %v671_v50  ;;  %v2415_v54 = vsel %vm916_vm1, %v2410_v45, %v2414_v44 }
  0xef   : > { %v7224_v11 = vpop.f32.mrf.mxu2  ;;  %v7226_v20 = vpop.f32.mrf.mxu3 }
  0xf0   : > { %9064 = vst [vmem:[#allocation26_spill] sm:$0xff] %v7224_v11  ;;  %v7228_v18 = vpop.f32.mrf.mxu0  ;;  %v7230_v19 = vpop.f32.mrf.mxu1 }
  0xf1   : > { %9065 = vst [vmem:[#allocation27_spill] sm:$0xff] %v7226_v20 }
  0xf7   : > { %v7239_v20 = vpop.f32.mrf.mxu2  ;;  %v7241_v30 = vpop.f32.mrf.mxu3 }
  0xf8   : > { %9066 = vst [vmem:[#allocation28_spill] sm:$0xff] %v7239_v20  ;;  %v7243_v57 = vpop.f32.mrf.mxu0  ;;  %v7245_v26 = vpop.f32.mrf.mxu1 }
  0xf9   : > { %9067 = vst [vmem:[#allocation29_spill] sm:$0xff] %v7241_v30  ;;  %v2076_v30 = vrot.slane %v2074_v0, 1  ;;  %v7269_v0 = vld [vmem:[#allocation2 + $0x50] sm:$0xff] }
  0xfb   : > { %1408 = vmatmul.bf16.gmra.mxu1 %v672_v48  ;;  %2966 = vmatmul.bf16.gmra.mxu0 %v2415_v54  ;;  %v2077_v48 = vsel %vm620_vm0, %v2072_v33, %v2076_v30  ;;  %v675_v54 = vor.u32 %v673_v61, %v671_v50  ;;  %v7283_v33 = vsel %vm916_vm1, %v2287_v31, %v2289_v37  ;;  %v2082_v61 = vshll.u32 %v7269_v0, 16 }
  0xfc   : > { %1577 = vmatmul.bf16.gmra.mxu2 %v929_v63  ;;  %2797 = vmatmul.bf16.gmra.mxu3 %v7251_v51  ;;  %v679_v63 = vrot.slane %v677_v6, 1  ;;  %v2418_v39 = vrot.slane %v2077_v48, 1  ;;  %v931_v6 = vsel %vm916_vm1, %v928_v7, %v930_v42  ;;  %9073 = vst [vmem:[#allocation35_spill] sm:$0xff] %v7283_v33  ;;  %v6517_v48 = vld [vmem:[%s9011_s2 + $0x1a8] sm:$0xff]  ;;  %v2080_v7 = vor.u32 %v2078_v5, %v2076_v30 }
  0xfd   : > { %v2084_v31 = vrot.slane %v2082_v61, 1  ;;  %4514 = vmatpush.bf16.msra.mxu2 %v6517_v48  ;;  %v6478_v30 = vld [vmem:[%s9011_s2 + $0x168] sm:$0xff] }
  0xfe   : > { %v680_v20 = vsel %vm620_vm0, %v675_v54, %v679_v63  ;;  %v2419_v50 = vsel %vm916_vm1, %v2414_v44, %v2418_v39  ;;  %v6525_v44 = vld [vmem:[%s9011_s2 + $0x1e8] sm:$0xff]  ;;  %3104 = vmatpush.bf16.msra.mxu1 %v6478_v30 }
  0xff   : > { %v7256_v24 = vpop.f32.mrf.mxu2  ;;  %v7258_v17 = vpop.f32.mrf.mxu3  ;;  %4683 = vmatpush.bf16.msra.mxu3 %v6525_v44  ;;  %v6533_v5 = vld [vmem:[%s9011_s2 + $0x228] sm:$0xff] }
 0x100   : > { %9069 = vst [vmem:[#allocation31_spill] sm:$0xff] %v7256_v24  ;;  %v7260_v45 = vpop.f32.mrf.mxu0  ;;  %v7262_v58 = vpop.f32.mrf.mxu1  ;;  %4852 = vmatpush.bf16.msra.mxu0 %v6533_v5 }
 0x101   : > { %9070 = vst [vmem:[#allocation32_spill] sm:$0xff] %v7258_v17 }
 0x107   : > { %v7271_v17 = vpop.f32.mrf.mxu2  ;;  %v7273_v51 = vpop.f32.mrf.mxu3 }
 0x108   : > { %9071 = vst [vmem:[#allocation33_spill] sm:$0xff] %v7271_v17  ;;  %v7275_v24 = vpop.f32.mrf.mxu0  ;;  %v7277_v34 = vpop.f32.mrf.mxu1  ;;  %v2085_v17 = vsel %vm620_vm0, %v2080_v7, %v2084_v31 }
 0x109   : > { %9072 = vst [vmem:[#allocation34_spill] sm:$0xff] %v7273_v51  ;;  %v2422_v44 = vrot.slane %v2085_v17, 1 }
 0x10b   : > { %1413 = vmatmul.bf16.gmra.mxu1 %v680_v20  ;;  %2971 = vmatmul.bf16.gmra.mxu0 %v2419_v50 }
 0x10c   : > { %1582 = vmatmul.bf16.gmra.mxu2 %v931_v6  ;;  %2802 = vmatmul.bf16.gmra.mxu3 %v7283_v33  ;;  %v681_v6 = vshrl.u32 %v7055_v55, 16  ;;  %v685_v33 = vshll.u32 %v6884_v22, 16  ;;  %v2291_v55 = vrot.slane %v7237_v16, 1  ;;  %v2086_v16 = vshrl.u32 %v7269_v0, 16 }
 0x10e   : > { %v683_v61 = vor.u32 %v681_v6, %v679_v63  ;;  %v687_v48 = vrot.slane %v685_v33, 1  ;;  %v2423_v63 = vsel %vm916_vm1, %v2418_v39, %v2422_v44  ;;  %v7327_v33 = vsel %vm916_vm1, %v2289_v37, %v2291_v55 }
 0x10f   : > { %v7294_v54 = vpop.f32.mrf.mxu2  ;;  %v7296_v51 = vpop.f32.mrf.mxu3  ;;  %9078 = vst [vmem:[#allocation40_spill] sm:$0xff] %v7327_v33  ;;  %v2088_v5 = vor.u32 %v2086_v16, %v2084_v31  ;;  %v689_v37 = vshrl.u32 %v6884_v22, 16  ;;  %v934_v31 = vrot.slane %v6926_v41, 1  ;;  %v2293_v16 = vrot.slane %v7269_v0, 1 }
 0x110   : > { %9074 = vst [vmem:[#allocation36_spill] sm:$0xff] %v7294_v54  ;;  %v7298_v20 = vpop.f32.mrf.mxu0  ;;  %v7300_v50 = vpop.f32.mrf.mxu1  ;;  %v7313_v54 = vld [vmem:[#allocation2 + $0x58] sm:$0xff]  ;;  %v688_v30 = vsel %vm620_vm0, %v683_v61, %v687_v48 }
 0x111   : > { %9075 = vst [vmem:[#allocation37_spill] sm:$0xff] %v7296_v51  ;;  %v932_v51 = vrot.slane %v6884_v22, 1  ;;  %v2090_v6 = vshll.u32 %v7313_v54, 16 }
 0x113   : > { %v933_v17 = vsel %vm916_vm1, %v930_v42, %v932_v51 }
 0x117   : > { %v7315_v7 = vpop.f32.mrf.mxu2  ;;  %v7317_v11 = vpop.f32.mrf.mxu3 }
 0x118   : > { %9076 = vst [vmem:[#allocation38_spill] sm:$0xff] %v7315_v7  ;;  %v7319_v9 = vpop.f32.mrf.mxu0  ;;  %v7321_v8 = vpop.f32.mrf.mxu1 }
 0x119   : > { %9077 = vst [vmem:[#allocation39_spill] sm:$0xff] %v7317_v11  ;;  %v2092_v11 = vrot.slane %v2090_v6, 1  ;;  %v7345_v6 = vld [vmem:[#allocation2 + $0x60] sm:$0xff] }
 0x11a   : > { %v2098_v0 = vshll.u32 %v7345_v6, 16 }
 0x11b   : > { %1418 = vmatmul.bf16.gmra.mxu1 %v688_v30  ;;  %2976 = vmatmul.bf16.gmra.mxu0 %v2423_v63  ;;  %v2093_v30 = vsel %vm620_vm0, %v2088_v5, %v2092_v11  ;;  %v691_v63 = vor.u32 %v689_v37, %v687_v48  ;;  %v935_v48 = vsel %vm916_vm1, %v932_v51, %v934_v31  ;;  %v2094_v5 = vshrl.u32 %v7313_v54, 16 }
 0x11c   : > { %1587 = vmatmul.bf16.gmra.mxu2 %v933_v17  ;;  %2807 = vmatmul.bf16.gmra.mxu3 %v7327_v33  ;;  %v695_v17 = vrot.slane %v693_v38, 1  ;;  %v2426_v59 = vrot.slane %v2093_v30, 1  ;;  %v7355_v38 = vsel %vm916_vm1, %v2291_v55, %v2293_v16  ;;  %v2100_v30 = vrot.slane %v2098_v0, 1 }
 0x11d   : > { %9083 = vst [vmem:[#allocation45_spill] sm:$0xff] %v7355_v38  ;;  %v2096_v37 = vor.u32 %v2094_v5, %v2092_v11  ;;  %v936_v5 = vrot.slane %v6948_v53, 1 }
 0x11e   : > { %v696_v22 = vsel %vm620_vm0, %v691_v63, %v695_v17  ;;  %v2427_v10 = vsel %vm916_vm1, %v2422_v44, %v2426_v59 }
 0x11f   : > { %v7332_v7 = vpop.f32.mrf.mxu2  ;;  %v7334_v61 = vpop.f32.mrf.mxu3 }
 0x120   : > { %9079 = vst [vmem:[#allocation41_spill] sm:$0xff] %v7332_v7  ;;  %v7336_v39 = vpop.f32.mrf.mxu0  ;;  %v7338_v42 = vpop.f32.mrf.mxu1 }
 0x121   : > { %9080 = vst [vmem:[#allocation42_spill] sm:$0xff] %v7334_v61 }
 0x127   : > { %v7347_v61 = vpop.f32.mrf.mxu2  ;;  %v7349_v33 = vpop.f32.mrf.mxu3 }
 0x128   : > { %9081 = vst [vmem:[#allocation43_spill] sm:$0xff] %v7347_v61  ;;  %v1384_v7 = vpop.f32.mrf.mxu1  ;;  %v2942_v32 = vpop.f32.mrf.mxu0 }
 0x129   : > { %9082 = vst [vmem:[#allocation44_spill] sm:$0xff] %v7349_v33  ;;  %v1385_v63 = vadd.f32 %v1384_v7, %v7072_v28  ;;  %v2295_v28 = vrot.slane %v7313_v54, 1  ;;  %v7370_v7 = vld [vmem:[#allocation2 + $0x68] sm:$0xff] }
 0x12b   : > { %1423 = vmatmul.bf16.gmra.mxu1 %v696_v22  ;;  %2981 = vmatmul.bf16.gmra.mxu0 %v2427_v10  ;;  %v701_v22 = vshll.u32 %v6948_v53, 16  ;;  %v2101_v10 = vsel %vm620_vm0, %v2096_v37, %v2100_v30  ;;  %v937_v37 = vsel %vm916_vm1, %v934_v31, %v936_v5  ;;  %v7381_v54 = vsel %vm916_vm1, %v2293_v16, %v2295_v28 }
 0x12c   : > { %1592 = vmatmul.bf16.gmra.mxu2 %v935_v48  ;;  %2812 = vmatmul.bf16.gmra.mxu3 %v7355_v38  ;;  %v699_v48 = vor.u32 %v697_v43, %v695_v17  ;;  %v2430_v11 = vrot.slane %v2101_v10, 1 }
 0x12d   : > { %v703_v38 = vrot.slane %v701_v22, 1  ;;  %v2102_v22 = vshrl.u32 %v7345_v6, 16 }
 0x12e   : > { %v2431_v17 = vsel %vm916_vm1, %v2426_v59, %v2430_v11 }
 0x12f   : > { %v1553_v33 = vpop.f32.mrf.mxu2  ;;  %v2773_v44 = vpop.f32.mrf.mxu3  ;;  %v704_v43 = vsel %vm620_vm0, %v699_v48, %v703_v38 }
 0x130   : > { %v7361_v61 = vadd.f32 %v1553_v33, %v1385_v63  ;;  %v7363_v51 = vadd.f32 %v2942_v32, %v2773_v44  ;;  %v1386_v55 = vpop.f32.mrf.mxu1  ;;  %v2944_v62 = vpop.f32.mrf.mxu0 }
 0x131   : > { %v1387_v32 = vadd.f32 %v1386_v55, %v7087_v46  ;;  %v2106_v46 = vshll.u32 %v7370_v7, 16 }
 0x132   : > { %9084 = vst [vmem:[#allocation46_spill] sm:$0xff] %v7361_v61 }
 0x133   : > { %v2108_v55 = vrot.slane %v2106_v46, 1 }
 0x137   : > { %v1555_v33 = vpop.f32.mrf.mxu2  ;;  %v2775_v0 = vpop.f32.mrf.mxu3 }
 0x138   : > { %v7373_v63 = vadd.f32 %v1555_v33, %v1387_v32  ;;  %v7375_v41 = vadd.f32 %v2944_v62, %v2775_v0  ;;  %v1389_v44 = vpop.f32.mrf.mxu1  ;;  %v2947_v61 = vpop.f32.mrf.mxu0  ;;  %v2104_v62 = vor.u32 %v2102_v22, %v2100_v30  ;;  %v705_v0 = vshrl.u32 %v6948_v53, 16 }
 0x139   : > { %v1390_v10 = vadd.f32 %v1389_v44, %v7102_v2  ;;  %v938_v22 = vrot.slane %v6970_v1, 1  ;;  %v2297_v2 = vrot.slane %v7345_v6, 1  ;;  %v7396_v44 = vld [vmem:[#allocation2 + $0x70] sm:$0xff] }
 0x13a   : > { %9085 = vst [vmem:[#allocation47_spill] sm:$0xff] %v7373_v63 }
 0x13b   : > { %1428 = vmatmul.bf16.gmra.mxu1 %v704_v43  ;;  %2986 = vmatmul.bf16.gmra.mxu0 %v2431_v17  ;;  %v709_v43 = vshll.u32 %v6970_v1, 16  ;;  %v2109_v17 = vsel %vm620_vm0, %v2104_v62, %v2108_v55  ;;  %v7407_v6 = vsel %vm916_vm1, %v2295_v28, %v2297_v2 }
 0x13c   : > { %1597 = vmatmul.bf16.gmra.mxu2 %v937_v37  ;;  %2817 = vmatmul.bf16.gmra.mxu3 %v7381_v54  ;;  %v707_v37 = vor.u32 %v705_v0, %v703_v38  ;;  %v2434_v30 = vrot.slane %v2109_v17, 1  ;;  %v939_v0 = vsel %vm916_vm1, %v936_v5, %v938_v22 }
 0x13d   : > { %v711_v63 = vrot.slane %v709_v43, 1  ;;  %v2110_v43 = vshrl.u32 %v7370_v7, 16 }
 0x13e   : > { %v2435_v62 = vsel %vm916_vm1, %v2430_v11, %v2434_v30  ;;  %v6524_v11 = vld [vmem:[%s9011_s2 + $0x1e0] sm:$0xff] }
 0x13f   : > { %v1558_v48 = vpop.f32.mrf.mxu2  ;;  %v2778_v59 = vpop.f32.mrf.mxu3  ;;  %v712_v38 = vsel %vm620_vm0, %v707_v37, %v711_v63  ;;  %v2112_v5 = vor.u32 %v2110_v43, %v2108_v55  ;;  %4684 = vmatpush.bf16.msra.mxu3 %v6524_v11  ;;  %v6532_v55 = vld [vmem:[%s9011_s2 + $0x220] sm:$0xff] }
 0x140   : > { %v7387_v32 = vadd.f32 %v1558_v48, %v1390_v10  ;;  %v7389_v31 = vadd.f32 %v2947_v61, %v2778_v59  ;;  %v1391_v16 = vpop.f32.mrf.mxu1  ;;  %v2949_v33 = vpop.f32.mrf.mxu0  ;;  %4853 = vmatpush.bf16.msra.mxu0 %v6532_v55 }
 0x141   : > { %v1392_v61 = vadd.f32 %v1391_v16, %v7120_v14  ;;  %v2114_v14 = vshll.u32 %v7396_v44, 16  ;;  %v6516_v16 = vld [vmem:[%s9011_s2 + $0x1a0] sm:$0xff] }
 0x142   : > { %9086 = vst [vmem:[#allocation48_spill] sm:$0xff] %v7387_v32  ;;  %4515 = vmatpush.bf16.msra.mxu2 %v6516_v16  ;;  %v7434_v16 = vld [vmem:[#allocation2 + $0x78] sm:$0xff] }
 0x143   : > { %v2116_v28 = vrot.slane %v2114_v14, 1  ;;  %v940_v14 = vrot.slane %v6992_v13, 1 }
 0x147   : > { %v1560_v46 = vpop.f32.mrf.mxu2  ;;  %v2780_v10 = vpop.f32.mrf.mxu3 }
 0x148   : > { %v7399_v48 = vadd.f32 %v1560_v46, %v1392_v61  ;;  %v7401_v53 = vadd.f32 %v2949_v33, %v2780_v10  ;;  %v1394_v59 = vpop.f32.mrf.mxu1  ;;  %v2952_v32 = vpop.f32.mrf.mxu0 }
 0x149   : > { %v1395_v33 = vadd.f32 %v1394_v59, %v7135_v36  ;;  %v6477_v36 = vld [vmem:[%s9011_s2 + $0x160] sm:$0xff] }
 0x14a   : > { %9087 = vst [vmem:[#allocation49_spill] sm:$0xff] %v7399_v48  ;;  %v2117_v48 = vsel %vm620_vm0, %v2112_v5, %v2116_v28  ;;  %3105 = vmatpush.bf16.msra.mxu1 %v6477_v36 }
 0x14b   : > { %1433 = vmatmul.bf16.gmra.mxu1 %v712_v38  ;;  %2991 = vmatmul.bf16.gmra.mxu0 %v2435_v62  ;;  %v713_v62 = vshrl.u32 %v6970_v1, 16  ;;  %v2438_v43 = vrot.slane %v2117_v48, 1  ;;  %v2299_v1 = vrot.slane %v7370_v7, 1 }
 0x14c   : > { %1602 = vmatmul.bf16.gmra.mxu2 %v939_v0  ;;  %2822 = vmatmul.bf16.gmra.mxu3 %v7407_v6  ;;  %v717_v0 = vshll.u32 %v6992_v13, 16 }
 0x14d   : > { %v2439_v48 = vsel %vm916_vm1, %v2434_v30, %v2438_v43  ;;  %v7445_v7 = vsel %vm916_vm1, %v2297_v2, %v2299_v1 }
 0x14e   : > { %v719_v59 = vrot.slane %v717_v0, 1  ;;  %v2118_v0 = vshrl.u32 %v7396_v44, 16 }
 0x14f   : > { %v1563_v17 = vpop.f32.mrf.mxu2  ;;  %v2783_v37 = vpop.f32.mrf.mxu3 }
 0x150   : > { %v7419_v61 = vadd.f32 %v1563_v17, %v1395_v33  ;;  %v7421_v46 = vadd.f32 %v2952_v32, %v2783_v37  ;;  %v1396_v10 = vpop.f32.mrf.mxu1  ;;  %v2954_v38 = vpop.f32.mrf.mxu0  ;;  %v715_v32 = vor.u32 %v713_v62, %v711_v63  ;;  %v941_v62 = vsel %vm916_vm1, %v938_v22, %v940_v14 }
 0x151   : > { %v1397_v11 = vadd.f32 %v1396_v10, %v7158_v3  ;;  %v2122_v3 = vshll.u32 %v7434_v16, 16  ;;  %v2120_v10 = vor.u32 %v2118_v0, %v2116_v28  ;;  %v942_v0 = vrot.slane %v7014_v27, 1 }
 0x152   : > { %9088 = vst [vmem:[#allocation50_spill] sm:$0xff] %v7419_v61  ;;  %v720_v63 = vsel %vm620_vm0, %v715_v32, %v719_v59 }
 0x157   : > { %v1565_v5 = vpop.f32.mrf.mxu2  ;;  %v2785_v33 = vpop.f32.mrf.mxu3 }
 0x158   : > { %v7437_v17 = vadd.f32 %v1565_v5, %v1397_v11  ;;  %v7439_v37 = vadd.f32 %v2954_v38, %v2785_v33  ;;  %v1399_v61 = vpop.f32.mrf.mxu1  ;;  %v2957_v36 = vpop.f32.mrf.mxu0  ;;  %v2124_v38 = vrot.slane %v2122_v3, 1  ;;  %v721_v33 = vshrl.u32 %v6992_v13, 16 }
 0x159   : > { %v1400_v55 = vadd.f32 %v1399_v61, %v7179_v23  ;;  %v2301_v23 = vrot.slane %v7396_v44, 1  ;;  %v7460_v61 = vld [vmem:[#allocation2 + $0x80] sm:$0xff] }
 0x15a   : > { %9089 = vst [vmem:[#allocation51_spill] sm:$0xff] %v7437_v17 }
 0x15b   : > { %1438 = vmatmul.bf16.gmra.mxu1 %v720_v63  ;;  %2996 = vmatmul.bf16.gmra.mxu0 %v2439_v48  ;;  %v725_v63 = vshll.u32 %v7014_v27, 16  ;;  %v2125_v48 = vsel %vm620_vm0, %v2120_v10, %v2124_v38  ;;  %v7471_v44 = vsel %vm916_vm1, %v2299_v1, %v2301_v23 }
 0x15c   : > { %1607 = vmatmul.bf16.gmra.mxu2 %v941_v62  ;;  %2827 = vmatmul.bf16.gmra.mxu3 %v7445_v7  ;;  %v723_v62 = vor.u32 %v721_v33, %v719_v59  ;;  %v2442_v28 = vrot.slane %v2125_v48, 1  ;;  %v943_v33 = vsel %vm916_vm1, %v940_v14, %v942_v0 }
 0x15d   : > { %v727_v17 = vrot.slane %v725_v63, 1  ;;  %v2126_v63 = vshrl.u32 %v7434_v16, 16 }
 0x15e   : > { %v2443_v10 = vsel %vm916_vm1, %v2438_v43, %v2442_v28 }
 0x15f   : > { %v1568_v32 = vpop.f32.mrf.mxu2  ;;  %v2788_v30 = vpop.f32.mrf.mxu3  ;;  %v728_v59 = vsel %vm620_vm0, %v723_v62, %v727_v17 }
 0x160   : > { %v7451_v11 = vadd.f32 %v1568_v32, %v1400_v55  ;;  %v7453_v22 = vadd.f32 %v2957_v36, %v2788_v30  ;;  %v1401_v2 = vpop.f32.mrf.mxu1  ;;  %v2959_v5 = vpop.f32.mrf.mxu0 }
 0x161   : > { %v1402_v36 = vadd.f32 %v1401_v2, %v7196_v21  ;;  %v2130_v21 = vshll.u32 %v7460_v61, 16  ;;  %v2128_v2 = vor.u32 %v2126_v63, %v2124_v38  ;;  %v944_v63 = vrot.slane %v7032_v35, 1 }
 0x162   : > { %9090 = vst [vmem:[#allocation52_spill] sm:$0xff] %v7451_v11 }
 0x167   : > { %v1570_v3 = vpop.f32.mrf.mxu2  ;;  %v2790_v55 = vpop.f32.mrf.mxu3 }
 0x168   : > { %v7463_v32 = vadd.f32 %v1570_v3, %v1402_v36  ;;  %v7465_v13 = vadd.f32 %v2959_v5, %v2790_v55  ;;  %v1404_v30 = vpop.f32.mrf.mxu1  ;;  %v2962_v11 = vpop.f32.mrf.mxu0  ;;  %v2132_v5 = vrot.slane %v2130_v21, 1  ;;  %v729_v55 = vshrl.u32 %v7014_v27, 16 }
 0x169   : > { %v1405_v48 = vadd.f32 %v1404_v30, %v7211_v60  ;;  %v2303_v60 = vrot.slane %v7434_v16, 1  ;;  %v7486_v30 = vld [vmem:[#allocation2 + $0x88] sm:$0xff] }
 0x16a   : > { %9091 = vst [vmem:[#allocation53_spill] sm:$0xff] %v7463_v32 }
 0x16b   : > { %1443 = vmatmul.bf16.gmra.mxu1 %v728_v59  ;;  %3001 = vmatmul.bf16.gmra.mxu0 %v2443_v10  ;;  %v733_v59 = vshll.u32 %v7032_v35, 16  ;;  %v2133_v10 = vsel %vm620_vm0, %v2128_v2, %v2132_v5  ;;  %v945_v35 = vsel %vm916_vm1, %v942_v0, %v944_v63  ;;  %v7497_v16 = vsel %vm916_vm1, %v2301_v23, %v2303_v60 }
 0x16c   : > { %1612 = vmatmul.bf16.gmra.mxu2 %v943_v33  ;;  %2832 = vmatmul.bf16.gmra.mxu3 %v7471_v44  ;;  %v731_v33 = vor.u32 %v729_v55, %v727_v17  ;;  %v2446_v38 = vrot.slane %v2133_v10, 1  ;;  %v2134_v55 = vshrl.u32 %v7460_v61, 16 }
 0x16d   : > { %v735_v32 = vrot.slane %v733_v59, 1 }
 0x16e   : > { %v2447_v2 = vsel %vm916_vm1, %v2442_v28, %v2446_v38 }
 0x16f   : > { %v1573_v62 = vpop.f32.mrf.mxu2  ;;  %v2793_v43 = vpop.f32.mrf.mxu3  ;;  %v736_v17 = vsel %vm620_vm0, %v731_v33, %v735_v32 }
 0x170   : > { %v7477_v36 = vadd.f32 %v1573_v62, %v1405_v48  ;;  %v7479_v14 = vadd.f32 %v2962_v11, %v2793_v43  ;;  %v1406_v1 = vpop.f32.mrf.mxu1  ;;  %v2964_v3 = vpop.f32.mrf.mxu0 }
 0x171   : > { %v1407_v11 = vadd.f32 %v1406_v1, %v7228_v18  ;;  %v2138_v18 = vshll.u32 %v7486_v30, 16  ;;  %v2136_v1 = vor.u32 %v2134_v55, %v2132_v5  ;;  %v946_v55 = vrot.slane %v7057_v56, 1 }
 0x172   : > { %9092 = vst [vmem:[#allocation54_spill] sm:$0xff] %v7477_v36 }
 0x177   : > { %v1575_v21 = vpop.f32.mrf.mxu2  ;;  %v2795_v48 = vpop.f32.mrf.mxu3 }
 0x178   : > { %v7489_v62 = vadd.f32 %v1575_v21, %v1407_v11  ;;  %v7491_v27 = vadd.f32 %v2964_v3, %v2795_v48  ;;  %v1409_v43 = vpop.f32.mrf.mxu1  ;;  %v2967_v36 = vpop.f32.mrf.mxu0  ;;  %v2140_v3 = vrot.slane %v2138_v18, 1  ;;  %v6768_v21 = vld [vmem:[#allocation2 + $0x70] sm:$0xff] }
 0x179   : > { %v1410_v59 = vadd.f32 %v1409_v43, %v7243_v57  ;;  %v737_v48 = vshrl.u32 %v6768_v21, 16  ;;  %v2305_v57 = vrot.slane %v7460_v61, 1  ;;  %v7511_v43 = vld [vmem:[#allocation2 + $0x90] sm:$0xff] }
 0x17a   : > { %9093 = vst [vmem:[#allocation55_spill] sm:$0xff] %v7489_v62 }
 0x17b   : > { %1448 = vmatmul.bf16.gmra.mxu1 %v736_v17  ;;  %3006 = vmatmul.bf16.gmra.mxu0 %v2447_v2  ;;  %v741_v17 = vshll.u32 %v7057_v56, 16  ;;  %v2141_v2 = vsel %vm620_vm0, %v2136_v1, %v2140_v3  ;;  %v947_v56 = vsel %vm916_vm1, %v944_v63, %v946_v55  ;;  %v7522_v61 = vsel %vm916_vm1, %v2303_v60, %v2305_v57 }
 0x17c   : > { %1617 = vmatmul.bf16.gmra.mxu2 %v945_v35  ;;  %2837 = vmatmul.bf16.gmra.mxu3 %v7497_v16  ;;  %v739_v35 = vor.u32 %v737_v48, %v735_v32  ;;  %v2450_v5 = vrot.slane %v2141_v2, 1  ;;  %v2142_v48 = vshrl.u32 %v7486_v30, 16 }
 0x17d   : > { %v743_v62 = vrot.slane %v741_v17, 1 }
 0x17e   : > { %v2451_v1 = vsel %vm916_vm1, %v2446_v38, %v2450_v5  ;;  %v6523_v38 = vld [vmem:[%s9011_s2 + $0x1d8] sm:$0xff]  ;;  %v2144_v63 = vor.u32 %v2142_v48, %v2140_v3 }
 0x17f   : > { %v1578_v10 = vpop.f32.mrf.mxu2  ;;  %v2798_v28 = vpop.f32.mrf.mxu3  ;;  %v744_v32 = vsel %vm620_vm0, %v739_v35, %v743_v62  ;;  %4685 = vmatpush.bf16.msra.mxu3 %v6523_v38  ;;  %v6531_v3 = vld [vmem:[%s9011_s2 + $0x218] sm:$0xff] }
 0x180   : > { %v7503_v33 = vadd.f32 %v1578_v10, %v1410_v59  ;;  %v7505_v0 = vadd.f32 %v2967_v36, %v2798_v28  ;;  %v1411_v23 = vpop.f32.mrf.mxu1  ;;  %v2969_v11 = vpop.f32.mrf.mxu0  ;;  %4854 = vmatpush.bf16.msra.mxu0 %v6531_v3  ;;  %v7546_v38 = vld [vmem:[#allocation2 + $0x98] sm:$0xff] }
 0x181   : > { %v1412_v36 = vadd.f32 %v1411_v23, %v7260_v45  ;;  %v2146_v45 = vshll.u32 %v7511_v43, 16  ;;  %v6515_v23 = vld [vmem:[%s9011_s2 + $0x198] sm:$0xff] }
 0x182   : > { %9094 = vst [vmem:[#allocation56_spill] sm:$0xff] %v7503_v33  ;;  %4516 = vmatpush.bf16.msra.mxu2 %v6515_v23  ;;  %v2307_v23 = vrot.slane %v7486_v30, 1 }
 0x183   : > { %v2148_v60 = vrot.slane %v2146_v45, 1 }
 0x184   : > { %v7557_v30 = vsel %vm916_vm1, %v2305_v57, %v2307_v23 }
 0x187   : > { %v1580_v18 = vpop.f32.mrf.mxu2  ;;  %v2800_v59 = vpop.f32.mrf.mxu3 }
 0x188   : > { %v7514_v10 = vadd.f32 %v1580_v18, %v1412_v36  ;;  %v7516_v28 = vadd.f32 %v2969_v11, %v2800_v59  ;;  %v1414_v21 = vpop.f32.mrf.mxu1  ;;  %v2972_v33 = vpop.f32.mrf.mxu0 }
 0x189   : > { %v1415_v11 = vadd.f32 %v1414_v21, %v7275_v24  ;;  %v6476_v24 = vld [vmem:[%s9011_s2 + $0x158] sm:$0xff] }
 0x18a   : > { %9095 = vst [vmem:[#allocation57_spill] sm:$0xff] %v7514_v10  ;;  %3106 = vmatpush.bf16.msra.mxu1 %v6476_v24 }
 0x18b   : > { %9096 = vst [vmem:[#allocation58_spill] sm:$0xff] %v7516_v28  ;;  %1453 = vmatmul.bf16.gmra.mxu1 %v744_v32  ;;  %3011 = vmatmul.bf16.gmra.mxu0 %v2451_v1  ;;  %v6769_v32 = vld [vmem:[#allocation2 + $0x78] sm:$0xff]  ;;  %v2149_v28 = vsel %vm620_vm0, %v2144_v63, %v2148_v60 }
 0x18c   : > { %1622 = vmatmul.bf16.gmra.mxu2 %v947_v56  ;;  %2842 = vmatmul.bf16.gmra.mxu3 %v7522_v61  ;;  %v745_v1 = vshrl.u32 %v6769_v32, 16  ;;  %v6770_v56 = vld [vmem:[#allocation2 + $0x80] sm:$0xff]  ;;  %v2454_v48 = vrot.slane %v2149_v28, 1  ;;  %v2150_v28 = vshrl.u32 %v7511_v43, 16 }
 0x18d   : > { %v749_v10 = vshll.u32 %v6770_v56, 16  ;;  %v948_v45 = vrot.slane %v6770_v56, 1 }
 0x18f   : > { %v1583_v17 = vpop.f32.mrf.mxu2  ;;  %v2803_v2 = vpop.f32.mrf.mxu3  ;;  %v751_v21 = vrot.slane %v749_v10, 1  ;;  %v949_v10 = vsel %vm916_vm1, %v946_v55, %v948_v45 }
 0x190   : > { %v7534_v35 = vadd.f32 %v1583_v17, %v1415_v11  ;;  %v7536_v36 = vadd.f32 %v2972_v33, %v2803_v2  ;;  %v1416_v18 = vpop.f32.mrf.mxu1  ;;  %v2974_v59 = vpop.f32.mrf.mxu0  ;;  %v747_v33 = vor.u32 %v745_v1, %v743_v62  ;;  %v2455_v62 = vsel %vm916_vm1, %v2450_v5, %v2454_v48 }
 0x191   : > { %v1417_v63 = vadd.f32 %v1416_v18, %v7298_v20  ;;  %v2154_v20 = vshll.u32 %v7546_v38, 16  ;;  %v2152_v18 = vor.u32 %v2150_v28, %v2148_v60  ;;  %v2309_v28 = vrot.slane %v7511_v43, 1 }
 0x192   : > { %9097 = vst [vmem:[#allocation59_spill] sm:$0xff] %v7534_v35  ;;  %v752_v24 = vsel %vm620_vm0, %v747_v33, %v751_v21 }
 0x193   : > { %9098 = vst [vmem:[#allocation60_spill] sm:$0xff] %v7536_v36  ;;  %v7580_v43 = vsel %vm916_vm1, %v2307_v23, %v2309_v28 }
 0x197   : > { %v1585_v11 = vpop.f32.mrf.mxu2  ;;  %v2805_v17 = vpop.f32.mrf.mxu3 }
 0x198   : > { %v7549_v2 = vadd.f32 %v1585_v11, %v1417_v63  ;;  %v7551_v32 = vadd.f32 %v2974_v59, %v2805_v17  ;;  %v1419_v35 = vpop.f32.mrf.mxu1  ;;  %v2977_v36 = vpop.f32.mrf.mxu0  ;;  %v2156_v59 = vrot.slane %v2154_v20, 1  ;;  %v753_v11 = vshrl.u32 %v6770_v56, 16  ;;  %v6771_v17 = vld [vmem:[#allocation2 + $0x88] sm:$0xff] }
 0x199   : > { %v1420_v1 = vadd.f32 %v1419_v35, %v7319_v9  ;;  %v950_v60 = vrot.slane %v6771_v17, 1  ;;  %v7569_v9 = vld [vmem:[#allocation2 + $0xa0] sm:$0xff] }
 0x19a   : > { %9099 = vst [vmem:[#allocation61_spill] sm:$0xff] %v7549_v2  ;;  %v757_v2 = vshll.u32 %v6771_v17, 16 }
 0x19b   : > { %9100 = vst [vmem:[#allocation62_spill] sm:$0xff] %v7551_v32  ;;  %1458 = vmatmul.bf16.gmra.mxu1 %v752_v24  ;;  %3016 = vmatmul.bf16.gmra.mxu0 %v2455_v62  ;;  %v2157_v24 = vsel %vm620_vm0, %v2152_v18, %v2156_v59  ;;  %v755_v62 = vor.u32 %v753_v11, %v751_v21  ;;  %v2158_v11 = vshrl.u32 %v7546_v38, 16 }
 0x19c   : > { %1627 = vmatmul.bf16.gmra.mxu2 %v949_v10  ;;  %2847 = vmatmul.bf16.gmra.mxu3 %v7557_v30  ;;  %v759_v10 = vrot.slane %v757_v2, 1  ;;  %v2458_v32 = vrot.slane %v2157_v24, 1  ;;  %v951_v2 = vsel %vm916_vm1, %v948_v45, %v950_v60 }
 0x19e   : > { %v760_v18 = vsel %vm620_vm0, %v755_v62, %v759_v10  ;;  %v2459_v21 = vsel %vm916_vm1, %v2454_v48, %v2458_v32 }
 0x19f   : > { %v1588_v3 = vpop.f32.mrf.mxu2  ;;  %v2808_v5 = vpop.f32.mrf.mxu3 }
 0x1a0   : > { %v7563_v33 = vadd.f32 %v1588_v3, %v1420_v1  ;;  %v7565_v55 = vadd.f32 %v2977_v36, %v2808_v5  ;;  %v1421_v57 = vpop.f32.mrf.mxu1  ;;  %v2979_v63 = vpop.f32.mrf.mxu0 }
 0x1a1   : > { %v1422_v35 = vadd.f32 %v1421_v57, %v7336_v39  ;;  %v2162_v39 = vshll.u32 %v7569_v9, 16  ;;  %v2160_v57 = vor.u32 %v2158_v11, %v2156_v59  ;;  %v2311_v11 = vrot.slane %v7546_v38, 1 }
 0x1a2   : > { %9101 = vst [vmem:[#allocation63_spill] sm:$0xff] %v7563_v33 }
 0x1a3   : > { %v7603_v38 = vsel %vm916_vm1, %v2309_v28, %v2311_v11 }
 0x1a7   : > { %v1590_v20 = vpop.f32.mrf.mxu2  ;;  %v2810_v36 = vpop.f32.mrf.mxu3 }
 0x1a8   : > { %v7572_v1 = vadd.f32 %v1590_v20, %v1422_v35  ;;  %v7574_v3 = vadd.f32 %v2979_v63, %v2810_v36  ;;  %v1424_v56 = vpop.f32.mrf.mxu1  ;;  %v2982_v5 = vpop.f32.mrf.mxu0  ;;  %v2164_v63 = vrot.slane %v2162_v39, 1  ;;  %v761_v36 = vshrl.u32 %v6771_v17, 16 }
 0x1a9   : > { %v1425_v24 = vadd.f32 %v1424_v56, %v7074_v29  ;;  %v7592_v29 = vld [vmem:[#allocation2 + $0xa8] sm:$0xff] }
 0x1aa   : > { %9102 = vst [vmem:[#allocation64_spill] sm:$0xff] %v7572_v1  ;;  %v6772_v1 = vld [vmem:[#allocation2 + $0x90] sm:$0xff] }
 0x1ab   : > { %9103 = vst [vmem:[#allocation65_spill] sm:$0xff] %v7574_v3  ;;  %1463 = vmatmul.bf16.gmra.mxu1 %v760_v18  ;;  %3021 = vmatmul.bf16.gmra.mxu0 %v2459_v21  ;;  %v765_v3 = vshll.u32 %v6772_v1, 16  ;;  %v2165_v18 = vsel %vm620_vm0, %v2160_v57, %v2164_v63  ;;  %v763_v21 = vor.u32 %v761_v36, %v759_v10  ;;  %v952_v59 = vrot.slane %v6772_v1, 1 }
 0x1ac   : > { %1632 = vmatmul.bf16.gmra.mxu2 %v951_v2  ;;  %2852 = vmatmul.bf16.gmra.mxu3 %v7580_v43  ;;  %v2462_v33 = vrot.slane %v2165_v18, 1  ;;  %v2166_v36 = vshrl.u32 %v7569_v9, 16 }
 0x1ad   : > { %v767_v2 = vrot.slane %v765_v3, 1  ;;  %v953_v3 = vsel %vm916_vm1, %v950_v60, %v952_v59 }
 0x1ae   : > { %v2463_v10 = vsel %vm916_vm1, %v2458_v32, %v2462_v33 }
 0x1af   : > { %v1593_v62 = vpop.f32.mrf.mxu2  ;;  %v2813_v48 = vpop.f32.mrf.mxu3  ;;  %v768_v57 = vsel %vm620_vm0, %v763_v21, %v767_v2 }
 0x1b0   : > { %v7586_v35 = vadd.f32 %v1593_v62, %v1425_v24  ;;  %v7588_v45 = vadd.f32 %v2982_v5, %v2813_v48  ;;  %v1426_v23 = vpop.f32.mrf.mxu1  ;;  %v2984_v20 = vpop.f32.mrf.mxu0 }
 0x1b1   : > { %v1427_v56 = vadd.f32 %v1426_v23, %v7089_v47  ;;  %v2170_v47 = vshll.u32 %v7592_v29, 16  ;;  %v2168_v23 = vor.u32 %v2166_v36, %v2164_v63 }
 0x1b7   : > { %v1595_v39 = vpop.f32.mrf.mxu2  ;;  %v2815_v5 = vpop.f32.mrf.mxu3 }
 0x1b8   : > { %v7595_v24 = vadd.f32 %v1595_v39, %v1427_v56  ;;  %v7597_v62 = vadd.f32 %v2984_v20, %v2815_v5  ;;  %v1429_v17 = vpop.f32.mrf.mxu1  ;;  %v2987_v48 = vpop.f32.mrf.mxu0  ;;  %v2172_v20 = vrot.slane %v2170_v47, 1  ;;  %v769_v5 = vshrl.u32 %v6772_v1, 16  ;;  %v7619_v47 = vld [vmem:[#allocation2 + $0xb0] sm:$0xff] }
 0x1b9   : > { %v1430_v18 = vadd.f32 %v1429_v17, %v7104_v40  ;;  %v2313_v17 = vrot.slane %v7569_v9, 1 }
 0x1ba   : > { %9104 = vst [vmem:[#allocation66_spill] sm:$0xff] %v7595_v24  ;;  %v7613_v24 = vld [vmem:[#allocation2 + $0x98] sm:$0xff] }
 0x1bb   : > { %1468 = vmatmul.bf16.gmra.mxu1 %v768_v57  ;;  %3026 = vmatmul.bf16.gmra.mxu0 %v2463_v10  ;;  %v773_v57 = vshll.u32 %v7613_v24, 16  ;;  %v2173_v10 = vsel %vm620_vm0, %v2168_v23, %v2172_v20  ;;  %v954_v40 = vrot.slane %v7613_v24, 1  ;;  %v7630_v9 = vsel %vm916_vm1, %v2311_v11, %v2313_v17 }
 0x1bc   : > { %1637 = vmatmul.bf16.gmra.mxu2 %v953_v3  ;;  %2857 = vmatmul.bf16.gmra.mxu3 %v7603_v38  ;;  %v771_v3 = vor.u32 %v769_v5, %v767_v2  ;;  %v2466_v36 = vrot.slane %v2173_v10, 1 }
 0x1bd   : > { %v775_v63 = vrot.slane %v773_v57, 1  ;;  %v955_v5 = vsel %vm916_vm1, %v952_v59, %v954_v40  ;;  %v2174_v57 = vshrl.u32 %v7592_v29, 16 }
 0x1be   : > { %v2467_v23 = vsel %vm916_vm1, %v2462_v33, %v2466_v36  ;;  %v6522_v33 = vld [vmem:[%s9011_s2 + $0x1d0] sm:$0xff] }
 0x1bf   : > { %v1598_v21 = vpop.f32.mrf.mxu2  ;;  %v2818_v32 = vpop.f32.mrf.mxu3  ;;  %v776_v2 = vsel %vm620_vm0, %v771_v3, %v775_v63  ;;  %v2176_v59 = vor.u32 %v2174_v57, %v2172_v20  ;;  %4686 = vmatpush.bf16.msra.mxu3 %v6522_v33  ;;  %v6530_v20 = vld [vmem:[%s9011_s2 + $0x210] sm:$0xff] }
 0x1c0   : > { %v7609_v56 = vadd.f32 %v1598_v21, %v1430_v18  ;;  %v7611_v60 = vadd.f32 %v2987_v48, %v2818_v32  ;;  %v1431_v28 = vpop.f32.mrf.mxu1  ;;  %v2989_v39 = vpop.f32.mrf.mxu0  ;;  %4855 = vmatpush.bf16.msra.mxu0 %v6530_v20 }
 0x1c1   : > { %v1432_v48 = vadd.f32 %v1431_v28, %v7122_v15  ;;  %v2178_v15 = vshll.u32 %v7619_v47, 16  ;;  %v6514_v28 = vld [vmem:[%s9011_s2 + $0x190] sm:$0xff] }
 0x1c2   : > { %9105 = vst [vmem:[#allocation67_spill] sm:$0xff] %v7609_v56  ;;  %4517 = vmatpush.bf16.msra.mxu2 %v6514_v28  ;;  %v7655_v28 = vld [vmem:[#allocation2 + $0xb8] sm:$0xff] }
 0x1c3   : > { %9106 = vst [vmem:[#allocation68_spill] sm:$0xff] %v7611_v60  ;;  %v2180_v11 = vrot.slane %v2178_v15, 1 }
 0x1c7   : > { %v1600_v18 = vpop.f32.mrf.mxu2  ;;  %v2820_v21 = vpop.f32.mrf.mxu3 }
 0x1c8   : > { %v7622_v1 = vadd.f32 %v1600_v18, %v1432_v48  ;;  %v7624_v32 = vadd.f32 %v2989_v39, %v2820_v21  ;;  %v1434_v56 = vpop.f32.mrf.mxu1  ;;  %v2992_v60 = vpop.f32.mrf.mxu0 }
 0x1c9   : > { %v1435_v39 = vadd.f32 %v1434_v56, %v7137_v52  ;;  %v6475_v52 = vld [vmem:[%s9011_s2 + $0x150] sm:$0xff] }
 0x1ca   : > { %9107 = vst [vmem:[#allocation69_spill] sm:$0xff] %v7622_v1  ;;  %3107 = vmatpush.bf16.msra.mxu1 %v6475_v52 }
 0x1cb   : > { %9108 = vst [vmem:[#allocation70_spill] sm:$0xff] %v7624_v32  ;;  %1473 = vmatmul.bf16.gmra.mxu1 %v776_v2  ;;  %3031 = vmatmul.bf16.gmra.mxu0 %v2467_v23  ;;  %v777_v23 = vshrl.u32 %v7613_v24, 16  ;;  %v2181_v32 = vsel %vm620_vm0, %v2176_v59, %v2180_v11  ;;  %v2315_v24 = vrot.slane %v7592_v29, 1 }
 0x1cc   : > { %1642 = vmatmul.bf16.gmra.mxu2 %v955_v5  ;;  %2862 = vmatmul.bf16.gmra.mxu3 %v7630_v9  ;;  %v6774_v5 = vld [vmem:[#allocation2 + $0xa0] sm:$0xff]  ;;  %v2470_v57 = vrot.slane %v2181_v32, 1  ;;  %v2182_v32 = vshrl.u32 %v7619_v47, 16 }
 0x1cd   : > { %v781_v1 = vshll.u32 %v6774_v5, 16  ;;  %v779_v56 = vor.u32 %v777_v23, %v775_v63  ;;  %v956_v15 = vrot.slane %v6774_v5, 1  ;;  %v7666_v29 = vsel %vm916_vm1, %v2313_v17, %v2315_v24 }
 0x1ce   : > { %v2471_v63 = vsel %vm916_vm1, %v2466_v36, %v2470_v57 }
 0x1cf   : > { %v1603_v10 = vpop.f32.mrf.mxu2  ;;  %v2823_v3 = vpop.f32.mrf.mxu3 }
 0x1d0   : > { %v7642_v48 = vadd.f32 %v1603_v10, %v1435_v39  ;;  %v7644_v18 = vadd.f32 %v2992_v60, %v2823_v3  ;;  %v1436_v21 = vpop.f32.mrf.mxu1  ;;  %v2994_v2 = vpop.f32.mrf.mxu0  ;;  %v783_v60 = vrot.slane %v781_v1, 1  ;;  %v957_v1 = vsel %vm916_vm1, %v954_v40, %v956_v15 }
 0x1d1   : > { %v1437_v33 = vadd.f32 %v1436_v21, %v7160_v4  ;;  %v2186_v4 = vshll.u32 %v7655_v28, 16  ;;  %v2184_v21 = vor.u32 %v2182_v32, %v2180_v11  ;;  %v2317_v32 = vrot.slane %v7619_v47, 1 }
 0x1d2   : > { %9109 = vst [vmem:[#allocation71_spill] sm:$0xff] %v7642_v48  ;;  %v784_v52 = vsel %vm620_vm0, %v779_v56, %v783_v60 }
 0x1d3   : > { %9110 = vst [vmem:[#allocation72_spill] sm:$0xff] %v7644_v18  ;;  %v7689_v47 = vsel %vm916_vm1, %v2315_v24, %v2317_v32 }
 0x1d7   : > { %v1605_v59 = vpop.f32.mrf.mxu2  ;;  %v2825_v39 = vpop.f32.mrf.mxu3 }
 0x1d8   : > { %v7658_v10 = vadd.f32 %v1605_v59, %v1437_v33  ;;  %v7660_v3 = vadd.f32 %v2994_v2, %v2825_v39  ;;  %v1439_v48 = vpop.f32.mrf.mxu1  ;;  %v2997_v18 = vpop.f32.mrf.mxu0  ;;  %v2188_v2 = vrot.slane %v2186_v4, 1  ;;  %v785_v59 = vshrl.u32 %v6774_v5, 16  ;;  %v6775_v39 = vld [vmem:[#allocation2 + $0xa8] sm:$0xff] }
 0x1d9   : > { %v1440_v23 = vadd.f32 %v1439_v48, %v7181_v49  ;;  %v958_v11 = vrot.slane %v6775_v39, 1  ;;  %v7678_v49 = vld [vmem:[#allocation2 + $0xc0] sm:$0xff] }
 0x1da   : > { %9111 = vst [vmem:[#allocation73_spill] sm:$0xff] %v7658_v10  ;;  %v789_v10 = vshll.u32 %v6775_v39, 16 }
 0x1db   : > { %9112 = vst [vmem:[#allocation74_spill] sm:$0xff] %v7660_v3  ;;  %1478 = vmatmul.bf16.gmra.mxu1 %v784_v52  ;;  %3036 = vmatmul.bf16.gmra.mxu0 %v2471_v63  ;;  %v2189_v52 = vsel %vm620_vm0, %v2184_v21, %v2188_v2  ;;  %v787_v63 = vor.u32 %v785_v59, %v783_v60  ;;  %v2190_v59 = vshrl.u32 %v7655_v28, 16 }
 0x1dc   : > { %1647 = vmatmul.bf16.gmra.mxu2 %v957_v1  ;;  %2867 = vmatmul.bf16.gmra.mxu3 %v7666_v29  ;;  %v791_v1 = vrot.slane %v789_v10, 1  ;;  %v2474_v3 = vrot.slane %v2189_v52, 1  ;;  %v959_v10 = vsel %vm916_vm1, %v956_v15, %v958_v11 }
 0x1de   : > { %v792_v21 = vsel %vm620_vm0, %v787_v63, %v791_v1  ;;  %v2475_v60 = vsel %vm916_vm1, %v2470_v57, %v2474_v3 }
 0x1df   : > { %v1608_v20 = vpop.f32.mrf.mxu2  ;;  %v2828_v36 = vpop.f32.mrf.mxu3 }
 0x1e0   : > { %v7672_v56 = vadd.f32 %v1608_v20, %v1440_v23  ;;  %v7674_v40 = vadd.f32 %v2997_v18, %v2828_v36  ;;  %v1441_v17 = vpop.f32.mrf.mxu1  ;;  %v2999_v33 = vpop.f32.mrf.mxu0 }
 0x1e1   : > { %v1442_v48 = vadd.f32 %v1441_v17, %v7198_v25  ;;  %v2194_v25 = vshll.u32 %v7678_v49, 16  ;;  %v2192_v17 = vor.u32 %v2190_v59, %v2188_v2  ;;  %v2319_v59 = vrot.slane %v7655_v28, 1 }
 0x1e2   : > { %9113 = vst [vmem:[#allocation75_spill] sm:$0xff] %v7672_v56 }
 0x1e3   : > { %v7712_v28 = vsel %vm916_vm1, %v2317_v32, %v2319_v59 }
 0x1e7   : > { %v1610_v4 = vpop.f32.mrf.mxu2  ;;  %v2830_v18 = vpop.f32.mrf.mxu3 }
 0x1e8   : > { %v7681_v23 = vadd.f32 %v1610_v4, %v1442_v48  ;;  %v7683_v20 = vadd.f32 %v2999_v33, %v2830_v18  ;;  %v1444_v5 = vpop.f32.mrf.mxu1  ;;  %v3002_v36 = vpop.f32.mrf.mxu0  ;;  %v2196_v33 = vrot.slane %v2194_v25, 1  ;;  %v793_v18 = vshrl.u32 %v6775_v39, 16 }
 0x1e9   : > { %v1445_v52 = vadd.f32 %v1444_v5, %v7213_v12  ;;  %v7701_v12 = vld [vmem:[#allocation2 + $0xc8] sm:$0xff] }
 0x1ea   : > { %9114 = vst [vmem:[#allocation76_spill] sm:$0xff] %v7681_v23  ;;  %v6776_v23 = vld [vmem:[#allocation2 + $0xb0] sm:$0xff] }
 0x1eb   : > { %9115 = vst [vmem:[#allocation77_spill] sm:$0xff] %v7683_v20  ;;  %1483 = vmatmul.bf16.gmra.mxu1 %v792_v21  ;;  %3041 = vmatmul.bf16.gmra.mxu0 %v2475_v60  ;;  %v797_v20 = vshll.u32 %v6776_v23, 16  ;;  %v2197_v21 = vsel %vm620_vm0, %v2192_v17, %v2196_v33  ;;  %v795_v60 = vor.u32 %v793_v18, %v791_v1  ;;  %v960_v2 = vrot.slane %v6776_v23, 1 }
 0x1ec   : > { %1652 = vmatmul.bf16.gmra.mxu2 %v959_v10  ;;  %2872 = vmatmul.bf16.gmra.mxu3 %v7689_v47  ;;  %v2478_v56 = vrot.slane %v2197_v21, 1  ;;  %v2198_v18 = vshrl.u32 %v7678_v49, 16 }
 0x1ed   : > { %v799_v10 = vrot.slane %v797_v20, 1  ;;  %v961_v20 = vsel %vm916_vm1, %v958_v11, %v960_v2 }
 0x1ee   : > { %v2479_v1 = vsel %vm916_vm1, %v2474_v3, %v2478_v56 }
 0x1ef   : > { %v1613_v63 = vpop.f32.mrf.mxu2  ;;  %v2833_v57 = vpop.f32.mrf.mxu3  ;;  %v800_v17 = vsel %vm620_vm0, %v795_v60, %v799_v10 }
 0x1f0   : > { %v7695_v48 = vadd.f32 %v1613_v63, %v1445_v52  ;;  %v7697_v15 = vadd.f32 %v3002_v36, %v2833_v57  ;;  %v1446_v24 = vpop.f32.mrf.mxu1  ;;  %v3004_v4 = vpop.f32.mrf.mxu0 }
 0x1f1   : > { %v1447_v5 = vadd.f32 %v1446_v24, %v7230_v19  ;;  %v2202_v19 = vshll.u32 %v7701_v12, 16  ;;  %v2200_v24 = vor.u32 %v2198_v18, %v2196_v33 }
 0x1f2   : > { %9116 = vst [vmem:[#allocation78_spill] sm:$0xff] %v7695_v48  ;;  %v9184_v48 = vld [vmem:[#allocation15_spill] sm:$0xff] }
 0x1f3   : > { %9117 = vst [vmem:[#allocation79_spill] sm:$0xff] %v7697_v15 }
 0x1f7   : > { %v1615_v25 = vpop.f32.mrf.mxu2  ;;  %v2835_v36 = vpop.f32.mrf.mxu3 }
 0x1f8   : > { %v7704_v52 = vadd.f32 %v1615_v25, %v1447_v5  ;;  %v7706_v63 = vadd.f32 %v3004_v4, %v2835_v36  ;;  %v1449_v39 = vpop.f32.mrf.mxu1  ;;  %v3007_v57 = vpop.f32.mrf.mxu0  ;;  %v2204_v4 = vrot.slane %v2202_v19, 1  ;;  %v801_v36 = vshrl.u32 %v6776_v23, 16  ;;  %v7728_v19 = vld [vmem:[#allocation2 + $0xd0] sm:$0xff] }
 0x1f9   : > { %v1450_v21 = vadd.f32 %v1449_v39, %v7245_v26  ;;  %v2321_v39 = vrot.slane %v7678_v49, 1 }
 0x1fa   : > { %9118 = vst [vmem:[#allocation80_spill] sm:$0xff] %v7704_v52  ;;  %v7722_v52 = vld [vmem:[#allocation2 + $0xb8] sm:$0xff] }
 0x1fb   : > { %9119 = vst [vmem:[#allocation81_spill] sm:$0xff] %v7706_v63  ;;  %1488 = vmatmul.bf16.gmra.mxu1 %v800_v17  ;;  %3046 = vmatmul.bf16.gmra.mxu0 %v2479_v1  ;;  %v805_v17 = vshll.u32 %v7722_v52, 16  ;;  %v2205_v1 = vsel %vm620_vm0, %v2200_v24, %v2204_v4  ;;  %v962_v26 = vrot.slane %v7722_v52, 1  ;;  %v7739_v49 = vsel %vm916_vm1, %v2319_v59, %v2321_v39  ;;  %v8002_v63 = vld [vmem:[#allocation2 + $0x18] sm:$0xff] }
 0x1fc   : > { %1657 = vmatmul.bf16.gmra.mxu2 %v961_v20  ;;  %2877 = vmatmul.bf16.gmra.mxu3 %v7712_v28  ;;  %v803_v20 = vor.u32 %v801_v36, %v799_v10  ;;  %v2482_v18 = vrot.slane %v2205_v1, 1 }
 0x1fd   : > { %v807_v33 = vrot.slane %v805_v17, 1  ;;  %v963_v36 = vsel %vm916_vm1, %v960_v2, %v962_v26  ;;  %v2206_v17 = vshrl.u32 %v7701_v12, 16 }
 0x1fe   : > { %v2483_v24 = vsel %vm916_vm1, %v2478_v56, %v2482_v18  ;;  %v6521_v56 = vld [vmem:[%s9011_s2 + $0x1c8] sm:$0xff] }
 0x1ff   : > { %v1618_v60 = vpop.f32.mrf.mxu2  ;;  %v2838_v3 = vpop.f32.mrf.mxu3  ;;  %v808_v10 = vsel %vm620_vm0, %v803_v20, %v807_v33  ;;  %v2208_v2 = vor.u32 %v2206_v17, %v2204_v4  ;;  %4687 = vmatpush.bf16.msra.mxu3 %v6521_v56  ;;  %v6529_v4 = vld [vmem:[%s9011_s2 + $0x208] sm:$0xff] }
 0x200   : > { %v7718_v5 = vadd.f32 %v1618_v60, %v1450_v21  ;;  %v7720_v11 = vadd.f32 %v3007_v57, %v2838_v3  ;;  %v1451_v32 = vpop.f32.mrf.mxu1  ;;  %v3009_v25 = vpop.f32.mrf.mxu0  ;;  %4856 = vmatpush.bf16.msra.mxu0 %v6529_v4 }
 0x201   : > { %v1452_v57 = vadd.f32 %v1451_v32, %v7262_v58  ;;  %v2210_v58 = vshll.u32 %v7728_v19, 16  ;;  %v6513_v32 = vld [vmem:[%s9011_s2 + $0x188] sm:$0xff] }
 0x202   : > { %9120 = vst [vmem:[#allocation82_spill] sm:$0xff] %v7718_v5  ;;  %4518 = vmatpush.bf16.msra.mxu2 %v6513_v32  ;;  %v7764_v32 = vld [vmem:[#allocation2 + $0xd8] sm:$0xff] }
 0x203   : > { %9121 = vst [vmem:[#allocation83_spill] sm:$0xff] %v7720_v11  ;;  %v2212_v59 = vrot.slane %v2210_v58, 1 }
 0x207   : > { %v1620_v21 = vpop.f32.mrf.mxu2  ;;  %v2840_v60 = vpop.f32.mrf.mxu3 }
 0x208   : > { %v7731_v23 = vadd.f32 %v1620_v21, %v1452_v57  ;;  %v7733_v3 = vadd.f32 %v3009_v25, %v2840_v60  ;;  %v1454_v5 = vpop.f32.mrf.mxu1  ;;  %v3012_v11 = vpop.f32.mrf.mxu0 }
 0x209   : > { %v1455_v25 = vadd.f32 %v1454_v5, %v7277_v34  ;;  %v6474_v34 = vld [vmem:[%s9011_s2 + $0x148] sm:$0xff] }
 0x20a   : > { %9122 = vst [vmem:[#allocation84_spill] sm:$0xff] %v7731_v23  ;;  %3108 = vmatpush.bf16.msra.mxu1 %v6474_v34 }
 0x20b   : > { %9123 = vst [vmem:[#allocation85_spill] sm:$0xff] %v7733_v3  ;;  %1493 = vmatmul.bf16.gmra.mxu1 %v808_v10  ;;  %3051 = vmatmul.bf16.gmra.mxu0 %v2483_v24  ;;  %v809_v24 = vshrl.u32 %v7722_v52, 16  ;;  %v2213_v3 = vsel %vm620_vm0, %v2208_v2, %v2212_v59  ;;  %v2323_v52 = vrot.slane %v7701_v12, 1 }
 0x20c   : > { %1662 = vmatmul.bf16.gmra.mxu2 %v963_v36  ;;  %2882 = vmatmul.bf16.gmra.mxu3 %v7739_v49  ;;  %v6778_v36 = vld [vmem:[#allocation2 + $0xc0] sm:$0xff]  ;;  %v2486_v17 = vrot.slane %v2213_v3, 1  ;;  %v2214_v3 = vshrl.u32 %v7728_v19, 16 }
 0x20d   : > { %v813_v23 = vshll.u32 %v6778_v36, 16  ;;  %v811_v5 = vor.u32 %v809_v24, %v807_v33  ;;  %v964_v58 = vrot.slane %v6778_v36, 1  ;;  %v7775_v12 = vsel %vm916_vm1, %v2321_v39, %v2323_v52 }
 0x20e   : > { %v2487_v33 = vsel %vm916_vm1, %v2482_v18, %v2486_v17  ;;  %9128 = vst [vmem:[#allocation90_spill] sm:$0xff] %v7775_v12 }
 0x20f   : > { %v1623_v1 = vpop.f32.mrf.mxu2  ;;  %v2843_v20 = vpop.f32.mrf.mxu3 }
 0x210   : > { %v7751_v57 = vadd.f32 %v1623_v1, %v1455_v25  ;;  %v7753_v21 = vadd.f32 %v3012_v11, %v2843_v20  ;;  %v1456_v60 = vpop.f32.mrf.mxu1  ;;  %v3014_v10 = vpop.f32.mrf.mxu0  ;;  %v815_v11 = vrot.slane %v813_v23, 1  ;;  %v965_v23 = vsel %vm916_vm1, %v962_v26, %v964_v58 }
 0x211   : > { %v1457_v56 = vadd.f32 %v1456_v60, %v7300_v50  ;;  %v2218_v50 = vshll.u32 %v7764_v32, 16  ;;  %v2216_v60 = vor.u32 %v2214_v3, %v2212_v59  ;;  %v2325_v3 = vrot.slane %v7728_v19, 1 }
 0x212   : > { %9124 = vst [vmem:[#allocation86_spill] sm:$0xff] %v7751_v57  ;;  %v816_v34 = vsel %vm620_vm0, %v811_v5, %v815_v11 }
 0x213   : > { %9125 = vst [vmem:[#allocation87_spill] sm:$0xff] %v7753_v21  ;;  %v7798_v19 = vsel %vm916_vm1, %v2323_v52, %v2325_v3 }
 0x214   : > { %9133 = vst [vmem:[#allocation95_spill] sm:$0xff] %v7798_v19 }
 0x217   : > { %v1625_v2 = vpop.f32.mrf.mxu2  ;;  %v2845_v25 = vpop.f32.mrf.mxu3 }
 0x218   : > { %v7767_v1 = vadd.f32 %v1625_v2, %v1457_v56  ;;  %v7769_v20 = vadd.f32 %v3014_v10, %v2845_v25  ;;  %v1459_v57 = vpop.f32.mrf.mxu1  ;;  %v3017_v21 = vpop.f32.mrf.mxu0  ;;  %v2220_v10 = vrot.slane %v2218_v50, 1  ;;  %v817_v2 = vshrl.u32 %v6778_v36, 16  ;;  %v6779_v25 = vld [vmem:[#allocation2 + $0xc8] sm:$0xff] }
 0x219   : > { %v1460_v24 = vadd.f32 %v1459_v57, %v7321_v8  ;;  %v966_v59 = vrot.slane %v6779_v25, 1  ;;  %v7787_v8 = vld [vmem:[#allocation2 + $0xe0] sm:$0xff] }
 0x21a   : > { %9126 = vst [vmem:[#allocation88_spill] sm:$0xff] %v7767_v1  ;;  %v821_v1 = vshll.u32 %v6779_v25, 16 }
 0x21b   : > { %9127 = vst [vmem:[#allocation89_spill] sm:$0xff] %v7769_v20  ;;  %1498 = vmatmul.bf16.gmra.mxu1 %v816_v34  ;;  %3056 = vmatmul.bf16.gmra.mxu0 %v2487_v33  ;;  %v2221_v34 = vsel %vm620_vm0, %v2216_v60, %v2220_v10  ;;  %v819_v33 = vor.u32 %v817_v2, %v815_v11  ;;  %v2222_v2 = vshrl.u32 %v7764_v32, 16 }
 0x21c   : > { %1667 = vmatmul.bf16.gmra.mxu2 %v965_v23  ;;  %2887 = vmatmul.bf16.gmra.mxu3 %v7775_v12  ;;  %v823_v23 = vrot.slane %v821_v1, 1  ;;  %v2490_v20 = vrot.slane %v2221_v34, 1  ;;  %v967_v1 = vsel %vm916_vm1, %v964_v58, %v966_v59  ;;  %v9134_v34 = vld [vmem:[#allocation6_spill] sm:$0xff] }
 0x21e   : > { %v824_v60 = vsel %vm620_vm0, %v819_v33, %v823_v23  ;;  %v2491_v11 = vsel %vm916_vm1, %v2486_v17, %v2490_v20 }
 0x21f   : > { %v1628_v4 = vpop.f32.mrf.mxu2  ;;  %v2848_v18 = vpop.f32.mrf.mxu3 }
 0x220   : > { %v7781_v5 = vadd.f32 %v1628_v4, %v1460_v24  ;;  %v7783_v26 = vadd.f32 %v3017_v21, %v2848_v18  ;;  %v1461_v39 = vpop.f32.mrf.mxu1  ;;  %v3019_v56 = vpop.f32.mrf.mxu0 }
 0x221   : > { %v1462_v57 = vadd.f32 %v1461_v39, %v7338_v42  ;;  %v2226_v42 = vshll.u32 %v7787_v8, 16  ;;  %v2224_v39 = vor.u32 %v2222_v2, %v2220_v10  ;;  %v2327_v2 = vrot.slane %v7764_v32, 1 }
 0x222   : > { %9129 = vst [vmem:[#allocation91_spill] sm:$0xff] %v7781_v5 }
 0x223   : > { %9130 = vst [vmem:[#allocation92_spill] sm:$0xff] %v7783_v26 }
 0x227   : > { %v1630_v50 = vpop.f32.mrf.mxu2  ;;  %v2850_v21 = vpop.f32.mrf.mxu3 }
 0x228   : > { %v7790_v24 = vadd.f32 %v1630_v50, %v1462_v57  ;;  %v7792_v4 = vadd.f32 %v3019_v56, %v2850_v21  ;;  %v1464_v36 = vpop.f32.mrf.mxu1  ;;  %v3022_v18 = vpop.f32.mrf.mxu0  ;;  %v2228_v56 = vrot.slane %v2226_v42, 1  ;;  %v9137_v42 = vld [vmem:[#allocation8_spill] sm:$0xff] }
 0x229   : > { %v1465_v33 = vadd.f32 %v1464_v36, %v9134_v34  ;;  %v7810_v36 = vld [vmem:[#allocation2 + $0xe8] sm:$0xff] }
 0x22a   : > { %9131 = vst [vmem:[#allocation93_spill] sm:$0xff] %v7790_v24  ;;  %v825_v24 = vshrl.u32 %v6779_v25, 16 }
 0x22b   : > { %9132 = vst [vmem:[#allocation94_spill] sm:$0xff] %v7792_v4  ;;  %1503 = vmatmul.bf16.gmra.mxu1 %v824_v60  ;;  %3061 = vmatmul.bf16.gmra.mxu0 %v2491_v11  ;;  %v6780_v4 = vld [vmem:[#allocation2 + $0xd0] sm:$0xff]  ;;  %v2229_v60 = vsel %vm620_vm0, %v2224_v39, %v2228_v56  ;;  %v2230_v39 = vshrl.u32 %v7787_v8, 16 }
 0x22c   : > { %1672 = vmatmul.bf16.gmra.mxu2 %v967_v1  ;;  %2892 = vmatmul.bf16.gmra.mxu3 %v7798_v19  ;;  %v829_v5 = vshll.u32 %v6780_v4, 16  ;;  %v827_v11 = vor.u32 %v825_v24, %v823_v23  ;;  %v2494_v26 = vrot.slane %v2229_v60, 1  ;;  %v968_v10 = vrot.slane %v6780_v4, 1 }
 0x22d   : > { %v7821_v24 = vsel %vm916_vm1, %v2325_v3, %v2327_v2 }
 0x22e   : > { %v831_v1 = vrot.slane %v829_v5, 1  ;;  %v2495_v5 = vsel %vm916_vm1, %v2490_v20, %v2494_v26  ;;  %v969_v32 = vsel %vm916_vm1, %v966_v59, %v968_v10  ;;  %9140 = vst [vmem:[#allocation98_spill] sm:$0xff] %v7821_v24 }
 0x22f   : > { %v1633_v57 = vpop.f32.mrf.mxu2  ;;  %v2853_v17 = vpop.f32.mrf.mxu3 }
 0x230   : > { %v7804_v50 = vadd.f32 %v1633_v57, %v1465_v33  ;;  %v7806_v58 = vadd.f32 %v3022_v18, %v2853_v17  ;;  %v1466_v52 = vpop.f32.mrf.mxu1  ;;  %v3024_v21 = vpop.f32.mrf.mxu0  ;;  %v832_v23 = vsel %vm620_vm0, %v827_v11, %v831_v1  ;;  %v9141_v11 = vld [vmem:[#allocation11_spill] sm:$0xff] }
 0x231   : > { %v1467_v34 = vadd.f32 %v1466_v52, %v9137_v42  ;;  %v2234_v52 = vshll.u32 %v7810_v36, 16 }
 0x232   : > { %9135 = vst [vmem:[#allocation6_spill] sm:$0xff] %v7804_v50 }
 0x233   : > { %9136 = vst [vmem:[#allocation96_spill] sm:$0xff] %v7806_v58  ;;  %v2236_v60 = vrot.slane %v2234_v52, 1 }
 0x237   : > { %v1635_v18 = vpop.f32.mrf.mxu2  ;;  %v2855_v33 = vpop.f32.mrf.mxu3 }
 0x238   : > { %v7813_v57 = vadd.f32 %v1635_v18, %v1467_v34  ;;  %v7815_v25 = vadd.f32 %v3024_v21, %v2855_v33  ;;  %v1469_v17 = vpop.f32.mrf.mxu1  ;;  %v3027_v50 = vpop.f32.mrf.mxu0  ;;  %v2232_v21 = vor.u32 %v2230_v39, %v2228_v56 }
 0x239   : > { %v1470_v42 = vadd.f32 %v1469_v17, %v9141_v11  ;;  %v7842_v11 = vld [vmem:[#allocation2 + $0xf0] sm:$0xff] }
 0x23a   : > { %9138 = vst [vmem:[#allocation8_spill] sm:$0xff] %v7813_v57  ;;  %v833_v57 = vshrl.u32 %v6780_v4, 16 }
 0x23b   : > { %9139 = vst [vmem:[#allocation97_spill] sm:$0xff] %v7815_v25  ;;  %1508 = vmatmul.bf16.gmra.mxu1 %v832_v23  ;;  %3066 = vmatmul.bf16.gmra.mxu0 %v2495_v5  ;;  %v7833_v23 = vld [vmem:[#allocation2 + $0xd8] sm:$0xff]  ;;  %v349_v25 = vld [vmem:[%s7848_s6] sm:$0xff]  }
 0x23c   : > { %1677 = vmatmul.bf16.gmra.mxu2 %v969_v32  ;;  %2897 = vmatmul.bf16.gmra.mxu3 %v7821_v24  ;;  %v837_v5 = vshll.u32 %v7833_v23, 16  ;;  %v7837_v32 = vsel %vm620_vm0, %v2232_v21, %v2236_v60  ;;  %v835_v56 = vor.u32 %v833_v57, %v831_v1  ;;  %v970_v52 = vrot.slane %v7833_v23, 1  ;;  %354 = vst [vmem:[#allocation2 + $0x100] sm:$0xff] %v349_v25  }
 0x23d   : > { %v2498_v39 = vrot.slane %v7837_v32, 1 }
 0x23e   : > { %v839_v17 = vrot.slane %v837_v5, 1 }
 0x23f   : > { %v1638_v20 = vpop.f32.mrf.mxu2  ;;  %v2858_v34 = vpop.f32.mrf.mxu3  ;;  %v2499_v32 = vsel %vm916_vm1, %v2494_v26, %v2498_v39  ;;  %v6512_v26 = vld [vmem:[%s9011_s2 + $0x180] sm:$0xff] }
 0x240   : > { %v7829_v59 = vadd.f32 %v1638_v20, %v1470_v42  ;;  %v7831_v3 = vadd.f32 %v3027_v50, %v2858_v34  ;;  %v1471_v18 = vpop.f32.mrf.mxu1  ;;  %v3029_v33 = vpop.f32.mrf.mxu0  ;;  %v2329_v50 = vrot.slane %v7787_v8, 1  ;;  %v9144_v42 = vld [vmem:[#allocation13_spill] sm:$0xff]  ;;  %v840_v8 = vsel %vm620_vm0, %v835_v56, %v839_v17  ;;  %v9148_v56 = vld [vmem:[#allocation16_spill] sm:$0xff]  ;;  %4519 = vmatpush.bf16.msra.mxu2 %v6512_v26 }
 0x241   : > { %v1472_v4 = vadd.f32 %v1471_v18, %v9144_v42  ;;  %v971_v18 = vsel %vm916_vm1, %v968_v10, %v970_v52  ;;  %v6520_v10 = vld [vmem:[%s9011_s2 + $0x1c0] sm:$0xff] }
 0x242   : > { %9142 = vst [vmem:[#allocation11_spill] sm:$0xff] %v7829_v59  ;;  %v7858_v42 = vsel %vm916_vm1, %v2327_v2, %v2329_v50  ;;  %v2238_v59 = vshrl.u32 %v7810_v36, 16  ;;  %4688 = vmatpush.bf16.msra.mxu3 %v6520_v10 }
 0x243   : > { %9143 = vst [vmem:[#allocation99_spill] sm:$0xff] %v7831_v3  ;;  %v2242_v3 = vshll.u32 %v7842_v11, 16 }
 0x244   : > { %9147 = vst [vmem:[#allocation101_spill] sm:$0xff] %v7858_v42  ;;  %v2240_v2 = vor.u32 %v2238_v59, %v2236_v60  ;;  %v6473_v59 = vld [vmem:[%s9011_s2 + $0x140] sm:$0xff] }
 0x245   : > { %3109 = vmatpush.bf16.msra.mxu1 %v6473_v59 }
 0x247   : > { %v1640_v20 = vpop.f32.mrf.mxu2  ;;  %v2860_v34 = vpop.f32.mrf.mxu3 }
 0x248   : > { %v7850_v1 = vadd.f32 %v1640_v20, %v1472_v4  ;;  %v7852_v57 = vadd.f32 %v3029_v33, %v2860_v34  ;;  %v1474_v21 = vpop.f32.mrf.mxu1  ;;  %v3032_v5 = vpop.f32.mrf.mxu0  ;;  %v2244_v33 = vrot.slane %v2242_v3, 1  ;;  %v6528_v3 = vld [vmem:[%s9011_s2 + $0x200] sm:$0xff] }
 0x249   : > { %v1475_v4 = vadd.f32 %v1474_v21, %v9148_v56  ;;  %4857 = vmatpush.bf16.msra.mxu0 %v6528_v3  ;;  %v7884_v56 = vld [vmem:[#allocation2 + $0xf8] sm:$0xff] }
 0x24a   : > { %9145 = vst [vmem:[#allocation13_spill] sm:$0xff] %v7850_v1  ;;  %v841_v1 = vshrl.u32 %v7833_v23, 16  ;;  %v2245_v60 = vsel %vm620_vm0, %v2240_v2, %v2244_v33  ;;  %v2331_v23 = vrot.slane %v7810_v36, 1 }
 0x24b   : > { %9146 = vst [vmem:[#allocation100_spill] sm:$0xff] %v7852_v57  ;;  %1513 = vmatmul.bf16.gmra.mxu1 %v840_v8  ;;  %3071 = vmatmul.bf16.gmra.mxu0 %v2499_v32  ;;  %v6782_v57 = vld [vmem:[#allocation2 + $0xe0] sm:$0xff]  ;;  %v2502_v26 = vrot.slane %v2245_v60, 1  ;;  %v2250_v60 = vshll.u32 %v7884_v56, 16 }
 0x24c   : > { %1682 = vmatmul.bf16.gmra.mxu2 %v971_v18  ;;  %2902 = vmatmul.bf16.gmra.mxu3 %v7858_v42  ;;  %v845_v58 = vshll.u32 %v6782_v57, 16  ;;  %v843_v21 = vor.u32 %v841_v1, %v839_v17  ;;  %v972_v10 = vrot.slane %v6782_v57, 1  ;;  %v7896_v1 = vsel %vm916_vm1, %v2329_v50, %v2331_v23 }
 0x24d   : > { %9154 = vst [vmem:[#allocation104_spill] sm:$0xff] %v7896_v1  ;;  %v2252_v3 = vrot.slane %v2250_v60, 1  ;;  %v9158_v60 = vld [vmem:[#allocation23_spill] sm:$0xff] }
 0x24e   : > { %v973_v36 = vsel %vm916_vm1, %v970_v52, %v972_v10 }
 0x24f   : > { %v1643_v20 = vpop.f32.mrf.mxu2  ;;  %v2863_v34 = vpop.f32.mrf.mxu3 }
 0x250   : > { %v7871_v25 = vadd.f32 %v1643_v20, %v1475_v4  ;;  %v7873_v8 = vadd.f32 %v3032_v5, %v2863_v34  ;;  %v1476_v32 = vpop.f32.mrf.mxu1  ;;  %v3034_v18 = vpop.f32.mrf.mxu0  ;;  %v847_v5 = vrot.slane %v845_v58, 1  ;;  %v9151_v4 = vld [vmem:[#allocation18_spill] sm:$0xff]  ;;  %v2503_v58 = vsel %vm916_vm1, %v2498_v39, %v2502_v26 }
 0x251   : > { %v1477_v2 = vadd.f32 %v1476_v32, %v9151_v4  ;;  %v2246_v32 = vshrl.u32 %v7842_v11, 16 }
 0x252   : > { %9149 = vst [vmem:[#allocation16_spill] sm:$0xff] %v7871_v25  ;;  %v351_v25 = vld [vmem:[%s7848_s6 + $0x8] sm:$0xf]  ;;  %v848_v17 = vsel %vm620_vm0, %v843_v21, %v847_v5  ;;  %v9155_v21 = vld [vmem:[#allocation21_spill] sm:$0xff] }
 0x253   : > { %9150 = vst [vmem:[#allocation102_spill] sm:$0xff] %v7873_v8 }
 0x254   : > { %356 = vst [vmem:[#allocation2 + $0x108] sm:$0xf] %v351_v25 }
 0x257   : > { %v1645_v20 = vpop.f32.mrf.mxu2  ;;  %v2865_v34 = vpop.f32.mrf.mxu3 }
 0x258   : > { %v7888_v8 = vadd.f32 %v1645_v20, %v1477_v2  ;;  %v7890_v42 = vadd.f32 %v3034_v18, %v2865_v34  ;;  %v1479_v24 = vpop.f32.mrf.mxu1  ;;  %v3037_v59 = vpop.f32.mrf.mxu0  ;;  %v2248_v18 = vor.u32 %v2246_v32, %v2244_v33  ;;  %v849_v34 = vshrl.u32 %v6782_v57, 16 }
 0x259   : > { %v1480_v4 = vadd.f32 %v1479_v24, %v9155_v21  ;;  %v2333_v32 = vrot.slane %v7842_v11, 1  ;;  %v7908_v24 = vld [vmem:[#allocation2 + $0x100] sm:$0xff] }
 0x25a   : > { %9152 = vst [vmem:[#allocation18_spill] sm:$0xff] %v7888_v8  ;;  %v6783_v8 = vld [vmem:[#allocation2 + $0xe8] sm:$0xff] }
 0x25b   : > { %9153 = vst [vmem:[#allocation103_spill] sm:$0xff] %v7890_v42  ;;  %1518 = vmatmul.bf16.gmra.mxu1 %v848_v17  ;;  %3076 = vmatmul.bf16.gmra.mxu0 %v2503_v58  ;;  %v853_v42 = vshll.u32 %v6783_v8, 16  ;;  %v2253_v17 = vsel %vm620_vm0, %v2248_v18, %v2252_v3  ;;  %v851_v58 = vor.u32 %v849_v34, %v847_v5  ;;  %v974_v33 = vrot.slane %v6783_v8, 1 }
 0x25c   : > { %1687 = vmatmul.bf16.gmra.mxu2 %v973_v36  ;;  %2907 = vmatmul.bf16.gmra.mxu3 %v7896_v1  ;;  %v2506_v1 = vrot.slane %v2253_v17, 1  ;;  %v7919_v11 = vsel %vm916_vm1, %v2331_v23, %v2333_v32  ;;  %v2254_v34 = vshrl.u32 %v7884_v56, 16 }
 0x25d   : > { %v855_v36 = vrot.slane %v853_v42, 1  ;;  %v975_v5 = vsel %vm916_vm1, %v972_v10, %v974_v33  ;;  %9161 = vst [vmem:[#allocation107_spill] sm:$0xff] %v7919_v11 }
 0x25e   : > { %v2507_v42 = vsel %vm916_vm1, %v2502_v26, %v2506_v1 }
 0x25f   : > { %v1648_v39 = vpop.f32.mrf.mxu2  ;;  %v2868_v25 = vpop.f32.mrf.mxu3  ;;  %v856_v18 = vsel %vm620_vm0, %v851_v58, %v855_v36 }
 0x260   : > { %v7902_v2 = vadd.f32 %v1648_v39, %v1480_v4  ;;  %v7904_v52 = vadd.f32 %v3037_v59, %v2868_v25  ;;  %v1481_v50 = vpop.f32.mrf.mxu1  ;;  %v3039_v20 = vpop.f32.mrf.mxu0 }
 0x261   : > { %v1482_v21 = vadd.f32 %v1481_v50, %v9158_v60  ;;  %v2258_v50 = vshll.u32 %v7908_v24, 16  ;;  %v9162_v60 = vld [vmem:[#allocation26_spill] sm:$0xff] }
 0x262   : > { %9156 = vst [vmem:[#allocation21_spill] sm:$0xff] %v7902_v2 }
 0x263   : > { %9157 = vst [vmem:[#allocation105_spill] sm:$0xff] %v7904_v52  ;;  %v2260_v17 = vrot.slane %v2258_v50, 1  ;;  %v7929_v52 = vld [vmem:[#allocation2 + $0xf0] sm:$0xff] }
 0x264   : > { %v976_v50 = vrot.slane %v7929_v52, 1 }
 0x267   : > { %v1650_v4 = vpop.f32.mrf.mxu2  ;;  %v2870_v59 = vpop.f32.mrf.mxu3 }
 0x268   : > { %v7911_v39 = vadd.f32 %v1650_v4, %v1482_v21  ;;  %v7913_v25 = vadd.f32 %v3039_v20, %v2870_v59  ;;  %v1484_v57 = vpop.f32.mrf.mxu1  ;;  %v3042_v2 = vpop.f32.mrf.mxu0  ;;  %v2256_v20 = vor.u32 %v2254_v34, %v2252_v3  ;;  %v1842_v21 = vld [vmem:[#allocation2 + $0x108] sm:$0x3] }
 0x269   : > { %v1485_v58 = vadd.f32 %v1484_v57, %v9162_v60  ;;  %v2008_v3 = vunpack.c.l.b16 %v1842_v21  ;;  %v2335_v60 = vrot.slane %v7884_v56, 1  ;;  %v977_v21 = vsel %vm916_vm1, %v974_v33, %v976_v50 }
 0x26a   : > { %9159 = vst [vmem:[#allocation23_spill] sm:$0xff] %v7911_v39 }
 0x26b   : > { %9160 = vst [vmem:[#allocation106_spill] sm:$0xff] %v7913_v25  ;;  %1523 = vmatmul.bf16.gmra.mxu1 %v856_v18  ;;  %3081 = vmatmul.bf16.gmra.mxu0 %v2507_v42  ;;  %v857_v25 = vshrl.u32 %v6783_v8, 16  ;;  %v861_v18 = vshll.u32 %v7929_v52, 16  ;;  %v2261_v42 = vsel %vm620_vm0, %v2256_v20, %v2260_v17  ;;  %v7946_v56 = vsel %vm916_vm1, %v2333_v32, %v2335_v60 }
 0x26c   : > { %1692 = vmatmul.bf16.gmra.mxu2 %v975_v5  ;;  %2912 = vmatmul.bf16.gmra.mxu3 %v7919_v11  ;;  %v2510_v57 = vrot.slane %v2261_v42, 1  ;;  %9169 = vst [vmem:[#allocation111_spill] sm:$0xff] %v7946_v56  ;;  %v1843_v42 = vld [vmem:[#allocation2 + $0x8] sm:$0xc]  ;;  %v865_v32 = vshrl.u32 %v7929_v52, 16 }
 0x26d   : > { %v859_v5 = vor.u32 %v857_v25, %v855_v36  ;;  %v863_v34 = vrot.slane %v861_v18, 1  ;;  %v2262_v18 = vshrl.u32 %v7908_v24, 16 }
 0x26e   : > { %v2511_v25 = vsel %vm916_vm1, %v2506_v1, %v2510_v57 }
 0x26f   : > { %v1653_v26 = vpop.f32.mrf.mxu2  ;;  %v2873_v4 = vpop.f32.mrf.mxu3  ;;  %v864_v36 = vsel %vm620_vm0, %v859_v5, %v863_v34  ;;  %v2274_v5 = vunpack.c.l.b16 %v1843_v42  ;;  %v867_v42 = vor.u32 %v865_v32, %v863_v34 }
 0x270   : > { %v7925_v10 = vadd.f32 %v1653_v26, %v1485_v58  ;;  %v7927_v23 = vadd.f32 %v3042_v2, %v2873_v4  ;;  %v1486_v59 = vpop.f32.mrf.mxu1  ;;  %v3044_v39 = vpop.f32.mrf.mxu0  ;;  %v7935_v58 = vpack.c.b16 %v2008_v3, %v2008_v3  ;;  %v9166_v2 = vld [vmem:[#allocation28_spill] sm:$0xff] }
 0x271   : > { %v1487_v26 = vadd.f32 %v1486_v59, %v9166_v2  ;;  %v9170_v2 = vld [vmem:[#allocation31_spill] sm:$0xff] }
 0x272   : > { %9163 = vst [vmem:[#allocation26_spill] sm:$0xff] %v7925_v10  ;;  %v2266_v59 = vshll.u32 %v7935_v58, 16 }
 0x273   : > { %9164 = vst [vmem:[#allocation108_spill] sm:$0xff] %v7927_v23 }
 0x274   : > { %9165 = vst [vmem:[#allocation109_spill] sm:$0xff] %v7935_v58  ;;  %v2268_v3 = vrot.slane %v2266_v59, 1 }
 0x277   : > { %v1655_v4 = vpop.f32.mrf.mxu2  ;;  %v2875_v8 = vpop.f32.mrf.mxu3 }
 0x278   : > { %v7938_v10 = vadd.f32 %v1655_v4, %v1487_v26  ;;  %v7940_v23 = vadd.f32 %v3044_v39, %v2875_v8  ;;  %v1489_v11 = vpop.f32.mrf.mxu1  ;;  %v3047_v20 = vpop.f32.mrf.mxu0  ;;  %v2264_v39 = vor.u32 %v2262_v18, %v2260_v17  ;;  %v7953_v4 = vld [vmem:[#allocation2 + $0xf8] sm:$0xff] }
 0x279   : > { %v1490_v1 = vadd.f32 %v1489_v11, %v9170_v2  ;;  %v869_v8 = vshll.u32 %v7953_v4, 16  ;;  %v9173_v18 = vld [vmem:[#allocation4_spill] sm:$0xff] }
 0x27a   : > { %9167 = vst [vmem:[#allocation28_spill] sm:$0xff] %v7938_v10  ;;  %v7961_v17 = vsel %vm620_vm0, %v2264_v39, %v2268_v3  ;;  %v9174_v59 = vunpack.c.l.b16 %v9173_v18 }
 0x27b   : > { %9168 = vst [vmem:[#allocation110_spill] sm:$0xff] %v7940_v23  ;;  %1528 = vmatmul.bf16.gmra.mxu1 %v864_v36  ;;  %3086 = vmatmul.bf16.gmra.mxu0 %v2511_v25  ;;  %v871_v2 = vrot.slane %v869_v8, 1  ;;  %v9036_v52 = vrot.slane %v7961_v17, 1  ;;  %v423_v23 = vld [vmem:[#allocation2 + $0x100] sm:$0x1] }
 0x27c   : > { %1697 = vmatmul.bf16.gmra.mxu2 %v977_v21  ;;  %2917 = vmatmul.bf16.gmra.mxu3 %v7946_v56  ;;  %v2275_v11 = vpack.c.b16 %v9174_v59, %v2274_v5  ;;  %v618_v5 = vunpack.c.l.b16 %v423_v23  ;;  %v9179_v56 = vld [vmem:[#allocation5_spill] sm:$0xff] }
 0x27d   : > { %v872_v18 = vsel %vm620_vm0, %v867_v42, %v871_v2 }
 0x27f   : > { %v1658_v26 = vpop.f32.mrf.mxu2  ;;  %v2878_v33 = vpop.f32.mrf.mxu3 }
 0x280   : > { %v7956_v10 = vadd.f32 %v1658_v26, %v1490_v1  ;;  %v7958_v36 = vadd.f32 %v3047_v20, %v2878_v33  ;;  %v1491_v25 = vpop.f32.mrf.mxu1  ;;  %v3049_v21 = vpop.f32.mrf.mxu0  ;;  %v7968_v1 = vrot.slane %v7908_v24, 1  ;;  %v9175_v20 = vld [vmem:[#allocation33_spill] sm:$0xff]  ;;  %v2276_v33 = vrot.slane %v2275_v11, 1 }
 0x281   : > { %v1492_v26 = vadd.f32 %v1491_v25, %v9175_v20  ;;  %v2515_v24 = vsel %vm916_vm1, %v2510_v57, %v9036_v52  ;;  %v9180_v11 = vrot.slane %v7953_v4, 1 }
 0x282   : > { %9171 = vst [vmem:[#allocation31_spill] sm:$0xff] %v7956_v10  ;;  %v9176_v10 = vld [vmem:[#allocation10_spill] sm:$0xff]  ;;  %v2278_v25 = vsel %vm916_vm1, %v2276_v33, %v9179_v56  ;;  %v7987_v23 = vsel %vm916_vm1, %v2335_v60, %v7968_v1  ;;  %v3464_v56 = vld [vmem:[#allocation2 + $0x14] sm:$0xf] }
 0x283   : > { %9172 = vst [vmem:[#allocation112_spill] sm:$0xff] %v7958_v36  ;;  %v9037_v36 = vrot.slane %v9176_v10, 1  ;;  %v979_v20 = vsel %vm916_vm1, %v976_v50, %v9180_v11  ;;  %v2395_v42 = vrot.slane %v2278_v25, 1  ;;  %v2270_v50 = vshrl.u32 %v7935_v58, 16  ;;  %v9182_v60 = vld [vmem:[#allocation36_spill] sm:$0xff] }
 0x284   : > { %9181 = vst [vmem:[#allocation10_spill] sm:$0xff] %v7987_v23  ;;  %v3596_v11 = vunpack.c.l.b16 %v3464_v56 }
 0x285   : > { %v7992_v57 = vsel %vm916_vm1, %v2395_v42, %v9037_v36 }
 0x287   : > { %v1660_v39 = vpop.f32.mrf.mxu2  ;;  %v2880_v19 = vpop.f32.mrf.mxu3 }
 0x288   : > { %v7973_v34 = vadd.f32 %v1660_v39, %v1492_v26  ;;  %v7975_v32 = vadd.f32 %v3049_v21, %v2880_v19  ;;  %v1494_v8 = vpop.f32.mrf.mxu1  ;;  %v3052_v59 = vpop.f32.mrf.mxu0  ;;  %v1841_v19 = vld [vmem:[#allocation2 + $0x108] sm:$0x1]  ;;  %v619_v21 = vpack.c.b16 %v618_v5, %v618_v5  ;;  %v3463_v26 = vld [vmem:[#allocation2 + $0x10] sm:$0xc]  ;;  %v873_v5 = vshrl.u32 %v7953_v4, 16 }
 0x289   : > { %v1973_v33 = vunpack.c.l.b16 %v1841_v19  ;;  %v1495_v39 = vadd.f32 %v1494_v8, %v9182_v60  ;;  %v3595_v25 = vunpack.c.l.b16 %v3463_v26  ;;  %v3529_v8 = vld [vmem:[#allocation2 + $0x10] sm:$0x8] }
 0x28a   : > { %9177 = vst [vmem:[#allocation4_spill] sm:$0xff] %v7973_v34  ;;  %v877_v52 = vshll.u32 %v619_v21, 16  ;;  %v875_v26 = vor.u32 %v873_v5, %v871_v2  ;;  %v980_v60 = vrot.slane %v619_v21, 1  ;;  %v9188_v5 = vrot.slane %v7961_v17, 1 }
 0x28b   : > { %9178 = vst [vmem:[#allocation33_spill] sm:$0xff] %v7975_v32  ;;  %1533 = vmatmul.bf16.gmra.mxu1 %v872_v18  ;;  %3091 = vmatmul.bf16.gmra.mxu0 %v2515_v24  ;;  %v2272_v32 = vor.u32 %v2270_v50, %v2268_v3  ;;  %v8004_v19 = vpack.c.b16 %v3596_v11, %v3595_v25  ;;  %v3704_v50 = vshll.u32 %v8002_v63, 16 }
 0x28c   : > { %1702 = vmatmul.bf16.gmra.mxu2 %v979_v20  ;;  %2922 = vmatmul.bf16.gmra.mxu3 %v7987_v23  ;;  %v2006_v23 = vpack.c.b16 %v1973_v33, %v1973_v33  ;;  %v879_v56 = vrot.slane %v877_v52, 1 }
 0x28d   : > { %v2520_v58 = vrot.slane %v2272_v32, 1  ;;  %v3699_v3 = vshll.u32 %v8004_v19, 16  ;;  %v3697_v15 = vshrl.u32 %v8004_v19, 16 }
 0x28e   : > { %v2518_v12 = vrot.slane %v2006_v23, 1  ;;  %v9187_v23 = vrot.slane %v7953_v4, 1 }
 0x28f   : > { %v1663_v18 = vpop.f32.mrf.mxu2  ;;  %v2883_v24 = vpop.f32.mrf.mxu3  ;;  %v3701_v4 = vrot.slane %v3699_v3, 1 }
 0x290   : > { %v7998_v34 = vadd.f32 %v1663_v18, %v1495_v39  ;;  %v8000_v42 = vadd.f32 %v3052_v59, %v2883_v24  ;;  %v1496_v36 = vpop.f32.mrf.mxu1  ;;  %v3054_v20 = vpop.f32.mrf.mxu0  ;;  %v3960_v39 = vunpack.c.l.b16 %v3529_v8  ;;  %v9185_v18 = vld [vmem:[#allocation38_spill] sm:$0xff]  ;;  %v2521_v8 = vsel %vm916_vm1, %v9188_v5, %v2520_v58 }
 0x291   : > { %v1497_v59 = vadd.f32 %v1496_v36, %v9185_v18  ;;  %v8008_v24 = vld [vmem:[#allocation2 + $0x20] sm:$0xff]  ;;  %v981_v36 = vsel %vm916_vm1, %v9187_v23, %v980_v60  ;;  %v2519_v18 = vsel %vm916_vm1, %v7968_v1, %v2518_v12  ;;  %v3708_v60 = vshrl.u32 %v8002_v63, 16 }
 0x292   : > { %9183 = vst [vmem:[#allocation5_spill] sm:$0xff] %v7998_v34  ;;  %v880_v34 = vsel %vm620_vm0, %v875_v26, %v879_v56  ;;  %v3961_v26 = vpack.c.b16 %v3596_v11, %v3960_v39  ;;  %v9189_v56 = vrot.slane %v9184_v48, 1  ;;  %v3712_v17 = vshll.u32 %v8008_v24, 16  ;;  %v9191_v39 = vld [vmem:[#allocation41_spill] sm:$0xff] }
 0x293   : > { %v3963_v58 = vrot.slane %v8002_v63, 1  ;;  %v3965_v11 = vrot.slane %v8008_v24, 1 }
 0x294   : > { %v3962_v12 = vrot.slane %v3961_v26, 1  ;;  %v3714_v5 = vrot.slane %v3712_v17, 1 }
 0x297   : > { %v1665_v33 = vpop.f32.mrf.mxu2  ;;  %v2885_v25 = vpop.f32.mrf.mxu3 }
 0x298   : > { %v8013_v2 = vadd.f32 %v1665_v33, %v1497_v59  ;;  %v8015_v52 = vadd.f32 %v3054_v20, %v2885_v25  ;;  %v1499_v32 = vpop.f32.mrf.mxu1  ;;  %v3057_v21 = vpop.f32.mrf.mxu0  ;;  %v9190_v20 = vrot.slane %v9176_v10, 1  ;;  %v3706_v33 = vrot.slane %v3704_v50, 1 }
 0x299   : > { %v1500_v10 = vadd.f32 %v1499_v32, %v9191_v39  ;;  %v3702_v25 = vor.u32 %v3701_v4, %v3697_v15  ;;  %v9194_v32 = vld [vmem:[#allocation20_spill] sm:$0xff]  ;;  %v4077_v4 = vrot.slane %v8004_v19, 2 }
 0x29a   : > { %9186 = vst [vmem:[#allocation36_spill] sm:$0xff] %v8013_v2  ;;  %v8031_v59 = vsel %vm916_vm1, %v9190_v20, %v9189_v56  ;;  %v3710_v23 = vor.u32 %v3708_v60, %v3706_v33  ;;  %v2404_v15 = vrot.slane %v9194_v32, 1 }
 0x29b   : > { %1538 = vmatmul.bf16.gmra.mxu1 %v880_v34  ;;  %3096 = vmatmul.bf16.gmra.mxu0 %v2521_v8  ;;  %v3707_v26 = vsel %vm620_vm0, %v3702_v25, %v3706_v33 }
 0x29c   : > { %1707 = vmatmul.bf16.gmra.mxu2 %v981_v36  ;;  %2927 = vmatmul.bf16.gmra.mxu3 %v2519_v18  ;;  %v3964_v36 = vsel %vm916_vm1, %v3962_v12, %v3963_v58  ;;  %v3966_v18 = vsel %vm916_vm1, %v3963_v58, %v3965_v11  ;;  %v3715_v2 = vsel %vm620_vm0, %v3710_v23, %v3714_v5  ;;  %v4080_v39 = vrot.slane %v3707_v26, 2  ;;  %v8050_v12 = vld [vmem:[#allocation2 + $0x28] sm:$0xff] }
 0x29d   : > { %v4083_v60 = vrot.slane %v3964_v36, 2  ;;  %v4084_v17 = vrot.slane %v3966_v18, 2  ;;  %v3716_v18 = vshrl.u32 %v8008_v24, 16  ;;  %v3720_v26 = vshll.u32 %v8050_v12, 16 }
 0x29f   : > { %v1668_v3 = vpop.f32.mrf.mxu2  ;;  %v2888_v50 = vpop.f32.mrf.mxu3  ;;  %v4085_v19 = vsel %vm4076_vm2, %v4083_v60, %v4084_v17  ;;  %v3718_v60 = vor.u32 %v3716_v18, %v3714_v5  ;;  %v9203_v5 = vld [vmem:[#allocation9_spill] sm:$0xff] }
 0x2a0   : > { %v8038_v56 = vadd.f32 %v1668_v3, %v1500_v10  ;;  %v8040_v20 = vadd.f32 %v3057_v21, %v2888_v50  ;;  %v1501_v34 = vpop.f32.mrf.mxu1  ;;  %v3059_v8 = vpop.f32.mrf.mxu0  ;;  %v4078_v21 = vrot.slane %v8002_v63, 2  ;;  %v4081_v10 = vrot.slane %v3715_v2, 2  ;;  %v9195_v3 = vld [vmem:[#allocation43_spill] sm:$0xff] }
 0x2a1   : > { %v1502_v50 = vadd.f32 %v1501_v34, %v9195_v3  ;;  %v9198_v2 = vrot.slane %v9184_v48, 1 }
 0x2a2   : > { %9192 = vst [vmem:[#allocation15_spill] sm:$0xff] %v8038_v56  ;;  %v4079_v36 = vsel %vm4076_vm2, %v4077_v4, %v4078_v21  ;;  %v4082_v63 = vsel %vm4076_vm2, %v4080_v39, %v4081_v10  ;;  %v3722_v39 = vrot.slane %v3720_v26, 1  ;;  %v8078_v26 = vld [vmem:[#allocation2 + $0x30] sm:$0xff] }
 0x2a3   : > { %9193 = vst [vmem:[#allocation38_spill] sm:$0xff] %v8040_v20  ;;  %v8062_v34 = vsel %vm916_vm1, %v9198_v2, %v2404_v15  ;;  %v4086_v20 = vrot.slane %v8008_v24, 2 }
 0x2a7   : > { %v1670_v58 = vpop.f32.mrf.mxu2  ;;  %v2890_v56 = vpop.f32.mrf.mxu3 }
 0x2a8   : > { %v8052_v33 = vadd.f32 %v1670_v58, %v1502_v50  ;;  %v8054_v25 = vadd.f32 %v3059_v8, %v2890_v56  ;;  %v1504_v23 = vpop.f32.mrf.mxu1  ;;  %v3062_v32 = vpop.f32.mrf.mxu0  ;;  %v3967_v56 = vrot.slane %v8050_v12, 1  ;;  %v9199_v8 = vld [vmem:[#allocation7_spill] sm:$0xff] }
 0x2a9   : > { %v1505_v4 = vadd.f32 %v1504_v23, %v9199_v8 }
 0x2aa   : > { %9196 = vst [vmem:[#allocation41_spill] sm:$0xff] %v8052_v33 }
 0x2ab   : > { %9197 = vst [vmem:[#allocation20_spill] sm:$0xff] %v8054_v25  ;;  %3110 = vmatmul.bf16.vlgmr.msra.gmra.mxu1 %v7992_v57  ;;  %4858 = vmatmul.bf16.vlgmr.msra.gmra.mxu0 %v4085_v19  ;;  %v3968_v25 = vsel %vm916_vm1, %v3965_v11, %v3967_v56  ;;  %v3723_v57 = vsel %vm620_vm0, %v3718_v60, %v3722_v39 }
 0x2ac   : > { %4520 = vmatmul.bf16.vlgmr.msra.gmra.mxu2 %v4079_v36  ;;  %4689 = vmatmul.bf16.vlgmr.msra.gmra.mxu3 %v4082_v63  ;;  %v4090_v19 = vrot.slane %v3968_v25, 2  ;;  %v9202_v36 = vld [vmem:[#allocation25_spill] sm:$0xff]  ;;  %v4088_v23 = vrot.slane %v3723_v57, 2  ;;  %v4087_v25 = vsel %vm4076_vm2, %v4078_v21, %v4086_v20  ;;  %v3728_v57 = vshll.u32 %v8078_v26, 16 }
 0x2ad   : > { %v2408_v63 = vrot.slane %v9202_v36, 1 }
 0x2ae   : > { %v4091_v60 = vsel %vm4076_vm2, %v4084_v17, %v4090_v19  ;;  %v4089_v36 = vsel %vm4076_vm2, %v4081_v10, %v4088_v23  ;;  %v3730_v21 = vrot.slane %v3728_v57, 1  ;;  %v8104_v57 = vld [vmem:[#allocation2 + $0x38] sm:$0xff] }
 0x2af   : > { %v1673_v3 = vpop.f32.mrf.mxu2  ;;  %v2893_v48 = vpop.f32.mrf.mxu3  ;;  %v8088_v24 = vsel %vm916_vm1, %v2404_v15, %v2408_v63 }
 0x2b0   : > { %v8069_v50 = vadd.f32 %v1673_v3, %v1505_v4  ;;  %v8071_v58 = vadd.f32 %v3062_v32, %v2893_v48  ;;  %v1506_v2 = vpop.f32.mrf.mxu1  ;;  %v3064_v33 = vpop.f32.mrf.mxu0 }
 0x2b1   : > { %v1507_v18 = vadd.f32 %v1506_v2, %v9203_v5  ;;  %v3724_v2 = vshrl.u32 %v8050_v12, 16  ;;  %v9206_v5 = vld [vmem:[#allocation12_spill] sm:$0xff] }
 0x2b2   : > { %9200 = vst [vmem:[#allocation43_spill] sm:$0xff] %v8069_v50 }
 0x2b3   : > { %9201 = vst [vmem:[#allocation7_spill] sm:$0xff] %v8071_v58  ;;  %v4092_v58 = vrot.slane %v8050_v12, 2 }
 0x2b7   : > { %v1675_v8 = vpop.f32.mrf.mxu2  ;;  %v2895_v4 = vpop.f32.mrf.mxu3 }
 0x2b8   : > { %v8080_v32 = vadd.f32 %v1675_v8, %v1507_v18  ;;  %v8082_v3 = vadd.f32 %v3064_v33, %v2895_v4  ;;  %v1509_v48 = vpop.f32.mrf.mxu1  ;;  %v3067_v11 = vpop.f32.mrf.mxu0  ;;  %v3969_v33 = vrot.slane %v8078_v26, 1  ;;  %v3726_v18 = vor.u32 %v3724_v2, %v3722_v39  ;;  %v9210_v39 = vld [vmem:[#allocation14_spill] sm:$0xff] }
 0x2b9   : > { %v1510_v17 = vadd.f32 %v1509_v48, %v9206_v5 }
 0x2ba   : > { %9204 = vst [vmem:[#allocation25_spill] sm:$0xff] %v8080_v32  ;;  %v3970_v50 = vsel %vm916_vm1, %v3967_v56, %v3969_v33 }
 0x2bb   : > { %9205 = vst [vmem:[#allocation9_spill] sm:$0xff] %v8082_v3  ;;  %3115 = vmatmul.bf16.gmra.mxu1 %v8031_v59  ;;  %4863 = vmatmul.bf16.gmra.mxu0 %v4091_v60  ;;  %v3731_v59 = vsel %vm620_vm0, %v3726_v18, %v3730_v21  ;;  %v4096_v60 = vrot.slane %v3970_v50, 2  ;;  %v4093_v50 = vsel %vm4076_vm2, %v4086_v20, %v4092_v58 }
 0x2bc   : > { %4525 = vmatmul.bf16.gmra.mxu2 %v4087_v25  ;;  %4694 = vmatmul.bf16.gmra.mxu3 %v4089_v36  ;;  %v9209_v25 = vld [vmem:[#allocation30_spill] sm:$0xff]  ;;  %v4094_v48 = vrot.slane %v3731_v59, 2  ;;  %v3736_v59 = vshll.u32 %v8104_v57, 16 }
 0x2bd   : > { %v2412_v36 = vrot.slane %v9209_v25, 1  ;;  %v4097_v18 = vsel %vm4076_vm2, %v4090_v19, %v4096_v60 }
 0x2be   : > { %v4095_v25 = vsel %vm4076_vm2, %v4088_v23, %v4094_v48  ;;  %v3738_v20 = vrot.slane %v3736_v59, 1  ;;  %v8130_v59 = vld [vmem:[#allocation2 + $0x40] sm:$0xff] }
 0x2bf   : > { %v1678_v8 = vpop.f32.mrf.mxu2  ;;  %v2898_v10 = vpop.f32.mrf.mxu3  ;;  %v8114_v12 = vsel %vm916_vm1, %v2408_v63, %v2412_v36 }
 0x2c0   : > { %v8095_v4 = vadd.f32 %v1678_v8, %v1510_v17  ;;  %v8097_v15 = vadd.f32 %v3067_v11, %v2898_v10  ;;  %v1511_v32 = vpop.f32.mrf.mxu1  ;;  %v3069_v3 = vpop.f32.mrf.mxu0 }
 0x2c1   : > { %v1512_v2 = vadd.f32 %v1511_v32, %v9210_v39  ;;  %v3732_v32 = vshrl.u32 %v8078_v26, 16  ;;  %v9213_v39 = vld [vmem:[#allocation17_spill] sm:$0xff] }
 0x2c2   : > { %9207 = vst [vmem:[#allocation12_spill] sm:$0xff] %v8095_v4 }
 0x2c3   : > { %9208 = vst [vmem:[#allocation113_spill] sm:$0xff] %v8097_v15  ;;  %v4098_v15 = vrot.slane %v8078_v26, 2 }
 0x2c7   : > { %v1680_v5 = vpop.f32.mrf.mxu2  ;;  %v2900_v17 = vpop.f32.mrf.mxu3 }
 0x2c8   : > { %v8106_v11 = vadd.f32 %v1680_v5, %v1512_v2  ;;  %v8108_v8 = vadd.f32 %v3069_v3, %v2900_v17  ;;  %v1514_v10 = vpop.f32.mrf.mxu1  ;;  %v3072_v56 = vpop.f32.mrf.mxu0  ;;  %v3971_v3 = vrot.slane %v8104_v57, 1  ;;  %v3734_v2 = vor.u32 %v3732_v32, %v3730_v21  ;;  %v9217_v21 = vld [vmem:[#allocation19_spill] sm:$0xff] }
 0x2c9   : > { %v1515_v19 = vadd.f32 %v1514_v10, %v9213_v39 }
 0x2ca   : > { %9211 = vst [vmem:[#allocation30_spill] sm:$0xff] %v8106_v11  ;;  %v3972_v4 = vsel %vm916_vm1, %v3969_v33, %v3971_v3 }
 0x2cb   : > { %9212 = vst [vmem:[#allocation14_spill] sm:$0xff] %v8108_v8  ;;  %3120 = vmatmul.bf16.gmra.mxu1 %v8062_v34  ;;  %4868 = vmatmul.bf16.gmra.mxu0 %v4097_v18  ;;  %v3739_v34 = vsel %vm620_vm0, %v3734_v2, %v3738_v20  ;;  %v4102_v18 = vrot.slane %v3972_v4, 2  ;;  %v4099_v4 = vsel %vm4076_vm2, %v4092_v58, %v4098_v15 }
 0x2cc   : > { %4530 = vmatmul.bf16.gmra.mxu2 %v4093_v50  ;;  %4699 = vmatmul.bf16.gmra.mxu3 %v4095_v25  ;;  %v9216_v50 = vld [vmem:[#allocation35_spill] sm:$0xff]  ;;  %v4100_v10 = vrot.slane %v3739_v34, 2  ;;  %v3744_v34 = vshll.u32 %v8130_v59, 16 }
 0x2cd   : > { %v2416_v25 = vrot.slane %v9216_v50, 1  ;;  %v4103_v2 = vsel %vm4076_vm2, %v4096_v60, %v4102_v18 }
 0x2ce   : > { %v4101_v50 = vsel %vm4076_vm2, %v4094_v48, %v4100_v10  ;;  %v3746_v58 = vrot.slane %v3744_v34, 1  ;;  %v8156_v34 = vld [vmem:[#allocation2 + $0x48] sm:$0xff] }
 0x2cf   : > { %v1683_v5 = vpop.f32.mrf.mxu2  ;;  %v2903_v23 = vpop.f32.mrf.mxu3  ;;  %v8140_v26 = vsel %vm916_vm1, %v2412_v36, %v2416_v25 }
 0x2d0   : > { %v8121_v17 = vadd.f32 %v1683_v5, %v1515_v19  ;;  %v8123_v63 = vadd.f32 %v3072_v56, %v2903_v23  ;;  %v1516_v11 = vpop.f32.mrf.mxu1  ;;  %v3074_v8 = vpop.f32.mrf.mxu0 }
 0x2d1   : > { %v1517_v32 = vadd.f32 %v1516_v11, %v9217_v21  ;;  %v3740_v11 = vshrl.u32 %v8104_v57, 16  ;;  %v9220_v21 = vld [vmem:[#allocation22_spill] sm:$0xff] }
 0x2d2   : > { %9214 = vst [vmem:[#allocation17_spill] sm:$0xff] %v8121_v17 }
 0x2d3   : > { %9215 = vst [vmem:[#allocation114_spill] sm:$0xff] %v8123_v63  ;;  %v4104_v63 = vrot.slane %v8104_v57, 2 }
 0x2d7   : > { %v1685_v39 = vpop.f32.mrf.mxu2  ;;  %v2905_v19 = vpop.f32.mrf.mxu3 }
 0x2d8   : > { %v8132_v56 = vadd.f32 %v1685_v39, %v1517_v32  ;;  %v8134_v5 = vadd.f32 %v3074_v8, %v2905_v19  ;;  %v1519_v23 = vpop.f32.mrf.mxu1  ;;  %v3077_v33 = vpop.f32.mrf.mxu0  ;;  %v3973_v8 = vrot.slane %v8130_v59, 1  ;;  %v3742_v32 = vor.u32 %v3740_v11, %v3738_v20  ;;  %v9224_v20 = vld [vmem:[#allocation24_spill] sm:$0xff] }
 0x2d9   : > { %v1520_v60 = vadd.f32 %v1519_v23, %v9220_v21 }
 0x2da   : > { %9218 = vst [vmem:[#allocation35_spill] sm:$0xff] %v8132_v56  ;;  %v3974_v17 = vsel %vm916_vm1, %v3971_v3, %v3973_v8 }
 0x2db   : > { %9219 = vst [vmem:[#allocation19_spill] sm:$0xff] %v8134_v5  ;;  %3125 = vmatmul.bf16.gmra.mxu1 %v8088_v24  ;;  %4873 = vmatmul.bf16.gmra.mxu0 %v4103_v2  ;;  %v3747_v24 = vsel %vm620_vm0, %v3742_v32, %v3746_v58  ;;  %v4108_v2 = vrot.slane %v3974_v17, 2  ;;  %v4105_v17 = vsel %vm4076_vm2, %v4098_v15, %v4104_v63 }
 0x2dc   : > { %4535 = vmatmul.bf16.gmra.mxu2 %v4099_v4  ;;  %4704 = vmatmul.bf16.gmra.mxu3 %v4101_v50  ;;  %v9223_v4 = vld [vmem:[#allocation40_spill] sm:$0xff]  ;;  %v4106_v23 = vrot.slane %v3747_v24, 2  ;;  %v3752_v24 = vshll.u32 %v8156_v34, 16 }
 0x2dd   : > { %v2420_v50 = vrot.slane %v9223_v4, 1  ;;  %v4109_v32 = vsel %vm4076_vm2, %v4102_v18, %v4108_v2 }
 0x2de   : > { %v4107_v4 = vsel %vm4076_vm2, %v4100_v10, %v4106_v23  ;;  %v3754_v15 = vrot.slane %v3752_v24, 1  ;;  %v8182_v24 = vld [vmem:[#allocation2 + $0x50] sm:$0xff] }
 0x2df   : > { %v1688_v39 = vpop.f32.mrf.mxu2  ;;  %v2908_v48 = vpop.f32.mrf.mxu3  ;;  %v8166_v57 = vsel %vm916_vm1, %v2416_v25, %v2420_v50 }
 0x2e0   : > { %v8147_v19 = vadd.f32 %v1688_v39, %v1520_v60  ;;  %v8149_v36 = vadd.f32 %v3077_v33, %v2908_v48  ;;  %v1521_v56 = vpop.f32.mrf.mxu1  ;;  %v3079_v5 = vpop.f32.mrf.mxu0 }
 0x2e1   : > { %v1522_v11 = vadd.f32 %v1521_v56, %v9224_v20  ;;  %v3748_v56 = vshrl.u32 %v8130_v59, 16  ;;  %v9227_v20 = vld [vmem:[#allocation27_spill] sm:$0xff] }
 0x2e2   : > { %9221 = vst [vmem:[#allocation22_spill] sm:$0xff] %v8147_v19 }
 0x2e3   : > { %9222 = vst [vmem:[#allocation115_spill] sm:$0xff] %v8149_v36  ;;  %v4110_v36 = vrot.slane %v8130_v59, 2 }
 0x2e7   : > { %v1690_v21 = vpop.f32.mrf.mxu2  ;;  %v2910_v60 = vpop.f32.mrf.mxu3 }
 0x2e8   : > { %v8158_v33 = vadd.f32 %v1690_v21, %v1522_v11  ;;  %v8160_v39 = vadd.f32 %v3079_v5, %v2910_v60  ;;  %v1524_v48 = vpop.f32.mrf.mxu1  ;;  %v3082_v3 = vpop.f32.mrf.mxu0  ;;  %v3975_v5 = vrot.slane %v8156_v34, 1  ;;  %v3750_v11 = vor.u32 %v3748_v56, %v3746_v58  ;;  %v9231_v58 = vld [vmem:[#allocation29_spill] sm:$0xff] }
 0x2e9   : > { %v1525_v18 = vadd.f32 %v1524_v48, %v9227_v20 }
 0x2ea   : > { %9225 = vst [vmem:[#allocation40_spill] sm:$0xff] %v8158_v33  ;;  %v3976_v19 = vsel %vm916_vm1, %v3973_v8, %v3975_v5 }
 0x2eb   : > { %9226 = vst [vmem:[#allocation24_spill] sm:$0xff] %v8160_v39  ;;  %3130 = vmatmul.bf16.gmra.mxu1 %v8114_v12  ;;  %4878 = vmatmul.bf16.gmra.mxu0 %v4109_v32  ;;  %v3755_v12 = vsel %vm620_vm0, %v3750_v11, %v3754_v15  ;;  %v4114_v32 = vrot.slane %v3976_v19, 2  ;;  %v4111_v19 = vsel %vm4076_vm2, %v4104_v63, %v4110_v36 }
 0x2ec   : > { %4540 = vmatmul.bf16.gmra.mxu2 %v4105_v17  ;;  %4709 = vmatmul.bf16.gmra.mxu3 %v4107_v4  ;;  %v9230_v17 = vld [vmem:[#allocation45_spill] sm:$0xff]  ;;  %v4112_v48 = vrot.slane %v3755_v12, 2  ;;  %v3760_v12 = vshll.u32 %v8182_v24, 16 }
 0x2ed   : > { %v2424_v4 = vrot.slane %v9230_v17, 1  ;;  %v4115_v11 = vsel %vm4076_vm2, %v4108_v2, %v4114_v32 }
 0x2ee   : > { %v4113_v17 = vsel %vm4076_vm2, %v4106_v23, %v4112_v48  ;;  %v3762_v63 = vrot.slane %v3760_v12, 1 }
 0x2ef   : > { %v1693_v21 = vpop.f32.mrf.mxu2  ;;  %v2913_v10 = vpop.f32.mrf.mxu3  ;;  %v8192_v59 = vsel %vm916_vm1, %v2420_v50, %v2424_v4 }
 0x2f0   : > { %v8173_v60 = vadd.f32 %v1693_v21, %v1525_v18  ;;  %v8175_v25 = vadd.f32 %v3082_v3, %v2913_v10  ;;  %v1526_v33 = vpop.f32.mrf.mxu1  ;;  %v3084_v39 = vpop.f32.mrf.mxu0 }
 0x2f1   : > { %v1527_v56 = vadd.f32 %v1526_v33, %v9231_v58  ;;  %v3756_v33 = vshrl.u32 %v8156_v34, 16  ;;  %v9234_v58 = vld [vmem:[#allocation32_spill] sm:$0xff] }
 0x2f2   : > { %9228 = vst [vmem:[#allocation27_spill] sm:$0xff] %v8173_v60 }
 0x2f3   : > { %9229 = vst [vmem:[#allocation116_spill] sm:$0xff] %v8175_v25  ;;  %v9236_v25 = vld [vmem:[#allocation34_spill] sm:$0xff] }
 0x2f7   : > { %v1695_v20 = vpop.f32.mrf.mxu2  ;;  %v2915_v18 = vpop.f32.mrf.mxu3 }
 0x2f8   : > { %v8184_v3 = vadd.f32 %v1695_v20, %v1527_v56  ;;  %v8186_v21 = vadd.f32 %v3084_v39, %v2915_v18  ;;  %v1529_v10 = vpop.f32.mrf.mxu1  ;;  %v3087_v8 = vpop.f32.mrf.mxu0  ;;  %v3977_v39 = vrot.slane %v8182_v24, 1  ;;  %v3758_v56 = vor.u32 %v3756_v33, %v3754_v15  ;;  %v8207_v15 = vld [vmem:[#allocation2 + $0x58] sm:$0xff] }
 0x2f9   : > { %v1530_v2 = vadd.f32 %v1529_v10, %v9234_v58  ;;  %v2428_v33 = vrot.slane %v7381_v54, 1 }
 0x2fa   : > { %9232 = vst [vmem:[#allocation45_spill] sm:$0xff] %v8184_v3  ;;  %v3978_v60 = vsel %vm916_vm1, %v3975_v5, %v3977_v39 }
 0x2fb   : > { %9233 = vst [vmem:[#allocation29_spill] sm:$0xff] %v8186_v21  ;;  %3135 = vmatmul.bf16.gmra.mxu1 %v8140_v26  ;;  %4883 = vmatmul.bf16.gmra.mxu0 %v4115_v11  ;;  %v3763_v26 = vsel %vm620_vm0, %v3758_v56, %v3762_v63  ;;  %v4120_v11 = vrot.slane %v3978_v60, 2  ;;  %v8221_v54 = vsel %vm916_vm1, %v2424_v4, %v2428_v33 }
 0x2fc   : > { %4545 = vmatmul.bf16.gmra.mxu2 %v4111_v19  ;;  %4714 = vmatmul.bf16.gmra.mxu3 %v4113_v17  ;;  %v4116_v19 = vrot.slane %v8156_v34, 2  ;;  %v4118_v17 = vrot.slane %v3763_v26, 2 }
 0x2fd   : > { %v4121_v56 = vsel %vm4076_vm2, %v4114_v32, %v4120_v11 }
 0x2fe   : > { %v4117_v60 = vsel %vm4076_vm2, %v4110_v36, %v4116_v19  ;;  %v4119_v34 = vsel %vm4076_vm2, %v4112_v48, %v4118_v17 }
 0x2ff   : > { %v1698_v20 = vpop.f32.mrf.mxu2  ;;  %v2918_v23 = vpop.f32.mrf.mxu3 }
 0x300   : > { %v8199_v18 = vadd.f32 %v1698_v20, %v1530_v2  ;;  %v8201_v50 = vadd.f32 %v3087_v8, %v2918_v23  ;;  %v1531_v3 = vpop.f32.mrf.mxu1  ;;  %v3089_v21 = vpop.f32.mrf.mxu0  ;;  %v9239_v23 = vld [vmem:[#allocation37_spill] sm:$0xff] }
 0x301   : > { %v1532_v10 = vadd.f32 %v1531_v3, %v9236_v25  ;;  %v3764_v25 = vshrl.u32 %v8182_v24, 16  ;;  %v3768_v3 = vshll.u32 %v8207_v15, 16 }
 0x302   : > { %9235 = vst [vmem:[#allocation32_spill] sm:$0xff] %v8199_v18  ;;  %v9241_v18 = vld [vmem:[#allocation39_spill] sm:$0xff] }
 0x303   : > { %v3766_v26 = vor.u32 %v3764_v25, %v3762_v63  ;;  %v3770_v36 = vrot.slane %v3768_v3, 1  ;;  %v8233_v63 = vld [vmem:[#allocation2 + $0x60] sm:$0xff]  ;;  %v2432_v25 = vrot.slane %v7407_v6, 1 }
 0x305   : > { %v3771_v4 = vsel %vm620_vm0, %v3766_v26, %v3770_v36  ;;  %v8247_v6 = vsel %vm916_vm1, %v2428_v33, %v2432_v25 }
 0x307   : > { %v1700_v12 = vpop.f32.mrf.mxu2  ;;  %v2920_v58 = vpop.f32.mrf.mxu3 }
 0x308   : > { %v8210_v8 = vadd.f32 %v1700_v12, %v1532_v10  ;;  %v8212_v2 = vadd.f32 %v3089_v21, %v2920_v58  ;;  %v1534_v20 = vpop.f32.mrf.mxu1  ;;  %v3092_v5 = vpop.f32.mrf.mxu0  ;;  %v3979_v21 = vrot.slane %v8207_v15, 1 }
 0x309   : > { %v1535_v32 = vadd.f32 %v1534_v20, %v9239_v23 }
 0x30a   : > { %9237 = vst [vmem:[#allocation34_spill] sm:$0xff] %v8210_v8 }
 0x30b   : > { %9238 = vst [vmem:[#allocation117_spill] sm:$0xff] %v8212_v2  ;;  %3140 = vmatmul.bf16.gmra.mxu1 %v8166_v57  ;;  %4888 = vmatmul.bf16.gmra.mxu0 %v4121_v56  ;;  %v3980_v56 = vsel %vm916_vm1, %v3977_v39, %v3979_v21  ;;  %v4124_v2 = vrot.slane %v3771_v4, 2 }
 0x30c   : > { %4550 = vmatmul.bf16.gmra.mxu2 %v4117_v60  ;;  %4719 = vmatmul.bf16.gmra.mxu3 %v4119_v34  ;;  %v4126_v60 = vrot.slane %v3980_v56, 2  ;;  %v4122_v34 = vrot.slane %v8182_v24, 2  ;;  %v9244_v56 = vld [vmem:[#allocation42_spill] sm:$0xff] }
 0x30d   : > { %v4125_v24 = vsel %vm4076_vm2, %v4118_v17, %v4124_v2 }
 0x30e   : > { %v4127_v26 = vsel %vm4076_vm2, %v4120_v11, %v4126_v60 }
 0x30f   : > { %v1703_v10 = vpop.f32.mrf.mxu2  ;;  %v2923_v48 = vpop.f32.mrf.mxu3 }
 0x310   : > { %v8225_v12 = vadd.f32 %v1703_v10, %v1535_v32  ;;  %v8227_v58 = vadd.f32 %v3092_v5, %v2923_v48  ;;  %v1536_v8 = vpop.f32.mrf.mxu1  ;;  %v3094_v57 = vpop.f32.mrf.mxu0  ;;  %v4123_v48 = vsel %vm4076_vm2, %v4116_v19, %v4122_v34 }
 0x311   : > { %v1537_v20 = vadd.f32 %v1536_v8, %v9241_v18  ;;  %v3772_v18 = vshrl.u32 %v8207_v15, 16  ;;  %v3776_v8 = vshll.u32 %v8233_v63, 16 }
 0x312   : > { %9240 = vst [vmem:[#allocation37_spill] sm:$0xff] %v8225_v12  ;;  %v9245_v12 = vld [vmem:[#allocation44_spill] sm:$0xff] }
 0x313   : > { %v3774_v4 = vor.u32 %v3772_v18, %v3770_v36  ;;  %v3778_v19 = vrot.slane %v3776_v8, 1  ;;  %v8259_v36 = vld [vmem:[#allocation2 + $0x68] sm:$0xff]  ;;  %v2436_v18 = vrot.slane %v7445_v7, 1 }
 0x314   : > { %v3784_v7 = vshll.u32 %v8259_v36, 16 }
 0x315   : > { %v3779_v33 = vsel %vm620_vm0, %v3774_v4, %v3778_v19 }
 0x317   : > { %v1705_v3 = vpop.f32.mrf.mxu2  ;;  %v2925_v23 = vpop.f32.mrf.mxu3 }
 0x318   : > { %v8236_v5 = vadd.f32 %v1705_v3, %v1537_v20  ;;  %v8238_v32 = vadd.f32 %v3094_v57, %v2925_v23  ;;  %v1539_v10 = vpop.f32.mrf.mxu1  ;;  %v3097_v39 = vpop.f32.mrf.mxu0  ;;  %v3981_v57 = vrot.slane %v8233_v63, 1 }
 0x319   : > { %v1540_v11 = vadd.f32 %v1539_v10, %v9244_v56 }
 0x31a   : > { %9242 = vst [vmem:[#allocation39_spill] sm:$0xff] %v8236_v5 }
 0x31b   : > { %9243 = vst [vmem:[#allocation118_spill] sm:$0xff] %v8238_v32  ;;  %3145 = vmatmul.bf16.gmra.mxu1 %v8192_v59  ;;  %4893 = vmatmul.bf16.gmra.mxu0 %v4127_v26  ;;  %v3982_v26 = vsel %vm916_vm1, %v3979_v21, %v3981_v57  ;;  %v4130_v32 = vrot.slane %v3779_v33, 2 }
 0x31c   : > { %4555 = vmatmul.bf16.gmra.mxu2 %v4123_v48  ;;  %4724 = vmatmul.bf16.gmra.mxu3 %v4125_v24  ;;  %v4132_v48 = vrot.slane %v3982_v26, 2  ;;  %v4128_v24 = vrot.slane %v8207_v15, 2  ;;  %v9248_v26 = vld [vmem:[#allocation46_spill] sm:$0xff] }
 0x31e   : > { %v4133_v4 = vsel %vm4076_vm2, %v4126_v60, %v4132_v48  ;;  %v4129_v15 = vsel %vm4076_vm2, %v4122_v34, %v4128_v24  ;;  %v3786_v34 = vrot.slane %v3784_v7, 1  ;;  %v8289_v7 = vld [vmem:[#allocation2 + $0x70] sm:$0xff] }
 0x31f   : > { %v1708_v20 = vpop.f32.mrf.mxu2  ;;  %v2928_v17 = vpop.f32.mrf.mxu3 }
 0x320   : > { %v8251_v3 = vadd.f32 %v1708_v20, %v1540_v11  ;;  %v8253_v23 = vadd.f32 %v3097_v39, %v2928_v17  ;;  %v1541_v5 = vpop.f32.mrf.mxu1  ;;  %v3099_v59 = vpop.f32.mrf.mxu0 }
 0x321   : > { %v1542_v10 = vadd.f32 %v1541_v5, %v9245_v12  ;;  %v4131_v12 = vsel %vm4076_vm2, %v4124_v2, %v4130_v32  ;;  %v3780_v5 = vshrl.u32 %v8233_v63, 16 }
 0x323   : > { %v3782_v60 = vor.u32 %v3780_v5, %v3778_v19  ;;  %v4134_v19 = vrot.slane %v8233_v63, 2 }
 0x327   : > { %v1710_v8 = vpop.f32.mrf.mxu2  ;;  %v2930_v56 = vpop.f32.mrf.mxu3 }
 0x328   : > { %v8262_v39 = vadd.f32 %v1710_v8, %v1542_v10  ;;  %v8264_v11 = vadd.f32 %v3099_v59, %v2930_v56  ;;  %v3111_v20 = vpop.f32.mrf.mxu1  ;;  %v4859_v21 = vpop.f32.mrf.mxu0  ;;  %v8275_v59 = vsel %vm916_vm1, %v2432_v25, %v2436_v18  ;;  %v9249_v25 = vld [vmem:[#allocation47_spill] sm:$0xff] }
 0x329   : > { %v3112_v17 = vadd.f32 %v3111_v20, %v7363_v51  ;;  %v3983_v51 = vrot.slane %v8259_v36, 1 }
 0x32a   : > { %9246 = vst [vmem:[#allocation42_spill] sm:$0xff] %v8262_v39 }
 0x32b   : > { %9247 = vst [vmem:[#allocation44_spill] sm:$0xff] %v8264_v11  ;;  %v3335_v33 = vadd.f32 %v3112_v17, %v9248_v26  ;;  %3150 = vmatmul.bf16.gmra.mxu1 %v8221_v54  ;;  %4898 = vmatmul.bf16.gmra.mxu0 %v4133_v4  ;;  %v8280_v17 = vsel %vm916_vm1, %v3981_v57, %v3983_v51 }
 0x32c   : > { %4560 = vmatmul.bf16.gmra.mxu2 %v4129_v15  ;;  %4729 = vmatmul.bf16.gmra.mxu3 %v4131_v12  ;;  %v8283_v54 = vsel %vm620_vm0, %v3782_v60, %v3786_v34  ;;  %v4138_v12 = vrot.slane %v8280_v17, 2  ;;  %v8295_v60 = vld [vmem:[%s9012_s3] ss:$0 sm:$0xff] }
 0x32d   : > { %v4136_v5 = vrot.slane %v8283_v54, 2 }
 0x32f   : > { %v4521_v10 = vpop.f32.mrf.mxu2  ;;  %v4690_v2 = vpop.f32.mrf.mxu3  ;;  %v4137_v17 = vsel %vm4076_vm2, %v4130_v32, %v4136_v5  ;;  %v3985_v32 = vrot.slane %v8289_v7, 1 }
 0x330   : > { %v4691_v8 = vadd.f32 %v4690_v2, %v4521_v10  ;;  %v3113_v56 = vpop.f32.mrf.mxu1  ;;  %v4861_v20 = vpop.f32.mrf.mxu0 }
 0x331   : > { %v3114_v39 = vadd.f32 %v3113_v56, %v7375_v41  ;;  %v4135_v56 = vsel %vm4076_vm2, %v4128_v24, %v4134_v19 }
 0x332   : > { %v4860_v15 = vadd.f32 %v4859_v21, %v4691_v8  ;;  %v4139_v8 = vsel %vm4076_vm2, %v4132_v48, %v4138_v12 }
 0x333   : > { %v3336_v4 = vadd.f32 %v3114_v39, %v9249_v25  ;;  %v3788_v25 = vshrl.u32 %v8259_v36, 16 }
 0x334   : > { %v5083_v57 = vadd.f32 %v4860_v15, %v3335_v33  ;;  %v3792_v33 = vshll.u32 %v8289_v7, 16  ;;  %v9250_v15 = vld [vmem:[#allocation48_spill] sm:$0xff] }
 0x337   : > { %v4523_v41 = vpop.f32.mrf.mxu2  ;;  %v4692_v10 = vpop.f32.mrf.mxu3 }
 0x338   : > { %v4693_v39 = vadd.f32 %v4692_v10, %v4523_v41  ;;  %v3116_v21 = vpop.f32.mrf.mxu1  ;;  %v4864_v2 = vpop.f32.mrf.mxu0  ;;  %v9251_v41 = vrot.slane %v7471_v44, 1  ;;  %v3790_v10 = vor.u32 %v3788_v25, %v3786_v34 }
 0x339   : > { %v3117_v63 = vadd.f32 %v3116_v21, %v7389_v31  ;;  %v5279_v31 = vadd.f32 %v8295_v60, %v5083_v57  ;;  %v8322_v57 = vsel %vm916_vm1, %v3983_v51, %v3985_v32 }
 0x33a   : > { %v4862_v54 = vadd.f32 %v4861_v20, %v4693_v39  ;;  %v8308_v48 = vsel %vm916_vm1, %v2436_v18, %v9251_v41  ;;  %v3794_v39 = vrot.slane %v3792_v33, 1  ;;  %v4144_v33 = vrot.slane %v8322_v57, 2 }
 0x33b   : > { %v3337_v26 = vadd.f32 %v3117_v63, %v9250_v15  ;;  %3155 = vmatmul.bf16.gmra.mxu1 %v8247_v6  ;;  %4903 = vmatmul.bf16.gmra.mxu0 %v4139_v8  ;;  %v5343_v8 = vmax.f32 %v5279_v31, 0.0  ;;  %v4140_v41 = vrot.slane %v8259_v36, 2 }
 0x33c   : > { %v5084_v24 = vadd.f32 %v4862_v54, %v3336_v4  ;;  %4565 = vmatmul.bf16.gmra.mxu2 %v4135_v56  ;;  %4734 = vmatmul.bf16.gmra.mxu3 %v4137_v17  ;;  %v8325_v56 = vsel %vm620_vm0, %v3790_v10, %v3794_v39  ;;  %v9252_v17 = vld [vmem:[#allocation49_spill] sm:$0xff] }
 0x33d   : > { %v4142_v31 = vrot.slane %v8325_v56, 2 }
 0x33e   : > { %v5280_v20 = vadd.f32 %v8295_v60, %v5084_v24  ;;  %v8332_v24 = vld [vmem:[#allocation2 + $0x78] sm:$0xff] }
 0x33f   : > { %v4526_v21 = vpop.f32.mrf.mxu2  ;;  %v4695_v6 = vpop.f32.mrf.mxu3  ;;  %v4143_v36 = vsel %vm4076_vm2, %v4136_v5, %v4142_v31  ;;  %v3800_v57 = vshll.u32 %v8332_v24, 16  ;;  %v3987_v5 = vrot.slane %v8332_v24, 1 }
 0x340   : > { %v5344_v63 = vmax.f32 %v5280_v20, 0.0  ;;  %v4696_v15 = vadd.f32 %v4695_v6, %v4526_v21  ;;  %v3118_v11 = vpop.f32.mrf.mxu1  ;;  %v4866_v18 = vpop.f32.mrf.mxu0 }
 0x341   : > { %v3119_v4 = vadd.f32 %v3118_v11, %v7401_v53  ;;  %v2444_v53 = vrot.slane %v7497_v16, 1  ;;  %v9253_v16 = vld [vmem:[#allocation50_spill] sm:$0xff] }
 0x342   : > { %v6543_v34 = vpack.c.bf16 %v5344_v63, %v5343_v8  ;;  %v4865_v25 = vadd.f32 %v4864_v2, %v4696_v15  ;;  %v4145_v8 = vsel %vm4076_vm2, %v4138_v12, %v4144_v33  ;;  %v4141_v63 = vsel %vm4076_vm2, %v4134_v19, %v4140_v41 }
 0x343   : > { %v3338_v54 = vadd.f32 %v3119_v4, %v9252_v17  ;;  %v3796_v4 = vshrl.u32 %v8289_v7, 16  ;;  %v3802_v17 = vrot.slane %v3800_v57, 1 }
 0x344   : > { %6544 = vst [vmem:[%s8318_s20] sm:$0xff] %v6543_v34   ;;  %v5085_v20 = vadd.f32 %v4865_v25, %v3337_v26  ;;  %v9254_v26 = vrot.slane %v7471_v44, 1 }
 0x345   : > { %v3798_v56 = vor.u32 %v3796_v4, %v3794_v39  ;;  %v4146_v4 = vrot.slane %v8289_v7, 2 }
 0x346   : > { %v8346_v12 = vsel %vm916_vm1, %v9254_v26, %v2444_v53 }
 0x347   : > { %v4528_v11 = vpop.f32.mrf.mxu2  ;;  %v4697_v51 = vpop.f32.mrf.mxu3 }
 0x348   : > { %v4698_v21 = vadd.f32 %v4697_v51, %v4528_v11  ;;  %v3121_v10 = vpop.f32.mrf.mxu1  ;;  %v4869_v6 = vpop.f32.mrf.mxu0 }
 0x349   : > { %v3122_v2 = vadd.f32 %v3121_v10, %v7421_v46  ;;  %v5281_v46 = vadd.f32 %v8295_v60, %v5085_v20 }
 0x34a   : > { %v4867_v15 = vadd.f32 %v4866_v18, %v4698_v21 }
 0x34b   : > { %v3339_v34 = vadd.f32 %v3122_v2, %v9253_v16  ;;  %3160 = vmatmul.bf16.gmra.mxu1 %v8275_v59  ;;  %4908 = vmatmul.bf16.gmra.mxu0 %v4145_v8  ;;  %v5345_v11 = vmax.f32 %v5281_v46, 0.0  ;;  %v8356_v2 = vsel %vm620_vm0, %v3798_v56, %v3802_v17  ;;  %v8363_v16 = vld [vmem:[#allocation2 + $0x80] sm:$0xff] }
 0x34c   : > { %v5086_v19 = vadd.f32 %v4867_v15, %v3338_v54  ;;  %4570 = vmatmul.bf16.gmra.mxu2 %v4141_v63  ;;  %4739 = vmatmul.bf16.gmra.mxu3 %v4143_v36  ;;  %v8353_v54 = vsel %vm916_vm1, %v3985_v32, %v3987_v5  ;;  %v9255_v63 = vld [vmem:[#allocation51_spill] sm:$0xff]  ;;  %v4148_v57 = vrot.slane %v8356_v2, 2 }
 0x34d   : > { %v4150_v15 = vrot.slane %v8353_v54, 2 }
 0x34e   : > { %v5282_v18 = vadd.f32 %v8295_v60, %v5086_v19  ;;  %v4149_v7 = vsel %vm4076_vm2, %v4142_v31, %v4148_v57 }
 0x34f   : > { %v4531_v25 = vpop.f32.mrf.mxu2  ;;  %v4700_v59 = vpop.f32.mrf.mxu3 }
 0x350   : > { %v5346_v51 = vmax.f32 %v5282_v18, 0.0  ;;  %v4701_v44 = vadd.f32 %v4700_v59, %v4531_v25  ;;  %v3123_v21 = vpop.f32.mrf.mxu1  ;;  %v4871_v10 = vpop.f32.mrf.mxu0  ;;  %v4151_v25 = vsel %vm4076_vm2, %v4144_v33, %v4150_v15  ;;  %v4147_v59 = vsel %vm4076_vm2, %v4140_v41, %v4146_v4 }
 0x351   : > { %v3124_v8 = vadd.f32 %v3123_v21, %v7439_v37  ;;  %v2448_v37 = vrot.slane %v7522_v61, 1  ;;  %v9256_v61 = vld [vmem:[#allocation52_spill] sm:$0xff]  ;;  %v3989_v41 = vrot.slane %v8363_v16, 1 }
 0x352   : > { %v6548_v20 = vpack.c.bf16 %v5346_v51, %v5345_v11  ;;  %v4870_v39 = vadd.f32 %v4869_v6, %v4701_v44  ;;  %v3804_v51 = vshrl.u32 %v8332_v24, 16  ;;  %v3808_v44 = vshll.u32 %v8363_v16, 16 }
 0x353   : > { %v3340_v36 = vadd.f32 %v3124_v8, %v9255_v63 }
 0x354   : > { %6703 = vst [vmem:[%s8318_s20 + $0x8] sm:$0xff] %v6548_v20   ;;  %v5087_v46 = vadd.f32 %v4870_v39, %v3339_v34  ;;  %v8375_v34 = vsel %vm916_vm1, %v2444_v53, %v2448_v37  ;;  %v3810_v8 = vrot.slane %v3808_v44, 1 }
 0x356   : > { %v5283_v33 = vadd.f32 %v8295_v60, %v5087_v46 }
 0x357   : > { %v4533_v32 = vpop.f32.mrf.mxu2  ;;  %v4702_v26 = vpop.f32.mrf.mxu3 }
 0x358   : > { %v4703_v19 = vadd.f32 %v4702_v26, %v4533_v32  ;;  %v3126_v18 = vpop.f32.mrf.mxu1  ;;  %v4874_v56 = vpop.f32.mrf.mxu0  ;;  %v5347_v2 = vmax.f32 %v5283_v33, 0.0 }
 0x359   : > { %v3127_v6 = vadd.f32 %v3126_v18, %v7453_v22 }
 0x35a   : > { %v4872_v11 = vadd.f32 %v4871_v10, %v4703_v19  ;;  %v3806_v10 = vor.u32 %v3804_v51, %v3802_v17  ;;  %v9257_v19 = vld [vmem:[#allocation53_spill] sm:$0xff] }
 0x35b   : > { %v3341_v21 = vadd.f32 %v3127_v6, %v9256_v61  ;;  %3165 = vmatmul.bf16.gmra.mxu1 %v8308_v48  ;;  %4913 = vmatmul.bf16.gmra.mxu0 %v4151_v25  ;;  %v4152_v6 = vrot.slane %v8332_v24, 2 }
 0x35c   : > { %v5088_v22 = vadd.f32 %v4872_v11, %v3340_v36  ;;  %4575 = vmatmul.bf16.gmra.mxu2 %v4147_v59  ;;  %4744 = vmatmul.bf16.gmra.mxu3 %v4149_v7  ;;  %v8382_v36 = vsel %vm916_vm1, %v3987_v5, %v3989_v41  ;;  %v8385_v46 = vsel %vm620_vm0, %v3806_v10, %v3810_v8  ;;  %v8392_v7 = vld [vmem:[#allocation2 + $0x88] sm:$0xff] }
 0x35d   : > { %v4156_v25 = vrot.slane %v8382_v36, 2  ;;  %v4154_v59 = vrot.slane %v8385_v46, 2 }
 0x35e   : > { %v5284_v31 = vadd.f32 %v8295_v60, %v5088_v22 }
 0x35f   : > { %v4536_v54 = vpop.f32.mrf.mxu2  ;;  %v4705_v20 = vpop.f32.mrf.mxu3  ;;  %v4157_v22 = vsel %vm4076_vm2, %v4150_v15, %v4156_v25  ;;  %v4155_v24 = vsel %vm4076_vm2, %v4148_v57, %v4154_v59 }
 0x360   : > { %v5348_v48 = vmax.f32 %v5284_v31, 0.0  ;;  %v4706_v63 = vadd.f32 %v4705_v20, %v4536_v54  ;;  %v3128_v39 = vpop.f32.mrf.mxu1  ;;  %v4876_v53 = vpop.f32.mrf.mxu0  ;;  %v4153_v31 = vsel %vm4076_vm2, %v4146_v4, %v4152_v6  ;;  %v3812_v54 = vshrl.u32 %v8363_v16, 16 }
 0x361   : > { %v3129_v32 = vadd.f32 %v3128_v39, %v7465_v13  ;;  %v2452_v13 = vrot.slane %v7557_v30, 1  ;;  %v3816_v20 = vshll.u32 %v8392_v7, 16  ;;  %v9258_v30 = vld [vmem:[#allocation54_spill] sm:$0xff]  ;;  %v3991_v4 = vrot.slane %v8392_v7, 1 }
 0x362   : > { %v6553_v26 = vpack.c.bf16 %v5348_v48, %v5347_v2  ;;  %v4875_v17 = vadd.f32 %v4874_v56, %v4706_v63  ;;  %v3814_v48 = vor.u32 %v3812_v54, %v3810_v8 }
 0x363   : > { %v3342_v18 = vadd.f32 %v3129_v32, %v9257_v19  ;;  %v3818_v63 = vrot.slane %v3816_v20, 1  ;;  %v8411_v19 = vsel %vm916_vm1, %v3989_v41, %v3991_v4 }
 0x364   : > { %6704 = vst [vmem:[%s8318_s20 + $0x10] sm:$0xff] %v6553_v26   ;;  %v5089_v51 = vadd.f32 %v4875_v17, %v3341_v21  ;;  %v8404_v21 = vsel %vm916_vm1, %v2448_v37, %v2452_v13 }
 0x365   : > { %v8414_v17 = vsel %vm620_vm0, %v3814_v48, %v3818_v63 }
 0x366   : > { %v5285_v15 = vadd.f32 %v8295_v60, %v5089_v51  ;;  %v4162_v51 = vrot.slane %v8411_v19, 2 }
 0x367   : > { %v4538_v5 = vpop.f32.mrf.mxu2  ;;  %v4707_v11 = vpop.f32.mrf.mxu3 }
 0x368   : > { %v4708_v44 = vadd.f32 %v4707_v11, %v4538_v5  ;;  %v3131_v61 = vpop.f32.mrf.mxu1  ;;  %v4879_v33 = vpop.f32.mrf.mxu0  ;;  %v5349_v32 = vmax.f32 %v5285_v15, 0.0  ;;  %v9259_v5 = vld [vmem:[#allocation55_spill] sm:$0xff]  ;;  %v4163_v20 = vsel %vm4076_vm2, %v4156_v25, %v4162_v51 }
 0x369   : > { %v3132_v56 = vadd.f32 %v3131_v61, %v7479_v14  ;;  %v4160_v61 = vrot.slane %v8414_v17, 2 }
 0x36a   : > { %v4877_v10 = vadd.f32 %v4876_v53, %v4708_v44  ;;  %v4158_v44 = vrot.slane %v8363_v16, 2 }
 0x36b   : > { %v3343_v2 = vadd.f32 %v3132_v56, %v9258_v30  ;;  %3170 = vmatmul.bf16.gmra.mxu1 %v8346_v12  ;;  %4918 = vmatmul.bf16.gmra.mxu0 %v4157_v22  ;;  %v8421_v22 = vld [vmem:[#allocation2 + $0x90] sm:$0xff]  ;;  %v4161_v16 = vsel %vm4076_vm2, %v4154_v59, %v4160_v61 }
 0x36c   : > { %v5090_v14 = vadd.f32 %v4877_v10, %v3342_v18  ;;  %4580 = vmatmul.bf16.gmra.mxu2 %v4153_v31  ;;  %4749 = vmatmul.bf16.gmra.mxu3 %v4155_v24  ;;  %v4159_v30 = vsel %vm4076_vm2, %v4152_v6, %v4158_v44  ;;  %v3993_v6 = vrot.slane %v8421_v22, 1 }
 0x36e   : > { %v5286_v57 = vadd.f32 %v8295_v60, %v5090_v14  ;;  %v3820_v14 = vshrl.u32 %v8392_v7, 16 }
 0x36f   : > { %v4541_v39 = vpop.f32.mrf.mxu2  ;;  %v4710_v53 = vpop.f32.mrf.mxu3 }
 0x370   : > { %v5350_v12 = vmax.f32 %v5286_v57, 0.0  ;;  %v4711_v36 = vadd.f32 %v4710_v53, %v4541_v39  ;;  %v3133_v26 = vpop.f32.mrf.mxu1  ;;  %v4881_v37 = vpop.f32.mrf.mxu0  ;;  %v3824_v57 = vshll.u32 %v8421_v22, 16  ;;  %v3822_v39 = vor.u32 %v3820_v14, %v3818_v63 }
 0x371   : > { %v3134_v46 = vadd.f32 %v3133_v26, %v7491_v27  ;;  %v2456_v27 = vrot.slane %v7580_v43, 1  ;;  %v9260_v43 = vld [vmem:[#allocation56_spill] sm:$0xff] }
 0x372   : > { %v6558_v18 = vpack.c.bf16 %v5350_v12, %v5349_v32  ;;  %v4880_v8 = vadd.f32 %v4879_v33, %v4711_v36  ;;  %v3826_v53 = vrot.slane %v3824_v57, 1  ;;  %v9263_v57 = vld [vmem:[#allocation60_spill] sm:$0xff] }
 0x373   : > { %v3344_v11 = vadd.f32 %v3134_v46, %v9259_v5  ;;  %v9261_v46 = vld [vmem:[#allocation58_spill] sm:$0xff] }
 0x374   : > { %6705 = vst [vmem:[%s8318_s20 + $0x18] sm:$0xff] %v6558_v18   ;;  %v5091_v31 = vadd.f32 %v4880_v8, %v3343_v2  ;;  %v8433_v2 = vsel %vm916_vm1, %v2452_v13, %v2456_v27  ;;  %v8440_v18 = vsel %vm916_vm1, %v3991_v4, %v3993_v6  ;;  %v8443_v5 = vsel %vm620_vm0, %v3822_v39, %v3826_v53 }
 0x376   : > { %v5287_v25 = vadd.f32 %v8295_v60, %v5091_v31  ;;  %v4166_v31 = vrot.slane %v8443_v5, 2 }
 0x377   : > { %v4543_v41 = vpop.f32.mrf.mxu2  ;;  %v4712_v56 = vpop.f32.mrf.mxu3 }
 0x378   : > { %v4713_v24 = vadd.f32 %v4712_v56, %v4543_v41  ;;  %v3136_v10 = vpop.f32.mrf.mxu1  ;;  %v4884_v54 = vpop.f32.mrf.mxu0  ;;  %v5351_v36 = vmax.f32 %v5287_v25, 0.0  ;;  %v4168_v41 = vrot.slane %v8440_v18, 2  ;;  %v4164_v56 = vrot.slane %v8392_v7, 2 }
 0x379   : > { %v3137_v33 = vadd.f32 %v3136_v10, %v7505_v0  ;;  %v2460_v10 = vrot.slane %v7603_v38, 1  ;;  %v4167_v7 = vsel %vm4076_vm2, %v4160_v61, %v4166_v31  ;;  %v9264_v38 = vld [vmem:[#allocation59_spill] sm:$0xff] }
 0x37a   : > { %v4882_v15 = vadd.f32 %v4881_v37, %v4713_v24  ;;  %v8450_v24 = vld [vmem:[#allocation2 + $0x98] sm:$0xff]  ;;  %v4169_v14 = vsel %vm4076_vm2, %v4162_v51, %v4168_v41 }
 0x37b   : > { %v3345_v48 = vadd.f32 %v3137_v33, %v9260_v43  ;;  %3175 = vmatmul.bf16.gmra.mxu1 %v8375_v34  ;;  %4923 = vmatmul.bf16.gmra.mxu0 %v4163_v20  ;;  %v4165_v43 = vsel %vm4076_vm2, %v4158_v44, %v4164_v56  ;;  %v3995_v44 = vrot.slane %v8450_v24, 1 }
 0x37c   : > { %v5092_v0 = vadd.f32 %v4882_v15, %v3344_v11  ;;  %4585 = vmatmul.bf16.gmra.mxu2 %v4159_v30  ;;  %4754 = vmatmul.bf16.gmra.mxu3 %v4161_v16  ;;  %v9262_v11 = vld [vmem:[#allocation57_spill] sm:$0xff] }
 0x37e   : > { %v5288_v59 = vadd.f32 %v8295_v60, %v5092_v0  ;;  %v3828_v0 = vshrl.u32 %v8421_v22, 16 }
 0x37f   : > { %v4546_v32 = vpop.f32.mrf.mxu2  ;;  %v4715_v12 = vpop.f32.mrf.mxu3 }
 0x380   : > { %v5352_v34 = vmax.f32 %v5288_v59, 0.0  ;;  %v4716_v26 = vadd.f32 %v4715_v12, %v4546_v32  ;;  %v3138_v37 = vpop.f32.mrf.mxu1  ;;  %v4886_v13 = vpop.f32.mrf.mxu0  ;;  %v3832_v59 = vshll.u32 %v8450_v24, 16  ;;  %v3830_v12 = vor.u32 %v3828_v0, %v3826_v53 }
 0x381   : > { %v3139_v19 = vadd.f32 %v3138_v37, %v9261_v46 }
 0x382   : > { %v6563_v17 = vpack.c.bf16 %v5352_v34, %v5351_v36  ;;  %v4885_v63 = vadd.f32 %v4884_v54, %v4716_v26  ;;  %v3834_v36 = vrot.slane %v3832_v59, 1 }
 0x383   : > { %v3346_v8 = vadd.f32 %v3139_v19, %v9262_v11  ;;  %v9265_v19 = vld [vmem:[#allocation62_spill] sm:$0xff] }
 0x384   : > { %6706 = vst [vmem:[%s8318_s20 + $0x20] sm:$0xff] %v6563_v17   ;;  %v5093_v33 = vadd.f32 %v4885_v63, %v3345_v48  ;;  %v8462_v48 = vsel %vm916_vm1, %v2456_v27, %v2460_v10  ;;  %v8469_v17 = vsel %vm916_vm1, %v3993_v6, %v3995_v44  ;;  %v8472_v11 = vsel %vm620_vm0, %v3830_v12, %v3834_v36 }
 0x386   : > { %v5289_v51 = vadd.f32 %v8295_v60, %v5093_v33  ;;  %v4172_v33 = vrot.slane %v8472_v11, 2 }
 0x387   : > { %v4548_v4 = vpop.f32.mrf.mxu2  ;;  %v4717_v20 = vpop.f32.mrf.mxu3 }
 0x388   : > { %v4718_v30 = vadd.f32 %v4717_v20, %v4548_v4  ;;  %v3141_v16 = vpop.f32.mrf.mxu1  ;;  %v4889_v15 = vpop.f32.mrf.mxu0  ;;  %v5353_v37 = vmax.f32 %v5289_v51, 0.0  ;;  %v4174_v4 = vrot.slane %v8469_v17, 2  ;;  %v4170_v20 = vrot.slane %v8421_v22, 2 }
 0x389   : > { %v3142_v54 = vadd.f32 %v3141_v16, %v9263_v57  ;;  %v2464_v16 = vrot.slane %v7630_v9, 1  ;;  %v4173_v22 = vsel %vm4076_vm2, %v4166_v31, %v4172_v33  ;;  %v9267_v9 = vld [vmem:[#allocation63_spill] sm:$0xff] }
 0x38a   : > { %v4887_v25 = vadd.f32 %v4886_v13, %v4718_v30  ;;  %v8479_v30 = vld [vmem:[#allocation2 + $0xa0] sm:$0xff]  ;;  %v4171_v0 = vsel %vm4076_vm2, %v4164_v56, %v4170_v20 }
 0x38b   : > { %v3347_v39 = vadd.f32 %v3142_v54, %v9264_v38  ;;  %3180 = vmatmul.bf16.gmra.mxu1 %v8404_v21  ;;  %4928 = vmatmul.bf16.gmra.mxu0 %v4169_v14  ;;  %v3836_v38 = vshrl.u32 %v8450_v24, 16  ;;  %v3840_v51 = vshll.u32 %v8479_v30, 16  ;;  %v3997_v56 = vrot.slane %v8479_v30, 1 }
 0x38c   : > { %v5094_v32 = vadd.f32 %v4887_v25, %v3346_v8  ;;  %4590 = vmatmul.bf16.gmra.mxu2 %v4165_v43  ;;  %4759 = vmatmul.bf16.gmra.mxu3 %v4167_v7  ;;  %v9266_v8 = vld [vmem:[#allocation61_spill] sm:$0xff]  ;;  %v4175_v25 = vsel %vm4076_vm2, %v4168_v41, %v4174_v4 }
 0x38d   : > { %v3842_v12 = vrot.slane %v3840_v51, 1 }
 0x38e   : > { %v5290_v61 = vadd.f32 %v8295_v60, %v5094_v32 }
 0x38f   : > { %v4551_v34 = vpop.f32.mrf.mxu2  ;;  %v4720_v26 = vpop.f32.mrf.mxu3 }
 0x390   : > { %v5354_v21 = vmax.f32 %v5290_v61, 0.0  ;;  %v4721_v13 = vadd.f32 %v4720_v26, %v4551_v34  ;;  %v3143_v46 = vpop.f32.mrf.mxu1  ;;  %v4891_v27 = vpop.f32.mrf.mxu0  ;;  %v3838_v61 = vor.u32 %v3836_v38, %v3834_v36  ;;  %v3844_v38 = vshrl.u32 %v8479_v30, 16 }
 0x391   : > { %v3144_v18 = vadd.f32 %v3143_v46, %v9265_v19  ;;  %v9268_v46 = vld [vmem:[#allocation65_spill] sm:$0xff]  ;;  %v8498_v19 = vsel %vm916_vm1, %v3995_v44, %v3997_v56 }
 0x392   : > { %v6568_v5 = vpack.c.bf16 %v5354_v21, %v5353_v37  ;;  %v4890_v53 = vadd.f32 %v4889_v15, %v4721_v13  ;;  %v8501_v17 = vsel %vm620_vm0, %v3838_v61, %v3842_v12 }
 0x393   : > { %v3348_v63 = vadd.f32 %v3144_v18, %v9266_v8  ;;  %v4180_v8 = vrot.slane %v8498_v19, 2 }
 0x394   : > { %6707 = vst [vmem:[%s8318_s20 + $0x28] sm:$0xff] %v6568_v5   ;;  %v5095_v57 = vadd.f32 %v4890_v53, %v3347_v39  ;;  %v8491_v39 = vsel %vm916_vm1, %v2460_v10, %v2464_v16  ;;  %v9269_v5 = vld [vmem:[#allocation64_spill] sm:$0xff]  ;;  %v4178_v53 = vrot.slane %v8501_v17, 2 }
 0x396   : > { %v5291_v41 = vadd.f32 %v8295_v60, %v5095_v57 }
 0x397   : > { %v4553_v6 = vpop.f32.mrf.mxu2  ;;  %v4722_v14 = vpop.f32.mrf.mxu3 }
 0x398   : > { %v4723_v54 = vadd.f32 %v4722_v14, %v4553_v6  ;;  %v3146_v43 = vpop.f32.mrf.mxu1  ;;  %v4894_v7 = vpop.f32.mrf.mxu0  ;;  %v5355_v37 = vmax.f32 %v5291_v41, 0.0  ;;  %v8508_v6 = vld [vmem:[#allocation2 + $0xa8] sm:$0xff]  ;;  %v2468_v14 = vrot.slane %v7666_v29, 1 }
 0x399   : > { %v3147_v15 = vadd.f32 %v3146_v43, %v7565_v55  ;;  %v3848_v51 = vshll.u32 %v8508_v6, 16 }
 0x39a   : > { %v4892_v59 = vadd.f32 %v4891_v27, %v4723_v54 }
 0x39b   : > { %v3349_v32 = vadd.f32 %v3147_v15, %v9267_v9  ;;  %3185 = vmatmul.bf16.gmra.mxu1 %v8433_v2  ;;  %4933 = vmatmul.bf16.gmra.mxu0 %v4175_v25  ;;  %v8520_v9 = vsel %vm916_vm1, %v2464_v16, %v2468_v14  ;;  %v3850_v41 = vrot.slane %v3848_v51, 1 }
 0x39c   : > { %v5096_v55 = vadd.f32 %v4892_v59, %v3348_v63  ;;  %4595 = vmatmul.bf16.gmra.mxu2 %v4171_v0  ;;  %4764 = vmatmul.bf16.gmra.mxu3 %v4173_v22  ;;  %v4176_v63 = vrot.slane %v8450_v24, 2  ;;  %v4181_v0 = vsel %vm4076_vm2, %v4174_v4, %v4180_v8  ;;  %v4179_v24 = vsel %vm4076_vm2, %v4172_v33, %v4178_v53 }
 0x39e   : > { %v5292_v31 = vadd.f32 %v8295_v60, %v5096_v55  ;;  %v4177_v22 = vsel %vm4076_vm2, %v4170_v20, %v4176_v63  ;;  %v3999_v20 = vrot.slane %v8508_v6, 1 }
 0x39f   : > { %v4556_v34 = vpop.f32.mrf.mxu2  ;;  %v4725_v26 = vpop.f32.mrf.mxu3 }
 0x3a0   : > { %v5356_v2 = vmax.f32 %v5292_v31, 0.0  ;;  %v4726_v21 = vadd.f32 %v4725_v26, %v4556_v34  ;;  %v3148_v13 = vpop.f32.mrf.mxu1  ;;  %v4896_v10 = vpop.f32.mrf.mxu0 }
 0x3a1   : > { %v3149_v27 = vadd.f32 %v3148_v13, %v9268_v46  ;;  %v9270_v13 = vld [vmem:[#allocation66_spill] sm:$0xff] }
 0x3a2   : > { %v6573_v18 = vpack.c.bf16 %v5356_v2, %v5355_v37  ;;  %v4895_v36 = vadd.f32 %v4894_v7, %v4726_v21  ;;  %v8527_v37 = vsel %vm916_vm1, %v3997_v56, %v3999_v20 }
 0x3a3   : > { %v3350_v11 = vadd.f32 %v3149_v27, %v9269_v5  ;;  %v4186_v46 = vrot.slane %v8527_v37, 2  ;;  %v4182_v27 = vrot.slane %v8479_v30, 2  ;;  %v4188_v37 = vrot.slane %v8508_v6, 2 }
 0x3a4   : > { %6708 = vst [vmem:[%s8318_s20 + $0x30] sm:$0xff] %v6573_v18   ;;  %v5097_v54 = vadd.f32 %v4895_v36, %v3349_v32  ;;  %v3846_v32 = vor.u32 %v3844_v38, %v3842_v12  ;;  %v8537_v18 = vld [vmem:[#allocation2 + $0xb0] sm:$0xff] }
 0x3a6   : > { %v5293_v4 = vadd.f32 %v8295_v60, %v5097_v54  ;;  %v8530_v21 = vsel %vm620_vm0, %v3846_v32, %v3850_v41  ;;  %v9271_v54 = vld [vmem:[#allocation68_spill] sm:$0xff] }
 0x3a7   : > { %v4558_v44 = vpop.f32.mrf.mxu2  ;;  %v4727_v57 = vpop.f32.mrf.mxu3  ;;  %v4184_v19 = vrot.slane %v8530_v21, 2  ;;  %v8566_v21 = vld [vmem:[#allocation2 + $0xb8] sm:$0xff] }
 0x3a8   : > { %v4728_v43 = vadd.f32 %v4727_v57, %v4558_v44  ;;  %v3151_v25 = vpop.f32.mrf.mxu1  ;;  %v4899_v15 = vpop.f32.mrf.mxu0  ;;  %v5357_v31 = vmax.f32 %v5293_v4, 0.0  ;;  %v4187_v57 = vsel %vm4076_vm2, %v4180_v8, %v4186_v46 }
 0x3a9   : > { %v3152_v7 = vadd.f32 %v3151_v25, %v7588_v45  ;;  %v4183_v25 = vsel %vm4076_vm2, %v4176_v63, %v4182_v27  ;;  %v4185_v30 = vsel %vm4076_vm2, %v4178_v53, %v4184_v19  ;;  %v4001_v63 = vrot.slane %v8537_v18, 1 }
 0x3aa   : > { %v4897_v59 = vadd.f32 %v4896_v10, %v4728_v43 }
 0x3ab   : > { %v3351_v29 = vadd.f32 %v3152_v7, %v7586_v35  ;;  %3190 = vmatmul.bf16.gmra.mxu1 %v8462_v48  ;;  %4938 = vmatmul.bf16.gmra.mxu0 %v4181_v0  ;;  %v3852_v0 = vshrl.u32 %v8508_v6, 16  ;;  %v3856_v7 = vshll.u32 %v8537_v18, 16 }
 0x3ac   : > { %v5098_v45 = vadd.f32 %v4897_v59, %v3350_v11  ;;  %4600 = vmatmul.bf16.gmra.mxu2 %v4177_v22  ;;  %4769 = vmatmul.bf16.gmra.mxu3 %v4179_v24 }
 0x3ad   : > { %v3854_v38 = vor.u32 %v3852_v0, %v3850_v41  ;;  %v3858_v51 = vrot.slane %v3856_v7, 1 }
 0x3ae   : > { %v5294_v33 = vadd.f32 %v8295_v60, %v5098_v45 }
 0x3af   : > { %v4561_v55 = vpop.f32.mrf.mxu2  ;;  %v4730_v35 = vpop.f32.mrf.mxu3 }
 0x3b0   : > { %v5358_v48 = vmax.f32 %v5294_v33, 0.0  ;;  %v4731_v61 = vadd.f32 %v4730_v35, %v4561_v55  ;;  %v3153_v34 = vpop.f32.mrf.mxu1  ;;  %v4901_v16 = vpop.f32.mrf.mxu0  ;;  %v9273_v55 = vld [vmem:[#allocation70_spill] sm:$0xff] }
 0x3b1   : > { %v3154_v26 = vadd.f32 %v3153_v34, %v7597_v62  ;;  %v2472_v62 = vrot.slane %v7689_v47, 1  ;;  %v9272_v47 = vld [vmem:[#allocation67_spill] sm:$0xff]  ;;  %v9274_v34 = vld [vmem:[#allocation69_spill] sm:$0xff] }
 0x3b2   : > { %v6578_v2 = vpack.c.bf16 %v5358_v48, %v5357_v31  ;;  %v4900_v12 = vadd.f32 %v4899_v15, %v4731_v61  ;;  %v8556_v31 = vsel %vm916_vm1, %v3999_v20, %v4001_v63  ;;  %v8559_v61 = vsel %vm620_vm0, %v3854_v38, %v3858_v51 }
 0x3b3   : > { %v3352_v10 = vadd.f32 %v3154_v26, %v9270_v13  ;;  %v8549_v24 = vsel %vm916_vm1, %v2468_v14, %v2472_v62  ;;  %v4192_v26 = vrot.slane %v8556_v31, 2  ;;  %v2476_v13 = vrot.slane %v7712_v28, 1  ;;  %v9276_v28 = vld [vmem:[#allocation71_spill] sm:$0xff] }
 0x3b4   : > { %6709 = vst [vmem:[%s8318_s20 + $0x38] sm:$0xff] %v6578_v2   ;;  %v5099_v5 = vadd.f32 %v4900_v12, %v3351_v29  ;;  %v4190_v2 = vrot.slane %v8559_v61, 2  ;;  %v2480_v61 = vrot.slane %v7739_v49, 1  ;;  %v9279_v49 = vld [vmem:[#allocation75_spill] sm:$0xff] }
 0x3b6   : > { %v5295_v8 = vadd.f32 %v8295_v60, %v5099_v5  ;;  %v4191_v6 = vsel %vm4076_vm2, %v4184_v19, %v4190_v2 }
 0x3b7   : > { %v4563_v56 = vpop.f32.mrf.mxu2  ;;  %v4732_v17 = vpop.f32.mrf.mxu3 }
 0x3b8   : > { %v4733_v11 = vadd.f32 %v4732_v17, %v4563_v56  ;;  %v3156_v36 = vpop.f32.mrf.mxu1  ;;  %v4904_v44 = vpop.f32.mrf.mxu0  ;;  %v5359_v45 = vmax.f32 %v5295_v8, 0.0 }
 0x3b9   : > { %v3157_v43 = vadd.f32 %v3156_v36, %v9271_v54  ;;  %v9275_v36 = vld [vmem:[#allocation72_spill] sm:$0xff] }
 0x3ba   : > { %v4902_v15 = vadd.f32 %v4901_v16, %v4733_v11  ;;  %v4193_v11 = vsel %vm4076_vm2, %v4186_v46, %v4192_v26 }
 0x3bb   : > { %v3353_v22 = vadd.f32 %v3157_v43, %v9272_v47  ;;  %3195 = vmatmul.bf16.gmra.mxu1 %v8491_v39  ;;  %4943 = vmatmul.bf16.gmra.mxu0 %v4187_v57  ;;  %v4189_v57 = vsel %vm4076_vm2, %v4182_v27, %v4188_v37  ;;  %v3860_v43 = vshrl.u32 %v8537_v18, 16  ;;  %v4003_v27 = vrot.slane %v8566_v21, 1 }
 0x3bc   : > { %v5100_v59 = vadd.f32 %v4902_v15, %v3352_v10  ;;  %4605 = vmatmul.bf16.gmra.mxu2 %v4183_v25  ;;  %4774 = vmatmul.bf16.gmra.mxu3 %v4185_v30  ;;  %v3864_v25 = vshll.u32 %v8566_v21, 16  ;;  %v8578_v15 = vsel %vm916_vm1, %v2472_v62, %v2476_v13 }
 0x3bd   : > { %v3862_v7 = vor.u32 %v3860_v43, %v3858_v51 }
 0x3be   : > { %v5296_v53 = vadd.f32 %v8295_v60, %v5100_v59  ;;  %v3866_v47 = vrot.slane %v3864_v25, 1 }
 0x3bf   : > { %v4566_v29 = vpop.f32.mrf.mxu2  ;;  %v4735_v4 = vpop.f32.mrf.mxu3 }
 0x3c0   : > { %v5360_v39 = vmax.f32 %v5296_v53, 0.0  ;;  %v4736_v33 = vadd.f32 %v4735_v4, %v4566_v29  ;;  %v3158_v32 = vpop.f32.mrf.mxu1  ;;  %v4906_v14 = vpop.f32.mrf.mxu0  ;;  %v9277_v29 = vld [vmem:[#allocation74_spill] sm:$0xff] }
 0x3c1   : > { %v3159_v35 = vadd.f32 %v3158_v32, %v9273_v55  ;;  %v9278_v32 = vld [vmem:[#allocation73_spill] sm:$0xff] }
 0x3c2   : > { %v6583_v48 = vpack.c.bf16 %v5360_v39, %v5359_v45  ;;  %v4905_v41 = vadd.f32 %v4904_v44, %v4736_v33  ;;  %v8585_v45 = vsel %vm916_vm1, %v4001_v63, %v4003_v27  ;;  %v8588_v33 = vsel %vm620_vm0, %v3862_v7, %v3866_v47 }
 0x3c3   : > { %v3354_v16 = vadd.f32 %v3159_v35, %v9274_v34  ;;  %v4198_v55 = vrot.slane %v8585_v45, 2  ;;  %v4194_v35 = vrot.slane %v8537_v18, 2  ;;  %v4196_v31 = vrot.slane %v8588_v33, 2 }
 0x3c4   : > { %6710 = vst [vmem:[%s8318_s20 + $0x40] sm:$0xff] %v6583_v48   ;;  %v5101_v12 = vadd.f32 %v4905_v41, %v3353_v22  ;;  %v8595_v48 = vld [vmem:[#allocation2 + $0xc0] sm:$0xff] }
 0x3c5   : > { %v4197_v18 = vsel %vm4076_vm2, %v4190_v2, %v4196_v31 }
 0x3c6   : > { %v5297_v46 = vadd.f32 %v8295_v60, %v5101_v12  ;;  %v4199_v12 = vsel %vm4076_vm2, %v4192_v26, %v4198_v55 }
 0x3c7   : > { %v4568_v20 = vpop.f32.mrf.mxu2  ;;  %v4737_v10 = vpop.f32.mrf.mxu3 }
 0x3c8   : > { %v4738_v56 = vadd.f32 %v4737_v10, %v4568_v20  ;;  %v3161_v17 = vpop.f32.mrf.mxu1  ;;  %v4909_v5 = vpop.f32.mrf.mxu0  ;;  %v5361_v59 = vmax.f32 %v5297_v46, 0.0 }
 0x3c9   : > { %v3162_v44 = vadd.f32 %v3161_v17, %v9275_v36  ;;  %v4195_v17 = vsel %vm4076_vm2, %v4188_v37, %v4194_v35  ;;  %v3872_v36 = vshll.u32 %v8595_v48, 16  ;;  %v4005_v37 = vrot.slane %v8595_v48, 1 }
 0x3ca   : > { %v4907_v54 = vadd.f32 %v4906_v14, %v4738_v56 }
 0x3cb   : > { %v3355_v30 = vadd.f32 %v3162_v44, %v9276_v28  ;;  %3200 = vmatmul.bf16.gmra.mxu1 %v8520_v9  ;;  %4948 = vmatmul.bf16.gmra.mxu0 %v4193_v11  ;;  %v3868_v11 = vshrl.u32 %v8566_v21, 16  ;;  %v8614_v7 = vsel %vm916_vm1, %v4003_v27, %v4005_v37 }
 0x3cc   : > { %v5102_v0 = vadd.f32 %v4907_v54, %v3354_v16  ;;  %4610 = vmatmul.bf16.gmra.mxu2 %v4189_v57  ;;  %4779 = vmatmul.bf16.gmra.mxu3 %v4191_v6  ;;  %v8607_v57 = vsel %vm916_vm1, %v2476_v13, %v2480_v61  ;;  %v3874_v54 = vrot.slane %v3872_v36, 1 }
 0x3cd   : > { %v3870_v6 = vor.u32 %v3868_v11, %v3866_v47 }
 0x3ce   : > { %v5298_v19 = vadd.f32 %v8295_v60, %v5102_v0  ;;  %v9280_v0 = vld [vmem:[#allocation77_spill] sm:$0xff] }
 0x3cf   : > { %v4571_v22 = vpop.f32.mrf.mxu2  ;;  %v4740_v8 = vpop.f32.mrf.mxu3 }
 0x3d0   : > { %v5362_v9 = vmax.f32 %v5298_v19, 0.0  ;;  %v4741_v53 = vadd.f32 %v4740_v8, %v4571_v22  ;;  %v3163_v38 = vpop.f32.mrf.mxu1  ;;  %v4911_v62 = vpop.f32.mrf.mxu0  ;;  %v8617_v8 = vsel %vm620_vm0, %v3870_v6, %v3874_v54  ;;  %v9285_v6 = vld [vmem:[#allocation81_spill] sm:$0xff] }
 0x3d1   : > { %v3164_v4 = vadd.f32 %v3163_v38, %v9277_v29  ;;  %v4200_v38 = vrot.slane %v8566_v21, 2  ;;  %v8624_v29 = vld [vmem:[#allocation2 + $0xc8] sm:$0xff] }
 0x3d2   : > { %v6588_v39 = vpack.c.bf16 %v5362_v9, %v5361_v59  ;;  %v4910_v51 = vadd.f32 %v4909_v5, %v4741_v53  ;;  %v9281_v59 = vld [vmem:[#allocation76_spill] sm:$0xff]  ;;  %v4204_v53 = vrot.slane %v8614_v7, 2  ;;  %v9287_v7 = vld [vmem:[#allocation95_spill] sm:$0xff] }
 0x3d3   : > { %v3356_v14 = vadd.f32 %v3164_v4, %v9278_v32  ;;  %v9282_v4 = vld [vmem:[#allocation90_spill] sm:$0xff] }
 0x3d4   : > { %6711 = vst [vmem:[%s8318_s20 + $0x48] sm:$0xff] %v6588_v39   ;;  %v5103_v16 = vadd.f32 %v4910_v51, %v3355_v30  ;;  %v2484_v45 = vrot.slane %v9282_v4, 1 }
 0x3d6   : > { %v5299_v26 = vadd.f32 %v8295_v60, %v5103_v16 }
 0x3d7   : > { %v4573_v63 = vpop.f32.mrf.mxu2  ;;  %v4742_v34 = vpop.f32.mrf.mxu3 }
 0x3d8   : > { %v4743_v41 = vadd.f32 %v4742_v34, %v4573_v63  ;;  %v3166_v20 = vpop.f32.mrf.mxu1  ;;  %v4914_v10 = vpop.f32.mrf.mxu0  ;;  %v5363_v28 = vmax.f32 %v5299_v26, 0.0  ;;  %v4205_v63 = vsel %vm4076_vm2, %v4198_v55, %v4204_v53  ;;  %v9283_v34 = vld [vmem:[#allocation79_spill] sm:$0xff] }
 0x3d9   : > { %v3167_v56 = vadd.f32 %v3166_v20, %v7674_v40 }
 0x3da   : > { %v4912_v5 = vadd.f32 %v4911_v62, %v4743_v41  ;;  %v4202_v62 = vrot.slane %v8617_v8, 2  ;;  %v4201_v41 = vsel %vm4076_vm2, %v4194_v35, %v4200_v38  ;;  %v4007_v35 = vrot.slane %v8624_v29, 1 }
 0x3db   : > { %v3357_v44 = vadd.f32 %v3167_v56, %v9279_v49  ;;  %3205 = vmatmul.bf16.gmra.mxu1 %v8549_v24  ;;  %4953 = vmatmul.bf16.gmra.mxu0 %v4199_v12  ;;  %v3880_v12 = vshll.u32 %v8624_v29, 16  ;;  %v9284_v56 = vld [vmem:[#allocation78_spill] sm:$0xff] }
 0x3dc   : > { %v5104_v40 = vadd.f32 %v4912_v5, %v3356_v14  ;;  %4615 = vmatmul.bf16.gmra.mxu2 %v4195_v17  ;;  %4784 = vmatmul.bf16.gmra.mxu3 %v4197_v18  ;;  %v4203_v21 = vsel %vm4076_vm2, %v4196_v31, %v4202_v62  ;;  %v8636_v18 = vsel %vm916_vm1, %v2480_v61, %v2484_v45 }
 0x3dd   : > { %v3882_v36 = vrot.slane %v3880_v12, 1 }
 0x3de   : > { %v5300_v2 = vadd.f32 %v8295_v60, %v5104_v40 }
 0x3df   : > { %v4576_v43 = vpop.f32.mrf.mxu2  ;;  %v4745_v25 = vpop.f32.mrf.mxu3 }
 0x3e0   : > { %v5364_v24 = vmax.f32 %v5300_v2, 0.0  ;;  %v4746_v30 = vadd.f32 %v4745_v25, %v4576_v43  ;;  %v3168_v46 = vpop.f32.mrf.mxu1  ;;  %v4916_v13 = vpop.f32.mrf.mxu0  ;;  %v8643_v25 = vsel %vm916_vm1, %v4005_v37, %v4007_v35 }
 0x3e1   : > { %v3169_v19 = vadd.f32 %v3168_v46, %v9280_v0  ;;  %v4210_v46 = vrot.slane %v8643_v25, 2  ;;  %v8689_v25 = vld [vmem:[#allocation2 + $0xd8] sm:$0xff] }
 0x3e2   : > { %v6593_v22 = vpack.c.bf16 %v5364_v24, %v5363_v28  ;;  %v4915_v47 = vadd.f32 %v4914_v10, %v4746_v30  ;;  %v3876_v10 = vshrl.u32 %v8595_v48, 16  ;;  %v9286_v30 = vld [vmem:[#allocation80_spill] sm:$0xff] }
 0x3e3   : > { %v3358_v9 = vadd.f32 %v3169_v19, %v9281_v59  ;;  %v8653_v19 = vld [vmem:[#allocation2 + $0xd0] sm:$0xff] }
 0x3e4   : > { %6712 = vst [vmem:[%s8318_s20 + $0x50] sm:$0xff] %v6593_v22   ;;  %v5105_v33 = vadd.f32 %v4915_v47, %v3357_v44  ;;  %v3878_v11 = vor.u32 %v3876_v10, %v3874_v54  ;;  %v2488_v22 = vrot.slane %v9287_v7, 1 }
 0x3e6   : > { %v5301_v55 = vadd.f32 %v8295_v60, %v5105_v33  ;;  %v8646_v24 = vsel %vm620_vm0, %v3878_v11, %v3882_v36  ;;  %v9290_v11 = vld [vmem:[#allocation85_spill] sm:$0xff] }
 0x3e7   : > { %v4578_v27 = vpop.f32.mrf.mxu2  ;;  %v4747_v39 = vpop.f32.mrf.mxu3  ;;  %v4208_v0 = vrot.slane %v8646_v24, 2 }
 0x3e8   : > { %v4748_v32 = vadd.f32 %v4747_v39, %v4578_v27  ;;  %v3171_v14 = vpop.f32.mrf.mxu1  ;;  %v4919_v51 = vpop.f32.mrf.mxu0  ;;  %v5365_v26 = vmax.f32 %v5301_v55, 0.0  ;;  %v4211_v27 = vsel %vm4076_vm2, %v4204_v53, %v4210_v46  ;;  %v9288_v39 = vld [vmem:[#allocation83_spill] sm:$0xff]  ;;  %v8667_v53 = vsel %vm916_vm1, %v2484_v45, %v2488_v22 }
 0x3e9   : > { %v3172_v16 = vadd.f32 %v3171_v14, %v9283_v34  ;;  %v9289_v34 = vld [vmem:[#allocation82_spill] sm:$0xff] }
 0x3ea   : > { %v4917_v20 = vadd.f32 %v4916_v13, %v4748_v32  ;;  %v4206_v13 = vrot.slane %v8595_v48, 2  ;;  %v4209_v48 = vsel %vm4076_vm2, %v4202_v62, %v4208_v0 }
 0x3eb   : > { %v3359_v17 = vadd.f32 %v3172_v16, %v9284_v56  ;;  %3210 = vmatmul.bf16.gmra.mxu1 %v8578_v15  ;;  %4958 = vmatmul.bf16.gmra.mxu0 %v4205_v63  ;;  %v3888_v63 = vshll.u32 %v8653_v19, 16 }
 0x3ec   : > { %v5106_v5 = vadd.f32 %v4917_v20, %v3358_v9  ;;  %4620 = vmatmul.bf16.gmra.mxu2 %v4201_v41  ;;  %4789 = vmatmul.bf16.gmra.mxu3 %v4203_v21  ;;  %v4207_v32 = vsel %vm4076_vm2, %v4200_v38, %v4206_v13  ;;  %v8672_v38 = vld [vmem:[%s9012_s3] ss:$0 sm:$0xff]  ;;  %v4009_v21 = vrot.slane %v8653_v19, 1 }
 0x3ed   : > { %v3890_v10 = vrot.slane %v3888_v63, 1 }
 0x3ee   : > { %v5302_v31 = vadd.f32 %v8295_v60, %v5106_v5 }
 0x3ef   : > { %v4581_v49 = vpop.f32.mrf.mxu2  ;;  %v4750_v44 = vpop.f32.mrf.mxu3 }
 0x3f0   : > { %v5366_v15 = vmax.f32 %v5302_v31, 0.0  ;;  %v4751_v40 = vadd.f32 %v4750_v44, %v4581_v49  ;;  %v3173_v2 = vpop.f32.mrf.mxu1  ;;  %v4921_v61 = vpop.f32.mrf.mxu0  ;;  %v8679_v44 = vsel %vm916_vm1, %v4007_v35, %v4009_v21 }
 0x3f1   : > { %v3174_v43 = vadd.f32 %v3173_v2, %v9285_v6  ;;  %v4212_v6 = vrot.slane %v8624_v29, 2 }
 0x3f2   : > { %v6598_v28 = vpack.c.bf16 %v5366_v15, %v5365_v26  ;;  %v4920_v54 = vadd.f32 %v4919_v51, %v4751_v40  ;;  %v3884_v51 = vshrl.u32 %v8624_v29, 16  ;;  %v9291_v40 = vld [vmem:[#allocation84_spill] sm:$0xff] }
 0x3f3   : > { %v3360_v60 = vadd.f32 %v3174_v43, %v9286_v30 }
 0x3f4   : > { %6713 = vst [vmem:[%s8318_s20 + $0x58] sm:$0xff] %v6598_v28   ;;  %v5107_v59 = vadd.f32 %v4920_v54, %v3359_v17  ;;  %v3886_v20 = vor.u32 %v3884_v51, %v3882_v36  ;;  %v9292_v28 = vld [vmem:[#allocation98_spill] sm:$0xff] }
 0x3f5   : > { %v2492_v24 = vrot.slane %v9292_v28, 1 }
 0x3f6   : > { %v5303_v62 = vadd.f32 %v8672_v38, %v5107_v59  ;;  %v8682_v15 = vsel %vm620_vm0, %v3886_v20, %v3890_v10  ;;  %v9295_v20 = vld [vmem:[#allocation89_spill] sm:$0xff] }
 0x3f7   : > { %v4583_v37 = vpop.f32.mrf.mxu2  ;;  %v4752_v8 = vpop.f32.mrf.mxu3  ;;  %v4214_v43 = vrot.slane %v8682_v15, 2 }
 0x3f8   : > { %v4753_v9 = vadd.f32 %v4752_v8, %v4583_v37  ;;  %v3176_v47 = vpop.f32.mrf.mxu1  ;;  %v4924_v4 = vpop.f32.mrf.mxu0  ;;  %v5367_v56 = vmax.f32 %v5303_v62, 0.0 }
 0x3f9   : > { %v3177_v33 = vadd.f32 %v3176_v47, %v9288_v39  ;;  %v4215_v29 = vsel %vm4076_vm2, %v4208_v0, %v4214_v43  ;;  %v3892_v39 = vshrl.u32 %v8653_v19, 16  ;;  %v4011_v0 = vrot.slane %v8689_v25, 1 }
 0x3fa   : > { %v4922_v14 = vadd.f32 %v4921_v61, %v4753_v9  ;;  %v4216_v61 = vrot.slane %v8679_v44, 2  ;;  %v9293_v9 = vld [vmem:[#allocation87_spill] sm:$0xff]  ;;  %v8720_v44 = vld [vmem:[#allocation2 + $0xe0] sm:$0xff] }
 0x3fb   : > { %v3361_v16 = vadd.f32 %v3177_v33, %v9289_v34  ;;  %3215 = vmatmul.bf16.gmra.mxu1 %v8607_v57  ;;  %4963 = vmatmul.bf16.gmra.mxu0 %v4211_v27  ;;  %v3896_v33 = vshll.u32 %v8689_v25, 16  ;;  %v3894_v63 = vor.u32 %v3892_v39, %v3890_v10 }
 0x3fc   : > { %v5108_v41 = vadd.f32 %v4922_v14, %v3360_v60  ;;  %4625 = vmatmul.bf16.gmra.mxu2 %v4207_v32  ;;  %4794 = vmatmul.bf16.gmra.mxu3 %v4209_v48  ;;  %v4217_v59 = vsel %vm4076_vm2, %v4210_v46, %v4216_v61  ;;  %v9294_v32 = vld [vmem:[#allocation86_spill] sm:$0xff]  ;;  %v8703_v46 = vsel %vm916_vm1, %v2488_v22, %v2492_v24 }
 0x3fd   : > { %v3898_v34 = vrot.slane %v3896_v33, 1 }
 0x3fe   : > { %v5304_v57 = vadd.f32 %v8672_v38, %v5108_v41 }
 0x3ff   : > { %v4586_v12 = vpop.f32.mrf.mxu2  ;;  %v4755_v45 = vpop.f32.mrf.mxu3 }
 0x400   : > { %v5368_v17 = vmax.f32 %v5304_v57, 0.0  ;;  %v4756_v55 = vadd.f32 %v4755_v45, %v4586_v12  ;;  %v3178_v5 = vpop.f32.mrf.mxu1  ;;  %v4926_v31 = vpop.f32.mrf.mxu0  ;;  %v8710_v45 = vsel %vm916_vm1, %v4009_v21, %v4011_v0 }
 0x401   : > { %v3179_v49 = vadd.f32 %v3178_v5, %v9290_v11  ;;  %v4218_v11 = vrot.slane %v8653_v19, 2 }
 0x402   : > { %v6603_v26 = vpack.c.bf16 %v5368_v17, %v5367_v56  ;;  %v4925_v36 = vadd.f32 %v4924_v4, %v4756_v55  ;;  %v4213_v4 = vsel %vm4076_vm2, %v4206_v13, %v4212_v6  ;;  %v8713_v17 = vsel %vm620_vm0, %v3894_v63, %v3898_v34  ;;  %v9296_v55 = vld [vmem:[#allocation88_spill] sm:$0xff]  ;;  %v9300_v63 = vld [vmem:[#allocation94_spill] sm:$0xff] }
 0x403   : > { %v3362_v2 = vadd.f32 %v3179_v49, %v9291_v40  ;;  %v4220_v49 = vrot.slane %v8713_v17, 2 }
 0x404   : > { %6714 = vst [vmem:[%s8318_s20 + $0x60] sm:$0xff] %v6603_v26   ;;  %v5109_v60 = vadd.f32 %v4925_v36, %v3361_v16  ;;  %v9297_v26 = vld [vmem:[#allocation101_spill] sm:$0xff] }
 0x405   : > { %v2496_v15 = vrot.slane %v9297_v26, 1  ;;  %v4221_v19 = vsel %vm4076_vm2, %v4214_v43, %v4220_v49 }
 0x406   : > { %v5305_v14 = vadd.f32 %v8672_v38, %v5109_v60  ;;  %v9298_v60 = vld [vmem:[#allocation92_spill] sm:$0xff] }
 0x407   : > { %v4588_v35 = vpop.f32.mrf.mxu2  ;;  %v4757_v30 = vpop.f32.mrf.mxu3 }
 0x408   : > { %v4758_v54 = vadd.f32 %v4757_v30, %v4588_v35  ;;  %v3181_v37 = vpop.f32.mrf.mxu1  ;;  %v4929_v8 = vpop.f32.mrf.mxu0  ;;  %v5369_v62 = vmax.f32 %v5305_v14, 0.0 }
 0x409   : > { %v3182_v47 = vadd.f32 %v3181_v37, %v9293_v9  ;;  %v4219_v37 = vsel %vm4076_vm2, %v4212_v6, %v4218_v11  ;;  %v3904_v9 = vshll.u32 %v8720_v44, 16  ;;  %v4013_v6 = vrot.slane %v8720_v44, 1 }
 0x40a   : > { %v4927_v27 = vadd.f32 %v4926_v31, %v4758_v54  ;;  %v4222_v31 = vrot.slane %v8710_v45, 2  ;;  %v8749_v45 = vld [vmem:[#allocation2 + $0xe8] sm:$0xff] }
 0x40b   : > { %v3363_v48 = vadd.f32 %v3182_v47, %v9294_v32  ;;  %3220 = vmatmul.bf16.gmra.mxu1 %v8636_v18  ;;  %4968 = vmatmul.bf16.gmra.mxu0 %v4217_v59  ;;  %v3900_v59 = vshrl.u32 %v8689_v25, 16  ;;  %v9299_v47 = vld [vmem:[#allocation91_spill] sm:$0xff]  ;;  %v3906_v33 = vrot.slane %v3904_v9, 1 }
 0x40c   : > { %v5110_v13 = vadd.f32 %v4927_v27, %v3362_v2  ;;  %4630 = vmatmul.bf16.gmra.mxu2 %v4213_v4  ;;  %4799 = vmatmul.bf16.gmra.mxu3 %v4215_v29  ;;  %v4223_v30 = vsel %vm4076_vm2, %v4216_v61, %v4222_v31  ;;  %v8732_v29 = vsel %vm916_vm1, %v2492_v24, %v2496_v15 }
 0x40d   : > { %v3902_v39 = vor.u32 %v3900_v59, %v3898_v34 }
 0x40e   : > { %v5306_v51 = vadd.f32 %v8672_v38, %v5110_v13 }
 0x40f   : > { %v4591_v16 = vpop.f32.mrf.mxu2  ;;  %v4760_v18 = vpop.f32.mrf.mxu3 }
 0x410   : > { %v5370_v41 = vmax.f32 %v5306_v51, 0.0  ;;  %v4761_v7 = vadd.f32 %v4760_v18, %v4591_v16  ;;  %v3183_v57 = vpop.f32.mrf.mxu1  ;;  %v4931_v22 = vpop.f32.mrf.mxu0  ;;  %v8739_v18 = vsel %vm916_vm1, %v4011_v0, %v4013_v6 }
 0x411   : > { %v3184_v12 = vadd.f32 %v3183_v57, %v9295_v20  ;;  %v4224_v20 = vrot.slane %v8689_v25, 2 }
 0x412   : > { %v6608_v56 = vpack.c.bf16 %v5370_v41, %v5369_v62  ;;  %v4930_v10 = vadd.f32 %v4929_v8, %v4761_v7  ;;  %v8742_v41 = vsel %vm620_vm0, %v3902_v39, %v3906_v33  ;;  %v9301_v7 = vld [vmem:[#allocation93_spill] sm:$0xff] }
 0x413   : > { %v3364_v5 = vadd.f32 %v3184_v12, %v9296_v55  ;;  %v4226_v12 = vrot.slane %v8742_v41, 2  ;;  %v9305_v39 = vld [vmem:[#allocation97_spill] sm:$0xff] }
 0x414   : > { %6715 = vst [vmem:[%s8318_s20 + $0x68] sm:$0xff] %v6608_v56   ;;  %v5111_v2 = vadd.f32 %v4930_v10, %v3363_v48  ;;  %v9302_v56 = vld [vmem:[#allocation104_spill] sm:$0xff] }
 0x415   : > { %v2500_v17 = vrot.slane %v9302_v56, 1  ;;  %v4227_v25 = vsel %vm4076_vm2, %v4220_v49, %v4226_v12 }
 0x416   : > { %v5307_v61 = vadd.f32 %v8672_v38, %v5111_v2  ;;  %v9303_v2 = vld [vmem:[#allocation96_spill] sm:$0xff] }
 0x417   : > { %v4593_v21 = vpop.f32.mrf.mxu2  ;;  %v4762_v40 = vpop.f32.mrf.mxu3 }
 0x418   : > { %v4763_v36 = vadd.f32 %v4762_v40, %v4593_v21  ;;  %v3186_v28 = vpop.f32.mrf.mxu1  ;;  %v4934_v35 = vpop.f32.mrf.mxu0  ;;  %v5371_v14 = vmax.f32 %v5307_v61, 0.0 }
 0x419   : > { %v3187_v54 = vadd.f32 %v3186_v28, %v9298_v60  ;;  %v4225_v28 = vsel %vm4076_vm2, %v4218_v11, %v4224_v20  ;;  %v3912_v60 = vshll.u32 %v8749_v45, 16  ;;  %v4015_v11 = vrot.slane %v8749_v45, 1 }
 0x41a   : > { %v4932_v8 = vadd.f32 %v4931_v22, %v4763_v36  ;;  %v4228_v22 = vrot.slane %v8739_v18, 2  ;;  %v8778_v18 = vld [vmem:[#allocation2 + $0xf0] sm:$0xff] }
 0x41b   : > { %v3365_v4 = vadd.f32 %v3187_v54, %v9299_v47  ;;  %3225 = vmatmul.bf16.gmra.mxu1 %v8667_v53  ;;  %4973 = vmatmul.bf16.gmra.mxu0 %v4223_v30  ;;  %v3908_v30 = vshrl.u32 %v8720_v44, 16  ;;  %v9304_v54 = vld [vmem:[#allocation6_spill] sm:$0xff]  ;;  %v3914_v9 = vrot.slane %v3912_v60, 1 }
 0x41c   : > { %v5112_v27 = vadd.f32 %v4932_v8, %v3364_v5  ;;  %4635 = vmatmul.bf16.gmra.mxu2 %v4219_v37  ;;  %4804 = vmatmul.bf16.gmra.mxu3 %v4221_v19  ;;  %v4229_v40 = vsel %vm4076_vm2, %v4222_v31, %v4228_v22  ;;  %v8761_v19 = vsel %vm916_vm1, %v2496_v15, %v2500_v17 }
 0x41d   : > { %v3910_v59 = vor.u32 %v3908_v30, %v3906_v33 }
 0x41e   : > { %v5308_v43 = vadd.f32 %v8672_v38, %v5112_v27 }
 0x41f   : > { %v4596_v32 = vpop.f32.mrf.mxu2  ;;  %v4765_v48 = vpop.f32.mrf.mxu3 }
 0x420   : > { %v5372_v53 = vmax.f32 %v5308_v43, 0.0  ;;  %v4766_v13 = vadd.f32 %v4765_v48, %v4596_v32  ;;  %v3188_v51 = vpop.f32.mrf.mxu1  ;;  %v4936_v24 = vpop.f32.mrf.mxu0  ;;  %v8768_v48 = vsel %vm916_vm1, %v4013_v6, %v4015_v11 }
 0x421   : > { %v3189_v16 = vadd.f32 %v3188_v51, %v9300_v63  ;;  %v4230_v63 = vrot.slane %v8720_v44, 2 }
 0x422   : > { %v6613_v62 = vpack.c.bf16 %v5372_v53, %v5371_v14  ;;  %v4935_v34 = vadd.f32 %v4934_v35, %v4766_v13  ;;  %v8771_v53 = vsel %vm620_vm0, %v3910_v59, %v3914_v9  ;;  %v9306_v13 = vld [vmem:[#allocation8_spill] sm:$0xff] }
 0x423   : > { %v3366_v57 = vadd.f32 %v3189_v16, %v9301_v7  ;;  %v4232_v16 = vrot.slane %v8771_v53, 2  ;;  %v9310_v59 = vld [vmem:[#allocation100_spill] sm:$0xff] }
 0x424   : > { %6716 = vst [vmem:[%s8318_s20 + $0x70] sm:$0xff] %v6613_v62   ;;  %v5113_v5 = vadd.f32 %v4935_v34, %v3365_v4  ;;  %v9307_v62 = vld [vmem:[#allocation107_spill] sm:$0xff] }
 0x425   : > { %v2504_v41 = vrot.slane %v9307_v62, 1  ;;  %v4233_v44 = vsel %vm4076_vm2, %v4226_v12, %v4232_v16  ;;  %v4017_v12 = vrot.slane %v8778_v18, 1 }
 0x426   : > { %v5309_v31 = vadd.f32 %v8672_v38, %v5113_v5  ;;  %v9308_v5 = vld [vmem:[#allocation99_spill] sm:$0xff] }
 0x427   : > { %v4598_v0 = vpop.f32.mrf.mxu2  ;;  %v4767_v55 = vpop.f32.mrf.mxu3 }
 0x428   : > { %v4768_v10 = vadd.f32 %v4767_v55, %v4598_v0  ;;  %v3191_v26 = vpop.f32.mrf.mxu1  ;;  %v4939_v21 = vpop.f32.mrf.mxu0  ;;  %v5373_v61 = vmax.f32 %v5309_v31, 0.0 }
 0x429   : > { %v3192_v36 = vadd.f32 %v3191_v26, %v9303_v2  ;;  %v4231_v26 = vsel %vm4076_vm2, %v4224_v20, %v4230_v63  ;;  %v3920_v2 = vshll.u32 %v8778_v18, 16 }
 0x42a   : > { %v4937_v35 = vadd.f32 %v4936_v24, %v4768_v10  ;;  %v4234_v24 = vrot.slane %v8768_v48, 2  ;;  %v8809_v48 = vld [vmem:[#allocation2 + $0xf8] sm:$0xff] }
 0x42b   : > { %v3367_v37 = vadd.f32 %v3192_v36, %v9304_v54  ;;  %3230 = vmatmul.bf16.gmra.mxu1 %v8703_v46  ;;  %4978 = vmatmul.bf16.gmra.mxu0 %v4229_v40  ;;  %v3916_v40 = vshrl.u32 %v8749_v45, 16  ;;  %v9309_v36 = vld [vmem:[#allocation11_spill] sm:$0xff]  ;;  %v3922_v60 = vrot.slane %v3920_v2, 1 }
 0x42c   : > { %v5114_v8 = vadd.f32 %v4937_v35, %v3366_v57  ;;  %4640 = vmatmul.bf16.gmra.mxu2 %v4225_v28  ;;  %4809 = vmatmul.bf16.gmra.mxu3 %v4227_v25  ;;  %v4235_v55 = vsel %vm4076_vm2, %v4228_v22, %v4234_v24  ;;  %v8792_v22 = vsel %vm916_vm1, %v2500_v17, %v2504_v41 }
 0x42d   : > { %v3918_v30 = vor.u32 %v3916_v40, %v3914_v9  ;;  %v4019_v40 = vrot.slane %v8809_v48, 1 }
 0x42e   : > { %v5310_v49 = vadd.f32 %v8672_v38, %v5114_v8 }
 0x42f   : > { %v4601_v47 = vpop.f32.mrf.mxu2  ;;  %v4770_v4 = vpop.f32.mrf.mxu3 }
 0x430   : > { %v5374_v46 = vmax.f32 %v5310_v49, 0.0  ;;  %v4771_v27 = vadd.f32 %v4770_v4, %v4601_v47  ;;  %v3193_v43 = vpop.f32.mrf.mxu1  ;;  %v4941_v15 = vpop.f32.mrf.mxu0  ;;  %v8799_v4 = vsel %vm916_vm1, %v4015_v11, %v4017_v12 }
 0x431   : > { %v3194_v32 = vadd.f32 %v3193_v43, %v9305_v39  ;;  %v4236_v39 = vrot.slane %v8749_v45, 2 }
 0x432   : > { %v6618_v14 = vpack.c.bf16 %v5374_v46, %v5373_v61  ;;  %v4940_v33 = vadd.f32 %v4939_v21, %v4771_v27  ;;  %v8802_v46 = vsel %vm620_vm0, %v3918_v30, %v3922_v60  ;;  %v9311_v27 = vld [vmem:[#allocation13_spill] sm:$0xff] }
 0x433   : > { %v3368_v51 = vadd.f32 %v3194_v32, %v9306_v13  ;;  %v4238_v32 = vrot.slane %v8802_v46, 2  ;;  %v9317_v46 = vld [vmem:[#allocation10_spill] sm:$0xff] }
 0x434   : > { %6717 = vst [vmem:[%s8318_s20 + $0x78] sm:$0xff] %v6618_v14   ;;  %v5115_v57 = vadd.f32 %v4940_v33, %v3367_v37  ;;  %v9312_v14 = vld [vmem:[#allocation111_spill] sm:$0xff] }
 0x435   : > { %v2508_v11 = vrot.slane %v9312_v14, 1  ;;  %v4239_v45 = vsel %vm4076_vm2, %v4232_v16, %v4238_v32 }
 0x436   : > { %v5311_v25 = vadd.f32 %v8672_v38, %v5115_v57 }
 0x437   : > { %v4603_v6 = vpop.f32.mrf.mxu2  ;;  %v4772_v7 = vpop.f32.mrf.mxu3 }
 0x438   : > { %v4773_v34 = vadd.f32 %v4772_v7, %v4603_v6  ;;  %v3196_v56 = vpop.f32.mrf.mxu1  ;;  %v4944_v0 = vpop.f32.mrf.mxu0  ;;  %v5375_v37 = vmax.f32 %v5311_v25, 0.0 }
 0x439   : > { %v3197_v10 = vadd.f32 %v3196_v56, %v9308_v5  ;;  %v3924_v5 = vshrl.u32 %v8778_v18, 16 }
 0x43a   : > { %v4942_v21 = vadd.f32 %v4941_v15, %v4773_v34  ;;  %v4240_v15 = vrot.slane %v8799_v4, 2  ;;  %v9313_v34 = vld [vmem:[#allocation102_spill] sm:$0xff] }
 0x43b   : > { %v3369_v28 = vadd.f32 %v3197_v10, %v9309_v36  ;;  %3235 = vmatmul.bf16.gmra.mxu1 %v8732_v29  ;;  %4983 = vmatmul.bf16.gmra.mxu0 %v4235_v55  ;;  %v3928_v10 = vshll.u32 %v8809_v48, 16 }
 0x43c   : > { %v5116_v20 = vadd.f32 %v4942_v21, %v3368_v51  ;;  %4645 = vmatmul.bf16.gmra.mxu2 %v4231_v26  ;;  %4814 = vmatmul.bf16.gmra.mxu3 %v4233_v44  ;;  %v4241_v57 = vsel %vm4076_vm2, %v4234_v24, %v4240_v15  ;;  %v352_v26 = vld [vmem:[%s7848_s6 + $0xc] sm:$0xff]   ;;  %v9314_v44 = vld [vmem:[#allocation16_spill] sm:$0xff]  ;;  %v8826_v24 = vsel %vm916_vm1, %v2504_v41, %v2508_v11 }
 0x43d   : > { %357 = vst [vmem:[#allocation2 + $0x10c] sm:$0xff] %v352_v26   ;;  %v3930_v36 = vrot.slane %v3928_v10, 1 }
 0x43e   : > { %v5312_v35 = vadd.f32 %v8672_v38, %v5116_v20 }
 0x43f   : > { %v4606_v54 = vpop.f32.mrf.mxu2  ;;  %v4775_v29 = vpop.f32.mrf.mxu3 }
 0x440   : > { %v5376_v31 = vmax.f32 %v5312_v35, 0.0  ;;  %v4776_v8 = vadd.f32 %v4775_v29, %v4606_v54  ;;  %v3198_v49 = vpop.f32.mrf.mxu1  ;;  %v4946_v17 = vpop.f32.mrf.mxu0  ;;  %v9315_v54 = vld [vmem:[#allocation103_spill] sm:$0xff] }
 0x441   : > { %v3199_v47 = vadd.f32 %v3198_v49, %v9310_v59  ;;  %v9316_v49 = vld [vmem:[#allocation18_spill] sm:$0xff] }
 0x442   : > { %v6623_v61 = vpack.c.bf16 %v5376_v31, %v5375_v37  ;;  %v4945_v9 = vadd.f32 %v4944_v0, %v4776_v8  ;;  %v4237_v0 = vsel %vm4076_vm2, %v4230_v63, %v4236_v39  ;;  %v4020_v37 = vsel %vm916_vm1, %v4017_v12, %v4019_v40 }
 0x443   : > { %v3370_v43 = vadd.f32 %v3199_v47, %v9311_v27  ;;  %v4246_v59 = vrot.slane %v4020_v37, 2  ;;  %v4242_v47 = vrot.slane %v8778_v18, 2  ;;  %v2512_v27 = vrot.slane %v9317_v46, 1 }
 0x444   : > { %6718 = vst [vmem:[%s8318_s20 + $0x80] sm:$0xff] %v6623_v61   ;;  %v5117_v51 = vadd.f32 %v4945_v9, %v3369_v28  ;;  %v8840_v61 = vld [vmem:[#allocation2 + $0x100] sm:$0xff]  ;;  %v8870_v37 = vld [vmem:[#allocation2 + $0x108] sm:$0xff] }
 0x446   : > { %v5313_v63 = vadd.f32 %v8672_v38, %v5117_v51 }
 0x447   : > { %v4608_v53 = vpop.f32.mrf.mxu2  ;;  %v4777_v13 = vpop.f32.mrf.mxu3 }
 0x448   : > { %v4778_v33 = vadd.f32 %v4777_v13, %v4608_v53  ;;  %v3201_v6 = vpop.f32.mrf.mxu1  ;;  %v4949_v7 = vpop.f32.mrf.mxu0  ;;  %v5377_v20 = vmax.f32 %v5313_v63, 0.0 }
 0x449   : > { %v3202_v56 = vadd.f32 %v3201_v6, %v9313_v34  ;;  %v9318_v6 = vld [vmem:[#allocation105_spill] sm:$0xff] }
 0x44a   : > { %v4947_v55 = vadd.f32 %v4946_v17, %v4778_v33  ;;  %v4247_v33 = vsel %vm4076_vm2, %v4240_v15, %v4246_v59  ;;  %v8856_v15 = vsel %vm916_vm1, %v2508_v11, %v2512_v27 }
 0x44b   : > { %v3371_v21 = vadd.f32 %v3202_v56, %v9314_v44  ;;  %3240 = vmatmul.bf16.gmra.mxu1 %v8761_v19  ;;  %4988 = vmatmul.bf16.gmra.mxu0 %v4241_v57  ;;  %v3926_v19 = vor.u32 %v3924_v5, %v3922_v60  ;;  %v3932_v56 = vshrl.u32 %v8809_v48, 16  ;;  %v4021_v5 = vrot.slane %v8840_v61, 1 }
 0x44c   : > { %v5118_v16 = vadd.f32 %v4947_v55, %v3370_v43  ;;  %4650 = vmatmul.bf16.gmra.mxu2 %v4237_v0  ;;  %4819 = vmatmul.bf16.gmra.mxu3 %v4239_v45  ;;  %v3936_v0 = vshll.u32 %v8840_v61, 16  ;;  %v9319_v45 = vld [vmem:[#allocation21_spill] sm:$0xff] }
 0x44d   : > { %v8834_v8 = vsel %vm620_vm0, %v3926_v19, %v3930_v36  ;;  %v3934_v26 = vor.u32 %v3932_v56, %v3930_v36  ;;  %v9320_v19 = vld [vmem:[#allocation106_spill] sm:$0xff] }
 0x44e   : > { %v5314_v2 = vadd.f32 %v8672_v38, %v5118_v16  ;;  %v4244_v4 = vrot.slane %v8834_v8, 2 }
 0x44f   : > { %v4611_v28 = vpop.f32.mrf.mxu2  ;;  %v4780_v25 = vpop.f32.mrf.mxu3 }
 0x450   : > { %v5378_v62 = vmax.f32 %v5314_v2, 0.0  ;;  %v4781_v35 = vadd.f32 %v4780_v25, %v4611_v28  ;;  %v3203_v41 = vpop.f32.mrf.mxu1  ;;  %v4951_v30 = vpop.f32.mrf.mxu0  ;;  %v4245_v18 = vsel %vm4076_vm2, %v4238_v32, %v4244_v4  ;;  %v4022_v25 = vsel %vm916_vm1, %v4019_v40, %v4021_v5 }
 0x451   : > { %v3204_v29 = vadd.f32 %v3203_v41, %v9315_v54  ;;  %v4248_v54 = vrot.slane %v8809_v48, 2  ;;  %v3940_v48 = vshrl.u32 %v8840_v61, 16 }
 0x452   : > { %v6628_v31 = vpack.c.bf16 %v5378_v62, %v5377_v20  ;;  %v4950_v60 = vadd.f32 %v4949_v7, %v4781_v35  ;;  %v4243_v7 = vsel %vm4076_vm2, %v4236_v39, %v4242_v47  ;;  %v9321_v35 = vld [vmem:[#allocation23_spill] sm:$0xff] }
 0x453   : > { %v3372_v17 = vadd.f32 %v3204_v29, %v9316_v49 }
 0x454   : > { %6719 = vst [vmem:[%s8318_s20 + $0x88] sm:$0xff] %v6628_v31   ;;  %v5119_v12 = vadd.f32 %v4950_v60, %v3371_v21 }
 0x456   : > { %v5315_v39 = vadd.f32 %v8672_v38, %v5119_v12 }
 0x457   : > { %v4613_v43 = vpop.f32.mrf.mxu2  ;;  %v4782_v9 = vpop.f32.mrf.mxu3 }
 0x458   : > { %v4783_v53 = vadd.f32 %v4782_v9, %v4613_v43  ;;  %v3206_v13 = vpop.f32.mrf.mxu1  ;;  %v4954_v51 = vpop.f32.mrf.mxu0  ;;  %v5379_v63 = vmax.f32 %v5315_v39, 0.0  ;;  %v9322_v9 = vld [vmem:[#allocation108_spill] sm:$0xff] }
 0x459   : > { %v3207_v57 = vadd.f32 %v3206_v13, %v9318_v6  ;;  %v9323_v6 = vld [vmem:[#allocation26_spill] sm:$0xff] }
 0x45a   : > { %v4952_v34 = vadd.f32 %v4951_v30, %v4783_v53  ;;  %v4252_v30 = vrot.slane %v4022_v25, 2  ;;  %v4249_v53 = vsel %vm4076_vm2, %v4242_v47, %v4248_v54 }
 0x45b   : > { %v3373_v55 = vadd.f32 %v3207_v57, %v9319_v45  ;;  %3245 = vmatmul.bf16.gmra.mxu1 %v8792_v22  ;;  %4993 = vmatmul.bf16.gmra.mxu0 %v4247_v33  ;;  %v3938_v22 = vrot.slane %v3936_v0, 1  ;;  %v3944_v33 = vshll.u32 %v8870_v37, 16  ;;  %v3528_v45 = vld [vmem:[#allocation2 + $0x110] sm:$0x7] }
 0x45c   : > { %v5120_v32 = vadd.f32 %v4952_v34, %v3372_v17  ;;  %4655 = vmatmul.bf16.gmra.mxu2 %v4243_v7  ;;  %4824 = vmatmul.bf16.gmra.mxu3 %v4245_v18  ;;  %v4253_v43 = vsel %vm4076_vm2, %v4246_v59, %v4252_v30  ;;  %v4023_v59 = vrot.slane %v8870_v37, 1 }
 0x45d   : > { %v8864_v62 = vsel %vm620_vm0, %v3934_v26, %v3938_v22  ;;  %v3946_v34 = vrot.slane %v3944_v33, 1  ;;  %v9324_v26 = vld [vmem:[#allocation110_spill] sm:$0xff] }
 0x45e   : > { %v5316_v10 = vadd.f32 %v8672_v38, %v5120_v32  ;;  %v4250_v29 = vrot.slane %v8864_v62, 2 }
 0x45f   : > { %v4616_v44 = vpop.f32.mrf.mxu2  ;;  %v4785_v21 = vpop.f32.mrf.mxu3 }
 0x460   : > { %v5380_v16 = vmax.f32 %v5316_v10, 0.0  ;;  %v4786_v14 = vadd.f32 %v4785_v21, %v4616_v44  ;;  %v3208_v2 = vpop.f32.mrf.mxu1  ;;  %v4956_v11 = vpop.f32.mrf.mxu0  ;;  %v4251_v13 = vsel %vm4076_vm2, %v4244_v4, %v4250_v29  ;;  %v3942_v4 = vor.u32 %v3940_v48, %v3938_v22 }
 0x461   : > { %v3209_v28 = vadd.f32 %v3208_v2, %v9320_v19  ;;  %v8885_v21 = vsel %vm916_vm1, %v4021_v5, %v4023_v59  ;;  %v3694_v22 = vunpack.c.l.b16 %v3528_v45 }
 0x462   : > { %v6633_v20 = vpack.c.bf16 %v5380_v16, %v5379_v63  ;;  %v4955_v36 = vadd.f32 %v4954_v51, %v4786_v14  ;;  %v8888_v16 = vsel %vm620_vm0, %v3942_v4, %v3946_v34  ;;  %v9325_v14 = vld [vmem:[#allocation28_spill] sm:$0xff]  ;;  %v4258_v19 = vrot.slane %v8885_v21, 2 }
 0x463   : > { %v3374_v41 = vadd.f32 %v3209_v28, %v9321_v35  ;;  %v4254_v28 = vrot.slane %v8840_v61, 2  ;;  %v4256_v25 = vrot.slane %v8888_v16, 2  ;;  %v3948_v61 = vshrl.u32 %v8870_v37, 16 }
 0x464   : > { %6720 = vst [vmem:[%s8318_s20 + $0x90] sm:$0xff] %v6633_v20   ;;  %v5121_v49 = vadd.f32 %v4955_v36, %v3373_v55  ;;  %v8895_v20 = vpack.c.b16 %v3694_v22, %v3694_v22 }
 0x465   : > { %v3950_v33 = vor.u32 %v3948_v61, %v3946_v34 }
 0x466   : > { %v5317_v7 = vadd.f32 %v8672_v38, %v5121_v49  ;;  %v9326_v49 = vld [vmem:[#allocation112_spill] sm:$0xff] }
 0x467   : > { %v4618_v31 = vpop.f32.mrf.mxu2  ;;  %v4787_v8 = vpop.f32.mrf.mxu3 }
 0x468   : > { %v4788_v17 = vadd.f32 %v4787_v8, %v4618_v31  ;;  %v3211_v40 = vpop.f32.mrf.mxu1  ;;  %v4959_v60 = vpop.f32.mrf.mxu0  ;;  %v5381_v55 = vmax.f32 %v5317_v7, 0.0  ;;  %v4259_v8 = vsel %vm4076_vm2, %v4252_v30, %v4258_v19  ;;  %v9328_v30 = vld [vmem:[#allocation109_spill] sm:$0xff] }
 0x469   : > { %v3212_v12 = vadd.f32 %v3211_v40, %v9322_v9  ;;  %v4255_v40 = vsel %vm4076_vm2, %v4248_v54, %v4254_v28  ;;  %v3952_v9 = vshll.u32 %v8895_v20, 16  ;;  %v2339_v48 = vrot.slane %v9328_v30, 1  ;;  %v9332_v30 = vld [vmem:[#allocation36_spill] sm:$0xff] }
 0x46a   : > { %v4957_v51 = vadd.f32 %v4956_v11, %v4788_v17  ;;  %v4025_v54 = vrot.slane %v8895_v20, 1 }
 0x46b   : > { %v3375_v57 = vadd.f32 %v3212_v12, %v9323_v6  ;;  %3250 = vmatmul.bf16.gmra.mxu1 %v8826_v24  ;;  %4998 = vmatmul.bf16.gmra.mxu0 %v4253_v43  ;;  %v9327_v12 = vld [vmem:[#allocation31_spill] sm:$0xff]  ;;  %v3954_v6 = vrot.slane %v3952_v9, 1 }
 0x46c   : > { %v5122_v18 = vadd.f32 %v4957_v51, %v3374_v41  ;;  %4660 = vmatmul.bf16.gmra.mxu2 %v4249_v53  ;;  %4829 = vmatmul.bf16.gmra.mxu3 %v4251_v13 }
 0x46e   : > { %v5318_v47 = vadd.f32 %v8672_v38, %v5122_v18 }
 0x46f   : > { %v4621_v56 = vpop.f32.mrf.mxu2  ;;  %v4790_v0 = vpop.f32.mrf.mxu3 }
 0x470   : > { %v5382_v39 = vmax.f32 %v5318_v47, 0.0  ;;  %v4791_v32 = vadd.f32 %v4790_v0, %v4621_v56  ;;  %v3213_v24 = vpop.f32.mrf.mxu1  ;;  %v4961_v10 = vpop.f32.mrf.mxu0  ;;  %v9329_v0 = vld [vmem:[#allocation33_spill] sm:$0xff] }
 0x471   : > { %v3214_v44 = vadd.f32 %v3213_v24, %v9324_v26  ;;  %v3955_v24 = vsel %vm620_vm0, %v3950_v33, %v3954_v6 }
 0x472   : > { %v6638_v63 = vpack.c.bf16 %v5382_v39, %v5381_v55  ;;  %v4960_v11 = vadd.f32 %v4959_v60, %v4791_v32  ;;  %v4257_v60 = vsel %vm4076_vm2, %v4250_v29, %v4256_v25  ;;  %v2340_v55 = vsel %vm916_vm1, %v7968_v1, %v2339_v48 }
 0x473   : > { %v3376_v2 = vadd.f32 %v3214_v44, %v9325_v14  ;;  %v4026_v39 = vsel %vm916_vm1, %v4023_v59, %v4025_v54  ;;  %v2516_v44 = vrot.slane %v2340_v55, 1  ;;  %v4262_v16 = vrot.slane %v3955_v24, 2 }
 0x474   : > { %6721 = vst [vmem:[%s8318_s20 + $0x98] sm:$0xff] %v6638_v63   ;;  %v5123_v35 = vadd.f32 %v4960_v11, %v3375_v57  ;;  %v4264_v21 = vrot.slane %v4026_v39, 2  ;;  %v4260_v63 = vrot.slane %v8870_v37, 2 }
 0x475   : > { %v2517_v59 = vsel %vm916_vm1, %v2512_v27, %v2516_v44  ;;  %v3956_v27 = vshrl.u32 %v8895_v20, 16  ;;  %v4270_v20 = vrot.slane %v4025_v54, 2  ;;  %v9334_v54 = vld [vmem:[#allocation15_spill] sm:$0xff] }
 0x476   : > { %v5319_v13 = vadd.f32 %v8672_v38, %v5123_v35 }
 0x477   : > { %v4623_v62 = vpop.f32.mrf.mxu2  ;;  %v4792_v5 = vpop.f32.mrf.mxu3 }
 0x478   : > { %v4793_v41 = vadd.f32 %v4792_v5, %v4623_v62  ;;  %v3216_v36 = vpop.f32.mrf.mxu1  ;;  %v4964_v31 = vpop.f32.mrf.mxu0  ;;  %v5383_v18 = vmax.f32 %v5319_v13, 0.0  ;;  %v4265_v5 = vsel %vm4076_vm2, %v4258_v19, %v4264_v21  ;;  %v3958_v13 = vor.u32 %v3956_v27, %v3954_v6  ;;  %v9333_v6 = vld [vmem:[#allocation38_spill] sm:$0xff] }
 0x479   : > { %v3217_v17 = vadd.f32 %v3216_v36, %v9326_v49  ;;  %v4263_v36 = vsel %vm4076_vm2, %v4256_v25, %v4262_v16 }
 0x47a   : > { %v4962_v43 = vadd.f32 %v4961_v10, %v4793_v41  ;;  %v9330_v10 = vld [vmem:[#allocation4_spill] sm:$0xff]  ;;  %v4261_v41 = vsel %vm4076_vm2, %v4254_v28, %v4260_v63 }
 0x47b   : > { %v3377_v53 = vadd.f32 %v3217_v17, %v9327_v12  ;;  %3255 = vmatmul.bf16.gmra.mxu1 %v8856_v15  ;;  %5003 = vmatmul.bf16.gmra.mxu0 %v4259_v8  ;;  %v9331_v8 = vld [vmem:[#allocation5_spill] sm:$0xff] }
 0x47c   : > { %v5124_v51 = vadd.f32 %v4962_v43, %v3376_v2  ;;  %4665 = vmatmul.bf16.gmra.mxu2 %v4255_v40  ;;  %4834 = vmatmul.bf16.gmra.mxu3 %v4257_v60 }
 0x47e   : > { %v5320_v29 = vadd.f32 %v8672_v38, %v5124_v51 }
 0x47f   : > { %v4626_v57 = vpop.f32.mrf.mxu2  ;;  %v4795_v7 = vpop.f32.mrf.mxu3 }
 0x480   : > { %v5384_v47 = vmax.f32 %v5320_v29, 0.0  ;;  %v4796_v15 = vadd.f32 %v4795_v7, %v4626_v57  ;;  %v3218_v4 = vpop.f32.mrf.mxu1  ;;  %v4966_v56 = vpop.f32.mrf.mxu0  ;;  %v2522_v57 = vrot.slane %v2339_v48, 1 }
 0x481   : > { %v3219_v45 = vadd.f32 %v3218_v4, %v9329_v0 }
 0x482   : > { %v6643_v32 = vpack.c.bf16 %v5384_v47, %v5383_v18  ;;  %v4965_v26 = vadd.f32 %v4964_v31, %v4796_v15  ;;  %v3527_v31 = vld [vmem:[#allocation2 + $0x110] sm:$0x3]  ;;  %v4268_v18 = vrot.slane %v3958_v13, 2  ;;  %v2523_v55 = vsel %vm916_vm1, %v2516_v44, %v2522_v57  ;;  %v9340_v57 = vld [vmem:[#allocation25_spill] sm:$0xff] }
 0x483   : > { %v3378_v34 = vadd.f32 %v3219_v45, %v9330_v10  ;;  %v3659_v46 = vunpack.c.l.b16 %v3527_v31 }
 0x484   : > { %6722 = vst [vmem:[%s8318_s20 + $0xa0] sm:$0xff] %v6643_v32   ;;  %v5125_v2 = vadd.f32 %v4965_v26, %v3377_v53  ;;  %v4269_v24 = vsel %vm4076_vm2, %v4262_v16, %v4268_v18 }
 0x485   : > { %v3692_v53 = vpack.c.b16 %v3659_v46, %v3659_v46 }
 0x486   : > { %v5321_v17 = vadd.f32 %v8672_v38, %v5125_v2 }
 0x487   : > { %v4628_v22 = vpop.f32.mrf.mxu2  ;;  %v4797_v14 = vpop.f32.mrf.mxu3  ;;  %v4266_v7 = vrot.slane %v3692_v53, 2 }
 0x488   : > { %v4798_v11 = vadd.f32 %v4797_v14, %v4628_v22  ;;  %v3221_v62 = vpop.f32.mrf.mxu1  ;;  %v4969_v1 = vpop.f32.mrf.mxu0  ;;  %v5385_v25 = vmax.f32 %v5321_v17, 0.0 }
 0x489   : > { %v3222_v35 = vadd.f32 %v3221_v62, %v8000_v42  ;;  %v4267_v32 = vsel %vm4076_vm2, %v4260_v63, %v4266_v7  ;;  %v9335_v62 = vld [vmem:[#allocation20_spill] sm:$0xff] }
 0x48a   : > { %v4967_v37 = vadd.f32 %v4966_v56, %v4798_v11 }
 0x48b   : > { %v3379_v49 = vadd.f32 %v3222_v35, %v9331_v8  ;;  %3260 = vmatmul.bf16.gmra.mxu1 %v2517_v59  ;;  %5008 = vmatmul.bf16.gmra.mxu0 %v4265_v5  ;;  %v9336_v5 = vld [vmem:[#allocation41_spill] sm:$0xff] }
 0x48c   : > { %v5126_v40 = vadd.f32 %v4967_v37, %v3378_v34  ;;  %4670 = vmatmul.bf16.gmra.mxu2 %v4261_v41  ;;  %4839 = vmatmul.bf16.gmra.mxu3 %v4263_v36 }
 0x48e   : > { %v5322_v42 = vadd.f32 %v8672_v38, %v5126_v40  ;;  %v9337_v40 = vld [vmem:[#allocation7_spill] sm:$0xff] }
 0x48f   : > { %v4631_v19 = vpop.f32.mrf.mxu2  ;;  %v4800_v28 = vpop.f32.mrf.mxu3 }
 0x490   : > { %v5386_v60 = vmax.f32 %v5322_v42, 0.0  ;;  %v4801_v43 = vadd.f32 %v4800_v28, %v4631_v19  ;;  %v3223_v61 = vpop.f32.mrf.mxu1  ;;  %v4971_v9 = vpop.f32.mrf.mxu0  ;;  %v9338_v42 = vld [vmem:[#allocation43_spill] sm:$0xff] }
 0x491   : > { %v3224_v12 = vadd.f32 %v3223_v61, %v8015_v52  ;;  %v4271_v52 = vsel %vm4076_vm2, %v4264_v21, %v4270_v20 }
 0x492   : > { %v6648_v51 = vpack.c.bf16 %v5386_v60, %v5385_v25  ;;  %v4970_v33 = vadd.f32 %v4969_v1, %v4801_v43 }
 0x493   : > { %v3380_v29 = vadd.f32 %v3224_v12, %v9332_v30  ;;  %v9339_v30 = vld [vmem:[#allocation9_spill] sm:$0xff] }
 0x494   : > { %6723 = vst [vmem:[%s8318_s20 + $0xa8] sm:$0xff] %v6648_v51   ;;  %v5127_v4 = vadd.f32 %v4970_v33, %v3379_v49 }
 0x496   : > { %v5323_v34 = vadd.f32 %v8672_v38, %v5127_v4 }
 0x497   : > { %v4633_v47 = vpop.f32.mrf.mxu2  ;;  %v4802_v15 = vpop.f32.mrf.mxu3 }
 0x498   : > { %v4803_v56 = vadd.f32 %v4802_v15, %v4633_v47  ;;  %v3226_v0 = vpop.f32.mrf.mxu1  ;;  %v4974_v45 = vpop.f32.mrf.mxu0  ;;  %v5387_v14 = vmax.f32 %v5323_v34, 0.0 }
 0x499   : > { %v3227_v39 = vadd.f32 %v3226_v0, %v9333_v6  ;;  %v9342_v6 = vld [vmem:[#allocation12_spill] sm:$0xff] }
 0x49a   : > { %v4972_v48 = vadd.f32 %v4971_v9, %v4803_v56 }
 0x49b   : > { %v3381_v10 = vadd.f32 %v3227_v39, %v9334_v54  ;;  %3265 = vmatmul.bf16.gmra.mxu1 %v2523_v55  ;;  %5013 = vmatmul.bf16.gmra.mxu0 %v4271_v52 }
 0x49c   : > { %v5128_v26 = vadd.f32 %v4972_v48, %v3380_v29  ;;  %4675 = vmatmul.bf16.gmra.mxu2 %v4267_v32  ;;  %4844 = vmatmul.bf16.gmra.mxu3 %v4269_v24 }
 0x49e   : > { %v5324_v44 = vadd.f32 %v8672_v38, %v5128_v26 }
 0x49f   : > { %v4636_v21 = vpop.f32.mrf.mxu2  ;;  %v4805_v22 = vpop.f32.mrf.mxu3 }
 0x4a0   : > { %v5388_v2 = vmax.f32 %v5324_v44, 0.0  ;;  %v4806_v63 = vadd.f32 %v4805_v22, %v4636_v21  ;;  %v3228_v11 = vpop.f32.mrf.mxu1  ;;  %v4976_v16 = vpop.f32.mrf.mxu0 }
 0x4a1   : > { %v3229_v1 = vadd.f32 %v3228_v11, %v9335_v62  ;;  %v9344_v11 = vld [vmem:[#allocation30_spill] sm:$0xff] }
 0x4a2   : > { %v6653_v59 = vpack.c.bf16 %v5388_v2, %v5387_v14  ;;  %v4975_v41 = vadd.f32 %v4974_v45, %v4806_v63  ;;  %v9341_v45 = vld [vmem:[#allocation113_spill] sm:$0xff]  ;;  %v9343_v14 = vld [vmem:[#allocation14_spill] sm:$0xff] }
 0x4a3   : > { %v3382_v35 = vadd.f32 %v3229_v1, %v9336_v5 }
 0x4a4   : > { %6724 = vst [vmem:[%s8318_s20 + $0xb0] sm:$0xff] %v6653_v59   ;;  %v5129_v31 = vadd.f32 %v4975_v41, %v3381_v10 }
 0x4a6   : > { %v5325_v28 = vadd.f32 %v8672_v38, %v5129_v31 }
 0x4a7   : > { %v4638_v36 = vpop.f32.mrf.mxu2  ;;  %v4807_v37 = vpop.f32.mrf.mxu3 }
 0x4a8   : > { %v4808_v8 = vadd.f32 %v4807_v37, %v4638_v36  ;;  %v3231_v49 = vpop.f32.mrf.mxu1  ;;  %v4979_v17 = vpop.f32.mrf.mxu0  ;;  %v5389_v9 = vmax.f32 %v5325_v28, 0.0  ;;  %v9345_v37 = vld [vmem:[#allocation114_spill] sm:$0xff] }
 0x4a9   : > { %v3232_v46 = vadd.f32 %v3231_v49, %v9337_v40  ;;  %v9346_v49 = vld [vmem:[#allocation17_spill] sm:$0xff] }
 0x4aa   : > { %v4977_v27 = vadd.f32 %v4976_v16, %v4808_v8 }
 0x4ab   : > { %v3383_v19 = vadd.f32 %v3232_v46, %v9338_v42 }
 0x4ac   : > { %v5130_v25 = vadd.f32 %v4977_v27, %v3382_v35  ;;  %v8962_v27 = vld [vmem:[%s9012_s3] ss:$0 sm:$0xff] }
 0x4ae   : > { %v5326_v60 = vadd.f32 %v8672_v38, %v5130_v25 }
 0x4af   : > { %v4641_v43 = vpop.f32.mrf.mxu2  ;;  %v4810_v61 = vpop.f32.mrf.mxu3 }
 0x4b0   : > { %v5390_v12 = vmax.f32 %v5326_v60, 0.0  ;;  %v4811_v53 = vadd.f32 %v4810_v61, %v4641_v43  ;;  %v3233_v13 = vpop.f32.mrf.mxu1  ;;  %v4981_v51 = vpop.f32.mrf.mxu0 }
 0x4b1   : > { %v3234_v29 = vadd.f32 %v3233_v13, %v9339_v30 }
 0x4b2   : > { %v6658_v33 = vpack.c.bf16 %v5390_v12, %v5389_v9  ;;  %v4980_v7 = vadd.f32 %v4979_v17, %v4811_v53  ;;  %v9347_v12 = vld [vmem:[#allocation19_spill] sm:$0xff] }
 0x4b3   : > { %v3384_v20 = vadd.f32 %v3234_v29, %v9340_v57 }
 0x4b4   : > { %6725 = vst [vmem:[%s8318_s20 + $0xb8] sm:$0xff] %v6658_v33   ;;  %v5131_v15 = vadd.f32 %v4980_v7, %v3383_v19 }
 0x4b6   : > { %v5327_v32 = vadd.f32 %v8672_v38, %v5131_v15 }
 0x4b7   : > { %v4643_v18 = vpop.f32.mrf.mxu2  ;;  %v4812_v47 = vpop.f32.mrf.mxu3 }
 0x4b8   : > { %v4813_v4 = vadd.f32 %v4812_v47, %v4643_v18  ;;  %v3236_v56 = vpop.f32.mrf.mxu1  ;;  %v4984_v0 = vpop.f32.mrf.mxu0  ;;  %v5391_v34 = vmax.f32 %v5327_v32, 0.0  ;;  %v9349_v47 = vld [vmem:[#allocation115_spill] sm:$0xff] }
 0x4b9   : > { %v3237_v55 = vadd.f32 %v3236_v56, %v9341_v45  ;;  %v9350_v56 = vld [vmem:[#allocation22_spill] sm:$0xff] }
 0x4ba   : > { %v4982_v52 = vadd.f32 %v4981_v51, %v4813_v4  ;;  %v9348_v51 = vld [vmem:[#allocation35_spill] sm:$0xff] }
 0x4bb   : > { %v3385_v39 = vadd.f32 %v3237_v55, %v9342_v6 }
 0x4bc   : > { %v5132_v24 = vadd.f32 %v4982_v52, %v3384_v20 }
 0x4be   : > { %v5328_v48 = vadd.f32 %v8672_v38, %v5132_v24 }
 0x4bf   : > { %v4646_v54 = vpop.f32.mrf.mxu2  ;;  %v4815_v10 = vpop.f32.mrf.mxu3 }
 0x4c0   : > { %v5392_v26 = vmax.f32 %v5328_v48, 0.0  ;;  %v4816_v44 = vadd.f32 %v4815_v10, %v4646_v54  ;;  %v3238_v21 = vpop.f32.mrf.mxu1  ;;  %v4986_v22 = vpop.f32.mrf.mxu0 }
 0x4c1   : > { %v3239_v2 = vadd.f32 %v3238_v21, %v9343_v14  ;;  %v9352_v21 = vld [vmem:[#allocation40_spill] sm:$0xff] }
 0x4c2   : > { %v6663_v63 = vpack.c.bf16 %v5392_v26, %v5391_v34  ;;  %v4985_v62 = vadd.f32 %v4984_v0, %v4816_v44  ;;  %v9351_v34 = vld [vmem:[#allocation24_spill] sm:$0xff] }
 0x4c3   : > { %v3386_v16 = vadd.f32 %v3239_v2, %v9344_v11 }
 0x4c4   : > { %6726 = vst [vmem:[%s8318_s20 + $0xc0] sm:$0xff] %v6663_v63   ;;  %v5133_v5 = vadd.f32 %v4985_v62, %v3385_v39 }
 0x4c6   : > { %v5329_v40 = vadd.f32 %v8672_v38, %v5133_v5 }
 0x4c7   : > { %v4648_v1 = vpop.f32.mrf.mxu2  ;;  %v4817_v59 = vpop.f32.mrf.mxu3 }
 0x4c8   : > { %v4818_v35 = vadd.f32 %v4817_v59, %v4648_v1  ;;  %v3241_v41 = vpop.f32.mrf.mxu1  ;;  %v4989_v36 = vpop.f32.mrf.mxu0  ;;  %v5393_v25 = vmax.f32 %v5329_v40, 0.0  ;;  %v9353_v59 = vld [vmem:[#allocation116_spill] sm:$0xff] }
 0x4c9   : > { %v3242_v31 = vadd.f32 %v3241_v41, %v9345_v37  ;;  %v9354_v41 = vld [vmem:[#allocation27_spill] sm:$0xff] }
 0x4ca   : > { %v4987_v8 = vadd.f32 %v4986_v22, %v4818_v35 }
 0x4cb   : > { %v3387_v17 = vadd.f32 %v3242_v31, %v9346_v49 }
 0x4cc   : > { %v5134_v46 = vadd.f32 %v4987_v8, %v3386_v16 }
 0x4ce   : > { %v5330_v42 = vadd.f32 %v8962_v27, %v5134_v46 }
 0x4cf   : > { %v4651_v19 = vpop.f32.mrf.mxu2  ;;  %v4820_v28 = vpop.f32.mrf.mxu3 }
 0x4d0   : > { %v5394_v60 = vmax.f32 %v5330_v42, 0.0  ;;  %v4821_v43 = vadd.f32 %v4820_v28, %v4651_v19  ;;  %v3243_v61 = vpop.f32.mrf.mxu1  ;;  %v4991_v9 = vpop.f32.mrf.mxu0 }
 0x4d1   : > { %v3244_v53 = vadd.f32 %v3243_v61, %v9347_v12  ;;  %v9356_v61 = vld [vmem:[#allocation45_spill] sm:$0xff] }
 0x4d2   : > { %v6668_v13 = vpack.c.bf16 %v5394_v60, %v5393_v25  ;;  %v4990_v30 = vadd.f32 %v4989_v36, %v4821_v43  ;;  %v9355_v25 = vld [vmem:[#allocation29_spill] sm:$0xff] }
 0x4d3   : > { %v3388_v38 = vadd.f32 %v3244_v53, %v9348_v51 }
 0x4d4   : > { %6727 = vst [vmem:[%s8318_s20 + $0xc8] sm:$0xff] %v6668_v13   ;;  %v5135_v57 = vadd.f32 %v4990_v30, %v3387_v17 }
 0x4d6   : > { %v5331_v45 = vadd.f32 %v8962_v27, %v5135_v57 }
 0x4d7   : > { %v4653_v29 = vpop.f32.mrf.mxu2  ;;  %v4822_v33 = vpop.f32.mrf.mxu3 }
 0x4d8   : > { %v4823_v20 = vadd.f32 %v4822_v33, %v4653_v29  ;;  %v3246_v7 = vpop.f32.mrf.mxu1  ;;  %v4994_v18 = vpop.f32.mrf.mxu0  ;;  %v5395_v32 = vmax.f32 %v5331_v45, 0.0 }
 0x4d9   : > { %v3247_v15 = vadd.f32 %v3246_v7, %v9349_v47 }
 0x4da   : > { %v4992_v4 = vadd.f32 %v4991_v9, %v4823_v20  ;;  %v9357_v20 = vld [vmem:[#allocation32_spill] sm:$0xff] }
 0x4db   : > { %v3389_v0 = vadd.f32 %v3247_v15, %v9350_v56 }
 0x4dc   : > { %v5136_v55 = vadd.f32 %v4992_v4, %v3388_v38 }
 0x4de   : > { %v5332_v52 = vadd.f32 %v8962_v27, %v5136_v55 }
 0x4df   : > { %v4656_v6 = vpop.f32.mrf.mxu2  ;;  %v4825_v39 = vpop.f32.mrf.mxu3 }
 0x4e0   : > { %v5396_v24 = vmax.f32 %v5332_v52, 0.0  ;;  %v4826_v48 = vadd.f32 %v4825_v39, %v4656_v6  ;;  %v3248_v54 = vpop.f32.mrf.mxu1  ;;  %v4996_v10 = vpop.f32.mrf.mxu0  ;;  %v9358_v39 = vld [vmem:[#allocation117_spill] sm:$0xff] }
 0x4e1   : > { %v3249_v26 = vadd.f32 %v3248_v54, %v9351_v34 }
 0x4e2   : > { %v6673_v44 = vpack.c.bf16 %v5396_v24, %v5395_v32  ;;  %v4995_v14 = vadd.f32 %v4994_v18, %v4826_v48 }
 0x4e3   : > { %v3390_v22 = vadd.f32 %v3249_v26, %v9352_v21 }
 0x4e4   : > { %6728 = vst [vmem:[%s8318_s20 + $0xd0] sm:$0xff] %v6673_v44   ;;  %v5137_v11 = vadd.f32 %v4995_v14, %v3389_v0 }
 0x4e6   : > { %v5333_v37 = vadd.f32 %v8962_v27, %v5137_v11 }
 0x4e7   : > { %v4658_v2 = vpop.f32.mrf.mxu2  ;;  %v4827_v63 = vpop.f32.mrf.mxu3 }
 0x4e8   : > { %v4828_v16 = vadd.f32 %v4827_v63, %v4658_v2  ;;  %v3251_v62 = vpop.f32.mrf.mxu1  ;;  %v4999_v1 = vpop.f32.mrf.mxu0  ;;  %v5397_v40 = vmax.f32 %v5333_v37, 0.0  ;;  %v9360_v63 = vld [vmem:[#allocation37_spill] sm:$0xff] }
 0x4e9   : > { %v3252_v5 = vadd.f32 %v3251_v62, %v9353_v59 }
 0x4ea   : > { %v4997_v35 = vadd.f32 %v4996_v10, %v4828_v16 }
 0x4eb   : > { %v3391_v36 = vadd.f32 %v3252_v5, %v9354_v41 }
 0x4ec   : > { %v5138_v31 = vadd.f32 %v4997_v35, %v3390_v22 }
 0x4ee   : > { %v5334_v8 = vadd.f32 %v8962_v27, %v5138_v31  ;;  %v9361_v31 = vld [vmem:[#allocation118_spill] sm:$0xff] }
 0x4ef   : > { %v4661_v49 = vpop.f32.mrf.mxu2  ;;  %v4830_v17 = vpop.f32.mrf.mxu3 }
 0x4f0   : > { %v5398_v46 = vmax.f32 %v5334_v8, 0.0  ;;  %v4831_v42 = vadd.f32 %v4830_v17, %v4661_v49  ;;  %v3253_v19 = vpop.f32.mrf.mxu1  ;;  %v5001_v28 = vpop.f32.mrf.mxu0 }
 0x4f1   : > { %v3254_v60 = vadd.f32 %v3253_v19, %v9355_v25 }
 0x4f2   : > { %v6678_v43 = vpack.c.bf16 %v5398_v46, %v5397_v40  ;;  %v5000_v12 = vadd.f32 %v4999_v1, %v4831_v42 }
 0x4f3   : > { %v3392_v9 = vadd.f32 %v3254_v60, %v9356_v61 }
 0x4f4   : > { %6729 = vst [vmem:[%s8318_s20 + $0xd8] sm:$0xff] %v6678_v43   ;;  %v5139_v51 = vadd.f32 %v5000_v12, %v3391_v36 }
 0x4f6   : > { %v5335_v18 = vadd.f32 %v8962_v27, %v5139_v51 }
 0x4f7   : > { %v4663_v53 = vpop.f32.mrf.mxu2  ;;  %v4832_v13 = vpop.f32.mrf.mxu3 }
 0x4f8   : > { %v4833_v38 = vadd.f32 %v4832_v13, %v4663_v53  ;;  %v3256_v30 = vpop.f32.mrf.mxu1  ;;  %v5004_v29 = vpop.f32.mrf.mxu0  ;;  %v5399_v0 = vmax.f32 %v5335_v18, 0.0 }
 0x4f9   : > { %v3257_v33 = vadd.f32 %v3256_v30, %v8201_v50  ;;  %v9359_v50 = vld [vmem:[#allocation34_spill] sm:$0xff] }
 0x4fa   : > { %v5002_v57 = vadd.f32 %v5001_v28, %v4833_v38 }
 0x4fb   : > { %v3393_v7 = vadd.f32 %v3257_v33, %v9357_v20 }
 0x4fc   : > { %v5140_v47 = vadd.f32 %v5002_v57, %v3392_v9 }
 0x4fe   : > { %v5336_v15 = vadd.f32 %v8962_v27, %v5140_v47 }
 0x4ff   : > { %v4666_v4 = vpop.f32.mrf.mxu2  ;;  %v4835_v56 = vpop.f32.mrf.mxu3 }
 0x500   : > { %v5400_v45 = vmax.f32 %v5336_v15, 0.0  ;;  %v4836_v55 = vadd.f32 %v4835_v56, %v4666_v4  ;;  %v3258_v52 = vpop.f32.mrf.mxu1  ;;  %v5006_v6 = vpop.f32.mrf.mxu0 }
 0x501   : > { %v3259_v32 = vadd.f32 %v3258_v52, %v9358_v39 }
 0x502   : > { %v6683_v24 = vpack.c.bf16 %v5400_v45, %v5399_v0  ;;  %v5005_v54 = vadd.f32 %v5004_v29, %v4836_v55 }
 0x503   : > { %v3394_v48 = vadd.f32 %v3259_v32, %v9359_v50 }
 0x504   : > { %6730 = vst [vmem:[%s8318_s20 + $0xe0] sm:$0xff] %v6683_v24   ;;  %v5141_v26 = vadd.f32 %v5005_v54, %v3393_v7  ;;  %v9363_v7 = vld [vmem:[#allocation44_spill] sm:$0xff] }
 0x506   : > { %v5337_v16 = vadd.f32 %v8962_v27, %v5141_v26 }
 0x507   : > { %v4668_v10 = vpop.f32.mrf.mxu2  ;;  %v4837_v34 = vpop.f32.mrf.mxu3 }
 0x508   : > { %v4838_v44 = vadd.f32 %v4837_v34, %v4668_v10  ;;  %v3261_v21 = vpop.f32.mrf.mxu1  ;;  %v5009_v2 = vpop.f32.mrf.mxu0  ;;  %v5401_v35 = vmax.f32 %v5337_v16, 0.0 }
 0x509   : > { %v3262_v22 = vadd.f32 %v3261_v21, %v8227_v58  ;;  %v9362_v58 = vld [vmem:[#allocation39_spill] sm:$0xff] }
 0x50a   : > { %v5007_v14 = vadd.f32 %v5006_v6, %v4838_v44 }
 0x50b   : > { %v3395_v11 = vadd.f32 %v3262_v22, %v9360_v63 }
 0x50c   : > { %v5142_v62 = vadd.f32 %v5007_v14, %v3394_v48 }
 0x50e   : > { %v5338_v1 = vadd.f32 %v8962_v27, %v5142_v62 }
 0x50f   : > { %v4671_v59 = vpop.f32.mrf.mxu2  ;;  %v4840_v5 = vpop.f32.mrf.mxu3 }
 0x510   : > { %v5402_v41 = vmax.f32 %v5338_v1, 0.0  ;;  %v4841_v36 = vadd.f32 %v4840_v5, %v4671_v59  ;;  %v3263_v37 = vpop.f32.mrf.mxu1  ;;  %v5011_v46 = vpop.f32.mrf.mxu0 }
 0x511   : > { %v3264_v8 = vadd.f32 %v3263_v37, %v9361_v31 }
 0x512   : > { %v6688_v49 = vpack.c.bf16 %v5402_v41, %v5401_v35  ;;  %v5010_v40 = vadd.f32 %v5009_v2, %v4841_v36 }
 0x513   : > { %v3396_v17 = vadd.f32 %v3264_v8, %v9362_v58 }
 0x514   : > { %6731 = vst [vmem:[%s8318_s20 + $0xe8] sm:$0xff] %v6688_v49   ;;  %v5143_v28 = vadd.f32 %v5010_v40, %v3395_v11 }
 0x516   : > { %v5339_v12 = vadd.f32 %v8962_v27, %v5143_v28 }
 0x517   : > { %v4673_v42 = vpop.f32.mrf.mxu2  ;;  %v4842_v19 = vpop.f32.mrf.mxu3 }
 0x518   : > { %v4843_v25 = vadd.f32 %v4842_v19, %v4673_v42  ;;  %v3266_v60 = vpop.f32.mrf.mxu1  ;;  %v5014_v51 = vpop.f32.mrf.mxu0  ;;  %v5403_v29 = vmax.f32 %v5339_v12, 0.0 }
 0x519   : > { %v3267_v43 = vadd.f32 %v3266_v60, %v8253_v23  ;;  %v9364_v23 = vld [vmem:[#allocation42_spill] sm:$0xff] }
 0x51a   : > { %v5012_v61 = vadd.f32 %v5011_v46, %v4843_v25 }
 0x51b   : > { %v3397_v9 = vadd.f32 %v3267_v43, %v8251_v3 }
 0x51c   : > { %v5144_v53 = vadd.f32 %v5012_v61, %v3396_v17 }
 0x51e   : > { %v5340_v13 = vadd.f32 %v8962_v27, %v5144_v53 }
 0x51f   : > { %v4676_v38 = vpop.f32.mrf.mxu2  ;;  %v4845_v30 = vpop.f32.mrf.mxu3 }
 0x520   : > { %v5404_v33 = vmax.f32 %v5340_v13, 0.0  ;;  %v4846_v57 = vadd.f32 %v4845_v30, %v4676_v38  ;;  %v3268_v20 = vpop.f32.mrf.mxu1  ;;  %v5016_v55 = vpop.f32.mrf.mxu0 }
 0x521   : > { %v3269_v18 = vadd.f32 %v3268_v20, %v9363_v7 }
 0x522   : > { %v6693_v47 = vpack.c.bf16 %v5404_v33, %v5403_v29  ;;  %v5015_v3 = vadd.f32 %v5014_v51, %v4846_v57 }
 0x523   : > { %v3398_v15 = vadd.f32 %v3269_v18, %v9364_v23 }
 0x524   : > { %6732 = vst [vmem:[%s8318_s20 + $0xf0] sm:$0xff] %v6693_v47   ;;  %v5145_v0 = vadd.f32 %v5015_v3, %v3397_v9 }
 0x526   : > { %v5341_v6 = vadd.f32 %v8962_v27, %v5145_v0 }
 0x527   : > { %v4678_v4 = vpop.f32.mrf.mxu2  ;;  %v4847_v56 = vpop.f32.mrf.mxu3 }
 0x528   : > { %v4848_v45 = vadd.f32 %v4847_v56, %v4678_v4  ;;  %v5405_v24 = vmax.f32 %v5341_v6, 0.0 }
 0x52a   : > { %v5017_v52 = vadd.f32 %v5016_v55, %v4848_v45 }
 0x52c   : > { %v5146_v39 = vadd.f32 %v5017_v52, %v3398_v15 }
 0x52e   : > { %v5342_v32 = vadd.f32 %v8962_v27, %v5146_v39 }
 0x530   : > { %v5406_v50 = vmax.f32 %v5342_v32, 0.0 }
 0x532   : > { %v6698_v48 = vpack.c.bf16 %v5406_v50, %v5405_v24 }
 0x534   : > { %6733 = vst [vmem:[%s8318_s20 + $0xf8] sm:$0xff] %v6698_v48  }
 0x535 PF: > { %s14_s15 = sadd.s32 1, %s6794_s15  }
 0x536   : > { %p11_p5 = scmp.ge.s32.totalorder %s14_s15, 4  }
 0x538   :  { %13 = sbr.rel (!%p11_p5) target bundleno = 1 (0x1), region = 71 }

// kernel: homography_forward.18
= control target key start
LH: loop header
LB: loop body
LE: loop exit
PB: predicated region body
PF: predicated region fallthrough
CT: control target
= control target key end

     0   :  { %s2457_s12 = smov 0   ;;  %s2459_s13 = smov 0   ;;  %s3077_s0 = inlined_call_operand.vmem [shape: bf16[8,512], index: 0, kind: input, shape index: {}]   ;;  %s3078_s1 = inlined_call_operand.vmem [shape: bf16[512,1024], index: 1, kind: input, shape index: {}]   ;;  %s3079_s2 = inlined_call_operand.vmem [shape: f32[1,1024], index: 2, kind: input, shape index: {}]   ;;  %s3080_s3 = inlined_call_operand.vmem [shape: bf16[8,1024], index: 3, kind: output, shape index: {}]  }
   0x1   :  { %s2461_s14 = smov 0   ;;  %s2463_s15 = smov 0  }
   0x2   :  { %s2465_s16 = smov 0  }
   0x3 LB: > { %s28_s17 = sadd.s32 1, %s2431_s15  ;;  %p76_p1 = scmp.ne.s32.totalorder %s2423_s13, %s2419_s12  ;;  %s2435_s16 = sphi %s2465_s16, %s13_s16   ;;  %s2431_s15 = sphi %s2463_s15, %s3084_s15   ;;  %s2427_s14 = sphi %s2461_s14, %s3083_s14   ;;  %s2423_s13 = sphi %s2459_s13, %s3082_s13   ;;  %s2419_s12 = sphi %s2457_s12, %s3081_s12  }
   0x4   : > { %p30_p0 = scmp.ge.s32.totalorder %s28_s17, 2  ;;  %p77_p2 = scmp.eq.s32.totalorder %s2435_s16, 0 }
   0x5   : > { %s69_s19 = sadd.s32 1, %s2423_s13  ;;  %p1705_p5 = scmp.ge.s32.totalorder %s2435_s16, 2 }
   0x6   : > { %s3086_s17 = smov (%p30_p0, %s28_s17), 0  ;;  %p78_p3 = por %p77_p2, %p76_p1 }
   0x7   : > { %s65_s18 = ssub.s32 %s2431_s15, %s3086_s17  ;;  %169 = sbr.rel (%p1705_p5) target bundleno = 144 (0x90), region = 20 }
   0x8   : > { %p67_p4 = scmp.eq.s32.totalorder %s65_s18, 0 }
   0xa   : > { %s2492_s20 = scalar_select %p67_p4, %s2423_s13, %s69_s19  }
   0xc   : > { %172 = sbr.rel (!%p78_p3) target bundleno = 144 (0x90), region = 24  ;;  %s174_s21 = sand.u32 (%p78_p3), 1, %s2423_s13  }
   0xd   : > { %s2228_s22 = sshll.u32 (%p78_p3), %s2431_s15, 4  ;;  %s1706_s23 = sshll.u32 (%p78_p3), %s174_s21, 10 }
   0xe   : > { %s2500_s26 = scalar_lea.vmem (%p78_p3), %s3078_s1, %s2228_s22  ;;  %s2505_s27 = scalar_lea.vmem (%p78_p3), [#allocation3], %s1706_s23 }
   0xf   : > { %v195_v0 = vld [vmem:[%s2500_s26] sm:$0xff] (%p78_p3)  ;;  %v197_v1 = vld [vmem:[%s2500_s26 + $0x8] sm:$0xff] (%p78_p3) }
  0x10   : > { %v199_v2 = vld [vmem:[%s2500_s26 + $0x20] sm:$0xff] (%p78_p3)  ;;  %196 = vst [vmem:[%s2505_s27] sm:$0xff] (%p78_p3), %v195_v0  ;;  %v201_v3 = vld [vmem:[%s2500_s26 + $0x28] sm:$0xff] (%p78_p3) }
  0x11   : > { %198 = vst [vmem:[%s2505_s27 + $0x8] sm:$0xff] %v197_v1  ;;  %v203_v4 = vld [vmem:[%s2500_s26 + $0x40] sm:$0xff]  ;;  %v205_v5 = vld [vmem:[%s2500_s26 + $0x48] sm:$0xff] }
  0x12   : > { %200 = vst [vmem:[%s2505_s27 + $0x10] sm:$0xff] %v199_v2  ;;  %v207_v6 = vld [vmem:[%s2500_s26 + $0x60] sm:$0xff]  ;;  %v209_v7 = vld [vmem:[%s2500_s26 + $0x68] sm:$0xff] }
  0x13   : > { %202 = vst [vmem:[%s2505_s27 + $0x18] sm:$0xff] %v201_v3  ;;  %v211_v8 = vld [vmem:[%s2500_s26 + $0x80] sm:$0xff]  ;;  %v213_v9 = vld [vmem:[%s2500_s26 + $0x88] sm:$0xff] }
  0x14   : > { %204 = vst [vmem:[%s2505_s27 + $0x20] sm:$0xff] %v203_v4  ;;  %v215_v10 = vld [vmem:[%s2500_s26 + $0xa0] sm:$0xff]  ;;  %v217_v11 = vld [vmem:[%s2500_s26 + $0xa8] sm:$0xff] }
  0x15   : > { %206 = vst [vmem:[%s2505_s27 + $0x28] sm:$0xff] %v205_v5  ;;  %v219_v12 = vld [vmem:[%s2500_s26 + $0xc0] sm:$0xff]  ;;  %v221_v13 = vld [vmem:[%s2500_s26 + $0xc8] sm:$0xff] }
  0x16   : > { %208 = vst [vmem:[%s2505_s27 + $0x30] sm:$0xff] %v207_v6  ;;  %v223_v14 = vld [vmem:[%s2500_s26 + $0xe0] sm:$0xff]  ;;  %v225_v15 = vld [vmem:[%s2500_s26 + $0xe8] sm:$0xff] }
  0x17   : > { %210 = vst [vmem:[%s2505_s27 + $0x38] sm:$0xff] %v209_v7  ;;  %v227_v16 = vld [vmem:[%s2500_s26 + $0x100] sm:$0xff]  ;;  %v229_v17 = vld [vmem:[%s2500_s26 + $0x108] sm:$0xff] }
  0x18   : > { %212 = vst [vmem:[%s2505_s27 + $0x40] sm:$0xff] %v211_v8  ;;  %v231_v18 = vld [vmem:[%s2500_s26 + $0x120] sm:$0xff]  ;;  %v233_v19 = vld [vmem:[%s2500_s26 + $0x128] sm:$0xff] }
  0x19   : > { %214 = vst [vmem:[%s2505_s27 + $0x48] sm:$0xff] %v213_v9  ;;  %v235_v20 = vld [vmem:[%s2500_s26 + $0x140] sm:$0xff]  ;;  %v237_v21 = vld [vmem:[%s2500_s26 + $0x148] sm:$0xff] }
  0x1a   : > { %216 = vst [vmem:[%s2505_s27 + $0x50] sm:$0xff] %v215_v10  ;;  %v239_v22 = vld [vmem:[%s2500_s26 + $0x160] sm:$0xff]  ;;  %v241_v23 = vld [vmem:[%s2500_s26 + $0x168] sm:$0xff] }
  0x1b   : > { %218 = vst [vmem:[%s2505_s27 + $0x58] sm:$0xff] %v217_v11  ;;  %v243_v24 = vld [vmem:[%s2500_s26 + $0x180] sm:$0xff]  ;;  %v245_v25 = vld [vmem:[%s2500_s26 + $0x188] sm:$0xff] }
  0x1c   : > { %220 = vst [vmem:[%s2505_s27 + $0x60] sm:$0xff] %v219_v12  ;;  %v247_v26 = vld [vmem:[%s2500_s26 + $0x1a0] sm:$0xff]  ;;  %v249_v27 = vld [vmem:[%s2500_s26 + $0x1a8] sm:$0xff] }
  0x1d   : > { %222 = vst [vmem:[%s2505_s27 + $0x68] sm:$0xff] %v221_v13  ;;  %v251_v28 = vld [vmem:[%s2500_s26 + $0x1c0] sm:$0xff]  ;;  %v253_v29 = vld [vmem:[%s2500_s26 + $0x1c8] sm:$0xff] }
  0x1e   : > { %224 = vst [vmem:[%s2505_s27 + $0x70] sm:$0xff] %v223_v14  ;;  %v255_v30 = vld [vmem:[%s2500_s26 + $0x1e0] sm:$0xff]  ;;  %v257_v31 = vld [vmem:[%s2500_s26 + $0x1e8] sm:$0xff] }
  0x1f   : > { %226 = vst [vmem:[%s2505_s27 + $0x78] sm:$0xff] %v225_v15  ;;  %v259_v32 = vld [vmem:[%s2500_s26 + $0x200] sm:$0xff]  ;;  %v261_v33 = vld [vmem:[%s2500_s26 + $0x208] sm:$0xff] }
  0x20   : > { %228 = vst [vmem:[%s2505_s27 + $0x80] sm:$0xff] %v227_v16  ;;  %v263_v34 = vld [vmem:[%s2500_s26 + $0x220] sm:$0xff]  ;;  %v265_v35 = vld [vmem:[%s2500_s26 + $0x228] sm:$0xff] }
  0x21   : > { %230 = vst [vmem:[%s2505_s27 + $0x88] sm:$0xff] %v229_v17  ;;  %v267_v36 = vld [vmem:[%s2500_s26 + $0x240] sm:$0xff]  ;;  %v269_v37 = vld [vmem:[%s2500_s26 + $0x248] sm:$0xff] }
  0x22   : > { %232 = vst [vmem:[%s2505_s27 + $0x90] sm:$0xff] %v231_v18  ;;  %v271_v38 = vld [vmem:[%s2500_s26 + $0x260] sm:$0xff]  ;;  %v273_v39 = vld [vmem:[%s2500_s26 + $0x268] sm:$0xff] }
  0x23   : > { %234 = vst [vmem:[%s2505_s27 + $0x98] sm:$0xff] %v233_v19  ;;  %v275_v40 = vld [vmem:[%s2500_s26 + $0x280] sm:$0xff]  ;;  %v277_v41 = vld [vmem:[%s2500_s26 + $0x288] sm:$0xff] }
  0x24   : > { %236 = vst [vmem:[%s2505_s27 + $0xa0] sm:$0xff] %v235_v20  ;;  %v279_v42 = vld [vmem:[%s2500_s26 + $0x2a0] sm:$0xff]  ;;  %v281_v43 = vld [vmem:[%s2500_s26 + $0x2a8] sm:$0xff] }
  0x25   : > { %238 = vst [vmem:[%s2505_s27 + $0xa8] sm:$0xff] %v237_v21  ;;  %v283_v44 = vld [vmem:[%s2500_s26 + $0x2c0] sm:$0xff]  ;;  %v285_v45 = vld [vmem:[%s2500_s26 + $0x2c8] sm:$0xff] }
  0x26   : > { %240 = vst [vmem:[%s2505_s27 + $0xb0] sm:$0xff] %v239_v22  ;;  %v287_v46 = vld [vmem:[%s2500_s26 + $0x2e0] sm:$0xff]  ;;  %v289_v47 = vld [vmem:[%s2500_s26 + $0x2e8] sm:$0xff] }
  0x27   : > { %242 = vst [vmem:[%s2505_s27 + $0xb8] sm:$0xff] %v241_v23  ;;  %v291_v48 = vld [vmem:[%s2500_s26 + $0x300] sm:$0xff]  ;;  %v293_v49 = vld [vmem:[%s2500_s26 + $0x308] sm:$0xff] }
  0x28   : > { %244 = vst [vmem:[%s2505_s27 + $0xc0] sm:$0xff] %v243_v24  ;;  %v295_v50 = vld [vmem:[%s2500_s26 + $0x320] sm:$0xff]  ;;  %v297_v51 = vld [vmem:[%s2500_s26 + $0x328] sm:$0xff] }
  0x29   : > { %246 = vst [vmem:[%s2505_s27 + $0xc8] sm:$0xff] %v245_v25  ;;  %v299_v52 = vld [vmem:[%s2500_s26 + $0x340] sm:$0xff]  ;;  %v301_v53 = vld [vmem:[%s2500_s26 + $0x348] sm:$0xff] }
  0x2a   : > { %248 = vst [vmem:[%s2505_s27 + $0xd0] sm:$0xff] %v247_v26  ;;  %v303_v54 = vld [vmem:[%s2500_s26 + $0x360] sm:$0xff]  ;;  %v305_v55 = vld [vmem:[%s2500_s26 + $0x368] sm:$0xff] }
  0x2b   : > { %250 = vst [vmem:[%s2505_s27 + $0xd8] sm:$0xff] %v249_v27  ;;  %v307_v56 = vld [vmem:[%s2500_s26 + $0x380] sm:$0xff]  ;;  %v309_v57 = vld [vmem:[%s2500_s26 + $0x388] sm:$0xff] }
  0x2c   : > { %252 = vst [vmem:[%s2505_s27 + $0xe0] sm:$0xff] %v251_v28  ;;  %v311_v58 = vld [vmem:[%s2500_s26 + $0x3a0] sm:$0xff]  ;;  %v313_v59 = vld [vmem:[%s2500_s26 + $0x3a8] sm:$0xff] }
  0x2d   : > { %254 = vst [vmem:[%s2505_s27 + $0xe8] sm:$0xff] %v253_v29  ;;  %v315_v60 = vld [vmem:[%s2500_s26 + $0x3c0] sm:$0xff]  ;;  %v317_v61 = vld [vmem:[%s2500_s26 + $0x3c8] sm:$0xff] }
  0x2e   : > { %256 = vst [vmem:[%s2505_s27 + $0xf0] sm:$0xff] %v255_v30  ;;  %v319_v62 = vld [vmem:[%s2500_s26 + $0x3e0] sm:$0xff]  ;;  %v321_v63 = vld [vmem:[%s2500_s26 + $0x3e8] sm:$0xff] }
  0x2f   : > { %258 = vst [vmem:[%s2505_s27 + $0xf8] sm:$0xff] %v257_v31  ;;  %v323_v0 = vld [vmem:[%s2500_s26 + $0x400] sm:$0xff]  ;;  %v325_v1 = vld [vmem:[%s2500_s26 + $0x408] sm:$0xff] }
  0x30   : > { %260 = vst [vmem:[%s2505_s27 + $0x100] sm:$0xff] %v259_v32  ;;  %v327_v2 = vld [vmem:[%s2500_s26 + $0x420] sm:$0xff]  ;;  %v329_v3 = vld [vmem:[%s2500_s26 + $0x428] sm:$0xff] }
  0x31   : > { %262 = vst [vmem:[%s2505_s27 + $0x108] sm:$0xff] %v261_v33  ;;  %v331_v4 = vld [vmem:[%s2500_s26 + $0x440] sm:$0xff]  ;;  %v333_v5 = vld [vmem:[%s2500_s26 + $0x448] sm:$0xff] }
  0x32   : > { %264 = vst [vmem:[%s2505_s27 + $0x110] sm:$0xff] %v263_v34  ;;  %v335_v6 = vld [vmem:[%s2500_s26 + $0x460] sm:$0xff]  ;;  %v337_v7 = vld [vmem:[%s2500_s26 + $0x468] sm:$0xff] }
  0x33   : > { %266 = vst [vmem:[%s2505_s27 + $0x118] sm:$0xff] %v265_v35  ;;  %v339_v8 = vld [vmem:[%s2500_s26 + $0x480] sm:$0xff]  ;;  %v341_v9 = vld [vmem:[%s2500_s26 + $0x488] sm:$0xff] }
  0x34   : > { %268 = vst [vmem:[%s2505_s27 + $0x120] sm:$0xff] %v267_v36  ;;  %v343_v10 = vld [vmem:[%s2500_s26 + $0x4a0] sm:$0xff]  ;;  %v345_v11 = vld [vmem:[%s2500_s26 + $0x4a8] sm:$0xff] }
  0x35   : > { %270 = vst [vmem:[%s2505_s27 + $0x128] sm:$0xff] %v269_v37  ;;  %v347_v12 = vld [vmem:[%s2500_s26 + $0x4c0] sm:$0xff]  ;;  %v349_v13 = vld [vmem:[%s2500_s26 + $0x4c8] sm:$0xff] }
  0x36   : > { %272 = vst [vmem:[%s2505_s27 + $0x130] sm:$0xff] %v271_v38  ;;  %v351_v14 = vld [vmem:[%s2500_s26 + $0x4e0] sm:$0xff]  ;;  %v353_v15 = vld [vmem:[%s2500_s26 + $0x4e8] sm:$0xff] }
  0x37   : > { %274 = vst [vmem:[%s2505_s27 + $0x138] sm:$0xff] %v273_v39  ;;  %v355_v16 = vld [vmem:[%s2500_s26 + $0x500] sm:$0xff]  ;;  %v357_v17 = vld [vmem:[%s2500_s26 + $0x508] sm:$0xff] }
  0x38   : > { %276 = vst [vmem:[%s2505_s27 + $0x140] sm:$0xff] %v275_v40  ;;  %v359_v18 = vld [vmem:[%s2500_s26 + $0x520] sm:$0xff]  ;;  %v361_v19 = vld [vmem:[%s2500_s26 + $0x528] sm:$0xff] }
  0x39   : > { %278 = vst [vmem:[%s2505_s27 + $0x148] sm:$0xff] %v277_v41  ;;  %v363_v20 = vld [vmem:[%s2500_s26 + $0x540] sm:$0xff]  ;;  %v365_v21 = vld [vmem:[%s2500_s26 + $0x548] sm:$0xff] }
  0x3a   : > { %280 = vst [vmem:[%s2505_s27 + $0x150] sm:$0xff] %v279_v42  ;;  %v367_v22 = vld [vmem:[%s2500_s26 + $0x560] sm:$0xff]  ;;  %v369_v23 = vld [vmem:[%s2500_s26 + $0x568] sm:$0xff] }
  0x3b   : > { %282 = vst [vmem:[%s2505_s27 + $0x158] sm:$0xff] %v281_v43  ;;  %v371_v24 = vld [vmem:[%s2500_s26 + $0x580] sm:$0xff]  ;;  %v373_v25 = vld [vmem:[%s2500_s26 + $0x588] sm:$0xff] }
  0x3c   : > { %284 = vst [vmem:[%s2505_s27 + $0x160] sm:$0xff] %v283_v44  ;;  %v375_v26 = vld [vmem:[%s2500_s26 + $0x5a0] sm:$0xff]  ;;  %v377_v27 = vld [vmem:[%s2500_s26 + $0x5a8] sm:$0xff] }
  0x3d   : > { %286 = vst [vmem:[%s2505_s27 + $0x168] sm:$0xff] %v285_v45  ;;  %v379_v28 = vld [vmem:[%s2500_s26 + $0x5c0] sm:$0xff]  ;;  %v381_v29 = vld [vmem:[%s2500_s26 + $0x5c8] sm:$0xff] }
  0x3e   : > { %288 = vst [vmem:[%s2505_s27 + $0x170] sm:$0xff] %v287_v46  ;;  %v383_v30 = vld [vmem:[%s2500_s26 + $0x5e0] sm:$0xff]  ;;  %v385_v31 = vld [vmem:[%s2500_s26 + $0x5e8] sm:$0xff] }
  0x3f   : > { %290 = vst [vmem:[%s2505_s27 + $0x178] sm:$0xff] %v289_v47  ;;  %v387_v32 = vld [vmem:[%s2500_s26 + $0x600] sm:$0xff]  ;;  %v389_v33 = vld [vmem:[%s2500_s26 + $0x608] sm:$0xff] }
  0x40   : > { %292 = vst [vmem:[%s2505_s27 + $0x180] sm:$0xff] %v291_v48  ;;  %v391_v34 = vld [vmem:[%s2500_s26 + $0x620] sm:$0xff]  ;;  %v393_v35 = vld [vmem:[%s2500_s26 + $0x628] sm:$0xff] }
  0x41   : > { %294 = vst [vmem:[%s2505_s27 + $0x188] sm:$0xff] %v293_v49  ;;  %v395_v36 = vld [vmem:[%s2500_s26 + $0x640] sm:$0xff]  ;;  %v397_v37 = vld [vmem:[%s2500_s26 + $0x648] sm:$0xff] }
  0x42   : > { %296 = vst [vmem:[%s2505_s27 + $0x190] sm:$0xff] %v295_v50  ;;  %v399_v38 = vld [vmem:[%s2500_s26 + $0x660] sm:$0xff]  ;;  %v401_v39 = vld [vmem:[%s2500_s26 + $0x668] sm:$0xff] }
  0x43   : > { %298 = vst [vmem:[%s2505_s27 + $0x198] sm:$0xff] %v297_v51  ;;  %v403_v40 = vld [vmem:[%s2500_s26 + $0x680] sm:$0xff]  ;;  %v405_v41 = vld [vmem:[%s2500_s26 + $0x688] sm:$0xff] }
  0x44   : > { %300 = vst [vmem:[%s2505_s27 + $0x1a0] sm:$0xff] %v299_v52  ;;  %v407_v42 = vld [vmem:[%s2500_s26 + $0x6a0] sm:$0xff]  ;;  %v409_v43 = vld [vmem:[%s2500_s26 + $0x6a8] sm:$0xff] }
  0x45   : > { %302 = vst [vmem:[%s2505_s27 + $0x1a8] sm:$0xff] %v301_v53  ;;  %v411_v44 = vld [vmem:[%s2500_s26 + $0x6c0] sm:$0xff]  ;;  %v413_v45 = vld [vmem:[%s2500_s26 + $0x6c8] sm:$0xff] }
  0x46   : > { %304 = vst [vmem:[%s2505_s27 + $0x1b0] sm:$0xff] %v303_v54  ;;  %v415_v46 = vld [vmem:[%s2500_s26 + $0x6e0] sm:$0xff]  ;;  %v417_v47 = vld [vmem:[%s2500_s26 + $0x6e8] sm:$0xff] }
  0x47   : > { %306 = vst [vmem:[%s2505_s27 + $0x1b8] sm:$0xff] %v305_v55  ;;  %v419_v48 = vld [vmem:[%s2500_s26 + $0x700] sm:$0xff]  ;;  %v421_v49 = vld [vmem:[%s2500_s26 + $0x708] sm:$0xff] }
  0x48   : > { %308 = vst [vmem:[%s2505_s27 + $0x1c0] sm:$0xff] %v307_v56  ;;  %v423_v50 = vld [vmem:[%s2500_s26 + $0x720] sm:$0xff]  ;;  %v425_v51 = vld [vmem:[%s2500_s26 + $0x728] sm:$0xff] }
  0x49   : > { %310 = vst [vmem:[%s2505_s27 + $0x1c8] sm:$0xff] %v309_v57  ;;  %v427_v52 = vld [vmem:[%s2500_s26 + $0x740] sm:$0xff]  ;;  %v429_v53 = vld [vmem:[%s2500_s26 + $0x748] sm:$0xff] }
  0x4a   : > { %312 = vst [vmem:[%s2505_s27 + $0x1d0] sm:$0xff] %v311_v58  ;;  %v431_v54 = vld [vmem:[%s2500_s26 + $0x760] sm:$0xff]  ;;  %v433_v55 = vld [vmem:[%s2500_s26 + $0x768] sm:$0xff] }
  0x4b   : > { %314 = vst [vmem:[%s2505_s27 + $0x1d8] sm:$0xff] %v313_v59  ;;  %v435_v56 = vld [vmem:[%s2500_s26 + $0x780] sm:$0xff]  ;;  %v437_v57 = vld [vmem:[%s2500_s26 + $0x788] sm:$0xff] }
  0x4c   : > { %316 = vst [vmem:[%s2505_s27 + $0x1e0] sm:$0xff] %v315_v60  ;;  %v439_v58 = vld [vmem:[%s2500_s26 + $0x7a0] sm:$0xff]  ;;  %v441_v59 = vld [vmem:[%s2500_s26 + $0x7a8] sm:$0xff] }
  0x4d   : > { %318 = vst [vmem:[%s2505_s27 + $0x1e8] sm:$0xff] %v317_v61  ;;  %v443_v60 = vld [vmem:[%s2500_s26 + $0x7c0] sm:$0xff]  ;;  %v445_v61 = vld [vmem:[%s2500_s26 + $0x7c8] sm:$0xff] }
  0x4e   : > { %320 = vst [vmem:[%s2505_s27 + $0x1f0] sm:$0xff] %v319_v62  ;;  %v447_v62 = vld [vmem:[%s2500_s26 + $0x7e0] sm:$0xff] }
  0x4f   : > { %322 = vst [vmem:[%s2505_s27 + $0x1f8] sm:$0xff] %v321_v63  ;;  %v449_v63 = vld [vmem:[%s2500_s26 + $0x7e8] sm:$0xff] }
  0x50   : > { %324 = vst [vmem:[%s2505_s27 + $0x200] sm:$0xff] %v323_v0 }
  0x51   : > { %326 = vst [vmem:[%s2505_s27 + $0x208] sm:$0xff] %v325_v1 }
  0x52   : > { %328 = vst [vmem:[%s2505_s27 + $0x210] sm:$0xff] %v327_v2 }
  0x53   : > { %330 = vst [vmem:[%s2505_s27 + $0x218] sm:$0xff] %v329_v3 }
  0x54   : > { %332 = vst [vmem:[%s2505_s27 + $0x220] sm:$0xff] %v331_v4 }
  0x55   : > { %334 = vst [vmem:[%s2505_s27 + $0x228] sm:$0xff] %v333_v5 }
  0x56   : > { %336 = vst [vmem:[%s2505_s27 + $0x230] sm:$0xff] %v335_v6 }
  0x57   : > { %338 = vst [vmem:[%s2505_s27 + $0x238] sm:$0xff] %v337_v7 }
  0x58   : > { %340 = vst [vmem:[%s2505_s27 + $0x240] sm:$0xff] %v339_v8 }
  0x59   : > { %342 = vst [vmem:[%s2505_s27 + $0x248] sm:$0xff] %v341_v9 }
  0x5a   : > { %344 = vst [vmem:[%s2505_s27 + $0x250] sm:$0xff] %v343_v10 }
  0x5b   : > { %346 = vst [vmem:[%s2505_s27 + $0x258] sm:$0xff] %v345_v11 }
  0x5c   : > { %348 = vst [vmem:[%s2505_s27 + $0x260] sm:$0xff] %v347_v12 }
  0x5d   : > { %350 = vst [vmem:[%s2505_s27 + $0x268] sm:$0xff] %v349_v13 }
  0x5e   : > { %352 = vst [vmem:[%s2505_s27 + $0x270] sm:$0xff] %v351_v14 }
  0x5f   : > { %354 = vst [vmem:[%s2505_s27 + $0x278] sm:$0xff] %v353_v15 }
  0x60   : > { %356 = vst [vmem:[%s2505_s27 + $0x280] sm:$0xff] %v355_v16 }
  0x61   : > { %358 = vst [vmem:[%s2505_s27 + $0x288] sm:$0xff] %v357_v17 }
  0x62   : > { %360 = vst [vmem:[%s2505_s27 + $0x290] sm:$0xff] %v359_v18 }
  0x63   : > { %362 = vst [vmem:[%s2505_s27 + $0x298] sm:$0xff] %v361_v19 }
  0x64   : > { %364 = vst [vmem:[%s2505_s27 + $0x2a0] sm:$0xff] %v363_v20 }
  0x65   : > { %366 = vst [vmem:[%s2505_s27 + $0x2a8] sm:$0xff] %v365_v21 }
  0x66   : > { %368 = vst [vmem:[%s2505_s27 + $0x2b0] sm:$0xff] %v367_v22 }
  0x67   : > { %370 = vst [vmem:[%s2505_s27 + $0x2b8] sm:$0xff] %v369_v23 }
  0x68   : > { %372 = vst [vmem:[%s2505_s27 + $0x2c0] sm:$0xff] %v371_v24 }
  0x69   : > { %374 = vst [vmem:[%s2505_s27 + $0x2c8] sm:$0xff] %v373_v25 }
  0x6a   : > { %376 = vst [vmem:[%s2505_s27 + $0x2d0] sm:$0xff] %v375_v26 }
  0x6b   : > { %378 = vst [vmem:[%s2505_s27 + $0x2d8] sm:$0xff] %v377_v27 }
  0x6c   : > { %380 = vst [vmem:[%s2505_s27 + $0x2e0] sm:$0xff] %v379_v28 }
  0x6d   : > { %382 = vst [vmem:[%s2505_s27 + $0x2e8] sm:$0xff] %v381_v29 }
  0x6e   : > { %384 = vst [vmem:[%s2505_s27 + $0x2f0] sm:$0xff] %v383_v30 }
  0x6f   : > { %386 = vst [vmem:[%s2505_s27 + $0x2f8] sm:$0xff] %v385_v31 }
  0x70   : > { %388 = vst [vmem:[%s2505_s27 + $0x300] sm:$0xff] %v387_v32 }
  0x71   : > { %390 = vst [vmem:[%s2505_s27 + $0x308] sm:$0xff] %v389_v33 }
  0x72   : > { %392 = vst [vmem:[%s2505_s27 + $0x310] sm:$0xff] %v391_v34 }
  0x73   : > { %394 = vst [vmem:[%s2505_s27 + $0x318] sm:$0xff] %v393_v35 }
  0x74   : > { %396 = vst [vmem:[%s2505_s27 + $0x320] sm:$0xff] %v395_v36 }
  0x75   : > { %398 = vst [vmem:[%s2505_s27 + $0x328] sm:$0xff] %v397_v37 }
  0x76   : > { %400 = vst [vmem:[%s2505_s27 + $0x330] sm:$0xff] %v399_v38 }
  0x77   : > { %402 = vst [vmem:[%s2505_s27 + $0x338] sm:$0xff] %v401_v39 }
  0x78   : > { %404 = vst [vmem:[%s2505_s27 + $0x340] sm:$0xff] %v403_v40 }
  0x79   : > { %406 = vst [vmem:[%s2505_s27 + $0x348] sm:$0xff] %v405_v41 }
  0x7a   : > { %408 = vst [vmem:[%s2505_s27 + $0x350] sm:$0xff] %v407_v42 }
  0x7b   : > { %410 = vst [vmem:[%s2505_s27 + $0x358] sm:$0xff] %v409_v43 }
  0x7c   : > { %412 = vst [vmem:[%s2505_s27 + $0x360] sm:$0xff] %v411_v44 }
  0x7d   : > { %414 = vst [vmem:[%s2505_s27 + $0x368] sm:$0xff] %v413_v45 }
  0x7e   : > { %416 = vst [vmem:[%s2505_s27 + $0x370] sm:$0xff] %v415_v46 }
  0x7f   : > { %418 = vst [vmem:[%s2505_s27 + $0x378] sm:$0xff] %v417_v47 }
  0x80   : > { %420 = vst [vmem:[%s2505_s27 + $0x380] sm:$0xff] %v419_v48 }
  0x81   : > { %422 = vst [vmem:[%s2505_s27 + $0x388] sm:$0xff] %v421_v49 }
  0x82   : > { %424 = vst [vmem:[%s2505_s27 + $0x390] sm:$0xff] %v423_v50 }
  0x83   : > { %426 = vst [vmem:[%s2505_s27 + $0x398] sm:$0xff] %v425_v51 }
  0x84   : > { %428 = vst [vmem:[%s2505_s27 + $0x3a0] sm:$0xff] %v427_v52 }
  0x85   : > { %430 = vst [vmem:[%s2505_s27 + $0x3a8] sm:$0xff] %v429_v53 }
  0x86   : > { %432 = vst [vmem:[%s2505_s27 + $0x3b0] sm:$0xff] %v431_v54 }
  0x87   : > { %434 = vst [vmem:[%s2505_s27 + $0x3b8] sm:$0xff] %v433_v55 }
  0x88   : > { %436 = vst [vmem:[%s2505_s27 + $0x3c0] sm:$0xff] %v435_v56 }
  0x89   : > { %438 = vst [vmem:[%s2505_s27 + $0x3c8] sm:$0xff] %v437_v57 }
  0x8a   : > { %440 = vst [vmem:[%s2505_s27 + $0x3d0] sm:$0xff] %v439_v58 }
  0x8b   : > { %442 = vst [vmem:[%s2505_s27 + $0x3d8] sm:$0xff] %v441_v59 }
  0x8c   : > { %444 = vst [vmem:[%s2505_s27 + $0x3e0] sm:$0xff] %v443_v60 }
  0x8d   : > { %446 = vst [vmem:[%s2505_s27 + $0x3e8] sm:$0xff] %v445_v61 }
  0x8e   : > { %448 = vst [vmem:[%s2505_s27 + $0x3f0] sm:$0xff] %v447_v62 }
  0x8f   : > { %450 = vst [vmem:[%s2505_s27 + $0x3f8] sm:$0xff] %v449_v63 }
  0x90 PF: > { %p1709_p6 = scmp.ge.s32.totalorder %s2435_s16, 1  ;;  %p463_p7 = scmp.lt.s32.totalorder %s2435_s16, 3 }
  0x92   : > { %p464_p8 = pnand %p1709_p6, %p463_p7 }
  0x93   : > { %s470_s28 = sand.u32 (!%p464_p8), 1, %s2419_s12   ;;  %s1711_s8 = sshll.u32 (!%p464_p8), %s2427_s14, 2 }
  0x94   : > { %467 = sbr.rel (%p464_p8) target bundleno = 428 (0x1ac), region = 51  ;;  %s1710_s29 = sshll.u32 (!%p464_p8), %s470_s28, 10 }
  0x95   : > { %s2763_s30 = scalar_lea.vmem (!%p464_p8), [#allocation3], %s1710_s29  ;;  %p523_p9 = scmp.lt.s32.totalorder (!%p464_p8), %s1711_s8, 7 }
  0x99   : > { %v1828_v0 = vld [vmem:[%s2763_s30 + $0xe0] sm:$0xf]  ;;  %v2259_v1 = vld [vmem:[%s2763_s30 + $0xec] sm:$0xf0]  ;;  %s3088_s8 = smov (!%p523_p9, %s1711_s8), 7 }
  0x9a   : > { %v1956_v2 = vld [vmem:[%s2763_s30 + $0x1e0] sm:$0xf]  ;;  %v1829_v3 = vor.u32 %v2259_v1, %v1828_v0  ;;  %v2291_v4 = vld [vmem:[%s2763_s30 + $0x1ec] sm:$0xf0]  ;;  %s525_s11 = scalar_lea.vmem %s3079_s2, %s3088_s8  ;;  %s1713_s12 = sshll.u32 %s3088_s8, 2 }
  0x9b   : > { %v2084_v5 = vld [vmem:[%s2763_s30 + $0x2e0] sm:$0xf]  ;;  %v2323_v6 = vld [vmem:[%s2763_s30 + $0x2ec] sm:$0xf0]  ;;  %v1957_v7 = vor.u32 %v2291_v4, %v1956_v2  ;;  %s3058_s19 = scalar_lea.vmem %s3080_s3, %s1713_s12 }
  0x9c   : > { %v2085_v8 = vor.u32 %v2323_v6, %v2084_v5  ;;  %v2212_v9 = vld [vmem:[%s2763_s30 + $0x3e0] sm:$0xf]  ;;  %v2355_v10 = vld [vmem:[%s2763_s30 + $0x3ec] sm:$0xf0]  ;;  %1333 = vmatpush.bf16.msra.mxu0 %v1829_v3 }
  0x9d   : > { %v1812_v11 = vld [vmem:[%s2763_s30 + $0xc0] sm:$0xf]  ;;  %v2213_v12 = vor.u32 %v2355_v10, %v2212_v9  ;;  %v2255_v13 = vld [vmem:[%s2763_s30 + $0xcc] sm:$0xf0]  ;;  %1346 = vmatpush.bf16.msra.mxu1 %v1957_v7 }
  0x9e   : > { %v1940_v14 = vld [vmem:[%s2763_s30 + $0x1c0] sm:$0xf]  ;;  %v2287_v15 = vld [vmem:[%s2763_s30 + $0x1cc] sm:$0xf0]  ;;  %1359 = vmatpush.bf16.msra.mxu2 %v2085_v8  ;;  %v1813_v16 = vor.u32 %v2255_v13, %v1812_v11 }
  0x9f   : > { %v1941_v17 = vor.u32 %v2287_v15, %v1940_v14  ;;  %v2068_v18 = vld [vmem:[%s2763_s30 + $0x2c0] sm:$0xf]  ;;  %v2319_v19 = vld [vmem:[%s2763_s30 + $0x2cc] sm:$0xf0]  ;;  %1372 = vmatpush.bf16.msra.mxu3 %v2213_v12 }
  0xa0   : > { %v2196_v20 = vld [vmem:[%s2763_s30 + $0x3c0] sm:$0xf]  ;;  %v2069_v21 = vor.u32 %v2319_v19, %v2068_v18  ;;  %v2351_v22 = vld [vmem:[%s2763_s30 + $0x3cc] sm:$0xf0]  ;;  %1334 = vmatpush.bf16.msra.mxu0 %v1813_v16 }
  0xa1   : > { %v1796_v23 = vld [vmem:[%s2763_s30 + $0xa0] sm:$0xf]  ;;  %v2251_v24 = vld [vmem:[%s2763_s30 + $0xac] sm:$0xf0]  ;;  %v2197_v25 = vor.u32 %v2351_v22, %v2196_v20  ;;  %1347 = vmatpush.bf16.msra.mxu1 %v1941_v17 }
  0xa2   : > { %v1924_v26 = vld [vmem:[%s2763_s30 + $0x1a0] sm:$0xf]  ;;  %v2283_v27 = vld [vmem:[%s2763_s30 + $0x1ac] sm:$0xf0]  ;;  %v1797_v29 = vor.u32 %v2251_v24, %v1796_v23  ;;  %1360 = vmatpush.bf16.msra.mxu2 %v2069_v21 }
  0xa3   : > { %v2052_v28 = vld [vmem:[%s2763_s30 + $0x2a0] sm:$0xf]  ;;  %v2315_v30 = vld [vmem:[%s2763_s30 + $0x2ac] sm:$0xf0]  ;;  %v1925_v33 = vor.u32 %v2283_v27, %v1924_v26  ;;  %1373 = vmatpush.bf16.msra.mxu3 %v2197_v25 }
  0xa4   : > { %v2180_v31 = vld [vmem:[%s2763_s30 + $0x3a0] sm:$0xf]  ;;  %v2347_v32 = vld [vmem:[%s2763_s30 + $0x3ac] sm:$0xf0]  ;;  %v2053_v34 = vor.u32 %v2315_v30, %v2052_v28  ;;  %1335 = vmatpush.bf16.msra.mxu0 %v1797_v29  ;;  %v2257_v28 = vld [vmem:[%s2763_s30 + $0xe4] sm:$0xf] }
  0xa5   : > { %v1780_v35 = vld [vmem:[%s2763_s30 + $0x80] sm:$0xf]  ;;  %v2247_v36 = vld [vmem:[%s2763_s30 + $0x8c] sm:$0xf0]  ;;  %v2181_v38 = vor.u32 %v2347_v32, %v2180_v31  ;;  %1348 = vmatpush.bf16.msra.mxu1 %v1925_v33  ;;  %v1830_v29 = vld [vmem:[%s2763_s30 + $0xf0] sm:$0xf0] }
  0xa6   : > { %v1908_v37 = vld [vmem:[%s2763_s30 + $0x180] sm:$0xf]  ;;  %v2279_v39 = vld [vmem:[%s2763_s30 + $0x18c] sm:$0xf0]  ;;  %v1781_v44 = vor.u32 %v2247_v36, %v1780_v35  ;;  %1361 = vmatpush.bf16.msra.mxu2 %v2053_v34  ;;  %v2289_v30 = vld [vmem:[%s2763_s30 + $0x1e4] sm:$0xf] }
  0xa7   : > { %v2036_v40 = vld [vmem:[%s2763_s30 + $0x280] sm:$0xf]  ;;  %v2311_v41 = vld [vmem:[%s2763_s30 + $0x28c] sm:$0xf0]  ;;  %v1909_v45 = vor.u32 %v2279_v39, %v1908_v37  ;;  %1374 = vmatpush.bf16.msra.mxu3 %v2181_v38  ;;  %v1958_v32 = vld [vmem:[%s2763_s30 + $0x1f0] sm:$0xf0] }
  0xa8   : > { %v2164_v42 = vld [vmem:[%s2763_s30 + $0x380] sm:$0xf]  ;;  %v2343_v43 = vld [vmem:[%s2763_s30 + $0x38c] sm:$0xf0]  ;;  %v2037_v46 = vor.u32 %v2311_v41, %v2036_v40  ;;  %1336 = vmatpush.bf16.msra.mxu0 %v1781_v44  ;;  %v2321_v33 = vld [vmem:[%s2763_s30 + $0x2e4] sm:$0xf]  ;;  %v1833_v40 = vor.u32 %v2257_v28, %v1830_v29  ;;  %v1961_v41 = vor.u32 %v2289_v30, %v1958_v32 }
  0xa9   : > { %v1764_v47 = vld [vmem:[%s2763_s30 + $0x60] sm:$0xf]  ;;  %v2243_v48 = vld [vmem:[%s2763_s30 + $0x6c] sm:$0xf0]  ;;  %v2165_v50 = vor.u32 %v2343_v43, %v2164_v42  ;;  %1349 = vmatpush.bf16.msra.mxu1 %v1909_v45  ;;  %v2086_v34 = vld [vmem:[%s2763_s30 + $0x2f0] sm:$0xf0] }
  0xaa   : > { %v1892_v49 = vld [vmem:[%s2763_s30 + $0x160] sm:$0xf]  ;;  %v2275_v51 = vld [vmem:[%s2763_s30 + $0x16c] sm:$0xf0]  ;;  %v1765_v56 = vor.u32 %v2243_v48, %v1764_v47  ;;  %1362 = vmatpush.bf16.msra.mxu2 %v2037_v46  ;;  %v2353_v37 = vld [vmem:[%s2763_s30 + $0x3e4] sm:$0xf]  ;;  %v2089_v42 = vor.u32 %v2321_v33, %v2086_v34 }
  0xab   : > { %v2020_v52 = vld [vmem:[%s2763_s30 + $0x260] sm:$0xf]  ;;  %v2307_v53 = vld [vmem:[%s2763_s30 + $0x26c] sm:$0xf0]  ;;  %v1893_v57 = vor.u32 %v2275_v51, %v1892_v49  ;;  %1375 = vmatpush.bf16.msra.mxu3 %v2165_v50  ;;  %v2214_v38 = vld [vmem:[%s2763_s30 + $0x3f0] sm:$0xf0] }
  0xac   : > { %v2148_v54 = vld [vmem:[%s2763_s30 + $0x360] sm:$0xf]  ;;  %v2339_v55 = vld [vmem:[%s2763_s30 + $0x36c] sm:$0xf0]  ;;  %v2021_v58 = vor.u32 %v2307_v53, %v2020_v52  ;;  %1337 = vmatpush.bf16.msra.mxu0 %v1765_v56  ;;  %v2253_v43 = vld [vmem:[%s2763_s30 + $0xc4] sm:$0xf]  ;;  %v2217_v46 = vor.u32 %v2353_v37, %v2214_v38 }
  0xad   : > { %v1748_v59 = vld [vmem:[%s2763_s30 + $0x40] sm:$0xf]  ;;  %v2239_v60 = vld [vmem:[%s2763_s30 + $0x4c] sm:$0xf0]  ;;  %v2149_v62 = vor.u32 %v2339_v55, %v2148_v54  ;;  %1350 = vmatpush.bf16.msra.mxu1 %v1893_v57  ;;  %v1814_v44 = vld [vmem:[%s2763_s30 + $0xd0] sm:$0xf0] }
  0xae   : > { %v1876_v61 = vld [vmem:[%s2763_s30 + $0x140] sm:$0xf]  ;;  %v2271_v63 = vld [vmem:[%s2763_s30 + $0x14c] sm:$0xf0]  ;;  %v1749_v4 = vor.u32 %v2239_v60, %v1748_v59  ;;  %1363 = vmatpush.bf16.msra.mxu2 %v2021_v58  ;;  %v2285_v45 = vld [vmem:[%s2763_s30 + $0x1c4] sm:$0xf]  ;;  %v1817_v53 = vor.u32 %v2253_v43, %v1814_v44 }
  0xaf   : > { %v2004_v0 = vld [vmem:[%s2763_s30 + $0x240] sm:$0xf]  ;;  %v2303_v1 = vld [vmem:[%s2763_s30 + $0x24c] sm:$0xf0]  ;;  %v1877_v5 = vor.u32 %v2271_v63, %v1876_v61  ;;  %1376 = vmatpush.bf16.msra.mxu3 %v2149_v62  ;;  %v1942_v47 = vld [vmem:[%s2763_s30 + $0x1d0] sm:$0xf0] }
  0xb0   : > { %v2132_v2 = vld [vmem:[%s2763_s30 + $0x340] sm:$0xf]  ;;  %v2335_v3 = vld [vmem:[%s2763_s30 + $0x34c] sm:$0xf0]  ;;  %v2005_v6 = vor.u32 %v2303_v1, %v2004_v0  ;;  %1338 = vmatpush.bf16.msra.mxu0 %v1749_v4  ;;  %v2317_v48 = vld [vmem:[%s2763_s30 + $0x2c4] sm:$0xf]  ;;  %v1945_v57 = vor.u32 %v2285_v45, %v1942_v47 }
  0xb1   : > { %v1732_v7 = vld [vmem:[%s2763_s30 + $0x20] sm:$0xf]  ;;  %v2235_v8 = vld [vmem:[%s2763_s30 + $0x2c] sm:$0xf0]  ;;  %v2133_v10 = vor.u32 %v2335_v3, %v2132_v2  ;;  %1351 = vmatpush.bf16.msra.mxu1 %v1877_v5  ;;  %v2070_v49 = vld [vmem:[%s2763_s30 + $0x2d0] sm:$0xf0] }
  0xb2   : > { %v1860_v9 = vld [vmem:[%s2763_s30 + $0x120] sm:$0xf]  ;;  %v2267_v11 = vld [vmem:[%s2763_s30 + $0x12c] sm:$0xf0]  ;;  %v1733_v16 = vor.u32 %v2235_v8, %v1732_v7  ;;  %1364 = vmatpush.bf16.msra.mxu2 %v2005_v6  ;;  %v2349_v50 = vld [vmem:[%s2763_s30 + $0x3c4] sm:$0xf]  ;;  %v2073_v58 = vor.u32 %v2317_v48, %v2070_v49 }
  0xb3   : > { %v1988_v12 = vld [vmem:[%s2763_s30 + $0x220] sm:$0xf]  ;;  %v2299_v13 = vld [vmem:[%s2763_s30 + $0x22c] sm:$0xf0]  ;;  %v1861_v19 = vor.u32 %v2267_v11, %v1860_v9  ;;  %1377 = vmatpush.bf16.msra.mxu3 %v2133_v10  ;;  %v2198_v51 = vld [vmem:[%s2763_s30 + $0x3d0] sm:$0xf0] }
  0xb4   : > { %v2116_v14 = vld [vmem:[%s2763_s30 + $0x320] sm:$0xf]  ;;  %v2331_v15 = vld [vmem:[%s2763_s30 + $0x32c] sm:$0xf0]  ;;  %v1989_v20 = vor.u32 %v2299_v13, %v1988_v12  ;;  %1339 = vmatpush.bf16.msra.mxu0 %v1733_v16  ;;  %v550_v52 = vld [vmem:[%s3077_s0 + $0x8] sm:$0xff]  ;;  %v2201_v62 = vor.u32 %v2349_v50, %v2198_v51 }
  0xb5   : > { %v1716_v17 = vld [vmem:[%s2763_s30] sm:$0xf]  ;;  %v2231_v18 = vld [vmem:[%s2763_s30 + $0xc] sm:$0xf0]  ;;  %v2117_v24 = vor.u32 %v2331_v15, %v2116_v14  ;;  %1352 = vmatpush.bf16.msra.mxu1 %v1861_v19  ;;  %v2249_v54 = vld [vmem:[%s2763_s30 + $0xa4] sm:$0xf]  ;;  %v683_v55 = vunpack.c.l.b16 %v550_v52  ;;  %v684_v56 = vunpack.c.h.b16 %v550_v52 }
  0xb6   : > { %v1844_v21 = vld [vmem:[%s2763_s30 + $0x100] sm:$0xf]  ;;  %v2263_v22 = vld [vmem:[%s2763_s30 + $0x10c] sm:$0xf0]  ;;  %v1717_v31 = vor.u32 %v2231_v18, %v1716_v17  ;;  %1365 = vmatpush.bf16.msra.mxu2 %v1989_v20  ;;  %v1798_v59 = vld [vmem:[%s2763_s30 + $0xb0] sm:$0xf0] }
  0xb7   : > { %v1972_v23 = vld [vmem:[%s2763_s30 + $0x200] sm:$0xf]  ;;  %v2295_v25 = vld [vmem:[%s2763_s30 + $0x20c] sm:$0xf0]  ;;  %v1845_v35 = vor.u32 %v2263_v22, %v1844_v21  ;;  %1378 = vmatpush.bf16.msra.mxu3 %v2117_v24  ;;  %v2281_v60 = vld [vmem:[%s2763_s30 + $0x1a4] sm:$0xf]  ;;  %v2854_v1 = vpack.c.b16 %v683_v55, %v683_v55  ;;  %v2861_v5 = vpack.c.b16 %v684_v56, %v684_v56  ;;  %v1801_v8 = vor.u32 %v2249_v54, %v1798_v59 }
  0xb8   : > { %v2100_v26 = vld [vmem:[%s2763_s30 + $0x300] sm:$0xf]  ;;  %v2327_v27 = vld [vmem:[%s2763_s30 + $0x30c] sm:$0xf0]  ;;  %v1973_v36 = vor.u32 %v2295_v25, %v1972_v23  ;;  %1340 = vmatpush.bf16.msra.mxu0 %v1717_v31  ;;  %v1926_v61 = vld [vmem:[%s2763_s30 + $0x1b0] sm:$0xf0] }
  0xb9   : > { %v2101_v39 = vor.u32 %v2327_v27, %v2100_v26  ;;  %1353 = vmatpush.bf16.msra.mxu1 %v1845_v35  ;;  %v2313_v63 = vld [vmem:[%s2763_s30 + $0x2a4] sm:$0xf]  ;;  %v2054_v0 = vld [vmem:[%s2763_s30 + $0x2b0] sm:$0xf0]  ;;  %v1929_v9 = vor.u32 %v2281_v60, %v1926_v61 }
  0xba   : > { %1366 = vmatpush.bf16.msra.mxu2 %v1973_v36  ;;  %v549_v2 = vld [vmem:[%s3077_s0] sm:$0xff]  ;;  %v2182_v4 = vld [vmem:[%s2763_s30 + $0x3b0] sm:$0xf0]  ;;  %v2057_v10 = vor.u32 %v2313_v63, %v2054_v0 }
  0xbb   : > { %1379 = vmatpush.bf16.msra.mxu3 %v2101_v39  ;;  %v2345_v3 = vld [vmem:[%s2763_s30 + $0x3a4] sm:$0xf]  ;;  %v681_v6 = vunpack.c.l.b16 %v549_v2  ;;  %v682_v7 = vunpack.c.h.b16 %v549_v2  ;;  %v1782_v12 = vld [vmem:[%s2763_s30 + $0x90] sm:$0xf0] }
  0xbc   : > { %1385 = vmatpush.bf16.msrb.mxu0 %v1833_v40  ;;  %v2245_v11 = vld [vmem:[%s2763_s30 + $0x84] sm:$0xf]  ;;  %v2185_v16 = vor.u32 %v2345_v3, %v2182_v4  ;;  %v1910_v17 = vld [vmem:[%s2763_s30 + $0x190] sm:$0xf0] }
  0xbd   : > { %1398 = vmatpush.bf16.msrb.mxu1 %v1961_v41  ;;  %1367 = vmatmul.bf16.vlgmr.msra.gmra.mxu2 %v2854_v1  ;;  %v2277_v13 = vld [vmem:[%s2763_s30 + $0x184] sm:$0xf]  ;;  %v2867_v14 = vpack.c.b16 %v681_v6, %v681_v6  ;;  %v2869_v15 = vpack.c.b16 %v682_v7, %v682_v7  ;;  %v2038_v19 = vld [vmem:[%s2763_s30 + $0x290] sm:$0xf0]  ;;  %v1785_v22 = vor.u32 %v2245_v11, %v1782_v12  ;;  %v2292_v12 = vld [vmem:[%s2763_s30 + $0x1f4] sm:$0xf0] }
  0xbe   : > { %1411 = vmatpush.bf16.msrb.mxu2 %v2089_v42  ;;  %v2309_v18 = vld [vmem:[%s2763_s30 + $0x284] sm:$0xf]  ;;  %v2166_v21 = vld [vmem:[%s2763_s30 + $0x390] sm:$0xf0]  ;;  %1380 = vmatmul.bf16.vlgmr.msra.gmra.mxu3 %v2861_v5  ;;  %v1913_v23 = vor.u32 %v2277_v13, %v1910_v17  ;;  %v2092_v13 = vld [vmem:[%s2763_s30 + $0x2e8] sm:$0xf] }
  0xbf   : > { %1424 = vmatpush.bf16.msrb.mxu3 %v2217_v46  ;;  %v2341_v20 = vld [vmem:[%s2763_s30 + $0x384] sm:$0xf]  ;;  %1341 = vmatmul.bf16.vlgmr.msra.gmra.mxu0 %v2867_v14  ;;  %v2041_v24 = vor.u32 %v2309_v18, %v2038_v19  ;;  %v1766_v26 = vld [vmem:[%s2763_s30 + $0x70] sm:$0xf0]  ;;  %v2220_v19 = vld [vmem:[%s2763_s30 + $0x3e8] sm:$0xf] }
  0xc0   : > { %1386 = vmatpush.bf16.msrb.mxu0 %v1817_v53  ;;  %1354 = vmatmul.bf16.vlgmr.msra.gmra.mxu1 %v2869_v15  ;;  %v2241_v25 = vld [vmem:[%s2763_s30 + $0x64] sm:$0xf]  ;;  %v2169_v28 = vor.u32 %v2341_v20, %v2166_v21  ;;  %v1894_v29 = vld [vmem:[%s2763_s30 + $0x170] sm:$0xf0]  ;;  %v2356_v20 = vld [vmem:[%s2763_s30 + $0x3f4] sm:$0xf0] }
  0xc1   : > { %1399 = vmatpush.bf16.msrb.mxu1 %v1945_v57  ;;  %v2273_v27 = vld [vmem:[%s2763_s30 + $0x164] sm:$0xf]  ;;  %v2022_v31 = vld [vmem:[%s2763_s30 + $0x270] sm:$0xf0]  ;;  %v1769_v34 = vor.u32 %v2241_v25, %v1766_v26  ;;  %v1820_v25 = vld [vmem:[%s2763_s30 + $0xc8] sm:$0xf] }
  0xc2   : > { %1412 = vmatpush.bf16.msrb.mxu2 %v2073_v58  ;;  %v2305_v30 = vld [vmem:[%s2763_s30 + $0x264] sm:$0xf]  ;;  %v2150_v33 = vld [vmem:[%s2763_s30 + $0x370] sm:$0xf0]  ;;  %v1897_v35 = vor.u32 %v2273_v27, %v1894_v29  ;;  %v2256_v26 = vld [vmem:[%s2763_s30 + $0xd4] sm:$0xf0] }
  0xc3   : > { %1425 = vmatpush.bf16.msrb.mxu3 %v2201_v62  ;;  %v2337_v32 = vld [vmem:[%s2763_s30 + $0x364] sm:$0xf]  ;;  %v2025_v36 = vor.u32 %v2305_v30, %v2022_v31  ;;  %v1750_v38 = vld [vmem:[%s2763_s30 + $0x50] sm:$0xf0]  ;;  %v1948_v27 = vld [vmem:[%s2763_s30 + $0x1c8] sm:$0xf] }
  0xc4   : > { %1387 = vmatpush.bf16.msrb.mxu0 %v1801_v8  ;;  %v2237_v37 = vld [vmem:[%s2763_s30 + $0x44] sm:$0xf]  ;;  %v2153_v40 = vor.u32 %v2337_v32, %v2150_v33  ;;  %v1878_v41 = vld [vmem:[%s2763_s30 + $0x150] sm:$0xf0]  ;;  %v1836_v8 = vld [vmem:[%s2763_s30 + $0xe8] sm:$0xf] }
  0xc5   : > { %1400 = vmatpush.bf16.msrb.mxu1 %v1929_v9  ;;  %v2269_v39 = vld [vmem:[%s2763_s30 + $0x144] sm:$0xf]  ;;  %v2006_v43 = vld [vmem:[%s2763_s30 + $0x250] sm:$0xf0]  ;;  %v1753_v46 = vor.u32 %v2237_v37, %v1750_v38  ;;  %v2260_v9 = vld [vmem:[%s2763_s30 + $0xf4] sm:$0xf0] }
  0xc6   : > { %1413 = vmatpush.bf16.msrb.mxu2 %v2057_v10  ;;  %v2301_v42 = vld [vmem:[%s2763_s30 + $0x244] sm:$0xf]  ;;  %v2134_v45 = vld [vmem:[%s2763_s30 + $0x350] sm:$0xf0]  ;;  %v1881_v47 = vor.u32 %v2269_v39, %v1878_v41  ;;  %v1964_v10 = vld [vmem:[%s2763_s30 + $0x1e8] sm:$0xf] }
  0xc7   : > { %1426 = vmatpush.bf16.msrb.mxu3 %v2185_v16  ;;  %v2333_v44 = vld [vmem:[%s2763_s30 + $0x344] sm:$0xf]  ;;  %v2009_v48 = vor.u32 %v2301_v42, %v2006_v43  ;;  %v1734_v50 = vld [vmem:[%s2763_s30 + $0x30] sm:$0xf0]  ;;  %v2324_v16 = vld [vmem:[%s2763_s30 + $0x2f4] sm:$0xf0] }
  0xc8   : > { %1388 = vmatpush.bf16.msrb.mxu0 %v1785_v22  ;;  %v2233_v49 = vld [vmem:[%s2763_s30 + $0x24] sm:$0xf]  ;;  %v2137_v52 = vor.u32 %v2333_v44, %v2134_v45  ;;  %v1862_v53 = vld [vmem:[%s2763_s30 + $0x130] sm:$0xf0]  ;;  %v1837_v22 = vor.u32 %v2260_v9, %v1836_v8  ;;  %v2288_v29 = vld [vmem:[%s2763_s30 + $0x1d4] sm:$0xf0] }
  0xc9   : > { %1401 = vmatpush.bf16.msrb.mxu1 %v1913_v23  ;;  %v2265_v51 = vld [vmem:[%s2763_s30 + $0x124] sm:$0xf]  ;;  %v1990_v55 = vld [vmem:[%s2763_s30 + $0x230] sm:$0xf0]  ;;  %v1737_v58 = vor.u32 %v2233_v49, %v1734_v50  ;;  %v1965_v23 = vor.u32 %v2292_v12, %v1964_v10  ;;  %v2076_v30 = vld [vmem:[%s2763_s30 + $0x2c8] sm:$0xf] }
  0xca   : > { %1414 = vmatpush.bf16.msrb.mxu2 %v2041_v24  ;;  %v2297_v54 = vld [vmem:[%s2763_s30 + $0x224] sm:$0xf]  ;;  %v2118_v57 = vld [vmem:[%s2763_s30 + $0x330] sm:$0xf0]  ;;  %v1865_v61 = vor.u32 %v2265_v51, %v1862_v53  ;;  %v2093_v24 = vor.u32 %v2324_v16, %v2092_v13  ;;  %v2320_v31 = vld [vmem:[%s2763_s30 + $0x2d4] sm:$0xf0] }
  0xcb   : > { %1427 = vmatpush.bf16.msrb.mxu3 %v2169_v28  ;;  %v2329_v56 = vld [vmem:[%s2763_s30 + $0x324] sm:$0xf]  ;;  %v1718_v60 = vld [vmem:[%s2763_s30 + $0x10] sm:$0xf0]  ;;  %v1993_v62 = vor.u32 %v2297_v54, %v1990_v55  ;;  %v2221_v28 = vor.u32 %v2356_v20, %v2220_v19  ;;  %v2204_v32 = vld [vmem:[%s2763_s30 + $0x3c8] sm:$0xf] }
  0xcc   : > { %1389 = vmatpush.bf16.msrb.mxu0 %v1769_v34  ;;  %v2229_v59 = vld [vmem:[%s2763_s30 + $0x4] sm:$0xf]  ;;  %v1846_v0 = vld [vmem:[%s2763_s30 + $0x110] sm:$0xf0]  ;;  %v2121_v3 = vor.u32 %v2329_v56, %v2118_v57  ;;  %v2352_v33 = vld [vmem:[%s2763_s30 + $0x3d4] sm:$0xf0]  ;;  %v1821_v34 = vor.u32 %v2256_v26, %v1820_v25 }
  0xcd   : > { %1402 = vmatpush.bf16.msrb.mxu1 %v1897_v35  ;;  %v2261_v63 = vld [vmem:[%s2763_s30 + $0x104] sm:$0xf]  ;;  %v1974_v4 = vld [vmem:[%s2763_s30 + $0x210] sm:$0xf0]  ;;  %v1721_v11 = vor.u32 %v2229_v59, %v1718_v60  ;;  %v1949_v35 = vor.u32 %v2288_v29, %v1948_v27  ;;  %v1804_v37 = vld [vmem:[%s2763_s30 + $0xa8] sm:$0xf] }
  0xce   : > { %1415 = vmatpush.bf16.msrb.mxu2 %v2025_v36  ;;  %v2293_v2 = vld [vmem:[%s2763_s30 + $0x204] sm:$0xf]  ;;  %v2102_v7 = vld [vmem:[%s2763_s30 + $0x310] sm:$0xf0]  ;;  %v1849_v17 = vor.u32 %v2261_v63, %v1846_v0  ;;  %v2077_v36 = vor.u32 %v2320_v31, %v2076_v30  ;;  %v2252_v38 = vld [vmem:[%s2763_s30 + $0xb4] sm:$0xf0] }
  0xcf   : > { %1428 = vmatpush.bf16.msrb.mxu3 %v2153_v40  ;;  %v2325_v6 = vld [vmem:[%s2763_s30 + $0x304] sm:$0xf]  ;;  %v1977_v18 = vor.u32 %v2293_v2, %v1974_v4  ;;  %v1932_v39 = vld [vmem:[%s2763_s30 + $0x1a8] sm:$0xf]  ;;  %v2205_v40 = vor.u32 %v2352_v33, %v2204_v32  ;;  %v2284_v41 = vld [vmem:[%s2763_s30 + $0x1b4] sm:$0xf0] }
  0xd0   : > { %1390 = vmatpush.bf16.msrb.mxu0 %v1753_v46  ;;  %v2105_v21 = vor.u32 %v2325_v6, %v2102_v7  ;;  %v2060_v42 = vld [vmem:[%s2763_s30 + $0x2a8] sm:$0xf]  ;;  %v2316_v43 = vld [vmem:[%s2763_s30 + $0x2b4] sm:$0xf0]  ;;  %v1805_v46 = vor.u32 %v2252_v38, %v1804_v37 }
  0xd1   : > { %1403 = vmatpush.bf16.msrb.mxu1 %v1881_v47  ;;  %v2188_v44 = vld [vmem:[%s2763_s30 + $0x3a8] sm:$0xf]  ;;  %v2348_v45 = vld [vmem:[%s2763_s30 + $0x3b4] sm:$0xf0]  ;;  %v1933_v47 = vor.u32 %v2284_v41, %v1932_v39 }
  0xd2   : > { %1416 = vmatpush.bf16.msrb.mxu2 %v2009_v48  ;;  %v2061_v48 = vor.u32 %v2316_v43, %v2060_v42  ;;  %v1788_v49 = vld [vmem:[%s2763_s30 + $0x88] sm:$0xf]  ;;  %v2248_v50 = vld [vmem:[%s2763_s30 + $0x94] sm:$0xf0] }
  0xd3   : > { %1429 = vmatpush.bf16.msrb.mxu3 %v2137_v52  ;;  %v1916_v51 = vld [vmem:[%s2763_s30 + $0x188] sm:$0xf]  ;;  %v2189_v52 = vor.u32 %v2348_v45, %v2188_v44  ;;  %v2280_v53 = vld [vmem:[%s2763_s30 + $0x194] sm:$0xf0] }
  0xd4   : > { %1391 = vmatpush.bf16.msrb.mxu0 %v1737_v58  ;;  %v2044_v54 = vld [vmem:[%s2763_s30 + $0x288] sm:$0xf]  ;;  %v2312_v55 = vld [vmem:[%s2763_s30 + $0x294] sm:$0xf0]  ;;  %v1789_v58 = vor.u32 %v2248_v50, %v1788_v49  ;;  %v1917_v59 = vor.u32 %v2280_v53, %v1916_v51  ;;  %v1966_v50 = vld [vmem:[%s2763_s30 + $0x1f8] sm:$0xf0] }
  0xd5   : > { %1404 = vmatpush.bf16.msrb.mxu1 %v1865_v61  ;;  %v2172_v56 = vld [vmem:[%s2763_s30 + $0x388] sm:$0xf]  ;;  %v2344_v57 = vld [vmem:[%s2763_s30 + $0x394] sm:$0xf0]  ;;  %v2045_v60 = vor.u32 %v2312_v55, %v2044_v54  ;;  %v2322_v51 = vld [vmem:[%s2763_s30 + $0x2ec] sm:$0xf] }
  0xd6   : > { %1417 = vmatpush.bf16.msrb.mxu2 %v1993_v62  ;;  %v1772_v61 = vld [vmem:[%s2763_s30 + $0x68] sm:$0xf]  ;;  %v2244_v62 = vld [vmem:[%s2763_s30 + $0x74] sm:$0xf0]  ;;  %v2173_v0 = vor.u32 %v2344_v57, %v2172_v56  ;;  %v2354_v55 = vld [vmem:[%s2763_s30 + $0x3ec] sm:$0xf] }
  0xd7   : > { %1430 = vmatpush.bf16.msrb.mxu3 %v2121_v3  ;;  %v1900_v63 = vld [vmem:[%s2763_s30 + $0x168] sm:$0xf]  ;;  %v2276_v2 = vld [vmem:[%s2763_s30 + $0x174] sm:$0xf0]  ;;  %v1773_v8 = vor.u32 %v2244_v62, %v1772_v61  ;;  %v2222_v56 = vld [vmem:[%s2763_s30 + $0x3f8] sm:$0xf0] }
  0xd8   : > { %1392 = vmatpush.bf16.msrb.mxu0 %v1721_v11  ;;  %v2028_v3 = vld [vmem:[%s2763_s30 + $0x268] sm:$0xf]  ;;  %v2308_v4 = vld [vmem:[%s2763_s30 + $0x274] sm:$0xf0]  ;;  %v1901_v9 = vor.u32 %v2276_v2, %v1900_v63  ;;  %v2254_v61 = vld [vmem:[%s2763_s30 + $0xcc] sm:$0xf] }
  0xd9   : > { %1405 = vmatpush.bf16.msrb.mxu1 %v1849_v17  ;;  %v2156_v6 = vld [vmem:[%s2763_s30 + $0x368] sm:$0xf]  ;;  %v2340_v7 = vld [vmem:[%s2763_s30 + $0x374] sm:$0xf0]  ;;  %v2029_v10 = vor.u32 %v2308_v4, %v2028_v3  ;;  %v1822_v62 = vld [vmem:[%s2763_s30 + $0xd8] sm:$0xf0] }
  0xda   : > { %1418 = vmatpush.bf16.msrb.mxu2 %v1977_v18  ;;  %v1756_v11 = vld [vmem:[%s2763_s30 + $0x48] sm:$0xf]  ;;  %v2240_v12 = vld [vmem:[%s2763_s30 + $0x54] sm:$0xf0]  ;;  %v2157_v16 = vor.u32 %v2340_v7, %v2156_v6  ;;  %v2286_v63 = vld [vmem:[%s2763_s30 + $0x1cc] sm:$0xf] }
  0xdb   : > { %1431 = vmatpush.bf16.msrb.mxu3 %v2105_v21  ;;  %1393 = vmatmul.bf16.vlgmr.msrb.gmra.mxu0 %v2867_v14  ;;  %v1884_v13 = vld [vmem:[%s2763_s30 + $0x148] sm:$0xf]  ;;  %v2272_v17 = vld [vmem:[%s2763_s30 + $0x154] sm:$0xf0]  ;;  %v1950_v2 = vld [vmem:[%s2763_s30 + $0x1d8] sm:$0xf0] }
  0xdc   : > { %1437 = vmatpush.bf16.msra.mxu0 %v1837_v22  ;;  %1406 = vmatmul.bf16.vlgmr.msrb.gmra.mxu1 %v2869_v15  ;;  %v2012_v18 = vld [vmem:[%s2763_s30 + $0x248] sm:$0xf]  ;;  %v2304_v19 = vld [vmem:[%s2763_s30 + $0x254] sm:$0xf0]  ;;  %v1757_v22 = vor.u32 %v2240_v12, %v1756_v11  ;;  %v2318_v3 = vld [vmem:[%s2763_s30 + $0x2cc] sm:$0xf] }
  0xdd   : > { %1450 = vmatpush.bf16.msra.mxu1 %v1965_v23  ;;  %1419 = vmatmul.bf16.vlgmr.msrb.gmra.mxu2 %v2854_v1  ;;  %v2140_v20 = vld [vmem:[%s2763_s30 + $0x348] sm:$0xf]  ;;  %v2336_v21 = vld [vmem:[%s2763_s30 + $0x354] sm:$0xf0]  ;;  %v1885_v23 = vor.u32 %v2272_v17, %v1884_v13  ;;  %v2078_v4 = vld [vmem:[%s2763_s30 + $0x2d8] sm:$0xf0] }
  0xde   : > { %1463 = vmatpush.bf16.msra.mxu2 %v2093_v24  ;;  %1432 = vmatmul.bf16.vlgmr.msrb.gmra.mxu3 %v2861_v5  ;;  %v2013_v24 = vor.u32 %v2304_v19, %v2012_v18  ;;  %v1740_v25 = vld [vmem:[%s2763_s30 + $0x28] sm:$0xf]  ;;  %v2236_v26 = vld [vmem:[%s2763_s30 + $0x34] sm:$0xf0]  ;;  %v2350_v6 = vld [vmem:[%s2763_s30 + $0x3cc] sm:$0xf] }
  0xdf   : > { %1476 = vmatpush.bf16.msra.mxu3 %v2221_v28  ;;  %v1868_v27 = vld [vmem:[%s2763_s30 + $0x128] sm:$0xf]  ;;  %v2141_v28 = vor.u32 %v2336_v21, %v2140_v20  ;;  %v2268_v29 = vld [vmem:[%s2763_s30 + $0x134] sm:$0xf0]  ;;  %v2206_v7 = vld [vmem:[%s2763_s30 + $0x3d8] sm:$0xf0] }
  0xe0   : > { %1438 = vmatpush.bf16.msra.mxu0 %v1821_v34  ;;  %v1996_v30 = vld [vmem:[%s2763_s30 + $0x228] sm:$0xf]  ;;  %v2300_v31 = vld [vmem:[%s2763_s30 + $0x234] sm:$0xf0]  ;;  %v1741_v34 = vor.u32 %v2236_v26, %v1740_v25  ;;  %v1869_v37 = vor.u32 %v2268_v29, %v1868_v27  ;;  %v2250_v11 = vld [vmem:[%s2763_s30 + $0xac] sm:$0xf] }
  0xe1   : > { %1451 = vmatpush.bf16.msra.mxu1 %v1949_v35  ;;  %v2124_v32 = vld [vmem:[%s2763_s30 + $0x328] sm:$0xf]  ;;  %v2332_v33 = vld [vmem:[%s2763_s30 + $0x334] sm:$0xf0]  ;;  %v1997_v38 = vor.u32 %v2300_v31, %v1996_v30  ;;  %v1806_v12 = vld [vmem:[%s2763_s30 + $0xb8] sm:$0xf0] }
  0xe2   : > { %1464 = vmatpush.bf16.msra.mxu2 %v2077_v36  ;;  %v1724_v35 = vld [vmem:[%s2763_s30 + $0x8] sm:$0xf]  ;;  %v2232_v36 = vld [vmem:[%s2763_s30 + $0x14] sm:$0xf0]  ;;  %v2125_v42 = vor.u32 %v2332_v33, %v2124_v32  ;;  %v2282_v13 = vld [vmem:[%s2763_s30 + $0x1ac] sm:$0xf] }
  0xe3   : > { %1477 = vmatpush.bf16.msra.mxu3 %v2205_v40  ;;  %v1852_v39 = vld [vmem:[%s2763_s30 + $0x108] sm:$0xf]  ;;  %v2264_v40 = vld [vmem:[%s2763_s30 + $0x114] sm:$0xf0]  ;;  %v1725_v49 = vor.u32 %v2232_v36, %v1724_v35  ;;  %v1934_v17 = vld [vmem:[%s2763_s30 + $0x1b8] sm:$0xf0] }
  0xe4   : > { %1439 = vmatpush.bf16.msra.mxu0 %v1805_v46  ;;  %v1980_v41 = vld [vmem:[%s2763_s30 + $0x208] sm:$0xf]  ;;  %v2296_v43 = vld [vmem:[%s2763_s30 + $0x214] sm:$0xf0]  ;;  %v2258_v46 = vld [vmem:[%s2763_s30 + $0xec] sm:$0xf]  ;;  %v1853_v53 = vor.u32 %v2264_v40, %v1852_v39 }
  0xe5   : > { %1452 = vmatpush.bf16.msra.mxu1 %v1933_v47  ;;  %v2108_v44 = vld [vmem:[%s2763_s30 + $0x308] sm:$0xf]  ;;  %v2328_v45 = vld [vmem:[%s2763_s30 + $0x314] sm:$0xf0]  ;;  %v1838_v47 = vld [vmem:[%s2763_s30 + $0xf8] sm:$0xf0]  ;;  %v1981_v54 = vor.u32 %v2296_v43, %v1980_v41 }
  0xe6   : > { %1465 = vmatpush.bf16.msra.mxu2 %v2061_v48  ;;  %v2290_v48 = vld [vmem:[%s2763_s30 + $0x1ec] sm:$0xf]  ;;  %v2109_v57 = vor.u32 %v2328_v45, %v2108_v44  ;;  %v2062_v19 = vld [vmem:[%s2763_s30 + $0x2b8] sm:$0xf0] }
  0xe7   : > { %1478 = vmatpush.bf16.msra.mxu3 %v2189_v52  ;;  %v2094_v52 = vld [vmem:[%s2763_s30 + $0x2f8] sm:$0xf0]  ;;  %v2314_v18 = vld [vmem:[%s2763_s30 + $0x2ac] sm:$0xf] }
  0xe8   : > { %1440 = vmatpush.bf16.msra.mxu0 %v1789_v58  ;;  %v1841_v58 = vor.u32 %v2258_v46, %v1838_v47  ;;  %v2346_v20 = vld [vmem:[%s2763_s30 + $0x3ac] sm:$0xf]  ;;  %v2190_v21 = vld [vmem:[%s2763_s30 + $0x3b8] sm:$0xf0] }
  0xe9   : > { %1453 = vmatpush.bf16.msra.mxu1 %v1917_v59  ;;  %v1969_v59 = vor.u32 %v2290_v48, %v1966_v50  ;;  %v2246_v25 = vld [vmem:[%s2763_s30 + $0x8c] sm:$0xf]  ;;  %v1790_v26 = vld [vmem:[%s2763_s30 + $0x98] sm:$0xf0] }
  0xea   : > { %1466 = vmatpush.bf16.msra.mxu2 %v2045_v60  ;;  %v2097_v60 = vor.u32 %v2322_v51, %v2094_v52  ;;  %v2278_v27 = vld [vmem:[%s2763_s30 + $0x18c] sm:$0xf]  ;;  %v1918_v29 = vld [vmem:[%s2763_s30 + $0x198] sm:$0xf0] }
  0xeb   : > { %1479 = vmatpush.bf16.msra.mxu3 %v2173_v0  ;;  %v2225_v0 = vor.u32 %v2354_v55, %v2222_v56  ;;  %v2310_v30 = vld [vmem:[%s2763_s30 + $0x28c] sm:$0xf]  ;;  %v2046_v31 = vld [vmem:[%s2763_s30 + $0x298] sm:$0xf0]  ;;  %v1921_v35 = vor.u32 %v2278_v27, %v1918_v29 }
  0xec   : > { %1441 = vmatpush.bf16.msra.mxu0 %v1773_v8  ;;  %v1825_v8 = vor.u32 %v2254_v61, %v1822_v62  ;;  %v2342_v32 = vld [vmem:[%s2763_s30 + $0x38c] sm:$0xf]  ;;  %v2174_v33 = vld [vmem:[%s2763_s30 + $0x398] sm:$0xf0]  ;;  %v2049_v36 = vor.u32 %v2310_v30, %v2046_v31 }
  0xed   : > { %1454 = vmatpush.bf16.msra.mxu1 %v1901_v9  ;;  %v1953_v9 = vor.u32 %v2286_v63, %v1950_v2  ;;  %v2274_v39 = vld [vmem:[%s2763_s30 + $0x16c] sm:$0xf]  ;;  %v2177_v40 = vor.u32 %v2342_v32, %v2174_v33  ;;  %v1902_v41 = vld [vmem:[%s2763_s30 + $0x178] sm:$0xf0] }
  0xee   : > { %1467 = vmatpush.bf16.msra.mxu2 %v2029_v10  ;;  %v2081_v10 = vor.u32 %v2318_v3, %v2078_v4  ;;  %v2030_v43 = vld [vmem:[%s2763_s30 + $0x278] sm:$0xf0]  ;;  %v2338_v44 = vld [vmem:[%s2763_s30 + $0x36c] sm:$0xf]  ;;  %v1905_v47 = vor.u32 %v2274_v39, %v1902_v41 }
  0xef   : > { %1480 = vmatpush.bf16.msra.mxu3 %v2157_v16  ;;  %v2209_v16 = vor.u32 %v2350_v6, %v2206_v7  ;;  %v2158_v45 = vld [vmem:[%s2763_s30 + $0x378] sm:$0xf0]  ;;  %v2270_v51 = vld [vmem:[%s2763_s30 + $0x14c] sm:$0xf] }
  0xf0   : > { %1442 = vmatpush.bf16.msra.mxu0 %v1757_v22  ;;  %v1809_v22 = vor.u32 %v2250_v11, %v1806_v12  ;;  %v1758_v50 = vld [vmem:[%s2763_s30 + $0x58] sm:$0xf0]  ;;  %v2161_v52 = vor.u32 %v2338_v44, %v2158_v45  ;;  %v2334_v56 = vld [vmem:[%s2763_s30 + $0x34c] sm:$0xf] }
  0xf1   : > { %1455 = vmatpush.bf16.msra.mxu1 %v1885_v23  ;;  %v1937_v23 = vor.u32 %v2282_v13, %v1934_v17  ;;  %v2014_v55 = vld [vmem:[%s2763_s30 + $0x258] sm:$0xf0]  ;;  %v2234_v61 = vld [vmem:[%s2763_s30 + $0x2c] sm:$0xf] }
  0xf2   : > { %1468 = vmatpush.bf16.msra.mxu2 %v2013_v24  ;;  %v2065_v24 = vor.u32 %v2314_v18, %v2062_v19  ;;  %v1742_v62 = vld [vmem:[%s2763_s30 + $0x38] sm:$0xf0]  ;;  %v2266_v63 = vld [vmem:[%s2763_s30 + $0x12c] sm:$0xf] }
  0xf3   : > { %1481 = vmatpush.bf16.msra.mxu3 %v2141_v28  ;;  %v2193_v28 = vor.u32 %v2346_v20, %v2190_v21  ;;  %v1870_v2 = vld [vmem:[%s2763_s30 + $0x138] sm:$0xf0]  ;;  %v2298_v3 = vld [vmem:[%s2763_s30 + $0x22c] sm:$0xf] }
  0xf4   : > { %1443 = vmatpush.bf16.msra.mxu0 %v1741_v34  ;;  %v1793_v34 = vor.u32 %v2246_v25, %v1790_v26  ;;  %v1998_v4 = vld [vmem:[%s2763_s30 + $0x238] sm:$0xf0]  ;;  %v2330_v6 = vld [vmem:[%s2763_s30 + $0x32c] sm:$0xf] }
  0xf5   : > { %1456 = vmatpush.bf16.msra.mxu1 %v1869_v37  ;;  %v2242_v37 = vld [vmem:[%s2763_s30 + $0x6c] sm:$0xf]  ;;  %v2126_v7 = vld [vmem:[%s2763_s30 + $0x338] sm:$0xf0] }
  0xf6   : > { %1469 = vmatpush.bf16.msra.mxu2 %v1997_v38  ;;  %v1774_v38 = vld [vmem:[%s2763_s30 + $0x78] sm:$0xf0]  ;;  %v2230_v11 = vld [vmem:[%s2763_s30 + $0xc] sm:$0xf] }
  0xf7   : > { %1482 = vmatpush.bf16.msra.mxu3 %v2125_v42  ;;  %v2306_v42 = vld [vmem:[%s2763_s30 + $0x26c] sm:$0xf]  ;;  %v1777_v46 = vor.u32 %v2242_v37, %v1774_v38  ;;  %v1726_v12 = vld [vmem:[%s2763_s30 + $0x18] sm:$0xf0] }
  0xf8   : > { %1444 = vmatpush.bf16.msra.mxu0 %v1725_v49  ;;  %v2033_v48 = vor.u32 %v2306_v42, %v2030_v43  ;;  %v2238_v49 = vld [vmem:[%s2763_s30 + $0x4c] sm:$0xf]  ;;  %v1854_v17 = vld [vmem:[%s2763_s30 + $0x118] sm:$0xf0] }
  0xf9   : > { %1457 = vmatpush.bf16.msra.mxu1 %v1853_v53  ;;  %v1886_v53 = vld [vmem:[%s2763_s30 + $0x158] sm:$0xf0]  ;;  %v2262_v13 = vld [vmem:[%s2763_s30 + $0x10c] sm:$0xf] }
  0xfa   : > { %1470 = vmatpush.bf16.msra.mxu2 %v1981_v54  ;;  %v2302_v54 = vld [vmem:[%s2763_s30 + $0x24c] sm:$0xf]  ;;  %v1982_v19 = vld [vmem:[%s2763_s30 + $0x218] sm:$0xf0] }
  0xfb   : > { %1483 = vmatpush.bf16.msra.mxu3 %v2109_v57  ;;  %1445 = vmatmul.bf16.vlgmr.msra.gmra.mxu0 %v2867_v14  ;;  %v2142_v57 = vld [vmem:[%s2763_s30 + $0x358] sm:$0xf0]  ;;  %v2294_v18 = vld [vmem:[%s2763_s30 + $0x20c] sm:$0xf] }
  0xfc   : > { %1489 = vmatpush.bf16.msrb.mxu0 %v1841_v58  ;;  %1458 = vmatmul.bf16.vlgmr.msra.gmra.mxu1 %v2869_v15  ;;  %v1761_v58 = vor.u32 %v2238_v49, %v1758_v50  ;;  %v2326_v20 = vld [vmem:[%s2763_s30 + $0x30c] sm:$0xf]  ;;  %v2110_v21 = vld [vmem:[%s2763_s30 + $0x318] sm:$0xf0] }
  0xfd   : > { %1502 = vmatpush.bf16.msrb.mxu1 %v1969_v59  ;;  %1471 = vmatmul.bf16.vlgmr.msra.gmra.mxu2 %v2854_v1  ;;  %v1889_v59 = vor.u32 %v2270_v51, %v1886_v53  ;;  %v2113_v25 = vor.u32 %v2326_v20, %v2110_v21 }
  0xfe   : > { %1515 = vmatpush.bf16.msrb.mxu2 %v2097_v60  ;;  %1484 = vmatmul.bf16.vlgmr.msra.gmra.mxu3 %v2861_v5  ;;  %v2017_v60 = vor.u32 %v2302_v54, %v2014_v55 }
  0xff   : > { %1528 = vmatpush.bf16.msrb.mxu3 %v2225_v0  ;;  %v2145_v0 = vor.u32 %v2334_v56, %v2142_v57 }
 0x100   : > { %1490 = vmatpush.bf16.msrb.mxu0 %v1825_v8  ;;  %v1745_v8 = vor.u32 %v2234_v61, %v1742_v62 }
 0x101   : > { %1503 = vmatpush.bf16.msrb.mxu1 %v1953_v9  ;;  %v1873_v9 = vor.u32 %v2266_v63, %v1870_v2 }
 0x102   : > { %1516 = vmatpush.bf16.msrb.mxu2 %v2081_v10  ;;  %v2001_v10 = vor.u32 %v2298_v3, %v1998_v4 }
 0x103   : > { %1529 = vmatpush.bf16.msrb.mxu3 %v2209_v16  ;;  %v2129_v16 = vor.u32 %v2330_v6, %v2126_v7 }
 0x104   : > { %1491 = vmatpush.bf16.msrb.mxu0 %v1809_v22  ;;  %v1729_v22 = vor.u32 %v2230_v11, %v1726_v12 }
 0x105   : > { %1504 = vmatpush.bf16.msrb.mxu1 %v1937_v23  ;;  %v1857_v23 = vor.u32 %v2262_v13, %v1854_v17 }
 0x106   : > { %1517 = vmatpush.bf16.msrb.mxu2 %v2065_v24  ;;  %v1985_v24 = vor.u32 %v2294_v18, %v1982_v19 }
 0x107   : > { %1530 = vmatpush.bf16.msrb.mxu3 %v2193_v28 }
 0x108   : > { %1492 = vmatpush.bf16.msrb.mxu0 %v1793_v34 }
 0x109   : > { %1505 = vmatpush.bf16.msrb.mxu1 %v1921_v35 }
 0x10a   : > { %1518 = vmatpush.bf16.msrb.mxu2 %v2049_v36 }
 0x10b   : > { %1531 = vmatpush.bf16.msrb.mxu3 %v2177_v40 }
 0x10c   : > { %1493 = vmatpush.bf16.msrb.mxu0 %v1777_v46 }
 0x10d   : > { %1506 = vmatpush.bf16.msrb.mxu1 %v1905_v47 }
 0x10e   : > { %1519 = vmatpush.bf16.msrb.mxu2 %v2033_v48 }
 0x10f   : > { %1532 = vmatpush.bf16.msrb.mxu3 %v2161_v52 }
 0x110   : > { %1494 = vmatpush.bf16.msrb.mxu0 %v1761_v58 }
 0x111   : > { %1507 = vmatpush.bf16.msrb.mxu1 %v1889_v59 }
 0x112   : > { %1520 = vmatpush.bf16.msrb.mxu2 %v2017_v60 }
 0x113   : > { %1533 = vmatpush.bf16.msrb.mxu3 %v2145_v0 }
 0x114   : > { %1495 = vmatpush.bf16.msrb.mxu0 %v1745_v8 }
 0x115   : > { %1508 = vmatpush.bf16.msrb.mxu1 %v1873_v9 }
 0x116   : > { %1521 = vmatpush.bf16.msrb.mxu2 %v2001_v10 }
 0x117   : > { %1534 = vmatpush.bf16.msrb.mxu3 %v2129_v16 }
 0x118   : > { %1496 = vmatpush.bf16.msrb.mxu0 %v1729_v22 }
 0x119   : > { %1509 = vmatpush.bf16.msrb.mxu1 %v1857_v23 }
 0x11a   : > { %1522 = vmatpush.bf16.msrb.mxu2 %v1985_v24 }
 0x11b   : > { %1535 = vmatpush.bf16.msrb.mxu3 %v2113_v25  ;;  %1497 = vmatmul.bf16.vlgmr.msrb.gmra.mxu0 %v2867_v14 }
 0x11c   : > { %1510 = vmatmul.bf16.vlgmr.msrb.gmra.mxu1 %v2869_v15  ;;  %v1556_v15 = vld [vmem:[%s525_s11] sm:$0xf] }
 0x11d   : > { %1523 = vmatmul.bf16.vlgmr.msrb.gmra.mxu2 %v2854_v1  ;;  %v1558_v37 = vperm.slane %v1556_v15, 0  ;;  %v1559_v41 = vperm.slane %v1556_v15, 1  ;;  %v1560_v3 = vperm.slane %v1556_v15, 2  ;;  %v1561_v8 = vperm.slane %v1556_v15, 3 }
 0x11e   : > { %1536 = vmatmul.bf16.vlgmr.msrb.gmra.mxu3 %v2861_v5 }
 0x13c   : > { %v1342_v26 = vpop.f32.mrf.mxu0 }
 0x13d   : > { %v1355_v27 = vpop.f32.mrf.mxu1 }
 0x13e   : > { %v1356_v34 = vadd.f32 %v1355_v27, %v1342_v26 }
 0x140   : > { %v1368_v28 = vpop.f32.mrf.mxu2 }
 0x141   : > { %v1381_v29 = vpop.f32.mrf.mxu3  ;;  %v1369_v14 = vadd.f32 %v1368_v28, %v1356_v34 }
 0x143   : > { %v1382_v36 = vadd.f32 %v1381_v29, %v1369_v14 }
 0x144   : > { %v1344_v30 = vpop.f32.mrf.mxu0 }
 0x145   : > { %v1357_v31 = vpop.f32.mrf.mxu1  ;;  %v1566_v42 = vadd.f32 %v1558_v37, %v1382_v36 }
 0x147   : > { %v1570_v47 = vmax.f32 %v1566_v42, 0.0 }
 0x148   : > { %v1370_v32 = vpop.f32.mrf.mxu2 }
 0x149   : > { %v1383_v33 = vpop.f32.mrf.mxu3 }
 0x158   : > { %v1394_v1 = vpop.f32.mrf.mxu0 }
 0x159   : > { %v1407_v5 = vpop.f32.mrf.mxu1 }
 0x15a   : > { %v1408_v35 = vadd.f32 %v1407_v5, %v1394_v1 }
 0x160   : > { %v1420_v38 = vpop.f32.mrf.mxu2  ;;  %v1396_v44 = vpop.f32.mrf.mxu0 }
 0x161   : > { %v1421_v39 = vadd.f32 %v1420_v38, %v1408_v35  ;;  %v1433_v40 = vpop.f32.mrf.mxu3  ;;  %v1409_v45 = vpop.f32.mrf.mxu1 }
 0x163   : > { %v1434_v43 = vadd.f32 %v1433_v40, %v1421_v39 }
 0x165   : > { %v1567_v46 = vadd.f32 %v1559_v41, %v1434_v43 }
 0x167   : > { %v1571_v48 = vmax.f32 %v1567_v46, 0.0 }
 0x168   : > { %v1422_v49 = vpop.f32.mrf.mxu2 }
 0x169   : > { %v1574_v50 = vpack.c.bf16 %v1571_v48, %v1570_v47  ;;  %v1435_v51 = vpop.f32.mrf.mxu3 }
 0x16b   : > { %1576 = vst [vmem:[%s3058_s19] sm:$0xff] %v1574_v50 }
 0x178   : > { %v1446_v52 = vpop.f32.mrf.mxu0 }
 0x179   : > { %v1459_v53 = vpop.f32.mrf.mxu1 }
 0x17a   : > { %v1460_v60 = vadd.f32 %v1459_v53, %v1446_v52 }
 0x180   : > { %v1472_v54 = vpop.f32.mrf.mxu2  ;;  %v1448_v56 = vpop.f32.mrf.mxu0 }
 0x181   : > { %v1485_v55 = vpop.f32.mrf.mxu3  ;;  %v1461_v57 = vpop.f32.mrf.mxu1  ;;  %v1473_v63 = vadd.f32 %v1472_v54, %v1460_v60 }
 0x183   : > { %v1486_v2 = vadd.f32 %v1485_v55, %v1473_v63 }
 0x185   : > { %v1568_v11 = vadd.f32 %v1560_v3, %v1486_v2 }
 0x187   : > { %v1572_v16 = vmax.f32 %v1568_v11, 0.0 }
 0x188   : > { %v1474_v58 = vpop.f32.mrf.mxu2 }
 0x189   : > { %v1487_v59 = vpop.f32.mrf.mxu3 }
 0x198   : > { %v1498_v61 = vpop.f32.mrf.mxu0 }
 0x199   : > { %v1511_v62 = vpop.f32.mrf.mxu1 }
 0x19a   : > { %v1512_v0 = vadd.f32 %v1511_v62, %v1498_v61 }
 0x1a0   : > { %v1524_v4 = vpop.f32.mrf.mxu2  ;;  %v1500_v9 = vpop.f32.mrf.mxu0 }
 0x1a1   : > { %v1525_v6 = vadd.f32 %v1524_v4, %v1512_v0  ;;  %v1537_v7 = vpop.f32.mrf.mxu3  ;;  %v1513_v10 = vpop.f32.mrf.mxu1 }
 0x1a3   : > { %v1538_v12 = vadd.f32 %v1537_v7, %v1525_v6 }
 0x1a5   : > { %v1569_v13 = vadd.f32 %v1561_v8, %v1538_v12 }
 0x1a7   : > { %v1573_v17 = vmax.f32 %v1569_v13, 0.0 }
 0x1a8   : > { %v1526_v18 = vpop.f32.mrf.mxu2 }
 0x1a9   : > { %v1575_v19 = vpack.c.bf16 %v1573_v17, %v1572_v16  ;;  %v1539_v20 = vpop.f32.mrf.mxu3 }
 0x1ab   : > { %1577 = vst [vmem:[%s3058_s19 + $0x8] sm:$0xff] %v1575_v19 }
 0x1ac PF: > { %s13_s16 = sadd.s32 1, %s2435_s16   ;;  %s3081_s12 = smov %s2423_s13 }
 0x1ad   : > { %p10_p10 = scmp.ge.s32.totalorder %s13_s16, 4   ;;  %s3082_s13 = smov %s2492_s20 }
 0x1ae   : > { %s3083_s14 = smov %s2431_s15  ;;  %s3084_s15 = smov %s3086_s17 }
 0x1af   :  { %12 = sbr.rel (!%p10_p10) target bundleno = 3 (0x3), region = 104 }

// kernel: homography_forward.19
= control target key start
LH: loop header
LB: loop body
LE: loop exit
PB: predicated region body
PF: predicated region fallthrough
CT: control target
= control target key end

     0   :  { %s1235_s1 = inlined_call_operand.vmem [shape: bf16[1024,128], index: 1, kind: input, shape index: {}]   ;;  %s1236_s0 = inlined_call_operand.vmem [shape: bf16[8,1024], index: 0, kind: input, shape index: {}]   ;;  %s1237_s2 = inlined_call_operand.vmem [shape: f32[1,128], index: 2, kind: input, shape index: {}]   ;;  %s1238_s3 = inlined_call_operand.vmem [shape: f32[8,128], index: 3, kind: output, shape index: {}]  }
   0x1   :  { %v947_v0 = vld [vmem:[%s1235_s1 + $0x38] sm:$0xff]  ;;  %v946_v4 = vld [vmem:[%s1235_s1 + $0x30] sm:$0xff]  ;;  %v945_v8 = vld [vmem:[%s1235_s1 + $0x28] sm:$0xff] }
   0x2   :  { %v955_v1 = vld [vmem:[%s1235_s1 + $0x78] sm:$0xff]  ;;  %564 = vmatpush.bf16.msra.mxu0 %v947_v0  ;;  %v954_v5 = vld [vmem:[%s1235_s1 + $0x70] sm:$0xff]  ;;  %v953_v9 = vld [vmem:[%s1235_s1 + $0x68] sm:$0xff] }
   0x3   :  { %v963_v2 = vld [vmem:[%s1235_s1 + $0xb8] sm:$0xff]  ;;  %577 = vmatpush.bf16.msra.mxu1 %v955_v1  ;;  %v962_v6 = vld [vmem:[%s1235_s1 + $0xb0] sm:$0xff]  ;;  %v961_v10 = vld [vmem:[%s1235_s1 + $0xa8] sm:$0xff] }
   0x4   :  { %v971_v3 = vld [vmem:[%s1235_s1 + $0xf8] sm:$0xff]  ;;  %590 = vmatpush.bf16.msra.mxu2 %v963_v2  ;;  %v970_v7 = vld [vmem:[%s1235_s1 + $0xf0] sm:$0xff]  ;;  %v969_v11 = vld [vmem:[%s1235_s1 + $0xe8] sm:$0xff] }
   0x5   :  { %603 = vmatpush.bf16.msra.mxu3 %v971_v3  ;;  %v944_v12 = vld [vmem:[%s1235_s1 + $0x20] sm:$0xff]  ;;  %v943_v16 = vld [vmem:[%s1235_s1 + $0x18] sm:$0xff]  ;;  %v942_v20 = vld [vmem:[%s1235_s1 + $0x10] sm:$0xff] }
   0x6   :  { %565 = vmatpush.bf16.msra.mxu0 %v946_v4  ;;  %v952_v13 = vld [vmem:[%s1235_s1 + $0x60] sm:$0xff]  ;;  %v951_v17 = vld [vmem:[%s1235_s1 + $0x58] sm:$0xff]  ;;  %v950_v21 = vld [vmem:[%s1235_s1 + $0x50] sm:$0xff] }
   0x7   :  { %578 = vmatpush.bf16.msra.mxu1 %v954_v5  ;;  %v960_v14 = vld [vmem:[%s1235_s1 + $0xa0] sm:$0xff]  ;;  %v959_v18 = vld [vmem:[%s1235_s1 + $0x98] sm:$0xff]  ;;  %v958_v22 = vld [vmem:[%s1235_s1 + $0x90] sm:$0xff] }
   0x8   :  { %591 = vmatpush.bf16.msra.mxu2 %v962_v6  ;;  %v968_v15 = vld [vmem:[%s1235_s1 + $0xe0] sm:$0xff]  ;;  %v967_v19 = vld [vmem:[%s1235_s1 + $0xd8] sm:$0xff]  ;;  %v966_v23 = vld [vmem:[%s1235_s1 + $0xd0] sm:$0xff] }
   0x9   :  { %604 = vmatpush.bf16.msra.mxu3 %v970_v7  ;;  %v941_v24 = vld [vmem:[%s1235_s1 + $0x8] sm:$0xff]  ;;  %v20_v29 = vld [vmem:[%s1236_s0] sm:$0xff]  ;;  %v979_v38 = vld [vmem:[%s1235_s1 + $0x138] sm:$0xff] }
   0xa   :  { %566 = vmatpush.bf16.msra.mxu0 %v945_v8  ;;  %v949_v25 = vld [vmem:[%s1235_s1 + $0x48] sm:$0xff]  ;;  %v940_v30 = vld [vmem:[%s1235_s1] sm:$0xff]  ;;  %v156_v36 = vunpack.c.l.b16 %v20_v29  ;;  %v157_v37 = vunpack.c.h.b16 %v20_v29  ;;  %v987_v39 = vld [vmem:[%s1235_s1 + $0x178] sm:$0xff] }
   0xb   :  { %579 = vmatpush.bf16.msra.mxu1 %v953_v9  ;;  %v957_v26 = vld [vmem:[%s1235_s1 + $0x88] sm:$0xff]  ;;  %v948_v31 = vld [vmem:[%s1235_s1 + $0x40] sm:$0xff]  ;;  %v995_v40 = vld [vmem:[%s1235_s1 + $0x1b8] sm:$0xff] }
   0xc   :  { %592 = vmatpush.bf16.msra.mxu2 %v961_v10  ;;  %v965_v27 = vld [vmem:[%s1235_s1 + $0xc8] sm:$0xff]  ;;  %v956_v34 = vld [vmem:[%s1235_s1 + $0x80] sm:$0xff]  ;;  %v1003_v41 = vld [vmem:[%s1235_s1 + $0x1f8] sm:$0xff]  ;;  %v164_v44 = vpack.c.b16 %v156_v36, %v156_v36  ;;  %v165_v45 = vpack.c.b16 %v157_v37, %v157_v37 }
   0xd   :  { %605 = vmatpush.bf16.msra.mxu3 %v969_v11  ;;  %v21_v28 = vld [vmem:[%s1236_s0 + $0x8] sm:$0xff]  ;;  %v964_v35 = vld [vmem:[%s1235_s1 + $0xc0] sm:$0xff]  ;;  %v978_v46 = vld [vmem:[%s1235_s1 + $0x130] sm:$0xff] }
   0xe   :  { %567 = vmatpush.bf16.msra.mxu0 %v944_v12  ;;  %v158_v32 = vunpack.c.l.b16 %v21_v28  ;;  %v159_v33 = vunpack.c.h.b16 %v21_v28  ;;  %v986_v47 = vld [vmem:[%s1235_s1 + $0x170] sm:$0xff]  ;;  %v977_v50 = vld [vmem:[%s1235_s1 + $0x128] sm:$0xff]  ;;  %v976_v54 = vld [vmem:[%s1235_s1 + $0x120] sm:$0xff] }
   0xf   :  { %580 = vmatpush.bf16.msra.mxu1 %v952_v13  ;;  %v994_v48 = vld [vmem:[%s1235_s1 + $0x1b0] sm:$0xff]  ;;  %v985_v51 = vld [vmem:[%s1235_s1 + $0x168] sm:$0xff]  ;;  %v984_v55 = vld [vmem:[%s1235_s1 + $0x160] sm:$0xff] }
  0x10   :  { %593 = vmatpush.bf16.msra.mxu2 %v960_v14  ;;  %v166_v42 = vpack.c.b16 %v158_v32, %v158_v32  ;;  %v167_v43 = vpack.c.b16 %v159_v33, %v159_v33  ;;  %v1002_v49 = vld [vmem:[%s1235_s1 + $0x1f0] sm:$0xff]  ;;  %v993_v52 = vld [vmem:[%s1235_s1 + $0x1a8] sm:$0xff]  ;;  %v992_v56 = vld [vmem:[%s1235_s1 + $0x1a0] sm:$0xff] }
  0x11   :  { %606 = vmatpush.bf16.msra.mxu3 %v968_v15  ;;  %v1001_v53 = vld [vmem:[%s1235_s1 + $0x1e8] sm:$0xff]  ;;  %v1000_v57 = vld [vmem:[%s1235_s1 + $0x1e0] sm:$0xff]  ;;  %v975_v58 = vld [vmem:[%s1235_s1 + $0x118] sm:$0xff] }
  0x12   :  { %568 = vmatpush.bf16.msra.mxu0 %v943_v16  ;;  %v983_v59 = vld [vmem:[%s1235_s1 + $0x158] sm:$0xff]  ;;  %v974_v62 = vld [vmem:[%s1235_s1 + $0x110] sm:$0xff]  ;;  %v973_v2 = vld [vmem:[%s1235_s1 + $0x108] sm:$0xff] }
  0x13   :  { %581 = vmatpush.bf16.msra.mxu1 %v951_v17  ;;  %v991_v60 = vld [vmem:[%s1235_s1 + $0x198] sm:$0xff]  ;;  %v982_v63 = vld [vmem:[%s1235_s1 + $0x150] sm:$0xff]  ;;  %v981_v3 = vld [vmem:[%s1235_s1 + $0x148] sm:$0xff] }
  0x14   :  { %594 = vmatpush.bf16.msra.mxu2 %v959_v18  ;;  %v999_v61 = vld [vmem:[%s1235_s1 + $0x1d8] sm:$0xff]  ;;  %v990_v0 = vld [vmem:[%s1235_s1 + $0x190] sm:$0xff]  ;;  %v989_v5 = vld [vmem:[%s1235_s1 + $0x188] sm:$0xff] }
  0x15   :  { %607 = vmatpush.bf16.msra.mxu3 %v967_v19  ;;  %v998_v1 = vld [vmem:[%s1235_s1 + $0x1d0] sm:$0xff]  ;;  %v997_v6 = vld [vmem:[%s1235_s1 + $0x1c8] sm:$0xff]  ;;  %v23_v7 = vld [vmem:[%s1236_s0 + $0x18] sm:$0xff] }
  0x16   :  { %569 = vmatpush.bf16.msra.mxu0 %v942_v20  ;;  %v22_v4 = vld [vmem:[%s1236_s0 + $0x10] sm:$0xff]  ;;  %v972_v10 = vld [vmem:[%s1235_s1 + $0x100] sm:$0xff]  ;;  %v162_v12 = vunpack.c.l.b16 %v23_v7  ;;  %v163_v13 = vunpack.c.h.b16 %v23_v7 }
  0x17   :  { %582 = vmatpush.bf16.msra.mxu1 %v950_v21  ;;  %v160_v8 = vunpack.c.l.b16 %v22_v4  ;;  %v161_v9 = vunpack.c.h.b16 %v22_v4  ;;  %v980_v11 = vld [vmem:[%s1235_s1 + $0x140] sm:$0xff] }
  0x18   :  { %595 = vmatpush.bf16.msra.mxu2 %v958_v22  ;;  %v988_v14 = vld [vmem:[%s1235_s1 + $0x180] sm:$0xff]  ;;  %v170_v18 = vpack.c.b16 %v162_v12, %v162_v12  ;;  %v171_v19 = vpack.c.b16 %v163_v13, %v163_v13 }
  0x19   :  { %608 = vmatpush.bf16.msra.mxu3 %v966_v23  ;;  %v996_v15 = vld [vmem:[%s1235_s1 + $0x1c0] sm:$0xff]  ;;  %v168_v16 = vpack.c.b16 %v160_v8, %v160_v8  ;;  %v169_v17 = vpack.c.b16 %v161_v9, %v161_v9 }
  0x1a   :  { %570 = vmatpush.bf16.msra.mxu0 %v941_v24 }
  0x1b   :  { %583 = vmatpush.bf16.msra.mxu1 %v949_v25 }
  0x1c   :  { %596 = vmatpush.bf16.msra.mxu2 %v957_v26 }
  0x1d   :  { %609 = vmatpush.bf16.msra.mxu3 %v965_v27 }
  0x1e   :  { %571 = vmatpush.bf16.msra.mxu0 %v940_v30 }
  0x1f   :  { %584 = vmatpush.bf16.msra.mxu1 %v948_v31 }
  0x20   :  { %597 = vmatpush.bf16.msra.mxu2 %v956_v34 }
  0x21   :  { %610 = vmatpush.bf16.msra.mxu3 %v964_v35  ;;  %572 = vmatmul.bf16.vlgmr.msra.gmra.mxu0 %v164_v44 }
  0x22   :  { %616 = vmatpush.bf16.msrb.mxu0 %v979_v38  ;;  %585 = vmatmul.bf16.vlgmr.msra.gmra.mxu1 %v165_v45  ;;  %v1004_v38 = vld [vmem:[%s1237_s2] ss:$0 sm:$0xff] }
  0x23   :  { %629 = vmatpush.bf16.msrb.mxu1 %v987_v39  ;;  %598 = vmatmul.bf16.vlgmr.msra.gmra.mxu2 %v166_v42 }
  0x24   :  { %642 = vmatpush.bf16.msrb.mxu2 %v995_v40  ;;  %611 = vmatmul.bf16.vlgmr.msra.gmra.mxu3 %v167_v43 }
  0x25   :  { %655 = vmatpush.bf16.msrb.mxu3 %v1003_v41 }
  0x26   :  { %617 = vmatpush.bf16.msrb.mxu0 %v978_v46 }
  0x27   :  { %630 = vmatpush.bf16.msrb.mxu1 %v986_v47 }
  0x28   :  { %643 = vmatpush.bf16.msrb.mxu2 %v994_v48 }
  0x29   :  { %656 = vmatpush.bf16.msrb.mxu3 %v1002_v49 }
  0x2a   :  { %618 = vmatpush.bf16.msrb.mxu0 %v977_v50 }
  0x2b   :  { %631 = vmatpush.bf16.msrb.mxu1 %v985_v51 }
  0x2c   :  { %644 = vmatpush.bf16.msrb.mxu2 %v993_v52 }
  0x2d   :  { %657 = vmatpush.bf16.msrb.mxu3 %v1001_v53 }
  0x2e   :  { %619 = vmatpush.bf16.msrb.mxu0 %v976_v54 }
  0x2f   :  { %632 = vmatpush.bf16.msrb.mxu1 %v984_v55 }
  0x30   :  { %645 = vmatpush.bf16.msrb.mxu2 %v992_v56 }
  0x31   :  { %658 = vmatpush.bf16.msrb.mxu3 %v1000_v57 }
  0x32   :  { %620 = vmatpush.bf16.msrb.mxu0 %v975_v58 }
  0x33   :  { %633 = vmatpush.bf16.msrb.mxu1 %v983_v59 }
  0x34   :  { %646 = vmatpush.bf16.msrb.mxu2 %v991_v60 }
  0x35   :  { %659 = vmatpush.bf16.msrb.mxu3 %v999_v61 }
  0x36   :  { %621 = vmatpush.bf16.msrb.mxu0 %v974_v62 }
  0x37   :  { %634 = vmatpush.bf16.msrb.mxu1 %v982_v63 }
  0x38   :  { %647 = vmatpush.bf16.msrb.mxu2 %v990_v0 }
  0x39   :  { %660 = vmatpush.bf16.msrb.mxu3 %v998_v1 }
  0x3a   :  { %622 = vmatpush.bf16.msrb.mxu0 %v973_v2 }
  0x3b   :  { %635 = vmatpush.bf16.msrb.mxu1 %v981_v3 }
  0x3c   :  { %648 = vmatpush.bf16.msrb.mxu2 %v989_v5 }
  0x3d   :  { %661 = vmatpush.bf16.msrb.mxu3 %v997_v6 }
  0x3e   :  { %623 = vmatpush.bf16.msrb.mxu0 %v972_v10 }
  0x3f   :  { %636 = vmatpush.bf16.msrb.mxu1 %v980_v11 }
  0x40   :  { %649 = vmatpush.bf16.msrb.mxu2 %v988_v14 }
  0x41   :  { %662 = vmatpush.bf16.msrb.mxu3 %v996_v15  ;;  %624 = vmatmul.bf16.vlgmr.msrb.gmra.mxu0 %v168_v16 }
  0x42   :  { %637 = vmatmul.bf16.vlgmr.msrb.gmra.mxu1 %v169_v17 }
  0x43   :  { %650 = vmatmul.bf16.vlgmr.msrb.gmra.mxu2 %v170_v18 }
  0x44   :  { %663 = vmatmul.bf16.vlgmr.msrb.gmra.mxu3 %v171_v19 }
  0x9e   :  { %v573_v20 = vpop.f32.mrf.mxu0 }
  0x9f   :  { %v586_v21 = vpop.f32.mrf.mxu1 }
  0xa0   :  { %v587_v28 = vadd.f32 %v586_v21, %v573_v20 }
  0xa6   :  { %v599_v22 = vpop.f32.mrf.mxu2  ;;  %v575_v24 = vpop.f32.mrf.mxu0 }
  0xa7   :  { %v612_v23 = vpop.f32.mrf.mxu3  ;;  %v588_v25 = vpop.f32.mrf.mxu1  ;;  %v600_v29 = vadd.f32 %v599_v22, %v587_v28 }
  0xa9   :  { %v613_v30 = vadd.f32 %v612_v23, %v600_v29 }
  0xae   :  { %v601_v26 = vpop.f32.mrf.mxu2 }
  0xaf   :  { %v614_v27 = vpop.f32.mrf.mxu3 }
  0xbe   :  { %v625_v31 = vpop.f32.mrf.mxu0 }
  0xbf   :  { %v638_v32 = vpop.f32.mrf.mxu1  ;;  %v626_v33 = vadd.f32 %v625_v31, %v613_v30 }
  0xc1   :  { %v639_v34 = vadd.f32 %v638_v32, %v626_v33 }
  0xc6   :  { %v651_v35 = vpop.f32.mrf.mxu2  ;;  %v627_v39 = vpop.f32.mrf.mxu0 }
  0xc7   :  { %v664_v36 = vpop.f32.mrf.mxu3  ;;  %v652_v37 = vadd.f32 %v651_v35, %v639_v34  ;;  %v640_v40 = vpop.f32.mrf.mxu1 }
  0xc9   :  { %v665_v41 = vadd.f32 %v664_v36, %v652_v37 }
  0xcb   :  { %v678_v42 = vadd.f32 %v1004_v38, %v665_v41 }
  0xcd   :  { %679 = vst [vmem:[%s1238_s3] sm:$0xff] %v678_v42 }
  0xce   :  { %v653_v43 = vpop.f32.mrf.mxu2 }
  0xcf   :  { %v666_v44 = vpop.f32.mrf.mxu3 }

</bundles_post_ra>
